<compile_context>
chip_gen: v7x
topology: tpu7x:2x2x1
jax: 0.10.0
libtpu: 0.0.40
codegen_flags: <defaults>
</compile_context>

<pallas_src>
import math
import functools

import jax
import jax.numpy as jnp
from jax.experimental import pallas as pl
from jax.experimental.pallas import tpu as pltpu

MAX_SEQ_LENGTH = 100   # output classes of the last linear layer
TOTAL_WORD_NUM = 100   # embedding vocabulary size


# ----------------------------- in-kernel helpers -----------------------------

def _layer_norm(x):
    # (x - mean) / std with torch.std default (unbiased, ddof=1), no eps.
    d = x.shape[-1]
    mean = jnp.mean(x, axis=-1, keepdims=True)
    diff = x - mean
    var = jnp.sum(diff * diff, axis=-1, keepdims=True) * (1.0 / (d - 1))
    return diff * jax.lax.rsqrt(var)


def _mha(q_all, k_all, v_all, mask_col, *, batch, seq, head_num):
    """Multi-head attention on lane-dense (N, D) values; returns an (N, D) value.

    The 1/sqrt(dh) score scale is pre-folded into the Q projection weights, so
    no scaling happens here.  mask_col is (N, 1) float (1.0 == masked query
    row) and reproduces the reference's masked_fill(mask, 0) on scores BEFORE
    softmax (keys are never masked -- faithful to the reference quirk).
    """
    d = q_all.shape[-1]
    dh = d // head_num
    outs = []
    for b in range(batch):
        rows = slice(b * seq, (b + 1) * seq)
        # Head-stacked (H, S, dh) operands -> one batched dot_general per matmul
        q3 = jnp.stack([q_all[rows, h * dh:(h + 1) * dh] for h in range(head_num)], axis=0)
        k3 = jnp.stack([k_all[rows, h * dh:(h + 1) * dh] for h in range(head_num)], axis=0)
        v3 = jnp.stack([v_all[rows, h * dh:(h + 1) * dh] for h in range(head_num)], axis=0)
        s = jnp.einsum('hqd,hkd->hqk', q3, k3, preferred_element_type=jnp.float32)
        if mask_col is not None:
            m_b = mask_col[rows, :]                         # (S, 1), applied once per batch
            s = jnp.where(m_b[None, :, :] > 0.5, 0.0, s)    # zero masked QUERY rows
        s = s - jnp.max(s, axis=-1, keepdims=True)
        p = jnp.exp(s)
        p = p * pl.reciprocal(jnp.sum(p, axis=-1, keepdims=True), approx=True)
        o3 = jnp.einsum('hqk,hkd->hqd', p, v3, preferred_element_type=jnp.float32)
        outs.append(jnp.concatenate([o3[h] for h in range(head_num)], axis=-1))  # (S, D)
    return jnp.concatenate(outs, axis=0)        # (N, D), single lane-dense value


# ----------------------------- fused forward kernel --------------------------

def _fused_forward_kernel(*refs, batch, seq, head_num, hidden,
                          encoder_num, decoder_num, valid_out):
    pos = 0

    def take(n):
        nonlocal pos
        out = refs[pos:pos + n]
        pos += n
        return out

    enc_x_ref, dec_x_ref, mask_ref = take(3)
    enc_ws = [take(6) for _ in range(encoder_num)]
    dec_ws = [take(10) for _ in range(decoder_num)]
    wlast_ref, blast_ref = take(2)
    (out_ref,) = take(1)

    mm = functools.partial(_mha, batch=batch, seq=seq, head_num=head_num)
    m = mask_ref[...]                                  # (N, 1), 1.0 == masked

    # ------------------------------ encoder stack ------------------------------
    enc = enc_x_ref[...]
    for wqkv, bqkv, w1, b1, w2, b2 in enc_ws:
        qkv = jnp.dot(enc, wqkv[...], preferred_element_type=jnp.float32) + bqkv[...]
        attn = mm(qkv[:, :hidden], qkv[:, hidden:2 * hidden], qkv[:, 2 * hidden:], None)
        r1 = enc + _layer_norm(attn)
        hh = jnp.maximum(jnp.dot(r1, w1[...], preferred_element_type=jnp.float32) + b1[...], 0.0)
        ff = jnp.dot(hh, w2[...], preferred_element_type=jnp.float32) + b2[...]
        enc = r1 + _layer_norm(ff)

    # ------------------------------ decoder stack ------------------------------
    dec = dec_x_ref[...] * (1.0 - m)        # masked_fill(mask, 0) on embeddings
    for (wqkv1, bqkv1, wqk2, bqk2, wv2, bv2, w1, b1, w2, b2) in dec_ws:
        # masked self-attention
        qkv = jnp.dot(dec, wqkv1[...], preferred_element_type=jnp.float32) + bqkv1[...]
        attn = mm(qkv[:, :hidden], qkv[:, hidden:2 * hidden], qkv[:, 2 * hidden:], m)
        r1 = dec + _layer_norm(attn)
        # cross-attention, faithful to reference: q = k = encoder output, v = r1
        qk = jnp.dot(enc, wqk2[...], preferred_element_type=jnp.float32) + bqk2[...]
        v2 = jnp.dot(r1, wv2[...], preferred_element_type=jnp.float32) + bv2[...]
        attn2 = mm(qk[:, :hidden], qk[:, hidden:], v2, m)
        r2 = r1 + _layer_norm(attn2)
        # feed-forward
        hh = jnp.maximum(jnp.dot(r2, w1[...], preferred_element_type=jnp.float32) + b1[...], 0.0)
        ff = jnp.dot(hh, w2[...], preferred_element_type=jnp.float32) + b2[...]
        dec = r2 + _layer_norm(ff)

    # ----------------------- final classifier + softmax ------------------------
    logits = jnp.dot(dec, wlast_ref[...], preferred_element_type=jnp.float32) + blast_ref[...]
    n, dpad = logits.shape
    col = jax.lax.broadcasted_iota(jnp.int32, (n, dpad), 1)
    logits = jnp.where(col < valid_out, logits, -jnp.inf)   # padded lanes -> 0 prob
    logits = logits - jnp.max(logits, axis=-1, keepdims=True)
    e = jnp.exp(logits)
    # exact reciprocal here so output probabilities sum to 1 (parity with torch)
    out_ref[...] = e / jnp.sum(e, axis=-1, keepdims=True)


# ----------------------------- weight preparation -----------------------------

def prepare_transformer(params, *, head_num):
    """Fuse / transpose / pad all weights ONCE (not per forward call)."""
    hidden = params["in_embed"].shape[1]
    dh = hidden // head_num
    scale = 1.0 / math.sqrt(dh)        # folded into the Q projection

    def fuse_qkv(mha):
        wqkv = jnp.concatenate([mha["wq"] * scale, mha["wk"], mha["wv"]], axis=0).T  # (D, 3D)
        bqkv = jnp.concatenate([mha["bq"] * scale, mha["bk"], mha["bv"]]).reshape(1, 3 * hidden)
        return wqkv, bqkv

    def ffn_w(ffn):
        d4 = ffn["w1"].shape[0]
        return (ffn["w1"].T, ffn["b1"].reshape(1, d4),
                ffn["w2"].T, ffn["b2"].reshape(1, hidden))

    enc_layers = []
    for p in params["encoders"]:
        wqkv, bqkv = fuse_qkv(p["mha"])
        enc_layers.append((wqkv, bqkv) + ffn_w(p["ffn"]))

    dec_layers = []
    for p in params["decoders"]:
        wqkv1, bqkv1 = fuse_qkv(p["masked_mha"])
        m2 = p["mha"]
        wqk2 = jnp.concatenate([m2["wq"] * scale, m2["wk"]], axis=0).T               # (D, 2D)
        bqk2 = jnp.concatenate([m2["bq"] * scale, m2["bk"]]).reshape(1, 2 * hidden)
        wv2 = m2["wv"].T
        bv2 = m2["bv"].reshape(1, hidden)
        dec_layers.append((wqkv1, bqkv1, wqk2, bqk2, wv2, bv2) + ffn_w(p["ffn"]))

    dpad = ((MAX_SEQ_LENGTH + 127) // 128) * 128       # lane-dense classifier output
    w_last = jnp.zeros((hidden, dpad), jnp.float32).at[:, :MAX_SEQ_LENGTH].set(params["last_w"].T)
    b_last = jnp.zeros((1, dpad), jnp.float32).at[0, :MAX_SEQ_LENGTH].set(params["last_b"])

    return {"in_embed": params["in_embed"], "out_embed": params["out_embed"],
            "enc_layers": enc_layers, "dec_layers": dec_layers,
            "w_last": w_last, "b_last": b_last}


# ----------------------------- model composition ------------------------------

def position_encoding(pos_max, hidden_dim):
    position = jnp.arange(pos_max, dtype=jnp.float32)[:, None]
    div_term = jnp.power(
        10000.0, jnp.arange(0, hidden_dim, 2, dtype=jnp.float32) / hidden_dim)
    pe = jnp.zeros((pos_max, hidden_dim), jnp.float32)
    pe = pe.at[:, 0::2].set(jnp.sin(position / div_term))
    pe = pe.at[:, 1::2].set(jnp.cos(position / div_term))
    return pe[None]          # (1, pos_max, hidden_dim)


def transformer_forward(prep, input_ids, output_ids, mask, *, head_num):
    hidden = prep["in_embed"].shape[1]
    b, s_enc = input_ids.shape
    _, s_dec = output_ids.shape
    assert s_enc == s_dec, "reference cross-attention requires matching seq lengths"

    # TODO(synk): embedding gathers + positional-encoding table stay in plain
    # JAX (no benefit from a Pallas gather at these sizes).
    enc_x = jnp.take(prep["in_embed"], input_ids, axis=0) + position_encoding(s_enc, hidden)
    dec_x = jnp.take(prep["out_embed"], output_ids, axis=0) + position_encoding(s_dec, hidden)
    enc_x = enc_x.reshape(b * s_enc, hidden)                   # lane-dense (N, D)
    dec_x = dec_x.reshape(b * s_dec, hidden)
    mask_col = mask.astype(jnp.float32).reshape(b * s_dec, 1)  # query-row mask

    flat = [enc_x, dec_x, mask_col]
    for lw in prep["enc_layers"]:
        flat.extend(lw)
    for lw in prep["dec_layers"]:
        flat.extend(lw)
    flat.extend([prep["w_last"], prep["b_last"]])

    dpad = prep["w_last"].shape[1]
    kernel = functools.partial(
        _fused_forward_kernel, batch=b, seq=s_enc, head_num=head_num,
        hidden=hidden, encoder_num=len(prep["enc_layers"]),
        decoder_num=len(prep["dec_layers"]), valid_out=MAX_SEQ_LENGTH)

    vmem = pl.BlockSpec(memory_space=pltpu.MemorySpace.VMEM)   # fully resident, no grid
    probs = pl.pallas_call(
        kernel,
        out_shape=jax.ShapeDtypeStruct((b * s_dec, dpad), jnp.float32),
        in_specs=[vmem] * len(flat),
        out_specs=vmem,
    )(*flat)
    return probs[:, :MAX_SEQ_LENGTH].reshape(b, s_dec, MAX_SEQ_LENGTH)


# ----------------------------- parameter init --------------------------------

def _init_linear(key, din, dout):
    k1, k2 = jax.random.split(key)
    bound = 1.0 / math.sqrt(din)
    w = jax.random.uniform(k1, (dout, din), jnp.float32, -bound, bound)
    b = jax.random.uniform(k2, (dout,), jnp.float32, -bound, bound)
    return w, b


def _init_mha(key, d):
    ks = jax.random.split(key, 3)
    wq, bq = _init_linear(ks[0], d, d)
    wk, bk = _init_linear(ks[1], d, d)
    wv, bv = _init_linear(ks[2], d, d)
    # NOTE: the reference MultiHeadAttention defines output_embed but never uses it.
    return {"wq": wq, "bq": bq, "wk": wk, "bk": bk, "wv": wv, "bv": bv}


def _init_ffn(key, d):
    k1, k2 = jax.random.split(key)
    w1, b1 = _init_linear(k1, d, 4 * d)
    w2, b2 = _init_linear(k2, 4 * d, d)
    return {"w1": w1, "b1": b1, "w2": w2, "b2": b2}


def init_transformer_params(key, encoder_num, decoder_num, hidden_dim):
    keys = jax.random.split(key, 4 + encoder_num + decoder_num)
    params = {
        "in_embed": jax.random.normal(keys[0], (TOTAL_WORD_NUM, hidden_dim), jnp.float32),
        "out_embed": jax.random.normal(keys[1], (TOTAL_WORD_NUM, hidden_dim), jnp.float32),
    }
    lw, lb = _init_linear(keys[2], hidden_dim, MAX_SEQ_LENGTH)
    params["last_w"], params["last_b"] = lw, lb
    encoders = []
    for i in range(encoder_num):
        k1, k2 = jax.random.split(keys[3 + i])
        encoders.append({"mha": _init_mha(k1, hidden_dim),
                         "ffn": _init_ffn(k2, hidden_dim)})
    decoders = []
    for i in range(decoder_num):
        k1, k2, k3 = jax.random.split(keys[3 + encoder_num + i], 3)
        decoders.append({"masked_mha": _init_mha(k1, hidden_dim),
                         "mha": _init_mha(k2, hidden_dim),
                         "ffn": _init_ffn(k3, hidden_dim)})
    params["encoders"] = encoders
    params["decoders"] = decoders
    return params


# ----------------------------------- main ------------------------------------

if __name__ == "__main__":
    B, S = 2, 8               # batch, sequence length (enc seq == dec seq, required by ref)
    hidden_dim = 64
    head_num = 8
    encoder_num = 2
    decoder_num = 2

    root = jax.random.PRNGKey(0)
    k_params, k_in, k_out = jax.random.split(root, 3)

    params = init_transformer_params(k_params, encoder_num, decoder_num, hidden_dim)
    prep = prepare_transformer(params, head_num=head_num)     # one-time weight fusion

    input_ids = jax.random.randint(k_in, (B, S), 0, TOTAL_WORD_NUM)
    output_ids = jax.random.randint(k_out, (B, S), 0, TOTAL_WORD_NUM)
    # deterministic padding mask: True == masked position in decoder
    mask = jnp.arange(S)[None, :] >= jnp.array([[6], [5]])

    fwd = jax.jit(functools.partial(transformer_forward, head_num=head_num))
    out = fwd(prep, input_ids, output_ids, mask)
    out = jax.block_until_ready(out)

    assert out.shape == (B, S, MAX_SEQ_LENGTH)
    assert bool(jnp.all(jnp.isfinite(out)))
    print("KERNEL_OK")
</pallas_src>

<mosaic_0001>
module attributes {stable_mosaic.version = 11 : i64} {
  func.func @_fused_forward_kernel(%arg0: memref<16x64xf32, #tpu.memory_space<vmem>>, %arg1: memref<16x64xf32, #tpu.memory_space<vmem>>, %arg2: memref<16x1xf32, #tpu.memory_space<vmem>>, %arg3: memref<64x192xf32, #tpu.memory_space<vmem>>, %arg4: memref<1x192xf32, #tpu.memory_space<vmem>>, %arg5: memref<64x256xf32, #tpu.memory_space<vmem>>, %arg6: memref<1x256xf32, #tpu.memory_space<vmem>>, %arg7: memref<256x64xf32, #tpu.memory_space<vmem>>, %arg8: memref<1x64xf32, #tpu.memory_space<vmem>>, %arg9: memref<64x192xf32, #tpu.memory_space<vmem>>, %arg10: memref<1x192xf32, #tpu.memory_space<vmem>>, %arg11: memref<64x256xf32, #tpu.memory_space<vmem>>, %arg12: memref<1x256xf32, #tpu.memory_space<vmem>>, %arg13: memref<256x64xf32, #tpu.memory_space<vmem>>, %arg14: memref<1x64xf32, #tpu.memory_space<vmem>>, %arg15: memref<64x192xf32, #tpu.memory_space<vmem>>, %arg16: memref<1x192xf32, #tpu.memory_space<vmem>>, %arg17: memref<64x128xf32, #tpu.memory_space<vmem>>, %arg18: memref<1x128xf32, #tpu.memory_space<vmem>>, %arg19: memref<64x64xf32, #tpu.memory_space<vmem>>, %arg20: memref<1x64xf32, #tpu.memory_space<vmem>>, %arg21: memref<64x256xf32, #tpu.memory_space<vmem>>, %arg22: memref<1x256xf32, #tpu.memory_space<vmem>>, %arg23: memref<256x64xf32, #tpu.memory_space<vmem>>, %arg24: memref<1x64xf32, #tpu.memory_space<vmem>>, %arg25: memref<64x192xf32, #tpu.memory_space<vmem>>, %arg26: memref<1x192xf32, #tpu.memory_space<vmem>>, %arg27: memref<64x128xf32, #tpu.memory_space<vmem>>, %arg28: memref<1x128xf32, #tpu.memory_space<vmem>>, %arg29: memref<64x64xf32, #tpu.memory_space<vmem>>, %arg30: memref<1x64xf32, #tpu.memory_space<vmem>>, %arg31: memref<64x256xf32, #tpu.memory_space<vmem>>, %arg32: memref<1x256xf32, #tpu.memory_space<vmem>>, %arg33: memref<256x64xf32, #tpu.memory_space<vmem>>, %arg34: memref<1x64xf32, #tpu.memory_space<vmem>>, %arg35: memref<64x128xf32, #tpu.memory_space<vmem>>, %arg36: memref<1x128xf32, #tpu.memory_space<vmem>>, %arg37: memref<16x128xf32, #tpu.memory_space<vmem>>) attributes {dimension_semantics = [], scalar_prefetch = 0 : i64, scratch_operands = 0 : i64, tpu.core_type = #tpu.core_type<tc>} {
    %c0 = arith.constant 0 : index
    %c0_0 = arith.constant 0 : index
    %0 = vector.load %arg2[%c0, %c0_0] : memref<16x1xf32, #tpu.memory_space<vmem>>, vector<16x1xf32>
    %c0_1 = arith.constant 0 : index
    %c0_2 = arith.constant 0 : index
    %1 = vector.load %arg0[%c0_1, %c0_2] : memref<16x64xf32, #tpu.memory_space<vmem>>, vector<16x64xf32>
    %c0_3 = arith.constant 0 : index
    %c0_4 = arith.constant 0 : index
    %2 = vector.load %arg3[%c0_3, %c0_4] : memref<64x192xf32, #tpu.memory_space<vmem>>, vector<64x192xf32>
    %cst = arith.constant dense<0.000000e+00> : vector<16x192xf32>
    %3 = tpu.matmul %1, %2, %cst {dimension_numbers = #tpu.dot_dimension_numbers<[1], [0], [0], [1], [0, 0, 1, 1], [], []>} : vector<16x64xf32>, vector<64x192xf32>, vector<16x192xf32> -> vector<16x192xf32>
    %c0_5 = arith.constant 0 : index
    %c0_6 = arith.constant 0 : index
    %4 = vector.load %arg4[%c0_5, %c0_6] : memref<1x192xf32, #tpu.memory_space<vmem>>, vector<1x192xf32>
    %5 = vector.broadcast %4 : vector<1x192xf32> to vector<16x192xf32>
    %6 = arith.addf %3, %5 : vector<16x192xf32>
    %7 = vector.extract_strided_slice %6 {offsets = [0, 0], sizes = [16, 64], strides = [1, 1]} : vector<16x192xf32> to vector<16x64xf32>
    %8 = vector.extract_strided_slice %6 {offsets = [0, 64], sizes = [16, 64], strides = [1, 1]} : vector<16x192xf32> to vector<16x64xf32>
    %9 = vector.extract_strided_slice %6 {offsets = [0, 128], sizes = [16, 64], strides = [1, 1]} : vector<16x192xf32> to vector<16x64xf32>
    %10 = vector.extract_strided_slice %7 {offsets = [0, 0], sizes = [8, 8], strides = [1, 1]} : vector<16x64xf32> to vector<8x8xf32>
    %11 = vector.extract_strided_slice %7 {offsets = [0, 8], sizes = [8, 8], strides = [1, 1]} : vector<16x64xf32> to vector<8x8xf32>
    %12 = vector.extract_strided_slice %7 {offsets = [0, 16], sizes = [8, 8], strides = [1, 1]} : vector<16x64xf32> to vector<8x8xf32>
    %13 = vector.extract_strided_slice %7 {offsets = [0, 24], sizes = [8, 8], strides = [1, 1]} : vector<16x64xf32> to vector<8x8xf32>
    %14 = vector.extract_strided_slice %7 {offsets = [0, 32], sizes = [8, 8], strides = [1, 1]} : vector<16x64xf32> to vector<8x8xf32>
    %15 = vector.extract_strided_slice %7 {offsets = [0, 40], sizes = [8, 8], strides = [1, 1]} : vector<16x64xf32> to vector<8x8xf32>
    %16 = vector.extract_strided_slice %7 {offsets = [0, 48], sizes = [8, 8], strides = [1, 1]} : vector<16x64xf32> to vector<8x8xf32>
    %17 = vector.extract_strided_slice %7 {offsets = [0, 56], sizes = [8, 8], strides = [1, 1]} : vector<16x64xf32> to vector<8x8xf32>
    %18 = vector.shape_cast %10 : vector<8x8xf32> to vector<1x8x8xf32>
    %19 = vector.shape_cast %11 : vector<8x8xf32> to vector<1x8x8xf32>
    %20 = vector.shape_cast %12 : vector<8x8xf32> to vector<1x8x8xf32>
    %21 = vector.shape_cast %13 : vector<8x8xf32> to vector<1x8x8xf32>
    %22 = vector.shape_cast %14 : vector<8x8xf32> to vector<1x8x8xf32>
    %23 = vector.shape_cast %15 : vector<8x8xf32> to vector<1x8x8xf32>
    %24 = vector.shape_cast %16 : vector<8x8xf32> to vector<1x8x8xf32>
    %25 = vector.shape_cast %17 : vector<8x8xf32> to vector<1x8x8xf32>
    %26 = tpu.concatenate %18, %19, %20, %21, %22, %23, %24, %25 in 0 : vector<1x8x8xf32>, vector<1x8x8xf32>, vector<1x8x8xf32>, vector<1x8x8xf32>, vector<1x8x8xf32>, vector<1x8x8xf32>, vector<1x8x8xf32>, vector<1x8x8xf32> -> vector<8x8x8xf32>
    %27 = vector.extract_strided_slice %8 {offsets = [0, 0], sizes = [8, 8], strides = [1, 1]} : vector<16x64xf32> to vector<8x8xf32>
    %28 = vector.extract_strided_slice %8 {offsets = [0, 8], sizes = [8, 8], strides = [1, 1]} : vector<16x64xf32> to vector<8x8xf32>
    %29 = vector.extract_strided_slice %8 {offsets = [0, 16], sizes = [8, 8], strides = [1, 1]} : vector<16x64xf32> to vector<8x8xf32>
    %30 = vector.extract_strided_slice %8 {offsets = [0, 24], sizes = [8, 8], strides = [1, 1]} : vector<16x64xf32> to vector<8x8xf32>
    %31 = vector.extract_strided_slice %8 {offsets = [0, 32], sizes = [8, 8], strides = [1, 1]} : vector<16x64xf32> to vector<8x8xf32>
    %32 = vector.extract_strided_slice %8 {offsets = [0, 40], sizes = [8, 8], strides = [1, 1]} : vector<16x64xf32> to vector<8x8xf32>
    %33 = vector.extract_strided_slice %8 {offsets = [0, 48], sizes = [8, 8], strides = [1, 1]} : vector<16x64xf32> to vector<8x8xf32>
    %34 = vector.extract_strided_slice %8 {offsets = [0, 56], sizes = [8, 8], strides = [1, 1]} : vector<16x64xf32> to vector<8x8xf32>
    %35 = vector.shape_cast %27 : vector<8x8xf32> to vector<1x8x8xf32>
    %36 = vector.shape_cast %28 : vector<8x8xf32> to vector<1x8x8xf32>
    %37 = vector.shape_cast %29 : vector<8x8xf32> to vector<1x8x8xf32>
    %38 = vector.shape_cast %30 : vector<8x8xf32> to vector<1x8x8xf32>
    %39 = vector.shape_cast %31 : vector<8x8xf32> to vector<1x8x8xf32>
    %40 = vector.shape_cast %32 : vector<8x8xf32> to vector<1x8x8xf32>
    %41 = vector.shape_cast %33 : vector<8x8xf32> to vector<1x8x8xf32>
    %42 = vector.shape_cast %34 : vector<8x8xf32> to vector<1x8x8xf32>
    %43 = tpu.concatenate %35, %36, %37, %38, %39, %40, %41, %42 in 0 : vector<1x8x8xf32>, vector<1x8x8xf32>, vector<1x8x8xf32>, vector<1x8x8xf32>, vector<1x8x8xf32>, vector<1x8x8xf32>, vector<1x8x8xf32>, vector<1x8x8xf32> -> vector<8x8x8xf32>
    %44 = vector.extract_strided_slice %9 {offsets = [0, 0], sizes = [8, 8], strides = [1, 1]} : vector<16x64xf32> to vector<8x8xf32>
    %45 = vector.extract_strided_slice %9 {offsets = [0, 8], sizes = [8, 8], strides = [1, 1]} : vector<16x64xf32> to vector<8x8xf32>
    %46 = vector.extract_strided_slice %9 {offsets = [0, 16], sizes = [8, 8], strides = [1, 1]} : vector<16x64xf32> to vector<8x8xf32>
    %47 = vector.extract_strided_slice %9 {offsets = [0, 24], sizes = [8, 8], strides = [1, 1]} : vector<16x64xf32> to vector<8x8xf32>
    %48 = vector.extract_strided_slice %9 {offsets = [0, 32], sizes = [8, 8], strides = [1, 1]} : vector<16x64xf32> to vector<8x8xf32>
    %49 = vector.extract_strided_slice %9 {offsets = [0, 40], sizes = [8, 8], strides = [1, 1]} : vector<16x64xf32> to vector<8x8xf32>
    %50 = vector.extract_strided_slice %9 {offsets = [0, 48], sizes = [8, 8], strides = [1, 1]} : vector<16x64xf32> to vector<8x8xf32>
    %51 = vector.extract_strided_slice %9 {offsets = [0, 56], sizes = [8, 8], strides = [1, 1]} : vector<16x64xf32> to vector<8x8xf32>
    %52 = vector.shape_cast %44 : vector<8x8xf32> to vector<1x8x8xf32>
    %53 = vector.shape_cast %45 : vector<8x8xf32> to vector<1x8x8xf32>
    %54 = vector.shape_cast %46 : vector<8x8xf32> to vector<1x8x8xf32>
    %55 = vector.shape_cast %47 : vector<8x8xf32> to vector<1x8x8xf32>
    %56 = vector.shape_cast %48 : vector<8x8xf32> to vector<1x8x8xf32>
    %57 = vector.shape_cast %49 : vector<8x8xf32> to vector<1x8x8xf32>
    %58 = vector.shape_cast %50 : vector<8x8xf32> to vector<1x8x8xf32>
    %59 = vector.shape_cast %51 : vector<8x8xf32> to vector<1x8x8xf32>
    %60 = tpu.concatenate %52, %53, %54, %55, %56, %57, %58, %59 in 0 : vector<1x8x8xf32>, vector<1x8x8xf32>, vector<1x8x8xf32>, vector<1x8x8xf32>, vector<1x8x8xf32>, vector<1x8x8xf32>, vector<1x8x8xf32>, vector<1x8x8xf32> -> vector<8x8x8xf32>
    "tpu.trace_start"() <{level = 10 : i32, message = "hqd,hkd->hqk"}> : () -> ()
    %cst_7 = arith.constant dense<0.000000e+00> : vector<8x8x8xf32>
    %61 = tpu.matmul %26, %43, %cst_7 {dimension_numbers = #tpu.dot_dimension_numbers<[2], [2], [1], [1], [0, 0, 0, 1, 1, 1], [0], [0]>} : vector<8x8x8xf32>, vector<8x8x8xf32>, vector<8x8x8xf32> -> vector<8x8x8xf32>
    "tpu.trace_stop"() : () -> ()
    %cst_8 = arith.constant dense<0xFF800000> : vector<8x8xf32>
    %62 = vector.multi_reduction <maximumf>, %61, %cst_8 [2] : vector<8x8x8xf32> to vector<8x8xf32>
    %63 = vector.shape_cast %62 : vector<8x8xf32> to vector<8x8x1xf32>
    %64 = vector.broadcast %63 : vector<8x8x1xf32> to vector<8x8x8xf32>
    %65 = arith.subf %61, %64 : vector<8x8x8xf32>
    %66 = math.exp %65 : vector<8x8x8xf32>
    %cst_9 = arith.constant dense<0.000000e+00> : vector<8x8xf32>
    %67 = vector.multi_reduction <add>, %66, %cst_9 [2] : vector<8x8x8xf32> to vector<8x8xf32>
    %68 = vector.shape_cast %67 : vector<8x8xf32> to vector<8x8x1xf32>
    %69 = tpu.reciprocal %68 {approx = true} : vector<8x8x1xf32> -> vector<8x8x1xf32>
    %70 = vector.broadcast %69 : vector<8x8x1xf32> to vector<8x8x8xf32>
    %71 = arith.mulf %66, %70 : vector<8x8x8xf32>
    "tpu.trace_start"() <{level = 10 : i32, message = "hqk,hkd->hqd"}> : () -> ()
    %cst_10 = arith.constant dense<0.000000e+00> : vector<8x8x8xf32>
    %72 = tpu.matmul %71, %60, %cst_10 {dimension_numbers = #tpu.dot_dimension_numbers<[2], [1], [1], [2], [0, 0, 0, 1, 1, 2], [0], [0]>} : vector<8x8x8xf32>, vector<8x8x8xf32>, vector<8x8x8xf32> -> vector<8x8x8xf32>
    "tpu.trace_stop"() : () -> ()
    %73 = vector.extract_strided_slice %72 {offsets = [0, 0, 0], sizes = [1, 8, 8], strides = [1, 1, 1]} : vector<8x8x8xf32> to vector<1x8x8xf32>
    %74 = vector.shape_cast %73 : vector<1x8x8xf32> to vector<8x8xf32>
    %75 = vector.extract_strided_slice %72 {offsets = [1, 0, 0], sizes = [1, 8, 8], strides = [1, 1, 1]} : vector<8x8x8xf32> to vector<1x8x8xf32>
    %76 = vector.shape_cast %75 : vector<1x8x8xf32> to vector<8x8xf32>
    %77 = vector.extract_strided_slice %72 {offsets = [2, 0, 0], sizes = [1, 8, 8], strides = [1, 1, 1]} : vector<8x8x8xf32> to vector<1x8x8xf32>
    %78 = vector.shape_cast %77 : vector<1x8x8xf32> to vector<8x8xf32>
    %79 = vector.extract_strided_slice %72 {offsets = [3, 0, 0], sizes = [1, 8, 8], strides = [1, 1, 1]} : vector<8x8x8xf32> to vector<1x8x8xf32>
    %80 = vector.shape_cast %79 : vector<1x8x8xf32> to vector<8x8xf32>
    %81 = vector.extract_strided_slice %72 {offsets = [4, 0, 0], sizes = [1, 8, 8], strides = [1, 1, 1]} : vector<8x8x8xf32> to vector<1x8x8xf32>
    %82 = vector.shape_cast %81 : vector<1x8x8xf32> to vector<8x8xf32>
    %83 = vector.extract_strided_slice %72 {offsets = [5, 0, 0], sizes = [1, 8, 8], strides = [1, 1, 1]} : vector<8x8x8xf32> to vector<1x8x8xf32>
    %84 = vector.shape_cast %83 : vector<1x8x8xf32> to vector<8x8xf32>
    %85 = vector.extract_strided_slice %72 {offsets = [6, 0, 0], sizes = [1, 8, 8], strides = [1, 1, 1]} : vector<8x8x8xf32> to vector<1x8x8xf32>
    %86 = vector.shape_cast %85 : vector<1x8x8xf32> to vector<8x8xf32>
    %87 = vector.extract_strided_slice %72 {offsets = [7, 0, 0], sizes = [1, 8, 8], strides = [1, 1, 1]} : vector<8x8x8xf32> to vector<1x8x8xf32>
    %88 = vector.shape_cast %87 : vector<1x8x8xf32> to vector<8x8xf32>
    %89 = tpu.concatenate %74, %76, %78, %80, %82, %84, %86, %88 in 1 : vector<8x8xf32>, vector<8x8xf32>, vector<8x8xf32>, vector<8x8xf32>, vector<8x8xf32>, vector<8x8xf32>, vector<8x8xf32>, vector<8x8xf32> -> vector<8x64xf32>
    %90 = vector.extract_strided_slice %7 {offsets = [8, 0], sizes = [8, 8], strides = [1, 1]} : vector<16x64xf32> to vector<8x8xf32>
    %91 = vector.extract_strided_slice %7 {offsets = [8, 8], sizes = [8, 8], strides = [1, 1]} : vector<16x64xf32> to vector<8x8xf32>
    %92 = vector.extract_strided_slice %7 {offsets = [8, 16], sizes = [8, 8], strides = [1, 1]} : vector<16x64xf32> to vector<8x8xf32>
    %93 = vector.extract_strided_slice %7 {offsets = [8, 24], sizes = [8, 8], strides = [1, 1]} : vector<16x64xf32> to vector<8x8xf32>
    %94 = vector.extract_strided_slice %7 {offsets = [8, 32], sizes = [8, 8], strides = [1, 1]} : vector<16x64xf32> to vector<8x8xf32>
    %95 = vector.extract_strided_slice %7 {offsets = [8, 40], sizes = [8, 8], strides = [1, 1]} : vector<16x64xf32> to vector<8x8xf32>
    %96 = vector.extract_strided_slice %7 {offsets = [8, 48], sizes = [8, 8], strides = [1, 1]} : vector<16x64xf32> to vector<8x8xf32>
    %97 = vector.extract_strided_slice %7 {offsets = [8, 56], sizes = [8, 8], strides = [1, 1]} : vector<16x64xf32> to vector<8x8xf32>
    %98 = vector.shape_cast %90 : vector<8x8xf32> to vector<1x8x8xf32>
    %99 = vector.shape_cast %91 : vector<8x8xf32> to vector<1x8x8xf32>
    %100 = vector.shape_cast %92 : vector<8x8xf32> to vector<1x8x8xf32>
    %101 = vector.shape_cast %93 : vector<8x8xf32> to vector<1x8x8xf32>
    %102 = vector.shape_cast %94 : vector<8x8xf32> to vector<1x8x8xf32>
    %103 = vector.shape_cast %95 : vector<8x8xf32> to vector<1x8x8xf32>
    %104 = vector.shape_cast %96 : vector<8x8xf32> to vector<1x8x8xf32>
    %105 = vector.shape_cast %97 : vector<8x8xf32> to vector<1x8x8xf32>
    %106 = tpu.concatenate %98, %99, %100, %101, %102, %103, %104, %105 in 0 : vector<1x8x8xf32>, vector<1x8x8xf32>, vector<1x8x8xf32>, vector<1x8x8xf32>, vector<1x8x8xf32>, vector<1x8x8xf32>, vector<1x8x8xf32>, vector<1x8x8xf32> -> vector<8x8x8xf32>
    %107 = vector.extract_strided_slice %8 {offsets = [8, 0], sizes = [8, 8], strides = [1, 1]} : vector<16x64xf32> to vector<8x8xf32>
    %108 = vector.extract_strided_slice %8 {offsets = [8, 8], sizes = [8, 8], strides = [1, 1]} : vector<16x64xf32> to vector<8x8xf32>
    %109 = vector.extract_strided_slice %8 {offsets = [8, 16], sizes = [8, 8], strides = [1, 1]} : vector<16x64xf32> to vector<8x8xf32>
    %110 = vector.extract_strided_slice %8 {offsets = [8, 24], sizes = [8, 8], strides = [1, 1]} : vector<16x64xf32> to vector<8x8xf32>
    %111 = vector.extract_strided_slice %8 {offsets = [8, 32], sizes = [8, 8], strides = [1, 1]} : vector<16x64xf32> to vector<8x8xf32>
    %112 = vector.extract_strided_slice %8 {offsets = [8, 40], sizes = [8, 8], strides = [1, 1]} : vector<16x64xf32> to vector<8x8xf32>
    %113 = vector.extract_strided_slice %8 {offsets = [8, 48], sizes = [8, 8], strides = [1, 1]} : vector<16x64xf32> to vector<8x8xf32>
    %114 = vector.extract_strided_slice %8 {offsets = [8, 56], sizes = [8, 8], strides = [1, 1]} : vector<16x64xf32> to vector<8x8xf32>
    %115 = vector.shape_cast %107 : vector<8x8xf32> to vector<1x8x8xf32>
    %116 = vector.shape_cast %108 : vector<8x8xf32> to vector<1x8x8xf32>
    %117 = vector.shape_cast %109 : vector<8x8xf32> to vector<1x8x8xf32>
    %118 = vector.shape_cast %110 : vector<8x8xf32> to vector<1x8x8xf32>
    %119 = vector.shape_cast %111 : vector<8x8xf32> to vector<1x8x8xf32>
    %120 = vector.shape_cast %112 : vector<8x8xf32> to vector<1x8x8xf32>
    %121 = vector.shape_cast %113 : vector<8x8xf32> to vector<1x8x8xf32>
    %122 = vector.shape_cast %114 : vector<8x8xf32> to vector<1x8x8xf32>
    %123 = tpu.concatenate %115, %116, %117, %118, %119, %120, %121, %122 in 0 : vector<1x8x8xf32>, vector<1x8x8xf32>, vector<1x8x8xf32>, vector<1x8x8xf32>, vector<1x8x8xf32>, vector<1x8x8xf32>, vector<1x8x8xf32>, vector<1x8x8xf32> -> vector<8x8x8xf32>
    %124 = vector.extract_strided_slice %9 {offsets = [8, 0], sizes = [8, 8], strides = [1, 1]} : vector<16x64xf32> to vector<8x8xf32>
    %125 = vector.extract_strided_slice %9 {offsets = [8, 8], sizes = [8, 8], strides = [1, 1]} : vector<16x64xf32> to vector<8x8xf32>
    %126 = vector.extract_strided_slice %9 {offsets = [8, 16], sizes = [8, 8], strides = [1, 1]} : vector<16x64xf32> to vector<8x8xf32>
    %127 = vector.extract_strided_slice %9 {offsets = [8, 24], sizes = [8, 8], strides = [1, 1]} : vector<16x64xf32> to vector<8x8xf32>
    %128 = vector.extract_strided_slice %9 {offsets = [8, 32], sizes = [8, 8], strides = [1, 1]} : vector<16x64xf32> to vector<8x8xf32>
    %129 = vector.extract_strided_slice %9 {offsets = [8, 40], sizes = [8, 8], strides = [1, 1]} : vector<16x64xf32> to vector<8x8xf32>
    %130 = vector.extract_strided_slice %9 {offsets = [8, 48], sizes = [8, 8], strides = [1, 1]} : vector<16x64xf32> to vector<8x8xf32>
    %131 = vector.extract_strided_slice %9 {offsets = [8, 56], sizes = [8, 8], strides = [1, 1]} : vector<16x64xf32> to vector<8x8xf32>
    %132 = vector.shape_cast %124 : vector<8x8xf32> to vector<1x8x8xf32>
    %133 = vector.shape_cast %125 : vector<8x8xf32> to vector<1x8x8xf32>
    %134 = vector.shape_cast %126 : vector<8x8xf32> to vector<1x8x8xf32>
    %135 = vector.shape_cast %127 : vector<8x8xf32> to vector<1x8x8xf32>
    %136 = vector.shape_cast %128 : vector<8x8xf32> to vector<1x8x8xf32>
    %137 = vector.shape_cast %129 : vector<8x8xf32> to vector<1x8x8xf32>
    %138 = vector.shape_cast %130 : vector<8x8xf32> to vector<1x8x8xf32>
    %139 = vector.shape_cast %131 : vector<8x8xf32> to vector<1x8x8xf32>
    %140 = tpu.concatenate %132, %133, %134, %135, %136, %137, %138, %139 in 0 : vector<1x8x8xf32>, vector<1x8x8xf32>, vector<1x8x8xf32>, vector<1x8x8xf32>, vector<1x8x8xf32>, vector<1x8x8xf32>, vector<1x8x8xf32>, vector<1x8x8xf32> -> vector<8x8x8xf32>
    "tpu.trace_start"() <{level = 10 : i32, message = "hqd,hkd->hqk"}> : () -> ()
    %cst_11 = arith.constant dense<0.000000e+00> : vector<8x8x8xf32>
    %141 = tpu.matmul %106, %123, %cst_11 {dimension_numbers = #tpu.dot_dimension_numbers<[2], [2], [1], [1], [0, 0, 0, 1, 1, 1], [0], [0]>} : vector<8x8x8xf32>, vector<8x8x8xf32>, vector<8x8x8xf32> -> vector<8x8x8xf32>
    "tpu.trace_stop"() : () -> ()
    %cst_12 = arith.constant dense<0xFF800000> : vector<8x8xf32>
    %142 = vector.multi_reduction <maximumf>, %141, %cst_12 [2] : vector<8x8x8xf32> to vector<8x8xf32>
    %143 = vector.shape_cast %142 : vector<8x8xf32> to vector<8x8x1xf32>
    %144 = vector.broadcast %143 : vector<8x8x1xf32> to vector<8x8x8xf32>
    %145 = arith.subf %141, %144 : vector<8x8x8xf32>
    %146 = math.exp %145 : vector<8x8x8xf32>
    %cst_13 = arith.constant dense<0.000000e+00> : vector<8x8xf32>
    %147 = vector.multi_reduction <add>, %146, %cst_13 [2] : vector<8x8x8xf32> to vector<8x8xf32>
    %148 = vector.shape_cast %147 : vector<8x8xf32> to vector<8x8x1xf32>
    %149 = tpu.reciprocal %148 {approx = true} : vector<8x8x1xf32> -> vector<8x8x1xf32>
    %150 = vector.broadcast %149 : vector<8x8x1xf32> to vector<8x8x8xf32>
    %151 = arith.mulf %146, %150 : vector<8x8x8xf32>
    "tpu.trace_start"() <{level = 10 : i32, message = "hqk,hkd->hqd"}> : () -> ()
    %cst_14 = arith.constant dense<0.000000e+00> : vector<8x8x8xf32>
    %152 = tpu.matmul %151, %140, %cst_14 {dimension_numbers = #tpu.dot_dimension_numbers<[2], [1], [1], [2], [0, 0, 0, 1, 1, 2], [0], [0]>} : vector<8x8x8xf32>, vector<8x8x8xf32>, vector<8x8x8xf32> -> vector<8x8x8xf32>
    "tpu.trace_stop"() : () -> ()
    %153 = vector.extract_strided_slice %152 {offsets = [0, 0, 0], sizes = [1, 8, 8], strides = [1, 1, 1]} : vector<8x8x8xf32> to vector<1x8x8xf32>
    %154 = vector.shape_cast %153 : vector<1x8x8xf32> to vector<8x8xf32>
    %155 = vector.extract_strided_slice %152 {offsets = [1, 0, 0], sizes = [1, 8, 8], strides = [1, 1, 1]} : vector<8x8x8xf32> to vector<1x8x8xf32>
    %156 = vector.shape_cast %155 : vector<1x8x8xf32> to vector<8x8xf32>
    %157 = vector.extract_strided_slice %152 {offsets = [2, 0, 0], sizes = [1, 8, 8], strides = [1, 1, 1]} : vector<8x8x8xf32> to vector<1x8x8xf32>
    %158 = vector.shape_cast %157 : vector<1x8x8xf32> to vector<8x8xf32>
    %159 = vector.extract_strided_slice %152 {offsets = [3, 0, 0], sizes = [1, 8, 8], strides = [1, 1, 1]} : vector<8x8x8xf32> to vector<1x8x8xf32>
    %160 = vector.shape_cast %159 : vector<1x8x8xf32> to vector<8x8xf32>
    %161 = vector.extract_strided_slice %152 {offsets = [4, 0, 0], sizes = [1, 8, 8], strides = [1, 1, 1]} : vector<8x8x8xf32> to vector<1x8x8xf32>
    %162 = vector.shape_cast %161 : vector<1x8x8xf32> to vector<8x8xf32>
    %163 = vector.extract_strided_slice %152 {offsets = [5, 0, 0], sizes = [1, 8, 8], strides = [1, 1, 1]} : vector<8x8x8xf32> to vector<1x8x8xf32>
    %164 = vector.shape_cast %163 : vector<1x8x8xf32> to vector<8x8xf32>
    %165 = vector.extract_strided_slice %152 {offsets = [6, 0, 0], sizes = [1, 8, 8], strides = [1, 1, 1]} : vector<8x8x8xf32> to vector<1x8x8xf32>
    %166 = vector.shape_cast %165 : vector<1x8x8xf32> to vector<8x8xf32>
    %167 = vector.extract_strided_slice %152 {offsets = [7, 0, 0], sizes = [1, 8, 8], strides = [1, 1, 1]} : vector<8x8x8xf32> to vector<1x8x8xf32>
    %168 = vector.shape_cast %167 : vector<1x8x8xf32> to vector<8x8xf32>
    %169 = tpu.concatenate %154, %156, %158, %160, %162, %164, %166, %168 in 1 : vector<8x8xf32>, vector<8x8xf32>, vector<8x8xf32>, vector<8x8xf32>, vector<8x8xf32>, vector<8x8xf32>, vector<8x8xf32>, vector<8x8xf32> -> vector<8x64xf32>
    %170 = tpu.concatenate %89, %169 in 0 : vector<8x64xf32>, vector<8x64xf32> -> vector<16x64xf32>
    %cst_15 = arith.constant dense<0.000000e+00> : vector<16xf32>
    %171 = vector.multi_reduction <add>, %170, %cst_15 [1] : vector<16x64xf32> to vector<16xf32>
    %172 = vector.shape_cast %171 : vector<16xf32> to vector<16x1xf32>
    %cst_16 = arith.constant 6.400000e+01 : f32
    %173 = vector.broadcast %cst_16 : f32 to vector<16x1xf32>
    %174 = arith.divf %172, %173 : vector<16x1xf32>
    %175 = vector.broadcast %174 : vector<16x1xf32> to vector<16x64xf32>
    %176 = arith.subf %170, %175 : vector<16x64xf32>
    %177 = arith.mulf %176, %176 : vector<16x64xf32>
    %cst_17 = arith.constant dense<0.000000e+00> : vector<16xf32>
    %178 = vector.multi_reduction <add>, %177, %cst_17 [1] : vector<16x64xf32> to vector<16xf32>
    %179 = vector.shape_cast %178 : vector<16xf32> to vector<16x1xf32>
    %cst_18 = arith.constant 0.0158730168 : f32
    %180 = vector.broadcast %cst_18 : f32 to vector<16x1xf32>
    %181 = arith.mulf %179, %180 : vector<16x1xf32>
    %182 = math.rsqrt %181 : vector<16x1xf32>
    %183 = vector.broadcast %182 : vector<16x1xf32> to vector<16x64xf32>
    %184 = arith.mulf %176, %183 : vector<16x64xf32>
    %185 = arith.addf %1, %184 : vector<16x64xf32>
    %c0_19 = arith.constant 0 : index
    %c0_20 = arith.constant 0 : index
    %186 = vector.load %arg5[%c0_19, %c0_20] : memref<64x256xf32, #tpu.memory_space<vmem>>, vector<64x256xf32>
    %cst_21 = arith.constant dense<0.000000e+00> : vector<16x256xf32>
    %187 = tpu.matmul %185, %186, %cst_21 {dimension_numbers = #tpu.dot_dimension_numbers<[1], [0], [0], [1], [0, 0, 1, 1], [], []>} : vector<16x64xf32>, vector<64x256xf32>, vector<16x256xf32> -> vector<16x256xf32>
    %c0_22 = arith.constant 0 : index
    %c0_23 = arith.constant 0 : index
    %188 = vector.load %arg6[%c0_22, %c0_23] : memref<1x256xf32, #tpu.memory_space<vmem>>, vector<1x256xf32>
    %189 = vector.broadcast %188 : vector<1x256xf32> to vector<16x256xf32>
    %190 = arith.addf %187, %189 : vector<16x256xf32>
    %cst_24 = arith.constant 0.000000e+00 : f32
    %191 = vector.broadcast %cst_24 : f32 to vector<16x256xf32>
    %192 = arith.maximumf %190, %191 : vector<16x256xf32>
    %c0_25 = arith.constant 0 : index
    %c0_26 = arith.constant 0 : index
    %193 = vector.load %arg7[%c0_25, %c0_26] : memref<256x64xf32, #tpu.memory_space<vmem>>, vector<256x64xf32>
    %cst_27 = arith.constant dense<0.000000e+00> : vector<16x64xf32>
    %194 = tpu.matmul %192, %193, %cst_27 {dimension_numbers = #tpu.dot_dimension_numbers<[1], [0], [0], [1], [0, 0, 1, 1], [], []>} : vector<16x256xf32>, vector<256x64xf32>, vector<16x64xf32> -> vector<16x64xf32>
    %c0_28 = arith.constant 0 : index
    %c0_29 = arith.constant 0 : index
    %195 = vector.load %arg8[%c0_28, %c0_29] : memref<1x64xf32, #tpu.memory_space<vmem>>, vector<1x64xf32>
    %196 = vector.broadcast %195 : vector<1x64xf32> to vector<16x64xf32>
    %197 = arith.addf %194, %196 : vector<16x64xf32>
    %cst_30 = arith.constant dense<0.000000e+00> : vector<16xf32>
    %198 = vector.multi_reduction <add>, %197, %cst_30 [1] : vector<16x64xf32> to vector<16xf32>
    %199 = vector.shape_cast %198 : vector<16xf32> to vector<16x1xf32>
    %cst_31 = arith.constant 6.400000e+01 : f32
    %200 = vector.broadcast %cst_31 : f32 to vector<16x1xf32>
    %201 = arith.divf %199, %200 : vector<16x1xf32>
    %202 = vector.broadcast %201 : vector<16x1xf32> to vector<16x64xf32>
    %203 = arith.subf %197, %202 : vector<16x64xf32>
    %204 = arith.mulf %203, %203 : vector<16x64xf32>
    %cst_32 = arith.constant dense<0.000000e+00> : vector<16xf32>
    %205 = vector.multi_reduction <add>, %204, %cst_32 [1] : vector<16x64xf32> to vector<16xf32>
    %206 = vector.shape_cast %205 : vector<16xf32> to vector<16x1xf32>
    %cst_33 = arith.constant 0.0158730168 : f32
    %207 = vector.broadcast %cst_33 : f32 to vector<16x1xf32>
    %208 = arith.mulf %206, %207 : vector<16x1xf32>
    %209 = math.rsqrt %208 : vector<16x1xf32>
    %210 = vector.broadcast %209 : vector<16x1xf32> to vector<16x64xf32>
    %211 = arith.mulf %203, %210 : vector<16x64xf32>
    %212 = arith.addf %185, %211 : vector<16x64xf32>
    %c0_34 = arith.constant 0 : index
    %c0_35 = arith.constant 0 : index
    %213 = vector.load %arg9[%c0_34, %c0_35] : memref<64x192xf32, #tpu.memory_space<vmem>>, vector<64x192xf32>
    %cst_36 = arith.constant dense<0.000000e+00> : vector<16x192xf32>
    %214 = tpu.matmul %212, %213, %cst_36 {dimension_numbers = #tpu.dot_dimension_numbers<[1], [0], [0], [1], [0, 0, 1, 1], [], []>} : vector<16x64xf32>, vector<64x192xf32>, vector<16x192xf32> -> vector<16x192xf32>
    %c0_37 = arith.constant 0 : index
    %c0_38 = arith.constant 0 : index
    %215 = vector.load %arg10[%c0_37, %c0_38] : memref<1x192xf32, #tpu.memory_space<vmem>>, vector<1x192xf32>
    %216 = vector.broadcast %215 : vector<1x192xf32> to vector<16x192xf32>
    %217 = arith.addf %214, %216 : vector<16x192xf32>
    %218 = vector.extract_strided_slice %217 {offsets = [0, 0], sizes = [16, 64], strides = [1, 1]} : vector<16x192xf32> to vector<16x64xf32>
    %219 = vector.extract_strided_slice %217 {offsets = [0, 64], sizes = [16, 64], strides = [1, 1]} : vector<16x192xf32> to vector<16x64xf32>
    %220 = vector.extract_strided_slice %217 {offsets = [0, 128], sizes = [16, 64], strides = [1, 1]} : vector<16x192xf32> to vector<16x64xf32>
    %221 = vector.extract_strided_slice %218 {offsets = [0, 0], sizes = [8, 8], strides = [1, 1]} : vector<16x64xf32> to vector<8x8xf32>
    %222 = vector.extract_strided_slice %218 {offsets = [0, 8], sizes = [8, 8], strides = [1, 1]} : vector<16x64xf32> to vector<8x8xf32>
    %223 = vector.extract_strided_slice %218 {offsets = [0, 16], sizes = [8, 8], strides = [1, 1]} : vector<16x64xf32> to vector<8x8xf32>
    %224 = vector.extract_strided_slice %218 {offsets = [0, 24], sizes = [8, 8], strides = [1, 1]} : vector<16x64xf32> to vector<8x8xf32>
    %225 = vector.extract_strided_slice %218 {offsets = [0, 32], sizes = [8, 8], strides = [1, 1]} : vector<16x64xf32> to vector<8x8xf32>
    %226 = vector.extract_strided_slice %218 {offsets = [0, 40], sizes = [8, 8], strides = [1, 1]} : vector<16x64xf32> to vector<8x8xf32>
    %227 = vector.extract_strided_slice %218 {offsets = [0, 48], sizes = [8, 8], strides = [1, 1]} : vector<16x64xf32> to vector<8x8xf32>
    %228 = vector.extract_strided_slice %218 {offsets = [0, 56], sizes = [8, 8], strides = [1, 1]} : vector<16x64xf32> to vector<8x8xf32>
    %229 = vector.shape_cast %221 : vector<8x8xf32> to vector<1x8x8xf32>
    %230 = vector.shape_cast %222 : vector<8x8xf32> to vector<1x8x8xf32>
    %231 = vector.shape_cast %223 : vector<8x8xf32> to vector<1x8x8xf32>
    %232 = vector.shape_cast %224 : vector<8x8xf32> to vector<1x8x8xf32>
    %233 = vector.shape_cast %225 : vector<8x8xf32> to vector<1x8x8xf32>
    %234 = vector.shape_cast %226 : vector<8x8xf32> to vector<1x8x8xf32>
    %235 = vector.shape_cast %227 : vector<8x8xf32> to vector<1x8x8xf32>
    %236 = vector.shape_cast %228 : vector<8x8xf32> to vector<1x8x8xf32>
    %237 = tpu.concatenate %229, %230, %231, %232, %233, %234, %235, %236 in 0 : vector<1x8x8xf32>, vector<1x8x8xf32>, vector<1x8x8xf32>, vector<1x8x8xf32>, vector<1x8x8xf32>, vector<1x8x8xf32>, vector<1x8x8xf32>, vector<1x8x8xf32> -> vector<8x8x8xf32>
    %238 = vector.extract_strided_slice %219 {offsets = [0, 0], sizes = [8, 8], strides = [1, 1]} : vector<16x64xf32> to vector<8x8xf32>
    %239 = vector.extract_strided_slice %219 {offsets = [0, 8], sizes = [8, 8], strides = [1, 1]} : vector<16x64xf32> to vector<8x8xf32>
    %240 = vector.extract_strided_slice %219 {offsets = [0, 16], sizes = [8, 8], strides = [1, 1]} : vector<16x64xf32> to vector<8x8xf32>
    %241 = vector.extract_strided_slice %219 {offsets = [0, 24], sizes = [8, 8], strides = [1, 1]} : vector<16x64xf32> to vector<8x8xf32>
    %242 = vector.extract_strided_slice %219 {offsets = [0, 32], sizes = [8, 8], strides = [1, 1]} : vector<16x64xf32> to vector<8x8xf32>
    %243 = vector.extract_strided_slice %219 {offsets = [0, 40], sizes = [8, 8], strides = [1, 1]} : vector<16x64xf32> to vector<8x8xf32>
    %244 = vector.extract_strided_slice %219 {offsets = [0, 48], sizes = [8, 8], strides = [1, 1]} : vector<16x64xf32> to vector<8x8xf32>
    %245 = vector.extract_strided_slice %219 {offsets = [0, 56], sizes = [8, 8], strides = [1, 1]} : vector<16x64xf32> to vector<8x8xf32>
    %246 = vector.shape_cast %238 : vector<8x8xf32> to vector<1x8x8xf32>
    %247 = vector.shape_cast %239 : vector<8x8xf32> to vector<1x8x8xf32>
    %248 = vector.shape_cast %240 : vector<8x8xf32> to vector<1x8x8xf32>
    %249 = vector.shape_cast %241 : vector<8x8xf32> to vector<1x8x8xf32>
    %250 = vector.shape_cast %242 : vector<8x8xf32> to vector<1x8x8xf32>
    %251 = vector.shape_cast %243 : vector<8x8xf32> to vector<1x8x8xf32>
    %252 = vector.shape_cast %244 : vector<8x8xf32> to vector<1x8x8xf32>
    %253 = vector.shape_cast %245 : vector<8x8xf32> to vector<1x8x8xf32>
    %254 = tpu.concatenate %246, %247, %248, %249, %250, %251, %252, %253 in 0 : vector<1x8x8xf32>, vector<1x8x8xf32>, vector<1x8x8xf32>, vector<1x8x8xf32>, vector<1x8x8xf32>, vector<1x8x8xf32>, vector<1x8x8xf32>, vector<1x8x8xf32> -> vector<8x8x8xf32>
    %255 = vector.extract_strided_slice %220 {offsets = [0, 0], sizes = [8, 8], strides = [1, 1]} : vector<16x64xf32> to vector<8x8xf32>
    %256 = vector.extract_strided_slice %220 {offsets = [0, 8], sizes = [8, 8], strides = [1, 1]} : vector<16x64xf32> to vector<8x8xf32>
    %257 = vector.extract_strided_slice %220 {offsets = [0, 16], sizes = [8, 8], strides = [1, 1]} : vector<16x64xf32> to vector<8x8xf32>
    %258 = vector.extract_strided_slice %220 {offsets = [0, 24], sizes = [8, 8], strides = [1, 1]} : vector<16x64xf32> to vector<8x8xf32>
    %259 = vector.extract_strided_slice %220 {offsets = [0, 32], sizes = [8, 8], strides = [1, 1]} : vector<16x64xf32> to vector<8x8xf32>
    %260 = vector.extract_strided_slice %220 {offsets = [0, 40], sizes = [8, 8], strides = [1, 1]} : vector<16x64xf32> to vector<8x8xf32>
    %261 = vector.extract_strided_slice %220 {offsets = [0, 48], sizes = [8, 8], strides = [1, 1]} : vector<16x64xf32> to vector<8x8xf32>
    %262 = vector.extract_strided_slice %220 {offsets = [0, 56], sizes = [8, 8], strides = [1, 1]} : vector<16x64xf32> to vector<8x8xf32>
    %263 = vector.shape_cast %255 : vector<8x8xf32> to vector<1x8x8xf32>
    %264 = vector.shape_cast %256 : vector<8x8xf32> to vector<1x8x8xf32>
    %265 = vector.shape_cast %257 : vector<8x8xf32> to vector<1x8x8xf32>
    %266 = vector.shape_cast %258 : vector<8x8xf32> to vector<1x8x8xf32>
    %267 = vector.shape_cast %259 : vector<8x8xf32> to vector<1x8x8xf32>
    %268 = vector.shape_cast %260 : vector<8x8xf32> to vector<1x8x8xf32>
    %269 = vector.shape_cast %261 : vector<8x8xf32> to vector<1x8x8xf32>
    %270 = vector.shape_cast %262 : vector<8x8xf32> to vector<1x8x8xf32>
    %271 = tpu.concatenate %263, %264, %265, %266, %267, %268, %269, %270 in 0 : vector<1x8x8xf32>, vector<1x8x8xf32>, vector<1x8x8xf32>, vector<1x8x8xf32>, vector<1x8x8xf32>, vector<1x8x8xf32>, vector<1x8x8xf32>, vector<1x8x8xf32> -> vector<8x8x8xf32>
    "tpu.trace_start"() <{level = 10 : i32, message = "hqd,hkd->hqk"}> : () -> ()
    %cst_39 = arith.constant dense<0.000000e+00> : vector<8x8x8xf32>
    %272 = tpu.matmul %237, %254, %cst_39 {dimension_numbers = #tpu.dot_dimension_numbers<[2], [2], [1], [1], [0, 0, 0, 1, 1, 1], [0], [0]>} : vector<8x8x8xf32>, vector<8x8x8xf32>, vector<8x8x8xf32> -> vector<8x8x8xf32>
    "tpu.trace_stop"() : () -> ()
    %cst_40 = arith.constant dense<0xFF800000> : vector<8x8xf32>
    %273 = vector.multi_reduction <maximumf>, %272, %cst_40 [2] : vector<8x8x8xf32> to vector<8x8xf32>
    %274 = vector.shape_cast %273 : vector<8x8xf32> to vector<8x8x1xf32>
    %275 = vector.broadcast %274 : vector<8x8x1xf32> to vector<8x8x8xf32>
    %276 = arith.subf %272, %275 : vector<8x8x8xf32>
    %277 = math.exp %276 : vector<8x8x8xf32>
    %cst_41 = arith.constant dense<0.000000e+00> : vector<8x8xf32>
    %278 = vector.multi_reduction <add>, %277, %cst_41 [2] : vector<8x8x8xf32> to vector<8x8xf32>
    %279 = vector.shape_cast %278 : vector<8x8xf32> to vector<8x8x1xf32>
    %280 = tpu.reciprocal %279 {approx = true} : vector<8x8x1xf32> -> vector<8x8x1xf32>
    %281 = vector.broadcast %280 : vector<8x8x1xf32> to vector<8x8x8xf32>
    %282 = arith.mulf %277, %281 : vector<8x8x8xf32>
    "tpu.trace_start"() <{level = 10 : i32, message = "hqk,hkd->hqd"}> : () -> ()
    %cst_42 = arith.constant dense<0.000000e+00> : vector<8x8x8xf32>
    %283 = tpu.matmul %282, %271, %cst_42 {dimension_numbers = #tpu.dot_dimension_numbers<[2], [1], [1], [2], [0, 0, 0, 1, 1, 2], [0], [0]>} : vector<8x8x8xf32>, vector<8x8x8xf32>, vector<8x8x8xf32> -> vector<8x8x8xf32>
    "tpu.trace_stop"() : () -> ()
    %284 = vector.extract_strided_slice %283 {offsets = [0, 0, 0], sizes = [1, 8, 8], strides = [1, 1, 1]} : vector<8x8x8xf32> to vector<1x8x8xf32>
    %285 = vector.shape_cast %284 : vector<1x8x8xf32> to vector<8x8xf32>
    %286 = vector.extract_strided_slice %283 {offsets = [1, 0, 0], sizes = [1, 8, 8], strides = [1, 1, 1]} : vector<8x8x8xf32> to vector<1x8x8xf32>
    %287 = vector.shape_cast %286 : vector<1x8x8xf32> to vector<8x8xf32>
    %288 = vector.extract_strided_slice %283 {offsets = [2, 0, 0], sizes = [1, 8, 8], strides = [1, 1, 1]} : vector<8x8x8xf32> to vector<1x8x8xf32>
    %289 = vector.shape_cast %288 : vector<1x8x8xf32> to vector<8x8xf32>
    %290 = vector.extract_strided_slice %283 {offsets = [3, 0, 0], sizes = [1, 8, 8], strides = [1, 1, 1]} : vector<8x8x8xf32> to vector<1x8x8xf32>
    %291 = vector.shape_cast %290 : vector<1x8x8xf32> to vector<8x8xf32>
    %292 = vector.extract_strided_slice %283 {offsets = [4, 0, 0], sizes = [1, 8, 8], strides = [1, 1, 1]} : vector<8x8x8xf32> to vector<1x8x8xf32>
    %293 = vector.shape_cast %292 : vector<1x8x8xf32> to vector<8x8xf32>
    %294 = vector.extract_strided_slice %283 {offsets = [5, 0, 0], sizes = [1, 8, 8], strides = [1, 1, 1]} : vector<8x8x8xf32> to vector<1x8x8xf32>
    %295 = vector.shape_cast %294 : vector<1x8x8xf32> to vector<8x8xf32>
    %296 = vector.extract_strided_slice %283 {offsets = [6, 0, 0], sizes = [1, 8, 8], strides = [1, 1, 1]} : vector<8x8x8xf32> to vector<1x8x8xf32>
    %297 = vector.shape_cast %296 : vector<1x8x8xf32> to vector<8x8xf32>
    %298 = vector.extract_strided_slice %283 {offsets = [7, 0, 0], sizes = [1, 8, 8], strides = [1, 1, 1]} : vector<8x8x8xf32> to vector<1x8x8xf32>
    %299 = vector.shape_cast %298 : vector<1x8x8xf32> to vector<8x8xf32>
    %300 = tpu.concatenate %285, %287, %289, %291, %293, %295, %297, %299 in 1 : vector<8x8xf32>, vector<8x8xf32>, vector<8x8xf32>, vector<8x8xf32>, vector<8x8xf32>, vector<8x8xf32>, vector<8x8xf32>, vector<8x8xf32> -> vector<8x64xf32>
    %301 = vector.extract_strided_slice %218 {offsets = [8, 0], sizes = [8, 8], strides = [1, 1]} : vector<16x64xf32> to vector<8x8xf32>
    %302 = vector.extract_strided_slice %218 {offsets = [8, 8], sizes = [8, 8], strides = [1, 1]} : vector<16x64xf32> to vector<8x8xf32>
    %303 = vector.extract_strided_slice %218 {offsets = [8, 16], sizes = [8, 8], strides = [1, 1]} : vector<16x64xf32> to vector<8x8xf32>
    %304 = vector.extract_strided_slice %218 {offsets = [8, 24], sizes = [8, 8], strides = [1, 1]} : vector<16x64xf32> to vector<8x8xf32>
    %305 = vector.extract_strided_slice %218 {offsets = [8, 32], sizes = [8, 8], strides = [1, 1]} : vector<16x64xf32> to vector<8x8xf32>
    %306 = vector.extract_strided_slice %218 {offsets = [8, 40], sizes = [8, 8], strides = [1, 1]} : vector<16x64xf32> to vector<8x8xf32>
    %307 = vector.extract_strided_slice %218 {offsets = [8, 48], sizes = [8, 8], strides = [1, 1]} : vector<16x64xf32> to vector<8x8xf32>
    %308 = vector.extract_strided_slice %218 {offsets = [8, 56], sizes = [8, 8], strides = [1, 1]} : vector<16x64xf32> to vector<8x8xf32>
    %309 = vector.shape_cast %301 : vector<8x8xf32> to vector<1x8x8xf32>
    %310 = vector.shape_cast %302 : vector<8x8xf32> to vector<1x8x8xf32>
    %311 = vector.shape_cast %303 : vector<8x8xf32> to vector<1x8x8xf32>
    %312 = vector.shape_cast %304 : vector<8x8xf32> to vector<1x8x8xf32>
    %313 = vector.shape_cast %305 : vector<8x8xf32> to vector<1x8x8xf32>
    %314 = vector.shape_cast %306 : vector<8x8xf32> to vector<1x8x8xf32>
    %315 = vector.shape_cast %307 : vector<8x8xf32> to vector<1x8x8xf32>
    %316 = vector.shape_cast %308 : vector<8x8xf32> to vector<1x8x8xf32>
    %317 = tpu.concatenate %309, %310, %311, %312, %313, %314, %315, %316 in 0 : vector<1x8x8xf32>, vector<1x8x8xf32>, vector<1x8x8xf32>, vector<1x8x8xf32>, vector<1x8x8xf32>, vector<1x8x8xf32>, vector<1x8x8xf32>, vector<1x8x8xf32> -> vector<8x8x8xf32>
    %318 = vector.extract_strided_slice %219 {offsets = [8, 0], sizes = [8, 8], strides = [1, 1]} : vector<16x64xf32> to vector<8x8xf32>
    %319 = vector.extract_strided_slice %219 {offsets = [8, 8], sizes = [8, 8], strides = [1, 1]} : vector<16x64xf32> to vector<8x8xf32>
    %320 = vector.extract_strided_slice %219 {offsets = [8, 16], sizes = [8, 8], strides = [1, 1]} : vector<16x64xf32> to vector<8x8xf32>
    %321 = vector.extract_strided_slice %219 {offsets = [8, 24], sizes = [8, 8], strides = [1, 1]} : vector<16x64xf32> to vector<8x8xf32>
    %322 = vector.extract_strided_slice %219 {offsets = [8, 32], sizes = [8, 8], strides = [1, 1]} : vector<16x64xf32> to vector<8x8xf32>
    %323 = vector.extract_strided_slice %219 {offsets = [8, 40], sizes = [8, 8], strides = [1, 1]} : vector<16x64xf32> to vector<8x8xf32>
    %324 = vector.extract_strided_slice %219 {offsets = [8, 48], sizes = [8, 8], strides = [1, 1]} : vector<16x64xf32> to vector<8x8xf32>
    %325 = vector.extract_strided_slice %219 {offsets = [8, 56], sizes = [8, 8], strides = [1, 1]} : vector<16x64xf32> to vector<8x8xf32>
    %326 = vector.shape_cast %318 : vector<8x8xf32> to vector<1x8x8xf32>
    %327 = vector.shape_cast %319 : vector<8x8xf32> to vector<1x8x8xf32>
    %328 = vector.shape_cast %320 : vector<8x8xf32> to vector<1x8x8xf32>
    %329 = vector.shape_cast %321 : vector<8x8xf32> to vector<1x8x8xf32>
    %330 = vector.shape_cast %322 : vector<8x8xf32> to vector<1x8x8xf32>
    %331 = vector.shape_cast %323 : vector<8x8xf32> to vector<1x8x8xf32>
    %332 = vector.shape_cast %324 : vector<8x8xf32> to vector<1x8x8xf32>
    %333 = vector.shape_cast %325 : vector<8x8xf32> to vector<1x8x8xf32>
    %334 = tpu.concatenate %326, %327, %328, %329, %330, %331, %332, %333 in 0 : vector<1x8x8xf32>, vector<1x8x8xf32>, vector<1x8x8xf32>, vector<1x8x8xf32>, vector<1x8x8xf32>, vector<1x8x8xf32>, vector<1x8x8xf32>, vector<1x8x8xf32> -> vector<8x8x8xf32>
    %335 = vector.extract_strided_slice %220 {offsets = [8, 0], sizes = [8, 8], strides = [1, 1]} : vector<16x64xf32> to vector<8x8xf32>
    %336 = vector.extract_strided_slice %220 {offsets = [8, 8], sizes = [8, 8], strides = [1, 1]} : vector<16x64xf32> to vector<8x8xf32>
    %337 = vector.extract_strided_slice %220 {offsets = [8, 16], sizes = [8, 8], strides = [1, 1]} : vector<16x64xf32> to vector<8x8xf32>
    %338 = vector.extract_strided_slice %220 {offsets = [8, 24], sizes = [8, 8], strides = [1, 1]} : vector<16x64xf32> to vector<8x8xf32>
    %339 = vector.extract_strided_slice %220 {offsets = [8, 32], sizes = [8, 8], strides = [1, 1]} : vector<16x64xf32> to vector<8x8xf32>
    %340 = vector.extract_strided_slice %220 {offsets = [8, 40], sizes = [8, 8], strides = [1, 1]} : vector<16x64xf32> to vector<8x8xf32>
    %341 = vector.extract_strided_slice %220 {offsets = [8, 48], sizes = [8, 8], strides = [1, 1]} : vector<16x64xf32> to vector<8x8xf32>
    %342 = vector.extract_strided_slice %220 {offsets = [8, 56], sizes = [8, 8], strides = [1, 1]} : vector<16x64xf32> to vector<8x8xf32>
    %343 = vector.shape_cast %335 : vector<8x8xf32> to vector<1x8x8xf32>
    %344 = vector.shape_cast %336 : vector<8x8xf32> to vector<1x8x8xf32>
    %345 = vector.shape_cast %337 : vector<8x8xf32> to vector<1x8x8xf32>
    %346 = vector.shape_cast %338 : vector<8x8xf32> to vector<1x8x8xf32>
    %347 = vector.shape_cast %339 : vector<8x8xf32> to vector<1x8x8xf32>
    %348 = vector.shape_cast %340 : vector<8x8xf32> to vector<1x8x8xf32>
    %349 = vector.shape_cast %341 : vector<8x8xf32> to vector<1x8x8xf32>
    %350 = vector.shape_cast %342 : vector<8x8xf32> to vector<1x8x8xf32>
    %351 = tpu.concatenate %343, %344, %345, %346, %347, %348, %349, %350 in 0 : vector<1x8x8xf32>, vector<1x8x8xf32>, vector<1x8x8xf32>, vector<1x8x8xf32>, vector<1x8x8xf32>, vector<1x8x8xf32>, vector<1x8x8xf32>, vector<1x8x8xf32> -> vector<8x8x8xf32>
    "tpu.trace_start"() <{level = 10 : i32, message = "hqd,hkd->hqk"}> : () -> ()
    %cst_43 = arith.constant dense<0.000000e+00> : vector<8x8x8xf32>
    %352 = tpu.matmul %317, %334, %cst_43 {dimension_numbers = #tpu.dot_dimension_numbers<[2], [2], [1], [1], [0, 0, 0, 1, 1, 1], [0], [0]>} : vector<8x8x8xf32>, vector<8x8x8xf32>, vector<8x8x8xf32> -> vector<8x8x8xf32>
    "tpu.trace_stop"() : () -> ()
    %cst_44 = arith.constant dense<0xFF800000> : vector<8x8xf32>
    %353 = vector.multi_reduction <maximumf>, %352, %cst_44 [2] : vector<8x8x8xf32> to vector<8x8xf32>
    %354 = vector.shape_cast %353 : vector<8x8xf32> to vector<8x8x1xf32>
    %355 = vector.broadcast %354 : vector<8x8x1xf32> to vector<8x8x8xf32>
    %356 = arith.subf %352, %355 : vector<8x8x8xf32>
    %357 = math.exp %356 : vector<8x8x8xf32>
    %cst_45 = arith.constant dense<0.000000e+00> : vector<8x8xf32>
    %358 = vector.multi_reduction <add>, %357, %cst_45 [2] : vector<8x8x8xf32> to vector<8x8xf32>
    %359 = vector.shape_cast %358 : vector<8x8xf32> to vector<8x8x1xf32>
    %360 = tpu.reciprocal %359 {approx = true} : vector<8x8x1xf32> -> vector<8x8x1xf32>
    %361 = vector.broadcast %360 : vector<8x8x1xf32> to vector<8x8x8xf32>
    %362 = arith.mulf %357, %361 : vector<8x8x8xf32>
    "tpu.trace_start"() <{level = 10 : i32, message = "hqk,hkd->hqd"}> : () -> ()
    %cst_46 = arith.constant dense<0.000000e+00> : vector<8x8x8xf32>
    %363 = tpu.matmul %362, %351, %cst_46 {dimension_numbers = #tpu.dot_dimension_numbers<[2], [1], [1], [2], [0, 0, 0, 1, 1, 2], [0], [0]>} : vector<8x8x8xf32>, vector<8x8x8xf32>, vector<8x8x8xf32> -> vector<8x8x8xf32>
    "tpu.trace_stop"() : () -> ()
    %364 = vector.extract_strided_slice %363 {offsets = [0, 0, 0], sizes = [1, 8, 8], strides = [1, 1, 1]} : vector<8x8x8xf32> to vector<1x8x8xf32>
    %365 = vector.shape_cast %364 : vector<1x8x8xf32> to vector<8x8xf32>
    %366 = vector.extract_strided_slice %363 {offsets = [1, 0, 0], sizes = [1, 8, 8], strides = [1, 1, 1]} : vector<8x8x8xf32> to vector<1x8x8xf32>
    %367 = vector.shape_cast %366 : vector<1x8x8xf32> to vector<8x8xf32>
    %368 = vector.extract_strided_slice %363 {offsets = [2, 0, 0], sizes = [1, 8, 8], strides = [1, 1, 1]} : vector<8x8x8xf32> to vector<1x8x8xf32>
    %369 = vector.shape_cast %368 : vector<1x8x8xf32> to vector<8x8xf32>
    %370 = vector.extract_strided_slice %363 {offsets = [3, 0, 0], sizes = [1, 8, 8], strides = [1, 1, 1]} : vector<8x8x8xf32> to vector<1x8x8xf32>
    %371 = vector.shape_cast %370 : vector<1x8x8xf32> to vector<8x8xf32>
    %372 = vector.extract_strided_slice %363 {offsets = [4, 0, 0], sizes = [1, 8, 8], strides = [1, 1, 1]} : vector<8x8x8xf32> to vector<1x8x8xf32>
    %373 = vector.shape_cast %372 : vector<1x8x8xf32> to vector<8x8xf32>
    %374 = vector.extract_strided_slice %363 {offsets = [5, 0, 0], sizes = [1, 8, 8], strides = [1, 1, 1]} : vector<8x8x8xf32> to vector<1x8x8xf32>
    %375 = vector.shape_cast %374 : vector<1x8x8xf32> to vector<8x8xf32>
    %376 = vector.extract_strided_slice %363 {offsets = [6, 0, 0], sizes = [1, 8, 8], strides = [1, 1, 1]} : vector<8x8x8xf32> to vector<1x8x8xf32>
    %377 = vector.shape_cast %376 : vector<1x8x8xf32> to vector<8x8xf32>
    %378 = vector.extract_strided_slice %363 {offsets = [7, 0, 0], sizes = [1, 8, 8], strides = [1, 1, 1]} : vector<8x8x8xf32> to vector<1x8x8xf32>
    %379 = vector.shape_cast %378 : vector<1x8x8xf32> to vector<8x8xf32>
    %380 = tpu.concatenate %365, %367, %369, %371, %373, %375, %377, %379 in 1 : vector<8x8xf32>, vector<8x8xf32>, vector<8x8xf32>, vector<8x8xf32>, vector<8x8xf32>, vector<8x8xf32>, vector<8x8xf32>, vector<8x8xf32> -> vector<8x64xf32>
    %381 = tpu.concatenate %300, %380 in 0 : vector<8x64xf32>, vector<8x64xf32> -> vector<16x64xf32>
    %cst_47 = arith.constant dense<0.000000e+00> : vector<16xf32>
    %382 = vector.multi_reduction <add>, %381, %cst_47 [1] : vector<16x64xf32> to vector<16xf32>
    %383 = vector.shape_cast %382 : vector<16xf32> to vector<16x1xf32>
    %cst_48 = arith.constant 6.400000e+01 : f32
    %384 = vector.broadcast %cst_48 : f32 to vector<16x1xf32>
    %385 = arith.divf %383, %384 : vector<16x1xf32>
    %386 = vector.broadcast %385 : vector<16x1xf32> to vector<16x64xf32>
    %387 = arith.subf %381, %386 : vector<16x64xf32>
    %388 = arith.mulf %387, %387 : vector<16x64xf32>
    %cst_49 = arith.constant dense<0.000000e+00> : vector<16xf32>
    %389 = vector.multi_reduction <add>, %388, %cst_49 [1] : vector<16x64xf32> to vector<16xf32>
    %390 = vector.shape_cast %389 : vector<16xf32> to vector<16x1xf32>
    %cst_50 = arith.constant 0.0158730168 : f32
    %391 = vector.broadcast %cst_50 : f32 to vector<16x1xf32>
    %392 = arith.mulf %390, %391 : vector<16x1xf32>
    %393 = math.rsqrt %392 : vector<16x1xf32>
    %394 = vector.broadcast %393 : vector<16x1xf32> to vector<16x64xf32>
    %395 = arith.mulf %387, %394 : vector<16x64xf32>
    %396 = arith.addf %212, %395 : vector<16x64xf32>
    %c0_51 = arith.constant 0 : index
    %c0_52 = arith.constant 0 : index
    %397 = vector.load %arg11[%c0_51, %c0_52] : memref<64x256xf32, #tpu.memory_space<vmem>>, vector<64x256xf32>
    %cst_53 = arith.constant dense<0.000000e+00> : vector<16x256xf32>
    %398 = tpu.matmul %396, %397, %cst_53 {dimension_numbers = #tpu.dot_dimension_numbers<[1], [0], [0], [1], [0, 0, 1, 1], [], []>} : vector<16x64xf32>, vector<64x256xf32>, vector<16x256xf32> -> vector<16x256xf32>
    %c0_54 = arith.constant 0 : index
    %c0_55 = arith.constant 0 : index
    %399 = vector.load %arg12[%c0_54, %c0_55] : memref<1x256xf32, #tpu.memory_space<vmem>>, vector<1x256xf32>
    %400 = vector.broadcast %399 : vector<1x256xf32> to vector<16x256xf32>
    %401 = arith.addf %398, %400 : vector<16x256xf32>
    %cst_56 = arith.constant 0.000000e+00 : f32
    %402 = vector.broadcast %cst_56 : f32 to vector<16x256xf32>
    %403 = arith.maximumf %401, %402 : vector<16x256xf32>
    %c0_57 = arith.constant 0 : index
    %c0_58 = arith.constant 0 : index
    %404 = vector.load %arg13[%c0_57, %c0_58] : memref<256x64xf32, #tpu.memory_space<vmem>>, vector<256x64xf32>
    %cst_59 = arith.constant dense<0.000000e+00> : vector<16x64xf32>
    %405 = tpu.matmul %403, %404, %cst_59 {dimension_numbers = #tpu.dot_dimension_numbers<[1], [0], [0], [1], [0, 0, 1, 1], [], []>} : vector<16x256xf32>, vector<256x64xf32>, vector<16x64xf32> -> vector<16x64xf32>
    %c0_60 = arith.constant 0 : index
    %c0_61 = arith.constant 0 : index
    %406 = vector.load %arg14[%c0_60, %c0_61] : memref<1x64xf32, #tpu.memory_space<vmem>>, vector<1x64xf32>
    %407 = vector.broadcast %406 : vector<1x64xf32> to vector<16x64xf32>
    %408 = arith.addf %405, %407 : vector<16x64xf32>
    %cst_62 = arith.constant dense<0.000000e+00> : vector<16xf32>
    %409 = vector.multi_reduction <add>, %408, %cst_62 [1] : vector<16x64xf32> to vector<16xf32>
    %410 = vector.shape_cast %409 : vector<16xf32> to vector<16x1xf32>
    %cst_63 = arith.constant 6.400000e+01 : f32
    %411 = vector.broadcast %cst_63 : f32 to vector<16x1xf32>
    %412 = arith.divf %410, %411 : vector<16x1xf32>
    %413 = vector.broadcast %412 : vector<16x1xf32> to vector<16x64xf32>
    %414 = arith.subf %408, %413 : vector<16x64xf32>
    %415 = arith.mulf %414, %414 : vector<16x64xf32>
    %cst_64 = arith.constant dense<0.000000e+00> : vector<16xf32>
    %416 = vector.multi_reduction <add>, %415, %cst_64 [1] : vector<16x64xf32> to vector<16xf32>
    %417 = vector.shape_cast %416 : vector<16xf32> to vector<16x1xf32>
    %cst_65 = arith.constant 0.0158730168 : f32
    %418 = vector.broadcast %cst_65 : f32 to vector<16x1xf32>
    %419 = arith.mulf %417, %418 : vector<16x1xf32>
    %420 = math.rsqrt %419 : vector<16x1xf32>
    %421 = vector.broadcast %420 : vector<16x1xf32> to vector<16x64xf32>
    %422 = arith.mulf %414, %421 : vector<16x64xf32>
    %423 = arith.addf %396, %422 : vector<16x64xf32>
    %c0_66 = arith.constant 0 : index
    %c0_67 = arith.constant 0 : index
    %424 = vector.load %arg1[%c0_66, %c0_67] : memref<16x64xf32, #tpu.memory_space<vmem>>, vector<16x64xf32>
    %cst_68 = arith.constant 1.000000e+00 : f32
    %425 = vector.broadcast %cst_68 : f32 to vector<16x1xf32>
    %426 = arith.subf %425, %0 : vector<16x1xf32>
    %427 = vector.broadcast %426 : vector<16x1xf32> to vector<16x64xf32>
    %428 = arith.mulf %424, %427 : vector<16x64xf32>
    %c0_69 = arith.constant 0 : index
    %c0_70 = arith.constant 0 : index
    %429 = vector.load %arg15[%c0_69, %c0_70] : memref<64x192xf32, #tpu.memory_space<vmem>>, vector<64x192xf32>
    %cst_71 = arith.constant dense<0.000000e+00> : vector<16x192xf32>
    %430 = tpu.matmul %428, %429, %cst_71 {dimension_numbers = #tpu.dot_dimension_numbers<[1], [0], [0], [1], [0, 0, 1, 1], [], []>} : vector<16x64xf32>, vector<64x192xf32>, vector<16x192xf32> -> vector<16x192xf32>
    %c0_72 = arith.constant 0 : index
    %c0_73 = arith.constant 0 : index
    %431 = vector.load %arg16[%c0_72, %c0_73] : memref<1x192xf32, #tpu.memory_space<vmem>>, vector<1x192xf32>
    %432 = vector.broadcast %431 : vector<1x192xf32> to vector<16x192xf32>
    %433 = arith.addf %430, %432 : vector<16x192xf32>
    %434 = vector.extract_strided_slice %433 {offsets = [0, 0], sizes = [16, 64], strides = [1, 1]} : vector<16x192xf32> to vector<16x64xf32>
    %435 = vector.extract_strided_slice %433 {offsets = [0, 64], sizes = [16, 64], strides = [1, 1]} : vector<16x192xf32> to vector<16x64xf32>
    %436 = vector.extract_strided_slice %433 {offsets = [0, 128], sizes = [16, 64], strides = [1, 1]} : vector<16x192xf32> to vector<16x64xf32>
    %437 = vector.extract_strided_slice %434 {offsets = [0, 0], sizes = [8, 8], strides = [1, 1]} : vector<16x64xf32> to vector<8x8xf32>
    %438 = vector.extract_strided_slice %434 {offsets = [0, 8], sizes = [8, 8], strides = [1, 1]} : vector<16x64xf32> to vector<8x8xf32>
    %439 = vector.extract_strided_slice %434 {offsets = [0, 16], sizes = [8, 8], strides = [1, 1]} : vector<16x64xf32> to vector<8x8xf32>
    %440 = vector.extract_strided_slice %434 {offsets = [0, 24], sizes = [8, 8], strides = [1, 1]} : vector<16x64xf32> to vector<8x8xf32>
    %441 = vector.extract_strided_slice %434 {offsets = [0, 32], sizes = [8, 8], strides = [1, 1]} : vector<16x64xf32> to vector<8x8xf32>
    %442 = vector.extract_strided_slice %434 {offsets = [0, 40], sizes = [8, 8], strides = [1, 1]} : vector<16x64xf32> to vector<8x8xf32>
    %443 = vector.extract_strided_slice %434 {offsets = [0, 48], sizes = [8, 8], strides = [1, 1]} : vector<16x64xf32> to vector<8x8xf32>
    %444 = vector.extract_strided_slice %434 {offsets = [0, 56], sizes = [8, 8], strides = [1, 1]} : vector<16x64xf32> to vector<8x8xf32>
    %445 = vector.shape_cast %437 : vector<8x8xf32> to vector<1x8x8xf32>
    %446 = vector.shape_cast %438 : vector<8x8xf32> to vector<1x8x8xf32>
    %447 = vector.shape_cast %439 : vector<8x8xf32> to vector<1x8x8xf32>
    %448 = vector.shape_cast %440 : vector<8x8xf32> to vector<1x8x8xf32>
    %449 = vector.shape_cast %441 : vector<8x8xf32> to vector<1x8x8xf32>
    %450 = vector.shape_cast %442 : vector<8x8xf32> to vector<1x8x8xf32>
    %451 = vector.shape_cast %443 : vector<8x8xf32> to vector<1x8x8xf32>
    %452 = vector.shape_cast %444 : vector<8x8xf32> to vector<1x8x8xf32>
    %453 = tpu.concatenate %445, %446, %447, %448, %449, %450, %451, %452 in 0 : vector<1x8x8xf32>, vector<1x8x8xf32>, vector<1x8x8xf32>, vector<1x8x8xf32>, vector<1x8x8xf32>, vector<1x8x8xf32>, vector<1x8x8xf32>, vector<1x8x8xf32> -> vector<8x8x8xf32>
    %454 = vector.extract_strided_slice %435 {offsets = [0, 0], sizes = [8, 8], strides = [1, 1]} : vector<16x64xf32> to vector<8x8xf32>
    %455 = vector.extract_strided_slice %435 {offsets = [0, 8], sizes = [8, 8], strides = [1, 1]} : vector<16x64xf32> to vector<8x8xf32>
    %456 = vector.extract_strided_slice %435 {offsets = [0, 16], sizes = [8, 8], strides = [1, 1]} : vector<16x64xf32> to vector<8x8xf32>
    %457 = vector.extract_strided_slice %435 {offsets = [0, 24], sizes = [8, 8], strides = [1, 1]} : vector<16x64xf32> to vector<8x8xf32>
    %458 = vector.extract_strided_slice %435 {offsets = [0, 32], sizes = [8, 8], strides = [1, 1]} : vector<16x64xf32> to vector<8x8xf32>
    %459 = vector.extract_strided_slice %435 {offsets = [0, 40], sizes = [8, 8], strides = [1, 1]} : vector<16x64xf32> to vector<8x8xf32>
    %460 = vector.extract_strided_slice %435 {offsets = [0, 48], sizes = [8, 8], strides = [1, 1]} : vector<16x64xf32> to vector<8x8xf32>
    %461 = vector.extract_strided_slice %435 {offsets = [0, 56], sizes = [8, 8], strides = [1, 1]} : vector<16x64xf32> to vector<8x8xf32>
    %462 = vector.shape_cast %454 : vector<8x8xf32> to vector<1x8x8xf32>
    %463 = vector.shape_cast %455 : vector<8x8xf32> to vector<1x8x8xf32>
    %464 = vector.shape_cast %456 : vector<8x8xf32> to vector<1x8x8xf32>
    %465 = vector.shape_cast %457 : vector<8x8xf32> to vector<1x8x8xf32>
    %466 = vector.shape_cast %458 : vector<8x8xf32> to vector<1x8x8xf32>
    %467 = vector.shape_cast %459 : vector<8x8xf32> to vector<1x8x8xf32>
    %468 = vector.shape_cast %460 : vector<8x8xf32> to vector<1x8x8xf32>
    %469 = vector.shape_cast %461 : vector<8x8xf32> to vector<1x8x8xf32>
    %470 = tpu.concatenate %462, %463, %464, %465, %466, %467, %468, %469 in 0 : vector<1x8x8xf32>, vector<1x8x8xf32>, vector<1x8x8xf32>, vector<1x8x8xf32>, vector<1x8x8xf32>, vector<1x8x8xf32>, vector<1x8x8xf32>, vector<1x8x8xf32> -> vector<8x8x8xf32>
    %471 = vector.extract_strided_slice %436 {offsets = [0, 0], sizes = [8, 8], strides = [1, 1]} : vector<16x64xf32> to vector<8x8xf32>
    %472 = vector.extract_strided_slice %436 {offsets = [0, 8], sizes = [8, 8], strides = [1, 1]} : vector<16x64xf32> to vector<8x8xf32>
    %473 = vector.extract_strided_slice %436 {offsets = [0, 16], sizes = [8, 8], strides = [1, 1]} : vector<16x64xf32> to vector<8x8xf32>
    %474 = vector.extract_strided_slice %436 {offsets = [0, 24], sizes = [8, 8], strides = [1, 1]} : vector<16x64xf32> to vector<8x8xf32>
    %475 = vector.extract_strided_slice %436 {offsets = [0, 32], sizes = [8, 8], strides = [1, 1]} : vector<16x64xf32> to vector<8x8xf32>
    %476 = vector.extract_strided_slice %436 {offsets = [0, 40], sizes = [8, 8], strides = [1, 1]} : vector<16x64xf32> to vector<8x8xf32>
    %477 = vector.extract_strided_slice %436 {offsets = [0, 48], sizes = [8, 8], strides = [1, 1]} : vector<16x64xf32> to vector<8x8xf32>
    %478 = vector.extract_strided_slice %436 {offsets = [0, 56], sizes = [8, 8], strides = [1, 1]} : vector<16x64xf32> to vector<8x8xf32>
    %479 = vector.shape_cast %471 : vector<8x8xf32> to vector<1x8x8xf32>
    %480 = vector.shape_cast %472 : vector<8x8xf32> to vector<1x8x8xf32>
    %481 = vector.shape_cast %473 : vector<8x8xf32> to vector<1x8x8xf32>
    %482 = vector.shape_cast %474 : vector<8x8xf32> to vector<1x8x8xf32>
    %483 = vector.shape_cast %475 : vector<8x8xf32> to vector<1x8x8xf32>
    %484 = vector.shape_cast %476 : vector<8x8xf32> to vector<1x8x8xf32>
    %485 = vector.shape_cast %477 : vector<8x8xf32> to vector<1x8x8xf32>
    %486 = vector.shape_cast %478 : vector<8x8xf32> to vector<1x8x8xf32>
    %487 = tpu.concatenate %479, %480, %481, %482, %483, %484, %485, %486 in 0 : vector<1x8x8xf32>, vector<1x8x8xf32>, vector<1x8x8xf32>, vector<1x8x8xf32>, vector<1x8x8xf32>, vector<1x8x8xf32>, vector<1x8x8xf32>, vector<1x8x8xf32> -> vector<8x8x8xf32>
    "tpu.trace_start"() <{level = 10 : i32, message = "hqd,hkd->hqk"}> : () -> ()
    %cst_74 = arith.constant dense<0.000000e+00> : vector<8x8x8xf32>
    %488 = tpu.matmul %453, %470, %cst_74 {dimension_numbers = #tpu.dot_dimension_numbers<[2], [2], [1], [1], [0, 0, 0, 1, 1, 1], [0], [0]>} : vector<8x8x8xf32>, vector<8x8x8xf32>, vector<8x8x8xf32> -> vector<8x8x8xf32>
    "tpu.trace_stop"() : () -> ()
    %489 = vector.extract_strided_slice %0 {offsets = [0, 0], sizes = [8, 1], strides = [1, 1]} : vector<16x1xf32> to vector<8x1xf32>
    %490 = vector.shape_cast %489 : vector<8x1xf32> to vector<1x8x1xf32>
    %cst_75 = arith.constant 5.000000e-01 : f32
    %491 = vector.broadcast %cst_75 : f32 to vector<1x8x1xf32>
    %492 = arith.cmpf ogt, %490, %491 : vector<1x8x1xf32>
    %cst_76 = arith.constant 0.000000e+00 : f32
    %493 = vector.shape_cast %492 : vector<1x8x1xi1> to vector<1x8x1xi1>
    %494 = vector.broadcast %493 : vector<1x8x1xi1> to vector<8x8x8xi1>
    %495 = vector.broadcast %cst_76 : f32 to vector<8x8x8xf32>
    %496 = arith.select %494, %495, %488 : vector<8x8x8xi1>, vector<8x8x8xf32>
    %cst_77 = arith.constant dense<0xFF800000> : vector<8x8xf32>
    %497 = vector.multi_reduction <maximumf>, %496, %cst_77 [2] : vector<8x8x8xf32> to vector<8x8xf32>
    %498 = vector.shape_cast %497 : vector<8x8xf32> to vector<8x8x1xf32>
    %499 = vector.broadcast %498 : vector<8x8x1xf32> to vector<8x8x8xf32>
    %500 = arith.subf %496, %499 : vector<8x8x8xf32>
    %501 = math.exp %500 : vector<8x8x8xf32>
    %cst_78 = arith.constant dense<0.000000e+00> : vector<8x8xf32>
    %502 = vector.multi_reduction <add>, %501, %cst_78 [2] : vector<8x8x8xf32> to vector<8x8xf32>
    %503 = vector.shape_cast %502 : vector<8x8xf32> to vector<8x8x1xf32>
    %504 = tpu.reciprocal %503 {approx = true} : vector<8x8x1xf32> -> vector<8x8x1xf32>
    %505 = vector.broadcast %504 : vector<8x8x1xf32> to vector<8x8x8xf32>
    %506 = arith.mulf %501, %505 : vector<8x8x8xf32>
    "tpu.trace_start"() <{level = 10 : i32, message = "hqk,hkd->hqd"}> : () -> ()
    %cst_79 = arith.constant dense<0.000000e+00> : vector<8x8x8xf32>
    %507 = tpu.matmul %506, %487, %cst_79 {dimension_numbers = #tpu.dot_dimension_numbers<[2], [1], [1], [2], [0, 0, 0, 1, 1, 2], [0], [0]>} : vector<8x8x8xf32>, vector<8x8x8xf32>, vector<8x8x8xf32> -> vector<8x8x8xf32>
    "tpu.trace_stop"() : () -> ()
    %508 = vector.extract_strided_slice %507 {offsets = [0, 0, 0], sizes = [1, 8, 8], strides = [1, 1, 1]} : vector<8x8x8xf32> to vector<1x8x8xf32>
    %509 = vector.shape_cast %508 : vector<1x8x8xf32> to vector<8x8xf32>
    %510 = vector.extract_strided_slice %507 {offsets = [1, 0, 0], sizes = [1, 8, 8], strides = [1, 1, 1]} : vector<8x8x8xf32> to vector<1x8x8xf32>
    %511 = vector.shape_cast %510 : vector<1x8x8xf32> to vector<8x8xf32>
    %512 = vector.extract_strided_slice %507 {offsets = [2, 0, 0], sizes = [1, 8, 8], strides = [1, 1, 1]} : vector<8x8x8xf32> to vector<1x8x8xf32>
    %513 = vector.shape_cast %512 : vector<1x8x8xf32> to vector<8x8xf32>
    %514 = vector.extract_strided_slice %507 {offsets = [3, 0, 0], sizes = [1, 8, 8], strides = [1, 1, 1]} : vector<8x8x8xf32> to vector<1x8x8xf32>
    %515 = vector.shape_cast %514 : vector<1x8x8xf32> to vector<8x8xf32>
    %516 = vector.extract_strided_slice %507 {offsets = [4, 0, 0], sizes = [1, 8, 8], strides = [1, 1, 1]} : vector<8x8x8xf32> to vector<1x8x8xf32>
    %517 = vector.shape_cast %516 : vector<1x8x8xf32> to vector<8x8xf32>
    %518 = vector.extract_strided_slice %507 {offsets = [5, 0, 0], sizes = [1, 8, 8], strides = [1, 1, 1]} : vector<8x8x8xf32> to vector<1x8x8xf32>
    %519 = vector.shape_cast %518 : vector<1x8x8xf32> to vector<8x8xf32>
    %520 = vector.extract_strided_slice %507 {offsets = [6, 0, 0], sizes = [1, 8, 8], strides = [1, 1, 1]} : vector<8x8x8xf32> to vector<1x8x8xf32>
    %521 = vector.shape_cast %520 : vector<1x8x8xf32> to vector<8x8xf32>
    %522 = vector.extract_strided_slice %507 {offsets = [7, 0, 0], sizes = [1, 8, 8], strides = [1, 1, 1]} : vector<8x8x8xf32> to vector<1x8x8xf32>
    %523 = vector.shape_cast %522 : vector<1x8x8xf32> to vector<8x8xf32>
    %524 = tpu.concatenate %509, %511, %513, %515, %517, %519, %521, %523 in 1 : vector<8x8xf32>, vector<8x8xf32>, vector<8x8xf32>, vector<8x8xf32>, vector<8x8xf32>, vector<8x8xf32>, vector<8x8xf32>, vector<8x8xf32> -> vector<8x64xf32>
    %525 = vector.extract_strided_slice %434 {offsets = [8, 0], sizes = [8, 8], strides = [1, 1]} : vector<16x64xf32> to vector<8x8xf32>
    %526 = vector.extract_strided_slice %434 {offsets = [8, 8], sizes = [8, 8], strides = [1, 1]} : vector<16x64xf32> to vector<8x8xf32>
    %527 = vector.extract_strided_slice %434 {offsets = [8, 16], sizes = [8, 8], strides = [1, 1]} : vector<16x64xf32> to vector<8x8xf32>
    %528 = vector.extract_strided_slice %434 {offsets = [8, 24], sizes = [8, 8], strides = [1, 1]} : vector<16x64xf32> to vector<8x8xf32>
    %529 = vector.extract_strided_slice %434 {offsets = [8, 32], sizes = [8, 8], strides = [1, 1]} : vector<16x64xf32> to vector<8x8xf32>
    %530 = vector.extract_strided_slice %434 {offsets = [8, 40], sizes = [8, 8], strides = [1, 1]} : vector<16x64xf32> to vector<8x8xf32>
    %531 = vector.extract_strided_slice %434 {offsets = [8, 48], sizes = [8, 8], strides = [1, 1]} : vector<16x64xf32> to vector<8x8xf32>
    %532 = vector.extract_strided_slice %434 {offsets = [8, 56], sizes = [8, 8], strides = [1, 1]} : vector<16x64xf32> to vector<8x8xf32>
    %533 = vector.shape_cast %525 : vector<8x8xf32> to vector<1x8x8xf32>
    %534 = vector.shape_cast %526 : vector<8x8xf32> to vector<1x8x8xf32>
    %535 = vector.shape_cast %527 : vector<8x8xf32> to vector<1x8x8xf32>
    %536 = vector.shape_cast %528 : vector<8x8xf32> to vector<1x8x8xf32>
    %537 = vector.shape_cast %529 : vector<8x8xf32> to vector<1x8x8xf32>
    %538 = vector.shape_cast %530 : vector<8x8xf32> to vector<1x8x8xf32>
    %539 = vector.shape_cast %531 : vector<8x8xf32> to vector<1x8x8xf32>
    %540 = vector.shape_cast %532 : vector<8x8xf32> to vector<1x8x8xf32>
    %541 = tpu.concatenate %533, %534, %535, %536, %537, %538, %539, %540 in 0 : vector<1x8x8xf32>, vector<1x8x8xf32>, vector<1x8x8xf32>, vector<1x8x8xf32>, vector<1x8x8xf32>, vector<1x8x8xf32>, vector<1x8x8xf32>, vector<1x8x8xf32> -> vector<8x8x8xf32>
    %542 = vector.extract_strided_slice %435 {offsets = [8, 0], sizes = [8, 8], strides = [1, 1]} : vector<16x64xf32> to vector<8x8xf32>
    %543 = vector.extract_strided_slice %435 {offsets = [8, 8], sizes = [8, 8], strides = [1, 1]} : vector<16x64xf32> to vector<8x8xf32>
    %544 = vector.extract_strided_slice %435 {offsets = [8, 16], sizes = [8, 8], strides = [1, 1]} : vector<16x64xf32> to vector<8x8xf32>
    %545 = vector.extract_strided_slice %435 {offsets = [8, 24], sizes = [8, 8], strides = [1, 1]} : vector<16x64xf32> to vector<8x8xf32>
    %546 = vector.extract_strided_slice %435 {offsets = [8, 32], sizes = [8, 8], strides = [1, 1]} : vector<16x64xf32> to vector<8x8xf32>
    %547 = vector.extract_strided_slice %435 {offsets = [8, 40], sizes = [8, 8], strides = [1, 1]} : vector<16x64xf32> to vector<8x8xf32>
    %548 = vector.extract_strided_slice %435 {offsets = [8, 48], sizes = [8, 8], strides = [1, 1]} : vector<16x64xf32> to vector<8x8xf32>
    %549 = vector.extract_strided_slice %435 {offsets = [8, 56], sizes = [8, 8], strides = [1, 1]} : vector<16x64xf32> to vector<8x8xf32>
    %550 = vector.shape_cast %542 : vector<8x8xf32> to vector<1x8x8xf32>
    %551 = vector.shape_cast %543 : vector<8x8xf32> to vector<1x8x8xf32>
    %552 = vector.shape_cast %544 : vector<8x8xf32> to vector<1x8x8xf32>
    %553 = vector.shape_cast %545 : vector<8x8xf32> to vector<1x8x8xf32>
    %554 = vector.shape_cast %546 : vector<8x8xf32> to vector<1x8x8xf32>
    %555 = vector.shape_cast %547 : vector<8x8xf32> to vector<1x8x8xf32>
    %556 = vector.shape_cast %548 : vector<8x8xf32> to vector<1x8x8xf32>
    %557 = vector.shape_cast %549 : vector<8x8xf32> to vector<1x8x8xf32>
    %558 = tpu.concatenate %550, %551, %552, %553, %554, %555, %556, %557 in 0 : vector<1x8x8xf32>, vector<1x8x8xf32>, vector<1x8x8xf32>, vector<1x8x8xf32>, vector<1x8x8xf32>, vector<1x8x8xf32>, vector<1x8x8xf32>, vector<1x8x8xf32> -> vector<8x8x8xf32>
    %559 = vector.extract_strided_slice %436 {offsets = [8, 0], sizes = [8, 8], strides = [1, 1]} : vector<16x64xf32> to vector<8x8xf32>
    %560 = vector.extract_strided_slice %436 {offsets = [8, 8], sizes = [8, 8], strides = [1, 1]} : vector<16x64xf32> to vector<8x8xf32>
    %561 = vector.extract_strided_slice %436 {offsets = [8, 16], sizes = [8, 8], strides = [1, 1]} : vector<16x64xf32> to vector<8x8xf32>
    %562 = vector.extract_strided_slice %436 {offsets = [8, 24], sizes = [8, 8], strides = [1, 1]} : vector<16x64xf32> to vector<8x8xf32>
    %563 = vector.extract_strided_slice %436 {offsets = [8, 32], sizes = [8, 8], strides = [1, 1]} : vector<16x64xf32> to vector<8x8xf32>
    %564 = vector.extract_strided_slice %436 {offsets = [8, 40], sizes = [8, 8], strides = [1, 1]} : vector<16x64xf32> to vector<8x8xf32>
    %565 = vector.extract_strided_slice %436 {offsets = [8, 48], sizes = [8, 8], strides = [1, 1]} : vector<16x64xf32> to vector<8x8xf32>
    %566 = vector.extract_strided_slice %436 {offsets = [8, 56], sizes = [8, 8], strides = [1, 1]} : vector<16x64xf32> to vector<8x8xf32>
    %567 = vector.shape_cast %559 : vector<8x8xf32> to vector<1x8x8xf32>
    %568 = vector.shape_cast %560 : vector<8x8xf32> to vector<1x8x8xf32>
    %569 = vector.shape_cast %561 : vector<8x8xf32> to vector<1x8x8xf32>
    %570 = vector.shape_cast %562 : vector<8x8xf32> to vector<1x8x8xf32>
    %571 = vector.shape_cast %563 : vector<8x8xf32> to vector<1x8x8xf32>
    %572 = vector.shape_cast %564 : vector<8x8xf32> to vector<1x8x8xf32>
    %573 = vector.shape_cast %565 : vector<8x8xf32> to vector<1x8x8xf32>
    %574 = vector.shape_cast %566 : vector<8x8xf32> to vector<1x8x8xf32>
    %575 = tpu.concatenate %567, %568, %569, %570, %571, %572, %573, %574 in 0 : vector<1x8x8xf32>, vector<1x8x8xf32>, vector<1x8x8xf32>, vector<1x8x8xf32>, vector<1x8x8xf32>, vector<1x8x8xf32>, vector<1x8x8xf32>, vector<1x8x8xf32> -> vector<8x8x8xf32>
    "tpu.trace_start"() <{level = 10 : i32, message = "hqd,hkd->hqk"}> : () -> ()
    %cst_80 = arith.constant dense<0.000000e+00> : vector<8x8x8xf32>
    %576 = tpu.matmul %541, %558, %cst_80 {dimension_numbers = #tpu.dot_dimension_numbers<[2], [2], [1], [1], [0, 0, 0, 1, 1, 1], [0], [0]>} : vector<8x8x8xf32>, vector<8x8x8xf32>, vector<8x8x8xf32> -> vector<8x8x8xf32>
    "tpu.trace_stop"() : () -> ()
    %577 = vector.extract_strided_slice %0 {offsets = [8, 0], sizes = [8, 1], strides = [1, 1]} : vector<16x1xf32> to vector<8x1xf32>
    %578 = vector.shape_cast %577 : vector<8x1xf32> to vector<1x8x1xf32>
    %cst_81 = arith.constant 5.000000e-01 : f32
    %579 = vector.broadcast %cst_81 : f32 to vector<1x8x1xf32>
    %580 = arith.cmpf ogt, %578, %579 : vector<1x8x1xf32>
    %cst_82 = arith.constant 0.000000e+00 : f32
    %581 = vector.shape_cast %580 : vector<1x8x1xi1> to vector<1x8x1xi1>
    %582 = vector.broadcast %581 : vector<1x8x1xi1> to vector<8x8x8xi1>
    %583 = vector.broadcast %cst_82 : f32 to vector<8x8x8xf32>
    %584 = arith.select %582, %583, %576 : vector<8x8x8xi1>, vector<8x8x8xf32>
    %cst_83 = arith.constant dense<0xFF800000> : vector<8x8xf32>
    %585 = vector.multi_reduction <maximumf>, %584, %cst_83 [2] : vector<8x8x8xf32> to vector<8x8xf32>
    %586 = vector.shape_cast %585 : vector<8x8xf32> to vector<8x8x1xf32>
    %587 = vector.broadcast %586 : vector<8x8x1xf32> to vector<8x8x8xf32>
    %588 = arith.subf %584, %587 : vector<8x8x8xf32>
    %589 = math.exp %588 : vector<8x8x8xf32>
    %cst_84 = arith.constant dense<0.000000e+00> : vector<8x8xf32>
    %590 = vector.multi_reduction <add>, %589, %cst_84 [2] : vector<8x8x8xf32> to vector<8x8xf32>
    %591 = vector.shape_cast %590 : vector<8x8xf32> to vector<8x8x1xf32>
    %592 = tpu.reciprocal %591 {approx = true} : vector<8x8x1xf32> -> vector<8x8x1xf32>
    %593 = vector.broadcast %592 : vector<8x8x1xf32> to vector<8x8x8xf32>
    %594 = arith.mulf %589, %593 : vector<8x8x8xf32>
    "tpu.trace_start"() <{level = 10 : i32, message = "hqk,hkd->hqd"}> : () -> ()
    %cst_85 = arith.constant dense<0.000000e+00> : vector<8x8x8xf32>
    %595 = tpu.matmul %594, %575, %cst_85 {dimension_numbers = #tpu.dot_dimension_numbers<[2], [1], [1], [2], [0, 0, 0, 1, 1, 2], [0], [0]>} : vector<8x8x8xf32>, vector<8x8x8xf32>, vector<8x8x8xf32> -> vector<8x8x8xf32>
    "tpu.trace_stop"() : () -> ()
    %596 = vector.extract_strided_slice %595 {offsets = [0, 0, 0], sizes = [1, 8, 8], strides = [1, 1, 1]} : vector<8x8x8xf32> to vector<1x8x8xf32>
    %597 = vector.shape_cast %596 : vector<1x8x8xf32> to vector<8x8xf32>
    %598 = vector.extract_strided_slice %595 {offsets = [1, 0, 0], sizes = [1, 8, 8], strides = [1, 1, 1]} : vector<8x8x8xf32> to vector<1x8x8xf32>
    %599 = vector.shape_cast %598 : vector<1x8x8xf32> to vector<8x8xf32>
    %600 = vector.extract_strided_slice %595 {offsets = [2, 0, 0], sizes = [1, 8, 8], strides = [1, 1, 1]} : vector<8x8x8xf32> to vector<1x8x8xf32>
    %601 = vector.shape_cast %600 : vector<1x8x8xf32> to vector<8x8xf32>
    %602 = vector.extract_strided_slice %595 {offsets = [3, 0, 0], sizes = [1, 8, 8], strides = [1, 1, 1]} : vector<8x8x8xf32> to vector<1x8x8xf32>
    %603 = vector.shape_cast %602 : vector<1x8x8xf32> to vector<8x8xf32>
    %604 = vector.extract_strided_slice %595 {offsets = [4, 0, 0], sizes = [1, 8, 8], strides = [1, 1, 1]} : vector<8x8x8xf32> to vector<1x8x8xf32>
    %605 = vector.shape_cast %604 : vector<1x8x8xf32> to vector<8x8xf32>
    %606 = vector.extract_strided_slice %595 {offsets = [5, 0, 0], sizes = [1, 8, 8], strides = [1, 1, 1]} : vector<8x8x8xf32> to vector<1x8x8xf32>
    %607 = vector.shape_cast %606 : vector<1x8x8xf32> to vector<8x8xf32>
    %608 = vector.extract_strided_slice %595 {offsets = [6, 0, 0], sizes = [1, 8, 8], strides = [1, 1, 1]} : vector<8x8x8xf32> to vector<1x8x8xf32>
    %609 = vector.shape_cast %608 : vector<1x8x8xf32> to vector<8x8xf32>
    %610 = vector.extract_strided_slice %595 {offsets = [7, 0, 0], sizes = [1, 8, 8], strides = [1, 1, 1]} : vector<8x8x8xf32> to vector<1x8x8xf32>
    %611 = vector.shape_cast %610 : vector<1x8x8xf32> to vector<8x8xf32>
    %612 = tpu.concatenate %597, %599, %601, %603, %605, %607, %609, %611 in 1 : vector<8x8xf32>, vector<8x8xf32>, vector<8x8xf32>, vector<8x8xf32>, vector<8x8xf32>, vector<8x8xf32>, vector<8x8xf32>, vector<8x8xf32> -> vector<8x64xf32>
    %613 = tpu.concatenate %524, %612 in 0 : vector<8x64xf32>, vector<8x64xf32> -> vector<16x64xf32>
    %cst_86 = arith.constant dense<0.000000e+00> : vector<16xf32>
    %614 = vector.multi_reduction <add>, %613, %cst_86 [1] : vector<16x64xf32> to vector<16xf32>
    %615 = vector.shape_cast %614 : vector<16xf32> to vector<16x1xf32>
    %cst_87 = arith.constant 6.400000e+01 : f32
    %616 = vector.broadcast %cst_87 : f32 to vector<16x1xf32>
    %617 = arith.divf %615, %616 : vector<16x1xf32>
    %618 = vector.broadcast %617 : vector<16x1xf32> to vector<16x64xf32>
    %619 = arith.subf %613, %618 : vector<16x64xf32>
    %620 = arith.mulf %619, %619 : vector<16x64xf32>
    %cst_88 = arith.constant dense<0.000000e+00> : vector<16xf32>
    %621 = vector.multi_reduction <add>, %620, %cst_88 [1] : vector<16x64xf32> to vector<16xf32>
    %622 = vector.shape_cast %621 : vector<16xf32> to vector<16x1xf32>
    %cst_89 = arith.constant 0.0158730168 : f32
    %623 = vector.broadcast %cst_89 : f32 to vector<16x1xf32>
    %624 = arith.mulf %622, %623 : vector<16x1xf32>
    %625 = math.rsqrt %624 : vector<16x1xf32>
    %626 = vector.broadcast %625 : vector<16x1xf32> to vector<16x64xf32>
    %627 = arith.mulf %619, %626 : vector<16x64xf32>
    %628 = arith.addf %428, %627 : vector<16x64xf32>
    %c0_90 = arith.constant 0 : index
    %c0_91 = arith.constant 0 : index
    %629 = vector.load %arg17[%c0_90, %c0_91] : memref<64x128xf32, #tpu.memory_space<vmem>>, vector<64x128xf32>
    %cst_92 = arith.constant dense<0.000000e+00> : vector<16x128xf32>
    %630 = tpu.matmul %423, %629, %cst_92 {dimension_numbers = #tpu.dot_dimension_numbers<[1], [0], [0], [1], [0, 0, 1, 1], [], []>} : vector<16x64xf32>, vector<64x128xf32>, vector<16x128xf32> -> vector<16x128xf32>
    %c0_93 = arith.constant 0 : index
    %c0_94 = arith.constant 0 : index
    %631 = vector.load %arg18[%c0_93, %c0_94] : memref<1x128xf32, #tpu.memory_space<vmem>>, vector<1x128xf32>
    %632 = vector.broadcast %631 : vector<1x128xf32> to vector<16x128xf32>
    %633 = arith.addf %630, %632 : vector<16x128xf32>
    %c0_95 = arith.constant 0 : index
    %c0_96 = arith.constant 0 : index
    %634 = vector.load %arg19[%c0_95, %c0_96] : memref<64x64xf32, #tpu.memory_space<vmem>>, vector<64x64xf32>
    %cst_97 = arith.constant dense<0.000000e+00> : vector<16x64xf32>
    %635 = tpu.matmul %628, %634, %cst_97 {dimension_numbers = #tpu.dot_dimension_numbers<[1], [0], [0], [1], [0, 0, 1, 1], [], []>} : vector<16x64xf32>, vector<64x64xf32>, vector<16x64xf32> -> vector<16x64xf32>
    %c0_98 = arith.constant 0 : index
    %c0_99 = arith.constant 0 : index
    %636 = vector.load %arg20[%c0_98, %c0_99] : memref<1x64xf32, #tpu.memory_space<vmem>>, vector<1x64xf32>
    %637 = vector.broadcast %636 : vector<1x64xf32> to vector<16x64xf32>
    %638 = arith.addf %635, %637 : vector<16x64xf32>
    %639 = vector.extract_strided_slice %633 {offsets = [0, 0], sizes = [16, 64], strides = [1, 1]} : vector<16x128xf32> to vector<16x64xf32>
    %640 = vector.extract_strided_slice %633 {offsets = [0, 64], sizes = [16, 64], strides = [1, 1]} : vector<16x128xf32> to vector<16x64xf32>
    %641 = vector.extract_strided_slice %639 {offsets = [0, 0], sizes = [8, 8], strides = [1, 1]} : vector<16x64xf32> to vector<8x8xf32>
    %642 = vector.extract_strided_slice %639 {offsets = [0, 8], sizes = [8, 8], strides = [1, 1]} : vector<16x64xf32> to vector<8x8xf32>
    %643 = vector.extract_strided_slice %639 {offsets = [0, 16], sizes = [8, 8], strides = [1, 1]} : vector<16x64xf32> to vector<8x8xf32>
    %644 = vector.extract_strided_slice %639 {offsets = [0, 24], sizes = [8, 8], strides = [1, 1]} : vector<16x64xf32> to vector<8x8xf32>
    %645 = vector.extract_strided_slice %639 {offsets = [0, 32], sizes = [8, 8], strides = [1, 1]} : vector<16x64xf32> to vector<8x8xf32>
    %646 = vector.extract_strided_slice %639 {offsets = [0, 40], sizes = [8, 8], strides = [1, 1]} : vector<16x64xf32> to vector<8x8xf32>
    %647 = vector.extract_strided_slice %639 {offsets = [0, 48], sizes = [8, 8], strides = [1, 1]} : vector<16x64xf32> to vector<8x8xf32>
    %648 = vector.extract_strided_slice %639 {offsets = [0, 56], sizes = [8, 8], strides = [1, 1]} : vector<16x64xf32> to vector<8x8xf32>
    %649 = vector.shape_cast %641 : vector<8x8xf32> to vector<1x8x8xf32>
    %650 = vector.shape_cast %642 : vector<8x8xf32> to vector<1x8x8xf32>
    %651 = vector.shape_cast %643 : vector<8x8xf32> to vector<1x8x8xf32>
    %652 = vector.shape_cast %644 : vector<8x8xf32> to vector<1x8x8xf32>
    %653 = vector.shape_cast %645 : vector<8x8xf32> to vector<1x8x8xf32>
    %654 = vector.shape_cast %646 : vector<8x8xf32> to vector<1x8x8xf32>
    %655 = vector.shape_cast %647 : vector<8x8xf32> to vector<1x8x8xf32>
    %656 = vector.shape_cast %648 : vector<8x8xf32> to vector<1x8x8xf32>
    %657 = tpu.concatenate %649, %650, %651, %652, %653, %654, %655, %656 in 0 : vector<1x8x8xf32>, vector<1x8x8xf32>, vector<1x8x8xf32>, vector<1x8x8xf32>, vector<1x8x8xf32>, vector<1x8x8xf32>, vector<1x8x8xf32>, vector<1x8x8xf32> -> vector<8x8x8xf32>
    %658 = vector.extract_strided_slice %640 {offsets = [0, 0], sizes = [8, 8], strides = [1, 1]} : vector<16x64xf32> to vector<8x8xf32>
    %659 = vector.extract_strided_slice %640 {offsets = [0, 8], sizes = [8, 8], strides = [1, 1]} : vector<16x64xf32> to vector<8x8xf32>
    %660 = vector.extract_strided_slice %640 {offsets = [0, 16], sizes = [8, 8], strides = [1, 1]} : vector<16x64xf32> to vector<8x8xf32>
    %661 = vector.extract_strided_slice %640 {offsets = [0, 24], sizes = [8, 8], strides = [1, 1]} : vector<16x64xf32> to vector<8x8xf32>
    %662 = vector.extract_strided_slice %640 {offsets = [0, 32], sizes = [8, 8], strides = [1, 1]} : vector<16x64xf32> to vector<8x8xf32>
    %663 = vector.extract_strided_slice %640 {offsets = [0, 40], sizes = [8, 8], strides = [1, 1]} : vector<16x64xf32> to vector<8x8xf32>
    %664 = vector.extract_strided_slice %640 {offsets = [0, 48], sizes = [8, 8], strides = [1, 1]} : vector<16x64xf32> to vector<8x8xf32>
    %665 = vector.extract_strided_slice %640 {offsets = [0, 56], sizes = [8, 8], strides = [1, 1]} : vector<16x64xf32> to vector<8x8xf32>
    %666 = vector.shape_cast %658 : vector<8x8xf32> to vector<1x8x8xf32>
    %667 = vector.shape_cast %659 : vector<8x8xf32> to vector<1x8x8xf32>
    %668 = vector.shape_cast %660 : vector<8x8xf32> to vector<1x8x8xf32>
    %669 = vector.shape_cast %661 : vector<8x8xf32> to vector<1x8x8xf32>
    %670 = vector.shape_cast %662 : vector<8x8xf32> to vector<1x8x8xf32>
    %671 = vector.shape_cast %663 : vector<8x8xf32> to vector<1x8x8xf32>
    %672 = vector.shape_cast %664 : vector<8x8xf32> to vector<1x8x8xf32>
    %673 = vector.shape_cast %665 : vector<8x8xf32> to vector<1x8x8xf32>
    %674 = tpu.concatenate %666, %667, %668, %669, %670, %671, %672, %673 in 0 : vector<1x8x8xf32>, vector<1x8x8xf32>, vector<1x8x8xf32>, vector<1x8x8xf32>, vector<1x8x8xf32>, vector<1x8x8xf32>, vector<1x8x8xf32>, vector<1x8x8xf32> -> vector<8x8x8xf32>
    %675 = vector.extract_strided_slice %638 {offsets = [0, 0], sizes = [8, 8], strides = [1, 1]} : vector<16x64xf32> to vector<8x8xf32>
    %676 = vector.extract_strided_slice %638 {offsets = [0, 8], sizes = [8, 8], strides = [1, 1]} : vector<16x64xf32> to vector<8x8xf32>
    %677 = vector.extract_strided_slice %638 {offsets = [0, 16], sizes = [8, 8], strides = [1, 1]} : vector<16x64xf32> to vector<8x8xf32>
    %678 = vector.extract_strided_slice %638 {offsets = [0, 24], sizes = [8, 8], strides = [1, 1]} : vector<16x64xf32> to vector<8x8xf32>
    %679 = vector.extract_strided_slice %638 {offsets = [0, 32], sizes = [8, 8], strides = [1, 1]} : vector<16x64xf32> to vector<8x8xf32>
    %680 = vector.extract_strided_slice %638 {offsets = [0, 40], sizes = [8, 8], strides = [1, 1]} : vector<16x64xf32> to vector<8x8xf32>
    %681 = vector.extract_strided_slice %638 {offsets = [0, 48], sizes = [8, 8], strides = [1, 1]} : vector<16x64xf32> to vector<8x8xf32>
    %682 = vector.extract_strided_slice %638 {offsets = [0, 56], sizes = [8, 8], strides = [1, 1]} : vector<16x64xf32> to vector<8x8xf32>
    %683 = vector.shape_cast %675 : vector<8x8xf32> to vector<1x8x8xf32>
    %684 = vector.shape_cast %676 : vector<8x8xf32> to vector<1x8x8xf32>
    %685 = vector.shape_cast %677 : vector<8x8xf32> to vector<1x8x8xf32>
    %686 = vector.shape_cast %678 : vector<8x8xf32> to vector<1x8x8xf32>
    %687 = vector.shape_cast %679 : vector<8x8xf32> to vector<1x8x8xf32>
    %688 = vector.shape_cast %680 : vector<8x8xf32> to vector<1x8x8xf32>
    %689 = vector.shape_cast %681 : vector<8x8xf32> to vector<1x8x8xf32>
    %690 = vector.shape_cast %682 : vector<8x8xf32> to vector<1x8x8xf32>
    %691 = tpu.concatenate %683, %684, %685, %686, %687, %688, %689, %690 in 0 : vector<1x8x8xf32>, vector<1x8x8xf32>, vector<1x8x8xf32>, vector<1x8x8xf32>, vector<1x8x8xf32>, vector<1x8x8xf32>, vector<1x8x8xf32>, vector<1x8x8xf32> -> vector<8x8x8xf32>
    "tpu.trace_start"() <{level = 10 : i32, message = "hqd,hkd->hqk"}> : () -> ()
    %cst_100 = arith.constant dense<0.000000e+00> : vector<8x8x8xf32>
    %692 = tpu.matmul %657, %674, %cst_100 {dimension_numbers = #tpu.dot_dimension_numbers<[2], [2], [1], [1], [0, 0, 0, 1, 1, 1], [0], [0]>} : vector<8x8x8xf32>, vector<8x8x8xf32>, vector<8x8x8xf32> -> vector<8x8x8xf32>
    "tpu.trace_stop"() : () -> ()
    %693 = vector.extract_strided_slice %0 {offsets = [0, 0], sizes = [8, 1], strides = [1, 1]} : vector<16x1xf32> to vector<8x1xf32>
    %694 = vector.shape_cast %693 : vector<8x1xf32> to vector<1x8x1xf32>
    %cst_101 = arith.constant 5.000000e-01 : f32
    %695 = vector.broadcast %cst_101 : f32 to vector<1x8x1xf32>
    %696 = arith.cmpf ogt, %694, %695 : vector<1x8x1xf32>
    %cst_102 = arith.constant 0.000000e+00 : f32
    %697 = vector.shape_cast %696 : vector<1x8x1xi1> to vector<1x8x1xi1>
    %698 = vector.broadcast %697 : vector<1x8x1xi1> to vector<8x8x8xi1>
    %699 = vector.broadcast %cst_102 : f32 to vector<8x8x8xf32>
    %700 = arith.select %698, %699, %692 : vector<8x8x8xi1>, vector<8x8x8xf32>
    %cst_103 = arith.constant dense<0xFF800000> : vector<8x8xf32>
    %701 = vector.multi_reduction <maximumf>, %700, %cst_103 [2] : vector<8x8x8xf32> to vector<8x8xf32>
    %702 = vector.shape_cast %701 : vector<8x8xf32> to vector<8x8x1xf32>
    %703 = vector.broadcast %702 : vector<8x8x1xf32> to vector<8x8x8xf32>
    %704 = arith.subf %700, %703 : vector<8x8x8xf32>
    %705 = math.exp %704 : vector<8x8x8xf32>
    %cst_104 = arith.constant dense<0.000000e+00> : vector<8x8xf32>
    %706 = vector.multi_reduction <add>, %705, %cst_104 [2] : vector<8x8x8xf32> to vector<8x8xf32>
    %707 = vector.shape_cast %706 : vector<8x8xf32> to vector<8x8x1xf32>
    %708 = tpu.reciprocal %707 {approx = true} : vector<8x8x1xf32> -> vector<8x8x1xf32>
    %709 = vector.broadcast %708 : vector<8x8x1xf32> to vector<8x8x8xf32>
    %710 = arith.mulf %705, %709 : vector<8x8x8xf32>
    "tpu.trace_start"() <{level = 10 : i32, message = "hqk,hkd->hqd"}> : () -> ()
    %cst_105 = arith.constant dense<0.000000e+00> : vector<8x8x8xf32>
    %711 = tpu.matmul %710, %691, %cst_105 {dimension_numbers = #tpu.dot_dimension_numbers<[2], [1], [1], [2], [0, 0, 0, 1, 1, 2], [0], [0]>} : vector<8x8x8xf32>, vector<8x8x8xf32>, vector<8x8x8xf32> -> vector<8x8x8xf32>
    "tpu.trace_stop"() : () -> ()
    %712 = vector.extract_strided_slice %711 {offsets = [0, 0, 0], sizes = [1, 8, 8], strides = [1, 1, 1]} : vector<8x8x8xf32> to vector<1x8x8xf32>
    %713 = vector.shape_cast %712 : vector<1x8x8xf32> to vector<8x8xf32>
    %714 = vector.extract_strided_slice %711 {offsets = [1, 0, 0], sizes = [1, 8, 8], strides = [1, 1, 1]} : vector<8x8x8xf32> to vector<1x8x8xf32>
    %715 = vector.shape_cast %714 : vector<1x8x8xf32> to vector<8x8xf32>
    %716 = vector.extract_strided_slice %711 {offsets = [2, 0, 0], sizes = [1, 8, 8], strides = [1, 1, 1]} : vector<8x8x8xf32> to vector<1x8x8xf32>
    %717 = vector.shape_cast %716 : vector<1x8x8xf32> to vector<8x8xf32>
    %718 = vector.extract_strided_slice %711 {offsets = [3, 0, 0], sizes = [1, 8, 8], strides = [1, 1, 1]} : vector<8x8x8xf32> to vector<1x8x8xf32>
    %719 = vector.shape_cast %718 : vector<1x8x8xf32> to vector<8x8xf32>
    %720 = vector.extract_strided_slice %711 {offsets = [4, 0, 0], sizes = [1, 8, 8], strides = [1, 1, 1]} : vector<8x8x8xf32> to vector<1x8x8xf32>
    %721 = vector.shape_cast %720 : vector<1x8x8xf32> to vector<8x8xf32>
    %722 = vector.extract_strided_slice %711 {offsets = [5, 0, 0], sizes = [1, 8, 8], strides = [1, 1, 1]} : vector<8x8x8xf32> to vector<1x8x8xf32>
    %723 = vector.shape_cast %722 : vector<1x8x8xf32> to vector<8x8xf32>
    %724 = vector.extract_strided_slice %711 {offsets = [6, 0, 0], sizes = [1, 8, 8], strides = [1, 1, 1]} : vector<8x8x8xf32> to vector<1x8x8xf32>
    %725 = vector.shape_cast %724 : vector<1x8x8xf32> to vector<8x8xf32>
    %726 = vector.extract_strided_slice %711 {offsets = [7, 0, 0], sizes = [1, 8, 8], strides = [1, 1, 1]} : vector<8x8x8xf32> to vector<1x8x8xf32>
    %727 = vector.shape_cast %726 : vector<1x8x8xf32> to vector<8x8xf32>
    %728 = tpu.concatenate %713, %715, %717, %719, %721, %723, %725, %727 in 1 : vector<8x8xf32>, vector<8x8xf32>, vector<8x8xf32>, vector<8x8xf32>, vector<8x8xf32>, vector<8x8xf32>, vector<8x8xf32>, vector<8x8xf32> -> vector<8x64xf32>
    %729 = vector.extract_strided_slice %639 {offsets = [8, 0], sizes = [8, 8], strides = [1, 1]} : vector<16x64xf32> to vector<8x8xf32>
    %730 = vector.extract_strided_slice %639 {offsets = [8, 8], sizes = [8, 8], strides = [1, 1]} : vector<16x64xf32> to vector<8x8xf32>
    %731 = vector.extract_strided_slice %639 {offsets = [8, 16], sizes = [8, 8], strides = [1, 1]} : vector<16x64xf32> to vector<8x8xf32>
    %732 = vector.extract_strided_slice %639 {offsets = [8, 24], sizes = [8, 8], strides = [1, 1]} : vector<16x64xf32> to vector<8x8xf32>
    %733 = vector.extract_strided_slice %639 {offsets = [8, 32], sizes = [8, 8], strides = [1, 1]} : vector<16x64xf32> to vector<8x8xf32>
    %734 = vector.extract_strided_slice %639 {offsets = [8, 40], sizes = [8, 8], strides = [1, 1]} : vector<16x64xf32> to vector<8x8xf32>
    %735 = vector.extract_strided_slice %639 {offsets = [8, 48], sizes = [8, 8], strides = [1, 1]} : vector<16x64xf32> to vector<8x8xf32>
    %736 = vector.extract_strided_slice %639 {offsets = [8, 56], sizes = [8, 8], strides = [1, 1]} : vector<16x64xf32> to vector<8x8xf32>
    %737 = vector.shape_cast %729 : vector<8x8xf32> to vector<1x8x8xf32>
    %738 = vector.shape_cast %730 : vector<8x8xf32> to vector<1x8x8xf32>
    %739 = vector.shape_cast %731 : vector<8x8xf32> to vector<1x8x8xf32>
    %740 = vector.shape_cast %732 : vector<8x8xf32> to vector<1x8x8xf32>
    %741 = vector.shape_cast %733 : vector<8x8xf32> to vector<1x8x8xf32>
    %742 = vector.shape_cast %734 : vector<8x8xf32> to vector<1x8x8xf32>
    %743 = vector.shape_cast %735 : vector<8x8xf32> to vector<1x8x8xf32>
    %744 = vector.shape_cast %736 : vector<8x8xf32> to vector<1x8x8xf32>
    %745 = tpu.concatenate %737, %738, %739, %740, %741, %742, %743, %744 in 0 : vector<1x8x8xf32>, vector<1x8x8xf32>, vector<1x8x8xf32>, vector<1x8x8xf32>, vector<1x8x8xf32>, vector<1x8x8xf32>, vector<1x8x8xf32>, vector<1x8x8xf32> -> vector<8x8x8xf32>
    %746 = vector.extract_strided_slice %640 {offsets = [8, 0], sizes = [8, 8], strides = [1, 1]} : vector<16x64xf32> to vector<8x8xf32>
    %747 = vector.extract_strided_slice %640 {offsets = [8, 8], sizes = [8, 8], strides = [1, 1]} : vector<16x64xf32> to vector<8x8xf32>
    %748 = vector.extract_strided_slice %640 {offsets = [8, 16], sizes = [8, 8], strides = [1, 1]} : vector<16x64xf32> to vector<8x8xf32>
    %749 = vector.extract_strided_slice %640 {offsets = [8, 24], sizes = [8, 8], strides = [1, 1]} : vector<16x64xf32> to vector<8x8xf32>
    %750 = vector.extract_strided_slice %640 {offsets = [8, 32], sizes = [8, 8], strides = [1, 1]} : vector<16x64xf32> to vector<8x8xf32>
    %751 = vector.extract_strided_slice %640 {offsets = [8, 40], sizes = [8, 8], strides = [1, 1]} : vector<16x64xf32> to vector<8x8xf32>
    %752 = vector.extract_strided_slice %640 {offsets = [8, 48], sizes = [8, 8], strides = [1, 1]} : vector<16x64xf32> to vector<8x8xf32>
    %753 = vector.extract_strided_slice %640 {offsets = [8, 56], sizes = [8, 8], strides = [1, 1]} : vector<16x64xf32> to vector<8x8xf32>
    %754 = vector.shape_cast %746 : vector<8x8xf32> to vector<1x8x8xf32>
    %755 = vector.shape_cast %747 : vector<8x8xf32> to vector<1x8x8xf32>
    %756 = vector.shape_cast %748 : vector<8x8xf32> to vector<1x8x8xf32>
    %757 = vector.shape_cast %749 : vector<8x8xf32> to vector<1x8x8xf32>
    %758 = vector.shape_cast %750 : vector<8x8xf32> to vector<1x8x8xf32>
    %759 = vector.shape_cast %751 : vector<8x8xf32> to vector<1x8x8xf32>
    %760 = vector.shape_cast %752 : vector<8x8xf32> to vector<1x8x8xf32>
    %761 = vector.shape_cast %753 : vector<8x8xf32> to vector<1x8x8xf32>
    %762 = tpu.concatenate %754, %755, %756, %757, %758, %759, %760, %761 in 0 : vector<1x8x8xf32>, vector<1x8x8xf32>, vector<1x8x8xf32>, vector<1x8x8xf32>, vector<1x8x8xf32>, vector<1x8x8xf32>, vector<1x8x8xf32>, vector<1x8x8xf32> -> vector<8x8x8xf32>
    %763 = vector.extract_strided_slice %638 {offsets = [8, 0], sizes = [8, 8], strides = [1, 1]} : vector<16x64xf32> to vector<8x8xf32>
    %764 = vector.extract_strided_slice %638 {offsets = [8, 8], sizes = [8, 8], strides = [1, 1]} : vector<16x64xf32> to vector<8x8xf32>
    %765 = vector.extract_strided_slice %638 {offsets = [8, 16], sizes = [8, 8], strides = [1, 1]} : vector<16x64xf32> to vector<8x8xf32>
    %766 = vector.extract_strided_slice %638 {offsets = [8, 24], sizes = [8, 8], strides = [1, 1]} : vector<16x64xf32> to vector<8x8xf32>
    %767 = vector.extract_strided_slice %638 {offsets = [8, 32], sizes = [8, 8], strides = [1, 1]} : vector<16x64xf32> to vector<8x8xf32>
    %768 = vector.extract_strided_slice %638 {offsets = [8, 40], sizes = [8, 8], strides = [1, 1]} : vector<16x64xf32> to vector<8x8xf32>
    %769 = vector.extract_strided_slice %638 {offsets = [8, 48], sizes = [8, 8], strides = [1, 1]} : vector<16x64xf32> to vector<8x8xf32>
    %770 = vector.extract_strided_slice %638 {offsets = [8, 56], sizes = [8, 8], strides = [1, 1]} : vector<16x64xf32> to vector<8x8xf32>
    %771 = vector.shape_cast %763 : vector<8x8xf32> to vector<1x8x8xf32>
    %772 = vector.shape_cast %764 : vector<8x8xf32> to vector<1x8x8xf32>
    %773 = vector.shape_cast %765 : vector<8x8xf32> to vector<1x8x8xf32>
    %774 = vector.shape_cast %766 : vector<8x8xf32> to vector<1x8x8xf32>
    %775 = vector.shape_cast %767 : vector<8x8xf32> to vector<1x8x8xf32>
    %776 = vector.shape_cast %768 : vector<8x8xf32> to vector<1x8x8xf32>
    %777 = vector.shape_cast %769 : vector<8x8xf32> to vector<1x8x8xf32>
    %778 = vector.shape_cast %770 : vector<8x8xf32> to vector<1x8x8xf32>
    %779 = tpu.concatenate %771, %772, %773, %774, %775, %776, %777, %778 in 0 : vector<1x8x8xf32>, vector<1x8x8xf32>, vector<1x8x8xf32>, vector<1x8x8xf32>, vector<1x8x8xf32>, vector<1x8x8xf32>, vector<1x8x8xf32>, vector<1x8x8xf32> -> vector<8x8x8xf32>
    "tpu.trace_start"() <{level = 10 : i32, message = "hqd,hkd->hqk"}> : () -> ()
    %cst_106 = arith.constant dense<0.000000e+00> : vector<8x8x8xf32>
    %780 = tpu.matmul %745, %762, %cst_106 {dimension_numbers = #tpu.dot_dimension_numbers<[2], [2], [1], [1], [0, 0, 0, 1, 1, 1], [0], [0]>} : vector<8x8x8xf32>, vector<8x8x8xf32>, vector<8x8x8xf32> -> vector<8x8x8xf32>
    "tpu.trace_stop"() : () -> ()
    %781 = vector.extract_strided_slice %0 {offsets = [8, 0], sizes = [8, 1], strides = [1, 1]} : vector<16x1xf32> to vector<8x1xf32>
    %782 = vector.shape_cast %781 : vector<8x1xf32> to vector<1x8x1xf32>
    %cst_107 = arith.constant 5.000000e-01 : f32
    %783 = vector.broadcast %cst_107 : f32 to vector<1x8x1xf32>
    %784 = arith.cmpf ogt, %782, %783 : vector<1x8x1xf32>
    %cst_108 = arith.constant 0.000000e+00 : f32
    %785 = vector.shape_cast %784 : vector<1x8x1xi1> to vector<1x8x1xi1>
    %786 = vector.broadcast %785 : vector<1x8x1xi1> to vector<8x8x8xi1>
    %787 = vector.broadcast %cst_108 : f32 to vector<8x8x8xf32>
    %788 = arith.select %786, %787, %780 : vector<8x8x8xi1>, vector<8x8x8xf32>
    %cst_109 = arith.constant dense<0xFF800000> : vector<8x8xf32>
    %789 = vector.multi_reduction <maximumf>, %788, %cst_109 [2] : vector<8x8x8xf32> to vector<8x8xf32>
    %790 = vector.shape_cast %789 : vector<8x8xf32> to vector<8x8x1xf32>
    %791 = vector.broadcast %790 : vector<8x8x1xf32> to vector<8x8x8xf32>
    %792 = arith.subf %788, %791 : vector<8x8x8xf32>
    %793 = math.exp %792 : vector<8x8x8xf32>
    %cst_110 = arith.constant dense<0.000000e+00> : vector<8x8xf32>
    %794 = vector.multi_reduction <add>, %793, %cst_110 [2] : vector<8x8x8xf32> to vector<8x8xf32>
    %795 = vector.shape_cast %794 : vector<8x8xf32> to vector<8x8x1xf32>
    %796 = tpu.reciprocal %795 {approx = true} : vector<8x8x1xf32> -> vector<8x8x1xf32>
    %797 = vector.broadcast %796 : vector<8x8x1xf32> to vector<8x8x8xf32>
    %798 = arith.mulf %793, %797 : vector<8x8x8xf32>
    "tpu.trace_start"() <{level = 10 : i32, message = "hqk,hkd->hqd"}> : () -> ()
    %cst_111 = arith.constant dense<0.000000e+00> : vector<8x8x8xf32>
    %799 = tpu.matmul %798, %779, %cst_111 {dimension_numbers = #tpu.dot_dimension_numbers<[2], [1], [1], [2], [0, 0, 0, 1, 1, 2], [0], [0]>} : vector<8x8x8xf32>, vector<8x8x8xf32>, vector<8x8x8xf32> -> vector<8x8x8xf32>
    "tpu.trace_stop"() : () -> ()
    %800 = vector.extract_strided_slice %799 {offsets = [0, 0, 0], sizes = [1, 8, 8], strides = [1, 1, 1]} : vector<8x8x8xf32> to vector<1x8x8xf32>
    %801 = vector.shape_cast %800 : vector<1x8x8xf32> to vector<8x8xf32>
    %802 = vector.extract_strided_slice %799 {offsets = [1, 0, 0], sizes = [1, 8, 8], strides = [1, 1, 1]} : vector<8x8x8xf32> to vector<1x8x8xf32>
    %803 = vector.shape_cast %802 : vector<1x8x8xf32> to vector<8x8xf32>
    %804 = vector.extract_strided_slice %799 {offsets = [2, 0, 0], sizes = [1, 8, 8], strides = [1, 1, 1]} : vector<8x8x8xf32> to vector<1x8x8xf32>
    %805 = vector.shape_cast %804 : vector<1x8x8xf32> to vector<8x8xf32>
    %806 = vector.extract_strided_slice %799 {offsets = [3, 0, 0], sizes = [1, 8, 8], strides = [1, 1, 1]} : vector<8x8x8xf32> to vector<1x8x8xf32>
    %807 = vector.shape_cast %806 : vector<1x8x8xf32> to vector<8x8xf32>
    %808 = vector.extract_strided_slice %799 {offsets = [4, 0, 0], sizes = [1, 8, 8], strides = [1, 1, 1]} : vector<8x8x8xf32> to vector<1x8x8xf32>
    %809 = vector.shape_cast %808 : vector<1x8x8xf32> to vector<8x8xf32>
    %810 = vector.extract_strided_slice %799 {offsets = [5, 0, 0], sizes = [1, 8, 8], strides = [1, 1, 1]} : vector<8x8x8xf32> to vector<1x8x8xf32>
    %811 = vector.shape_cast %810 : vector<1x8x8xf32> to vector<8x8xf32>
    %812 = vector.extract_strided_slice %799 {offsets = [6, 0, 0], sizes = [1, 8, 8], strides = [1, 1, 1]} : vector<8x8x8xf32> to vector<1x8x8xf32>
    %813 = vector.shape_cast %812 : vector<1x8x8xf32> to vector<8x8xf32>
    %814 = vector.extract_strided_slice %799 {offsets = [7, 0, 0], sizes = [1, 8, 8], strides = [1, 1, 1]} : vector<8x8x8xf32> to vector<1x8x8xf32>
    %815 = vector.shape_cast %814 : vector<1x8x8xf32> to vector<8x8xf32>
    %816 = tpu.concatenate %801, %803, %805, %807, %809, %811, %813, %815 in 1 : vector<8x8xf32>, vector<8x8xf32>, vector<8x8xf32>, vector<8x8xf32>, vector<8x8xf32>, vector<8x8xf32>, vector<8x8xf32>, vector<8x8xf32> -> vector<8x64xf32>
    %817 = tpu.concatenate %728, %816 in 0 : vector<8x64xf32>, vector<8x64xf32> -> vector<16x64xf32>
    %cst_112 = arith.constant dense<0.000000e+00> : vector<16xf32>
    %818 = vector.multi_reduction <add>, %817, %cst_112 [1] : vector<16x64xf32> to vector<16xf32>
    %819 = vector.shape_cast %818 : vector<16xf32> to vector<16x1xf32>
    %cst_113 = arith.constant 6.400000e+01 : f32
    %820 = vector.broadcast %cst_113 : f32 to vector<16x1xf32>
    %821 = arith.divf %819, %820 : vector<16x1xf32>
    %822 = vector.broadcast %821 : vector<16x1xf32> to vector<16x64xf32>
    %823 = arith.subf %817, %822 : vector<16x64xf32>
    %824 = arith.mulf %823, %823 : vector<16x64xf32>
    %cst_114 = arith.constant dense<0.000000e+00> : vector<16xf32>
    %825 = vector.multi_reduction <add>, %824, %cst_114 [1] : vector<16x64xf32> to vector<16xf32>
    %826 = vector.shape_cast %825 : vector<16xf32> to vector<16x1xf32>
    %cst_115 = arith.constant 0.0158730168 : f32
    %827 = vector.broadcast %cst_115 : f32 to vector<16x1xf32>
    %828 = arith.mulf %826, %827 : vector<16x1xf32>
    %829 = math.rsqrt %828 : vector<16x1xf32>
    %830 = vector.broadcast %829 : vector<16x1xf32> to vector<16x64xf32>
    %831 = arith.mulf %823, %830 : vector<16x64xf32>
    %832 = arith.addf %628, %831 : vector<16x64xf32>
    %c0_116 = arith.constant 0 : index
    %c0_117 = arith.constant 0 : index
    %833 = vector.load %arg21[%c0_116, %c0_117] : memref<64x256xf32, #tpu.memory_space<vmem>>, vector<64x256xf32>
    %cst_118 = arith.constant dense<0.000000e+00> : vector<16x256xf32>
    %834 = tpu.matmul %832, %833, %cst_118 {dimension_numbers = #tpu.dot_dimension_numbers<[1], [0], [0], [1], [0, 0, 1, 1], [], []>} : vector<16x64xf32>, vector<64x256xf32>, vector<16x256xf32> -> vector<16x256xf32>
    %c0_119 = arith.constant 0 : index
    %c0_120 = arith.constant 0 : index
    %835 = vector.load %arg22[%c0_119, %c0_120] : memref<1x256xf32, #tpu.memory_space<vmem>>, vector<1x256xf32>
    %836 = vector.broadcast %835 : vector<1x256xf32> to vector<16x256xf32>
    %837 = arith.addf %834, %836 : vector<16x256xf32>
    %cst_121 = arith.constant 0.000000e+00 : f32
    %838 = vector.broadcast %cst_121 : f32 to vector<16x256xf32>
    %839 = arith.maximumf %837, %838 : vector<16x256xf32>
    %c0_122 = arith.constant 0 : index
    %c0_123 = arith.constant 0 : index
    %840 = vector.load %arg23[%c0_122, %c0_123] : memref<256x64xf32, #tpu.memory_space<vmem>>, vector<256x64xf32>
    %cst_124 = arith.constant dense<0.000000e+00> : vector<16x64xf32>
    %841 = tpu.matmul %839, %840, %cst_124 {dimension_numbers = #tpu.dot_dimension_numbers<[1], [0], [0], [1], [0, 0, 1, 1], [], []>} : vector<16x256xf32>, vector<256x64xf32>, vector<16x64xf32> -> vector<16x64xf32>
    %c0_125 = arith.constant 0 : index
    %c0_126 = arith.constant 0 : index
    %842 = vector.load %arg24[%c0_125, %c0_126] : memref<1x64xf32, #tpu.memory_space<vmem>>, vector<1x64xf32>
    %843 = vector.broadcast %842 : vector<1x64xf32> to vector<16x64xf32>
    %844 = arith.addf %841, %843 : vector<16x64xf32>
    %cst_127 = arith.constant dense<0.000000e+00> : vector<16xf32>
    %845 = vector.multi_reduction <add>, %844, %cst_127 [1] : vector<16x64xf32> to vector<16xf32>
    %846 = vector.shape_cast %845 : vector<16xf32> to vector<16x1xf32>
    %cst_128 = arith.constant 6.400000e+01 : f32
    %847 = vector.broadcast %cst_128 : f32 to vector<16x1xf32>
    %848 = arith.divf %846, %847 : vector<16x1xf32>
    %849 = vector.broadcast %848 : vector<16x1xf32> to vector<16x64xf32>
    %850 = arith.subf %844, %849 : vector<16x64xf32>
    %851 = arith.mulf %850, %850 : vector<16x64xf32>
    %cst_129 = arith.constant dense<0.000000e+00> : vector<16xf32>
    %852 = vector.multi_reduction <add>, %851, %cst_129 [1] : vector<16x64xf32> to vector<16xf32>
    %853 = vector.shape_cast %852 : vector<16xf32> to vector<16x1xf32>
    %cst_130 = arith.constant 0.0158730168 : f32
    %854 = vector.broadcast %cst_130 : f32 to vector<16x1xf32>
    %855 = arith.mulf %853, %854 : vector<16x1xf32>
    %856 = math.rsqrt %855 : vector<16x1xf32>
    %857 = vector.broadcast %856 : vector<16x1xf32> to vector<16x64xf32>
    %858 = arith.mulf %850, %857 : vector<16x64xf32>
    %859 = arith.addf %832, %858 : vector<16x64xf32>
    %c0_131 = arith.constant 0 : index
    %c0_132 = arith.constant 0 : index
    %860 = vector.load %arg25[%c0_131, %c0_132] : memref<64x192xf32, #tpu.memory_space<vmem>>, vector<64x192xf32>
    %cst_133 = arith.constant dense<0.000000e+00> : vector<16x192xf32>
    %861 = tpu.matmul %859, %860, %cst_133 {dimension_numbers = #tpu.dot_dimension_numbers<[1], [0], [0], [1], [0, 0, 1, 1], [], []>} : vector<16x64xf32>, vector<64x192xf32>, vector<16x192xf32> -> vector<16x192xf32>
    %c0_134 = arith.constant 0 : index
    %c0_135 = arith.constant 0 : index
    %862 = vector.load %arg26[%c0_134, %c0_135] : memref<1x192xf32, #tpu.memory_space<vmem>>, vector<1x192xf32>
    %863 = vector.broadcast %862 : vector<1x192xf32> to vector<16x192xf32>
    %864 = arith.addf %861, %863 : vector<16x192xf32>
    %865 = vector.extract_strided_slice %864 {offsets = [0, 0], sizes = [16, 64], strides = [1, 1]} : vector<16x192xf32> to vector<16x64xf32>
    %866 = vector.extract_strided_slice %864 {offsets = [0, 64], sizes = [16, 64], strides = [1, 1]} : vector<16x192xf32> to vector<16x64xf32>
    %867 = vector.extract_strided_slice %864 {offsets = [0, 128], sizes = [16, 64], strides = [1, 1]} : vector<16x192xf32> to vector<16x64xf32>
    %868 = vector.extract_strided_slice %865 {offsets = [0, 0], sizes = [8, 8], strides = [1, 1]} : vector<16x64xf32> to vector<8x8xf32>
    %869 = vector.extract_strided_slice %865 {offsets = [0, 8], sizes = [8, 8], strides = [1, 1]} : vector<16x64xf32> to vector<8x8xf32>
    %870 = vector.extract_strided_slice %865 {offsets = [0, 16], sizes = [8, 8], strides = [1, 1]} : vector<16x64xf32> to vector<8x8xf32>
    %871 = vector.extract_strided_slice %865 {offsets = [0, 24], sizes = [8, 8], strides = [1, 1]} : vector<16x64xf32> to vector<8x8xf32>
    %872 = vector.extract_strided_slice %865 {offsets = [0, 32], sizes = [8, 8], strides = [1, 1]} : vector<16x64xf32> to vector<8x8xf32>
    %873 = vector.extract_strided_slice %865 {offsets = [0, 40], sizes = [8, 8], strides = [1, 1]} : vector<16x64xf32> to vector<8x8xf32>
    %874 = vector.extract_strided_slice %865 {offsets = [0, 48], sizes = [8, 8], strides = [1, 1]} : vector<16x64xf32> to vector<8x8xf32>
    %875 = vector.extract_strided_slice %865 {offsets = [0, 56], sizes = [8, 8], strides = [1, 1]} : vector<16x64xf32> to vector<8x8xf32>
    %876 = vector.shape_cast %868 : vector<8x8xf32> to vector<1x8x8xf32>
    %877 = vector.shape_cast %869 : vector<8x8xf32> to vector<1x8x8xf32>
    %878 = vector.shape_cast %870 : vector<8x8xf32> to vector<1x8x8xf32>
    %879 = vector.shape_cast %871 : vector<8x8xf32> to vector<1x8x8xf32>
    %880 = vector.shape_cast %872 : vector<8x8xf32> to vector<1x8x8xf32>
    %881 = vector.shape_cast %873 : vector<8x8xf32> to vector<1x8x8xf32>
    %882 = vector.shape_cast %874 : vector<8x8xf32> to vector<1x8x8xf32>
    %883 = vector.shape_cast %875 : vector<8x8xf32> to vector<1x8x8xf32>
    %884 = tpu.concatenate %876, %877, %878, %879, %880, %881, %882, %883 in 0 : vector<1x8x8xf32>, vector<1x8x8xf32>, vector<1x8x8xf32>, vector<1x8x8xf32>, vector<1x8x8xf32>, vector<1x8x8xf32>, vector<1x8x8xf32>, vector<1x8x8xf32> -> vector<8x8x8xf32>
    %885 = vector.extract_strided_slice %866 {offsets = [0, 0], sizes = [8, 8], strides = [1, 1]} : vector<16x64xf32> to vector<8x8xf32>
    %886 = vector.extract_strided_slice %866 {offsets = [0, 8], sizes = [8, 8], strides = [1, 1]} : vector<16x64xf32> to vector<8x8xf32>
    %887 = vector.extract_strided_slice %866 {offsets = [0, 16], sizes = [8, 8], strides = [1, 1]} : vector<16x64xf32> to vector<8x8xf32>
    %888 = vector.extract_strided_slice %866 {offsets = [0, 24], sizes = [8, 8], strides = [1, 1]} : vector<16x64xf32> to vector<8x8xf32>
    %889 = vector.extract_strided_slice %866 {offsets = [0, 32], sizes = [8, 8], strides = [1, 1]} : vector<16x64xf32> to vector<8x8xf32>
    %890 = vector.extract_strided_slice %866 {offsets = [0, 40], sizes = [8, 8], strides = [1, 1]} : vector<16x64xf32> to vector<8x8xf32>
    %891 = vector.extract_strided_slice %866 {offsets = [0, 48], sizes = [8, 8], strides = [1, 1]} : vector<16x64xf32> to vector<8x8xf32>
    %892 = vector.extract_strided_slice %866 {offsets = [0, 56], sizes = [8, 8], strides = [1, 1]} : vector<16x64xf32> to vector<8x8xf32>
    %893 = vector.shape_cast %885 : vector<8x8xf32> to vector<1x8x8xf32>
    %894 = vector.shape_cast %886 : vector<8x8xf32> to vector<1x8x8xf32>
    %895 = vector.shape_cast %887 : vector<8x8xf32> to vector<1x8x8xf32>
    %896 = vector.shape_cast %888 : vector<8x8xf32> to vector<1x8x8xf32>
    %897 = vector.shape_cast %889 : vector<8x8xf32> to vector<1x8x8xf32>
    %898 = vector.shape_cast %890 : vector<8x8xf32> to vector<1x8x8xf32>
    %899 = vector.shape_cast %891 : vector<8x8xf32> to vector<1x8x8xf32>
    %900 = vector.shape_cast %892 : vector<8x8xf32> to vector<1x8x8xf32>
    %901 = tpu.concatenate %893, %894, %895, %896, %897, %898, %899, %900 in 0 : vector<1x8x8xf32>, vector<1x8x8xf32>, vector<1x8x8xf32>, vector<1x8x8xf32>, vector<1x8x8xf32>, vector<1x8x8xf32>, vector<1x8x8xf32>, vector<1x8x8xf32> -> vector<8x8x8xf32>
    %902 = vector.extract_strided_slice %867 {offsets = [0, 0], sizes = [8, 8], strides = [1, 1]} : vector<16x64xf32> to vector<8x8xf32>
    %903 = vector.extract_strided_slice %867 {offsets = [0, 8], sizes = [8, 8], strides = [1, 1]} : vector<16x64xf32> to vector<8x8xf32>
    %904 = vector.extract_strided_slice %867 {offsets = [0, 16], sizes = [8, 8], strides = [1, 1]} : vector<16x64xf32> to vector<8x8xf32>
    %905 = vector.extract_strided_slice %867 {offsets = [0, 24], sizes = [8, 8], strides = [1, 1]} : vector<16x64xf32> to vector<8x8xf32>
    %906 = vector.extract_strided_slice %867 {offsets = [0, 32], sizes = [8, 8], strides = [1, 1]} : vector<16x64xf32> to vector<8x8xf32>
    %907 = vector.extract_strided_slice %867 {offsets = [0, 40], sizes = [8, 8], strides = [1, 1]} : vector<16x64xf32> to vector<8x8xf32>
    %908 = vector.extract_strided_slice %867 {offsets = [0, 48], sizes = [8, 8], strides = [1, 1]} : vector<16x64xf32> to vector<8x8xf32>
    %909 = vector.extract_strided_slice %867 {offsets = [0, 56], sizes = [8, 8], strides = [1, 1]} : vector<16x64xf32> to vector<8x8xf32>
    %910 = vector.shape_cast %902 : vector<8x8xf32> to vector<1x8x8xf32>
    %911 = vector.shape_cast %903 : vector<8x8xf32> to vector<1x8x8xf32>
    %912 = vector.shape_cast %904 : vector<8x8xf32> to vector<1x8x8xf32>
    %913 = vector.shape_cast %905 : vector<8x8xf32> to vector<1x8x8xf32>
    %914 = vector.shape_cast %906 : vector<8x8xf32> to vector<1x8x8xf32>
    %915 = vector.shape_cast %907 : vector<8x8xf32> to vector<1x8x8xf32>
    %916 = vector.shape_cast %908 : vector<8x8xf32> to vector<1x8x8xf32>
    %917 = vector.shape_cast %909 : vector<8x8xf32> to vector<1x8x8xf32>
    %918 = tpu.concatenate %910, %911, %912, %913, %914, %915, %916, %917 in 0 : vector<1x8x8xf32>, vector<1x8x8xf32>, vector<1x8x8xf32>, vector<1x8x8xf32>, vector<1x8x8xf32>, vector<1x8x8xf32>, vector<1x8x8xf32>, vector<1x8x8xf32> -> vector<8x8x8xf32>
    "tpu.trace_start"() <{level = 10 : i32, message = "hqd,hkd->hqk"}> : () -> ()
    %cst_136 = arith.constant dense<0.000000e+00> : vector<8x8x8xf32>
    %919 = tpu.matmul %884, %901, %cst_136 {dimension_numbers = #tpu.dot_dimension_numbers<[2], [2], [1], [1], [0, 0, 0, 1, 1, 1], [0], [0]>} : vector<8x8x8xf32>, vector<8x8x8xf32>, vector<8x8x8xf32> -> vector<8x8x8xf32>
    "tpu.trace_stop"() : () -> ()
    %920 = vector.extract_strided_slice %0 {offsets = [0, 0], sizes = [8, 1], strides = [1, 1]} : vector<16x1xf32> to vector<8x1xf32>
    %921 = vector.shape_cast %920 : vector<8x1xf32> to vector<1x8x1xf32>
    %cst_137 = arith.constant 5.000000e-01 : f32
    %922 = vector.broadcast %cst_137 : f32 to vector<1x8x1xf32>
    %923 = arith.cmpf ogt, %921, %922 : vector<1x8x1xf32>
    %cst_138 = arith.constant 0.000000e+00 : f32
    %924 = vector.shape_cast %923 : vector<1x8x1xi1> to vector<1x8x1xi1>
    %925 = vector.broadcast %924 : vector<1x8x1xi1> to vector<8x8x8xi1>
    %926 = vector.broadcast %cst_138 : f32 to vector<8x8x8xf32>
    %927 = arith.select %925, %926, %919 : vector<8x8x8xi1>, vector<8x8x8xf32>
    %cst_139 = arith.constant dense<0xFF800000> : vector<8x8xf32>
    %928 = vector.multi_reduction <maximumf>, %927, %cst_139 [2] : vector<8x8x8xf32> to vector<8x8xf32>
    %929 = vector.shape_cast %928 : vector<8x8xf32> to vector<8x8x1xf32>
    %930 = vector.broadcast %929 : vector<8x8x1xf32> to vector<8x8x8xf32>
    %931 = arith.subf %927, %930 : vector<8x8x8xf32>
    %932 = math.exp %931 : vector<8x8x8xf32>
    %cst_140 = arith.constant dense<0.000000e+00> : vector<8x8xf32>
    %933 = vector.multi_reduction <add>, %932, %cst_140 [2] : vector<8x8x8xf32> to vector<8x8xf32>
    %934 = vector.shape_cast %933 : vector<8x8xf32> to vector<8x8x1xf32>
    %935 = tpu.reciprocal %934 {approx = true} : vector<8x8x1xf32> -> vector<8x8x1xf32>
    %936 = vector.broadcast %935 : vector<8x8x1xf32> to vector<8x8x8xf32>
    %937 = arith.mulf %932, %936 : vector<8x8x8xf32>
    "tpu.trace_start"() <{level = 10 : i32, message = "hqk,hkd->hqd"}> : () -> ()
    %cst_141 = arith.constant dense<0.000000e+00> : vector<8x8x8xf32>
    %938 = tpu.matmul %937, %918, %cst_141 {dimension_numbers = #tpu.dot_dimension_numbers<[2], [1], [1], [2], [0, 0, 0, 1, 1, 2], [0], [0]>} : vector<8x8x8xf32>, vector<8x8x8xf32>, vector<8x8x8xf32> -> vector<8x8x8xf32>
    "tpu.trace_stop"() : () -> ()
    %939 = vector.extract_strided_slice %938 {offsets = [0, 0, 0], sizes = [1, 8, 8], strides = [1, 1, 1]} : vector<8x8x8xf32> to vector<1x8x8xf32>
    %940 = vector.shape_cast %939 : vector<1x8x8xf32> to vector<8x8xf32>
    %941 = vector.extract_strided_slice %938 {offsets = [1, 0, 0], sizes = [1, 8, 8], strides = [1, 1, 1]} : vector<8x8x8xf32> to vector<1x8x8xf32>
    %942 = vector.shape_cast %941 : vector<1x8x8xf32> to vector<8x8xf32>
    %943 = vector.extract_strided_slice %938 {offsets = [2, 0, 0], sizes = [1, 8, 8], strides = [1, 1, 1]} : vector<8x8x8xf32> to vector<1x8x8xf32>
    %944 = vector.shape_cast %943 : vector<1x8x8xf32> to vector<8x8xf32>
    %945 = vector.extract_strided_slice %938 {offsets = [3, 0, 0], sizes = [1, 8, 8], strides = [1, 1, 1]} : vector<8x8x8xf32> to vector<1x8x8xf32>
    %946 = vector.shape_cast %945 : vector<1x8x8xf32> to vector<8x8xf32>
    %947 = vector.extract_strided_slice %938 {offsets = [4, 0, 0], sizes = [1, 8, 8], strides = [1, 1, 1]} : vector<8x8x8xf32> to vector<1x8x8xf32>
    %948 = vector.shape_cast %947 : vector<1x8x8xf32> to vector<8x8xf32>
    %949 = vector.extract_strided_slice %938 {offsets = [5, 0, 0], sizes = [1, 8, 8], strides = [1, 1, 1]} : vector<8x8x8xf32> to vector<1x8x8xf32>
    %950 = vector.shape_cast %949 : vector<1x8x8xf32> to vector<8x8xf32>
    %951 = vector.extract_strided_slice %938 {offsets = [6, 0, 0], sizes = [1, 8, 8], strides = [1, 1, 1]} : vector<8x8x8xf32> to vector<1x8x8xf32>
    %952 = vector.shape_cast %951 : vector<1x8x8xf32> to vector<8x8xf32>
    %953 = vector.extract_strided_slice %938 {offsets = [7, 0, 0], sizes = [1, 8, 8], strides = [1, 1, 1]} : vector<8x8x8xf32> to vector<1x8x8xf32>
    %954 = vector.shape_cast %953 : vector<1x8x8xf32> to vector<8x8xf32>
    %955 = tpu.concatenate %940, %942, %944, %946, %948, %950, %952, %954 in 1 : vector<8x8xf32>, vector<8x8xf32>, vector<8x8xf32>, vector<8x8xf32>, vector<8x8xf32>, vector<8x8xf32>, vector<8x8xf32>, vector<8x8xf32> -> vector<8x64xf32>
    %956 = vector.extract_strided_slice %865 {offsets = [8, 0], sizes = [8, 8], strides = [1, 1]} : vector<16x64xf32> to vector<8x8xf32>
    %957 = vector.extract_strided_slice %865 {offsets = [8, 8], sizes = [8, 8], strides = [1, 1]} : vector<16x64xf32> to vector<8x8xf32>
    %958 = vector.extract_strided_slice %865 {offsets = [8, 16], sizes = [8, 8], strides = [1, 1]} : vector<16x64xf32> to vector<8x8xf32>
    %959 = vector.extract_strided_slice %865 {offsets = [8, 24], sizes = [8, 8], strides = [1, 1]} : vector<16x64xf32> to vector<8x8xf32>
    %960 = vector.extract_strided_slice %865 {offsets = [8, 32], sizes = [8, 8], strides = [1, 1]} : vector<16x64xf32> to vector<8x8xf32>
    %961 = vector.extract_strided_slice %865 {offsets = [8, 40], sizes = [8, 8], strides = [1, 1]} : vector<16x64xf32> to vector<8x8xf32>
    %962 = vector.extract_strided_slice %865 {offsets = [8, 48], sizes = [8, 8], strides = [1, 1]} : vector<16x64xf32> to vector<8x8xf32>
    %963 = vector.extract_strided_slice %865 {offsets = [8, 56], sizes = [8, 8], strides = [1, 1]} : vector<16x64xf32> to vector<8x8xf32>
    %964 = vector.shape_cast %956 : vector<8x8xf32> to vector<1x8x8xf32>
    %965 = vector.shape_cast %957 : vector<8x8xf32> to vector<1x8x8xf32>
    %966 = vector.shape_cast %958 : vector<8x8xf32> to vector<1x8x8xf32>
    %967 = vector.shape_cast %959 : vector<8x8xf32> to vector<1x8x8xf32>
    %968 = vector.shape_cast %960 : vector<8x8xf32> to vector<1x8x8xf32>
    %969 = vector.shape_cast %961 : vector<8x8xf32> to vector<1x8x8xf32>
    %970 = vector.shape_cast %962 : vector<8x8xf32> to vector<1x8x8xf32>
    %971 = vector.shape_cast %963 : vector<8x8xf32> to vector<1x8x8xf32>
    %972 = tpu.concatenate %964, %965, %966, %967, %968, %969, %970, %971 in 0 : vector<1x8x8xf32>, vector<1x8x8xf32>, vector<1x8x8xf32>, vector<1x8x8xf32>, vector<1x8x8xf32>, vector<1x8x8xf32>, vector<1x8x8xf32>, vector<1x8x8xf32> -> vector<8x8x8xf32>
    %973 = vector.extract_strided_slice %866 {offsets = [8, 0], sizes = [8, 8], strides = [1, 1]} : vector<16x64xf32> to vector<8x8xf32>
    %974 = vector.extract_strided_slice %866 {offsets = [8, 8], sizes = [8, 8], strides = [1, 1]} : vector<16x64xf32> to vector<8x8xf32>
    %975 = vector.extract_strided_slice %866 {offsets = [8, 16], sizes = [8, 8], strides = [1, 1]} : vector<16x64xf32> to vector<8x8xf32>
    %976 = vector.extract_strided_slice %866 {offsets = [8, 24], sizes = [8, 8], strides = [1, 1]} : vector<16x64xf32> to vector<8x8xf32>
    %977 = vector.extract_strided_slice %866 {offsets = [8, 32], sizes = [8, 8], strides = [1, 1]} : vector<16x64xf32> to vector<8x8xf32>
    %978 = vector.extract_strided_slice %866 {offsets = [8, 40], sizes = [8, 8], strides = [1, 1]} : vector<16x64xf32> to vector<8x8xf32>
    %979 = vector.extract_strided_slice %866 {offsets = [8, 48], sizes = [8, 8], strides = [1, 1]} : vector<16x64xf32> to vector<8x8xf32>
    %980 = vector.extract_strided_slice %866 {offsets = [8, 56], sizes = [8, 8], strides = [1, 1]} : vector<16x64xf32> to vector<8x8xf32>
    %981 = vector.shape_cast %973 : vector<8x8xf32> to vector<1x8x8xf32>
    %982 = vector.shape_cast %974 : vector<8x8xf32> to vector<1x8x8xf32>
    %983 = vector.shape_cast %975 : vector<8x8xf32> to vector<1x8x8xf32>
    %984 = vector.shape_cast %976 : vector<8x8xf32> to vector<1x8x8xf32>
    %985 = vector.shape_cast %977 : vector<8x8xf32> to vector<1x8x8xf32>
    %986 = vector.shape_cast %978 : vector<8x8xf32> to vector<1x8x8xf32>
    %987 = vector.shape_cast %979 : vector<8x8xf32> to vector<1x8x8xf32>
    %988 = vector.shape_cast %980 : vector<8x8xf32> to vector<1x8x8xf32>
    %989 = tpu.concatenate %981, %982, %983, %984, %985, %986, %987, %988 in 0 : vector<1x8x8xf32>, vector<1x8x8xf32>, vector<1x8x8xf32>, vector<1x8x8xf32>, vector<1x8x8xf32>, vector<1x8x8xf32>, vector<1x8x8xf32>, vector<1x8x8xf32> -> vector<8x8x8xf32>
    %990 = vector.extract_strided_slice %867 {offsets = [8, 0], sizes = [8, 8], strides = [1, 1]} : vector<16x64xf32> to vector<8x8xf32>
    %991 = vector.extract_strided_slice %867 {offsets = [8, 8], sizes = [8, 8], strides = [1, 1]} : vector<16x64xf32> to vector<8x8xf32>
    %992 = vector.extract_strided_slice %867 {offsets = [8, 16], sizes = [8, 8], strides = [1, 1]} : vector<16x64xf32> to vector<8x8xf32>
    %993 = vector.extract_strided_slice %867 {offsets = [8, 24], sizes = [8, 8], strides = [1, 1]} : vector<16x64xf32> to vector<8x8xf32>
    %994 = vector.extract_strided_slice %867 {offsets = [8, 32], sizes = [8, 8], strides = [1, 1]} : vector<16x64xf32> to vector<8x8xf32>
    %995 = vector.extract_strided_slice %867 {offsets = [8, 40], sizes = [8, 8], strides = [1, 1]} : vector<16x64xf32> to vector<8x8xf32>
    %996 = vector.extract_strided_slice %867 {offsets = [8, 48], sizes = [8, 8], strides = [1, 1]} : vector<16x64xf32> to vector<8x8xf32>
    %997 = vector.extract_strided_slice %867 {offsets = [8, 56], sizes = [8, 8], strides = [1, 1]} : vector<16x64xf32> to vector<8x8xf32>
    %998 = vector.shape_cast %990 : vector<8x8xf32> to vector<1x8x8xf32>
    %999 = vector.shape_cast %991 : vector<8x8xf32> to vector<1x8x8xf32>
    %1000 = vector.shape_cast %992 : vector<8x8xf32> to vector<1x8x8xf32>
    %1001 = vector.shape_cast %993 : vector<8x8xf32> to vector<1x8x8xf32>
    %1002 = vector.shape_cast %994 : vector<8x8xf32> to vector<1x8x8xf32>
    %1003 = vector.shape_cast %995 : vector<8x8xf32> to vector<1x8x8xf32>
    %1004 = vector.shape_cast %996 : vector<8x8xf32> to vector<1x8x8xf32>
    %1005 = vector.shape_cast %997 : vector<8x8xf32> to vector<1x8x8xf32>
    %1006 = tpu.concatenate %998, %999, %1000, %1001, %1002, %1003, %1004, %1005 in 0 : vector<1x8x8xf32>, vector<1x8x8xf32>, vector<1x8x8xf32>, vector<1x8x8xf32>, vector<1x8x8xf32>, vector<1x8x8xf32>, vector<1x8x8xf32>, vector<1x8x8xf32> -> vector<8x8x8xf32>
    "tpu.trace_start"() <{level = 10 : i32, message = "hqd,hkd->hqk"}> : () -> ()
    %cst_142 = arith.constant dense<0.000000e+00> : vector<8x8x8xf32>
    %1007 = tpu.matmul %972, %989, %cst_142 {dimension_numbers = #tpu.dot_dimension_numbers<[2], [2], [1], [1], [0, 0, 0, 1, 1, 1], [0], [0]>} : vector<8x8x8xf32>, vector<8x8x8xf32>, vector<8x8x8xf32> -> vector<8x8x8xf32>
    "tpu.trace_stop"() : () -> ()
    %1008 = vector.extract_strided_slice %0 {offsets = [8, 0], sizes = [8, 1], strides = [1, 1]} : vector<16x1xf32> to vector<8x1xf32>
    %1009 = vector.shape_cast %1008 : vector<8x1xf32> to vector<1x8x1xf32>
    %cst_143 = arith.constant 5.000000e-01 : f32
    %1010 = vector.broadcast %cst_143 : f32 to vector<1x8x1xf32>
    %1011 = arith.cmpf ogt, %1009, %1010 : vector<1x8x1xf32>
    %cst_144 = arith.constant 0.000000e+00 : f32
    %1012 = vector.shape_cast %1011 : vector<1x8x1xi1> to vector<1x8x1xi1>
    %1013 = vector.broadcast %1012 : vector<1x8x1xi1> to vector<8x8x8xi1>
    %1014 = vector.broadcast %cst_144 : f32 to vector<8x8x8xf32>
    %1015 = arith.select %1013, %1014, %1007 : vector<8x8x8xi1>, vector<8x8x8xf32>
    %cst_145 = arith.constant dense<0xFF800000> : vector<8x8xf32>
    %1016 = vector.multi_reduction <maximumf>, %1015, %cst_145 [2] : vector<8x8x8xf32> to vector<8x8xf32>
    %1017 = vector.shape_cast %1016 : vector<8x8xf32> to vector<8x8x1xf32>
    %1018 = vector.broadcast %1017 : vector<8x8x1xf32> to vector<8x8x8xf32>
    %1019 = arith.subf %1015, %1018 : vector<8x8x8xf32>
    %1020 = math.exp %1019 : vector<8x8x8xf32>
    %cst_146 = arith.constant dense<0.000000e+00> : vector<8x8xf32>
    %1021 = vector.multi_reduction <add>, %1020, %cst_146 [2] : vector<8x8x8xf32> to vector<8x8xf32>
    %1022 = vector.shape_cast %1021 : vector<8x8xf32> to vector<8x8x1xf32>
    %1023 = tpu.reciprocal %1022 {approx = true} : vector<8x8x1xf32> -> vector<8x8x1xf32>
    %1024 = vector.broadcast %1023 : vector<8x8x1xf32> to vector<8x8x8xf32>
    %1025 = arith.mulf %1020, %1024 : vector<8x8x8xf32>
    "tpu.trace_start"() <{level = 10 : i32, message = "hqk,hkd->hqd"}> : () -> ()
    %cst_147 = arith.constant dense<0.000000e+00> : vector<8x8x8xf32>
    %1026 = tpu.matmul %1025, %1006, %cst_147 {dimension_numbers = #tpu.dot_dimension_numbers<[2], [1], [1], [2], [0, 0, 0, 1, 1, 2], [0], [0]>} : vector<8x8x8xf32>, vector<8x8x8xf32>, vector<8x8x8xf32> -> vector<8x8x8xf32>
    "tpu.trace_stop"() : () -> ()
    %1027 = vector.extract_strided_slice %1026 {offsets = [0, 0, 0], sizes = [1, 8, 8], strides = [1, 1, 1]} : vector<8x8x8xf32> to vector<1x8x8xf32>
    %1028 = vector.shape_cast %1027 : vector<1x8x8xf32> to vector<8x8xf32>
    %1029 = vector.extract_strided_slice %1026 {offsets = [1, 0, 0], sizes = [1, 8, 8], strides = [1, 1, 1]} : vector<8x8x8xf32> to vector<1x8x8xf32>
    %1030 = vector.shape_cast %1029 : vector<1x8x8xf32> to vector<8x8xf32>
    %1031 = vector.extract_strided_slice %1026 {offsets = [2, 0, 0], sizes = [1, 8, 8], strides = [1, 1, 1]} : vector<8x8x8xf32> to vector<1x8x8xf32>
    %1032 = vector.shape_cast %1031 : vector<1x8x8xf32> to vector<8x8xf32>
    %1033 = vector.extract_strided_slice %1026 {offsets = [3, 0, 0], sizes = [1, 8, 8], strides = [1, 1, 1]} : vector<8x8x8xf32> to vector<1x8x8xf32>
    %1034 = vector.shape_cast %1033 : vector<1x8x8xf32> to vector<8x8xf32>
    %1035 = vector.extract_strided_slice %1026 {offsets = [4, 0, 0], sizes = [1, 8, 8], strides = [1, 1, 1]} : vector<8x8x8xf32> to vector<1x8x8xf32>
    %1036 = vector.shape_cast %1035 : vector<1x8x8xf32> to vector<8x8xf32>
    %1037 = vector.extract_strided_slice %1026 {offsets = [5, 0, 0], sizes = [1, 8, 8], strides = [1, 1, 1]} : vector<8x8x8xf32> to vector<1x8x8xf32>
    %1038 = vector.shape_cast %1037 : vector<1x8x8xf32> to vector<8x8xf32>
    %1039 = vector.extract_strided_slice %1026 {offsets = [6, 0, 0], sizes = [1, 8, 8], strides = [1, 1, 1]} : vector<8x8x8xf32> to vector<1x8x8xf32>
    %1040 = vector.shape_cast %1039 : vector<1x8x8xf32> to vector<8x8xf32>
    %1041 = vector.extract_strided_slice %1026 {offsets = [7, 0, 0], sizes = [1, 8, 8], strides = [1, 1, 1]} : vector<8x8x8xf32> to vector<1x8x8xf32>
    %1042 = vector.shape_cast %1041 : vector<1x8x8xf32> to vector<8x8xf32>
    %1043 = tpu.concatenate %1028, %1030, %1032, %1034, %1036, %1038, %1040, %1042 in 1 : vector<8x8xf32>, vector<8x8xf32>, vector<8x8xf32>, vector<8x8xf32>, vector<8x8xf32>, vector<8x8xf32>, vector<8x8xf32>, vector<8x8xf32> -> vector<8x64xf32>
    %1044 = tpu.concatenate %955, %1043 in 0 : vector<8x64xf32>, vector<8x64xf32> -> vector<16x64xf32>
    %cst_148 = arith.constant dense<0.000000e+00> : vector<16xf32>
    %1045 = vector.multi_reduction <add>, %1044, %cst_148 [1] : vector<16x64xf32> to vector<16xf32>
    %1046 = vector.shape_cast %1045 : vector<16xf32> to vector<16x1xf32>
    %cst_149 = arith.constant 6.400000e+01 : f32
    %1047 = vector.broadcast %cst_149 : f32 to vector<16x1xf32>
    %1048 = arith.divf %1046, %1047 : vector<16x1xf32>
    %1049 = vector.broadcast %1048 : vector<16x1xf32> to vector<16x64xf32>
    %1050 = arith.subf %1044, %1049 : vector<16x64xf32>
    %1051 = arith.mulf %1050, %1050 : vector<16x64xf32>
    %cst_150 = arith.constant dense<0.000000e+00> : vector<16xf32>
    %1052 = vector.multi_reduction <add>, %1051, %cst_150 [1] : vector<16x64xf32> to vector<16xf32>
    %1053 = vector.shape_cast %1052 : vector<16xf32> to vector<16x1xf32>
    %cst_151 = arith.constant 0.0158730168 : f32
    %1054 = vector.broadcast %cst_151 : f32 to vector<16x1xf32>
    %1055 = arith.mulf %1053, %1054 : vector<16x1xf32>
    %1056 = math.rsqrt %1055 : vector<16x1xf32>
    %1057 = vector.broadcast %1056 : vector<16x1xf32> to vector<16x64xf32>
    %1058 = arith.mulf %1050, %1057 : vector<16x64xf32>
    %1059 = arith.addf %859, %1058 : vector<16x64xf32>
    %c0_152 = arith.constant 0 : index
    %c0_153 = arith.constant 0 : index
    %1060 = vector.load %arg27[%c0_152, %c0_153] : memref<64x128xf32, #tpu.memory_space<vmem>>, vector<64x128xf32>
    %cst_154 = arith.constant dense<0.000000e+00> : vector<16x128xf32>
    %1061 = tpu.matmul %423, %1060, %cst_154 {dimension_numbers = #tpu.dot_dimension_numbers<[1], [0], [0], [1], [0, 0, 1, 1], [], []>} : vector<16x64xf32>, vector<64x128xf32>, vector<16x128xf32> -> vector<16x128xf32>
    %c0_155 = arith.constant 0 : index
    %c0_156 = arith.constant 0 : index
    %1062 = vector.load %arg28[%c0_155, %c0_156] : memref<1x128xf32, #tpu.memory_space<vmem>>, vector<1x128xf32>
    %1063 = vector.broadcast %1062 : vector<1x128xf32> to vector<16x128xf32>
    %1064 = arith.addf %1061, %1063 : vector<16x128xf32>
    %c0_157 = arith.constant 0 : index
    %c0_158 = arith.constant 0 : index
    %1065 = vector.load %arg29[%c0_157, %c0_158] : memref<64x64xf32, #tpu.memory_space<vmem>>, vector<64x64xf32>
    %cst_159 = arith.constant dense<0.000000e+00> : vector<16x64xf32>
    %1066 = tpu.matmul %1059, %1065, %cst_159 {dimension_numbers = #tpu.dot_dimension_numbers<[1], [0], [0], [1], [0, 0, 1, 1], [], []>} : vector<16x64xf32>, vector<64x64xf32>, vector<16x64xf32> -> vector<16x64xf32>
    %c0_160 = arith.constant 0 : index
    %c0_161 = arith.constant 0 : index
    %1067 = vector.load %arg30[%c0_160, %c0_161] : memref<1x64xf32, #tpu.memory_space<vmem>>, vector<1x64xf32>
    %1068 = vector.broadcast %1067 : vector<1x64xf32> to vector<16x64xf32>
    %1069 = arith.addf %1066, %1068 : vector<16x64xf32>
    %1070 = vector.extract_strided_slice %1064 {offsets = [0, 0], sizes = [16, 64], strides = [1, 1]} : vector<16x128xf32> to vector<16x64xf32>
    %1071 = vector.extract_strided_slice %1064 {offsets = [0, 64], sizes = [16, 64], strides = [1, 1]} : vector<16x128xf32> to vector<16x64xf32>
    %1072 = vector.extract_strided_slice %1070 {offsets = [0, 0], sizes = [8, 8], strides = [1, 1]} : vector<16x64xf32> to vector<8x8xf32>
    %1073 = vector.extract_strided_slice %1070 {offsets = [0, 8], sizes = [8, 8], strides = [1, 1]} : vector<16x64xf32> to vector<8x8xf32>
    %1074 = vector.extract_strided_slice %1070 {offsets = [0, 16], sizes = [8, 8], strides = [1, 1]} : vector<16x64xf32> to vector<8x8xf32>
    %1075 = vector.extract_strided_slice %1070 {offsets = [0, 24], sizes = [8, 8], strides = [1, 1]} : vector<16x64xf32> to vector<8x8xf32>
    %1076 = vector.extract_strided_slice %1070 {offsets = [0, 32], sizes = [8, 8], strides = [1, 1]} : vector<16x64xf32> to vector<8x8xf32>
    %1077 = vector.extract_strided_slice %1070 {offsets = [0, 40], sizes = [8, 8], strides = [1, 1]} : vector<16x64xf32> to vector<8x8xf32>
    %1078 = vector.extract_strided_slice %1070 {offsets = [0, 48], sizes = [8, 8], strides = [1, 1]} : vector<16x64xf32> to vector<8x8xf32>
    %1079 = vector.extract_strided_slice %1070 {offsets = [0, 56], sizes = [8, 8], strides = [1, 1]} : vector<16x64xf32> to vector<8x8xf32>
    %1080 = vector.shape_cast %1072 : vector<8x8xf32> to vector<1x8x8xf32>
    %1081 = vector.shape_cast %1073 : vector<8x8xf32> to vector<1x8x8xf32>
    %1082 = vector.shape_cast %1074 : vector<8x8xf32> to vector<1x8x8xf32>
    %1083 = vector.shape_cast %1075 : vector<8x8xf32> to vector<1x8x8xf32>
    %1084 = vector.shape_cast %1076 : vector<8x8xf32> to vector<1x8x8xf32>
    %1085 = vector.shape_cast %1077 : vector<8x8xf32> to vector<1x8x8xf32>
    %1086 = vector.shape_cast %1078 : vector<8x8xf32> to vector<1x8x8xf32>
    %1087 = vector.shape_cast %1079 : vector<8x8xf32> to vector<1x8x8xf32>
    %1088 = tpu.concatenate %1080, %1081, %1082, %1083, %1084, %1085, %1086, %1087 in 0 : vector<1x8x8xf32>, vector<1x8x8xf32>, vector<1x8x8xf32>, vector<1x8x8xf32>, vector<1x8x8xf32>, vector<1x8x8xf32>, vector<1x8x8xf32>, vector<1x8x8xf32> -> vector<8x8x8xf32>
    %1089 = vector.extract_strided_slice %1071 {offsets = [0, 0], sizes = [8, 8], strides = [1, 1]} : vector<16x64xf32> to vector<8x8xf32>
    %1090 = vector.extract_strided_slice %1071 {offsets = [0, 8], sizes = [8, 8], strides = [1, 1]} : vector<16x64xf32> to vector<8x8xf32>
    %1091 = vector.extract_strided_slice %1071 {offsets = [0, 16], sizes = [8, 8], strides = [1, 1]} : vector<16x64xf32> to vector<8x8xf32>
    %1092 = vector.extract_strided_slice %1071 {offsets = [0, 24], sizes = [8, 8], strides = [1, 1]} : vector<16x64xf32> to vector<8x8xf32>
    %1093 = vector.extract_strided_slice %1071 {offsets = [0, 32], sizes = [8, 8], strides = [1, 1]} : vector<16x64xf32> to vector<8x8xf32>
    %1094 = vector.extract_strided_slice %1071 {offsets = [0, 40], sizes = [8, 8], strides = [1, 1]} : vector<16x64xf32> to vector<8x8xf32>
    %1095 = vector.extract_strided_slice %1071 {offsets = [0, 48], sizes = [8, 8], strides = [1, 1]} : vector<16x64xf32> to vector<8x8xf32>
    %1096 = vector.extract_strided_slice %1071 {offsets = [0, 56], sizes = [8, 8], strides = [1, 1]} : vector<16x64xf32> to vector<8x8xf32>
    %1097 = vector.shape_cast %1089 : vector<8x8xf32> to vector<1x8x8xf32>
    %1098 = vector.shape_cast %1090 : vector<8x8xf32> to vector<1x8x8xf32>
    %1099 = vector.shape_cast %1091 : vector<8x8xf32> to vector<1x8x8xf32>
    %1100 = vector.shape_cast %1092 : vector<8x8xf32> to vector<1x8x8xf32>
    %1101 = vector.shape_cast %1093 : vector<8x8xf32> to vector<1x8x8xf32>
    %1102 = vector.shape_cast %1094 : vector<8x8xf32> to vector<1x8x8xf32>
    %1103 = vector.shape_cast %1095 : vector<8x8xf32> to vector<1x8x8xf32>
    %1104 = vector.shape_cast %1096 : vector<8x8xf32> to vector<1x8x8xf32>
    %1105 = tpu.concatenate %1097, %1098, %1099, %1100, %1101, %1102, %1103, %1104 in 0 : vector<1x8x8xf32>, vector<1x8x8xf32>, vector<1x8x8xf32>, vector<1x8x8xf32>, vector<1x8x8xf32>, vector<1x8x8xf32>, vector<1x8x8xf32>, vector<1x8x8xf32> -> vector<8x8x8xf32>
    %1106 = vector.extract_strided_slice %1069 {offsets = [0, 0], sizes = [8, 8], strides = [1, 1]} : vector<16x64xf32> to vector<8x8xf32>
    %1107 = vector.extract_strided_slice %1069 {offsets = [0, 8], sizes = [8, 8], strides = [1, 1]} : vector<16x64xf32> to vector<8x8xf32>
    %1108 = vector.extract_strided_slice %1069 {offsets = [0, 16], sizes = [8, 8], strides = [1, 1]} : vector<16x64xf32> to vector<8x8xf32>
    %1109 = vector.extract_strided_slice %1069 {offsets = [0, 24], sizes = [8, 8], strides = [1, 1]} : vector<16x64xf32> to vector<8x8xf32>
    %1110 = vector.extract_strided_slice %1069 {offsets = [0, 32], sizes = [8, 8], strides = [1, 1]} : vector<16x64xf32> to vector<8x8xf32>
    %1111 = vector.extract_strided_slice %1069 {offsets = [0, 40], sizes = [8, 8], strides = [1, 1]} : vector<16x64xf32> to vector<8x8xf32>
    %1112 = vector.extract_strided_slice %1069 {offsets = [0, 48], sizes = [8, 8], strides = [1, 1]} : vector<16x64xf32> to vector<8x8xf32>
    %1113 = vector.extract_strided_slice %1069 {offsets = [0, 56], sizes = [8, 8], strides = [1, 1]} : vector<16x64xf32> to vector<8x8xf32>
    %1114 = vector.shape_cast %1106 : vector<8x8xf32> to vector<1x8x8xf32>
    %1115 = vector.shape_cast %1107 : vector<8x8xf32> to vector<1x8x8xf32>
    %1116 = vector.shape_cast %1108 : vector<8x8xf32> to vector<1x8x8xf32>
    %1117 = vector.shape_cast %1109 : vector<8x8xf32> to vector<1x8x8xf32>
    %1118 = vector.shape_cast %1110 : vector<8x8xf32> to vector<1x8x8xf32>
    %1119 = vector.shape_cast %1111 : vector<8x8xf32> to vector<1x8x8xf32>
    %1120 = vector.shape_cast %1112 : vector<8x8xf32> to vector<1x8x8xf32>
    %1121 = vector.shape_cast %1113 : vector<8x8xf32> to vector<1x8x8xf32>
    %1122 = tpu.concatenate %1114, %1115, %1116, %1117, %1118, %1119, %1120, %1121 in 0 : vector<1x8x8xf32>, vector<1x8x8xf32>, vector<1x8x8xf32>, vector<1x8x8xf32>, vector<1x8x8xf32>, vector<1x8x8xf32>, vector<1x8x8xf32>, vector<1x8x8xf32> -> vector<8x8x8xf32>
    "tpu.trace_start"() <{level = 10 : i32, message = "hqd,hkd->hqk"}> : () -> ()
    %cst_162 = arith.constant dense<0.000000e+00> : vector<8x8x8xf32>
    %1123 = tpu.matmul %1088, %1105, %cst_162 {dimension_numbers = #tpu.dot_dimension_numbers<[2], [2], [1], [1], [0, 0, 0, 1, 1, 1], [0], [0]>} : vector<8x8x8xf32>, vector<8x8x8xf32>, vector<8x8x8xf32> -> vector<8x8x8xf32>
    "tpu.trace_stop"() : () -> ()
    %1124 = vector.extract_strided_slice %0 {offsets = [0, 0], sizes = [8, 1], strides = [1, 1]} : vector<16x1xf32> to vector<8x1xf32>
    %1125 = vector.shape_cast %1124 : vector<8x1xf32> to vector<1x8x1xf32>
    %cst_163 = arith.constant 5.000000e-01 : f32
    %1126 = vector.broadcast %cst_163 : f32 to vector<1x8x1xf32>
    %1127 = arith.cmpf ogt, %1125, %1126 : vector<1x8x1xf32>
    %cst_164 = arith.constant 0.000000e+00 : f32
    %1128 = vector.shape_cast %1127 : vector<1x8x1xi1> to vector<1x8x1xi1>
    %1129 = vector.broadcast %1128 : vector<1x8x1xi1> to vector<8x8x8xi1>
    %1130 = vector.broadcast %cst_164 : f32 to vector<8x8x8xf32>
    %1131 = arith.select %1129, %1130, %1123 : vector<8x8x8xi1>, vector<8x8x8xf32>
    %cst_165 = arith.constant dense<0xFF800000> : vector<8x8xf32>
    %1132 = vector.multi_reduction <maximumf>, %1131, %cst_165 [2] : vector<8x8x8xf32> to vector<8x8xf32>
    %1133 = vector.shape_cast %1132 : vector<8x8xf32> to vector<8x8x1xf32>
    %1134 = vector.broadcast %1133 : vector<8x8x1xf32> to vector<8x8x8xf32>
    %1135 = arith.subf %1131, %1134 : vector<8x8x8xf32>
    %1136 = math.exp %1135 : vector<8x8x8xf32>
    %cst_166 = arith.constant dense<0.000000e+00> : vector<8x8xf32>
    %1137 = vector.multi_reduction <add>, %1136, %cst_166 [2] : vector<8x8x8xf32> to vector<8x8xf32>
    %1138 = vector.shape_cast %1137 : vector<8x8xf32> to vector<8x8x1xf32>
    %1139 = tpu.reciprocal %1138 {approx = true} : vector<8x8x1xf32> -> vector<8x8x1xf32>
    %1140 = vector.broadcast %1139 : vector<8x8x1xf32> to vector<8x8x8xf32>
    %1141 = arith.mulf %1136, %1140 : vector<8x8x8xf32>
    "tpu.trace_start"() <{level = 10 : i32, message = "hqk,hkd->hqd"}> : () -> ()
    %cst_167 = arith.constant dense<0.000000e+00> : vector<8x8x8xf32>
    %1142 = tpu.matmul %1141, %1122, %cst_167 {dimension_numbers = #tpu.dot_dimension_numbers<[2], [1], [1], [2], [0, 0, 0, 1, 1, 2], [0], [0]>} : vector<8x8x8xf32>, vector<8x8x8xf32>, vector<8x8x8xf32> -> vector<8x8x8xf32>
    "tpu.trace_stop"() : () -> ()
    %1143 = vector.extract_strided_slice %1142 {offsets = [0, 0, 0], sizes = [1, 8, 8], strides = [1, 1, 1]} : vector<8x8x8xf32> to vector<1x8x8xf32>
    %1144 = vector.shape_cast %1143 : vector<1x8x8xf32> to vector<8x8xf32>
    %1145 = vector.extract_strided_slice %1142 {offsets = [1, 0, 0], sizes = [1, 8, 8], strides = [1, 1, 1]} : vector<8x8x8xf32> to vector<1x8x8xf32>
    %1146 = vector.shape_cast %1145 : vector<1x8x8xf32> to vector<8x8xf32>
    %1147 = vector.extract_strided_slice %1142 {offsets = [2, 0, 0], sizes = [1, 8, 8], strides = [1, 1, 1]} : vector<8x8x8xf32> to vector<1x8x8xf32>
    %1148 = vector.shape_cast %1147 : vector<1x8x8xf32> to vector<8x8xf32>
    %1149 = vector.extract_strided_slice %1142 {offsets = [3, 0, 0], sizes = [1, 8, 8], strides = [1, 1, 1]} : vector<8x8x8xf32> to vector<1x8x8xf32>
    %1150 = vector.shape_cast %1149 : vector<1x8x8xf32> to vector<8x8xf32>
    %1151 = vector.extract_strided_slice %1142 {offsets = [4, 0, 0], sizes = [1, 8, 8], strides = [1, 1, 1]} : vector<8x8x8xf32> to vector<1x8x8xf32>
    %1152 = vector.shape_cast %1151 : vector<1x8x8xf32> to vector<8x8xf32>
    %1153 = vector.extract_strided_slice %1142 {offsets = [5, 0, 0], sizes = [1, 8, 8], strides = [1, 1, 1]} : vector<8x8x8xf32> to vector<1x8x8xf32>
    %1154 = vector.shape_cast %1153 : vector<1x8x8xf32> to vector<8x8xf32>
    %1155 = vector.extract_strided_slice %1142 {offsets = [6, 0, 0], sizes = [1, 8, 8], strides = [1, 1, 1]} : vector<8x8x8xf32> to vector<1x8x8xf32>
    %1156 = vector.shape_cast %1155 : vector<1x8x8xf32> to vector<8x8xf32>
    %1157 = vector.extract_strided_slice %1142 {offsets = [7, 0, 0], sizes = [1, 8, 8], strides = [1, 1, 1]} : vector<8x8x8xf32> to vector<1x8x8xf32>
    %1158 = vector.shape_cast %1157 : vector<1x8x8xf32> to vector<8x8xf32>
    %1159 = tpu.concatenate %1144, %1146, %1148, %1150, %1152, %1154, %1156, %1158 in 1 : vector<8x8xf32>, vector<8x8xf32>, vector<8x8xf32>, vector<8x8xf32>, vector<8x8xf32>, vector<8x8xf32>, vector<8x8xf32>, vector<8x8xf32> -> vector<8x64xf32>
    %1160 = vector.extract_strided_slice %1070 {offsets = [8, 0], sizes = [8, 8], strides = [1, 1]} : vector<16x64xf32> to vector<8x8xf32>
    %1161 = vector.extract_strided_slice %1070 {offsets = [8, 8], sizes = [8, 8], strides = [1, 1]} : vector<16x64xf32> to vector<8x8xf32>
    %1162 = vector.extract_strided_slice %1070 {offsets = [8, 16], sizes = [8, 8], strides = [1, 1]} : vector<16x64xf32> to vector<8x8xf32>
    %1163 = vector.extract_strided_slice %1070 {offsets = [8, 24], sizes = [8, 8], strides = [1, 1]} : vector<16x64xf32> to vector<8x8xf32>
    %1164 = vector.extract_strided_slice %1070 {offsets = [8, 32], sizes = [8, 8], strides = [1, 1]} : vector<16x64xf32> to vector<8x8xf32>
    %1165 = vector.extract_strided_slice %1070 {offsets = [8, 40], sizes = [8, 8], strides = [1, 1]} : vector<16x64xf32> to vector<8x8xf32>
    %1166 = vector.extract_strided_slice %1070 {offsets = [8, 48], sizes = [8, 8], strides = [1, 1]} : vector<16x64xf32> to vector<8x8xf32>
    %1167 = vector.extract_strided_slice %1070 {offsets = [8, 56], sizes = [8, 8], strides = [1, 1]} : vector<16x64xf32> to vector<8x8xf32>
    %1168 = vector.shape_cast %1160 : vector<8x8xf32> to vector<1x8x8xf32>
    %1169 = vector.shape_cast %1161 : vector<8x8xf32> to vector<1x8x8xf32>
    %1170 = vector.shape_cast %1162 : vector<8x8xf32> to vector<1x8x8xf32>
    %1171 = vector.shape_cast %1163 : vector<8x8xf32> to vector<1x8x8xf32>
    %1172 = vector.shape_cast %1164 : vector<8x8xf32> to vector<1x8x8xf32>
    %1173 = vector.shape_cast %1165 : vector<8x8xf32> to vector<1x8x8xf32>
    %1174 = vector.shape_cast %1166 : vector<8x8xf32> to vector<1x8x8xf32>
    %1175 = vector.shape_cast %1167 : vector<8x8xf32> to vector<1x8x8xf32>
    %1176 = tpu.concatenate %1168, %1169, %1170, %1171, %1172, %1173, %1174, %1175 in 0 : vector<1x8x8xf32>, vector<1x8x8xf32>, vector<1x8x8xf32>, vector<1x8x8xf32>, vector<1x8x8xf32>, vector<1x8x8xf32>, vector<1x8x8xf32>, vector<1x8x8xf32> -> vector<8x8x8xf32>
    %1177 = vector.extract_strided_slice %1071 {offsets = [8, 0], sizes = [8, 8], strides = [1, 1]} : vector<16x64xf32> to vector<8x8xf32>
    %1178 = vector.extract_strided_slice %1071 {offsets = [8, 8], sizes = [8, 8], strides = [1, 1]} : vector<16x64xf32> to vector<8x8xf32>
    %1179 = vector.extract_strided_slice %1071 {offsets = [8, 16], sizes = [8, 8], strides = [1, 1]} : vector<16x64xf32> to vector<8x8xf32>
    %1180 = vector.extract_strided_slice %1071 {offsets = [8, 24], sizes = [8, 8], strides = [1, 1]} : vector<16x64xf32> to vector<8x8xf32>
    %1181 = vector.extract_strided_slice %1071 {offsets = [8, 32], sizes = [8, 8], strides = [1, 1]} : vector<16x64xf32> to vector<8x8xf32>
    %1182 = vector.extract_strided_slice %1071 {offsets = [8, 40], sizes = [8, 8], strides = [1, 1]} : vector<16x64xf32> to vector<8x8xf32>
    %1183 = vector.extract_strided_slice %1071 {offsets = [8, 48], sizes = [8, 8], strides = [1, 1]} : vector<16x64xf32> to vector<8x8xf32>
    %1184 = vector.extract_strided_slice %1071 {offsets = [8, 56], sizes = [8, 8], strides = [1, 1]} : vector<16x64xf32> to vector<8x8xf32>
    %1185 = vector.shape_cast %1177 : vector<8x8xf32> to vector<1x8x8xf32>
    %1186 = vector.shape_cast %1178 : vector<8x8xf32> to vector<1x8x8xf32>
    %1187 = vector.shape_cast %1179 : vector<8x8xf32> to vector<1x8x8xf32>
    %1188 = vector.shape_cast %1180 : vector<8x8xf32> to vector<1x8x8xf32>
    %1189 = vector.shape_cast %1181 : vector<8x8xf32> to vector<1x8x8xf32>
    %1190 = vector.shape_cast %1182 : vector<8x8xf32> to vector<1x8x8xf32>
    %1191 = vector.shape_cast %1183 : vector<8x8xf32> to vector<1x8x8xf32>
    %1192 = vector.shape_cast %1184 : vector<8x8xf32> to vector<1x8x8xf32>
    %1193 = tpu.concatenate %1185, %1186, %1187, %1188, %1189, %1190, %1191, %1192 in 0 : vector<1x8x8xf32>, vector<1x8x8xf32>, vector<1x8x8xf32>, vector<1x8x8xf32>, vector<1x8x8xf32>, vector<1x8x8xf32>, vector<1x8x8xf32>, vector<1x8x8xf32> -> vector<8x8x8xf32>
    %1194 = vector.extract_strided_slice %1069 {offsets = [8, 0], sizes = [8, 8], strides = [1, 1]} : vector<16x64xf32> to vector<8x8xf32>
    %1195 = vector.extract_strided_slice %1069 {offsets = [8, 8], sizes = [8, 8], strides = [1, 1]} : vector<16x64xf32> to vector<8x8xf32>
    %1196 = vector.extract_strided_slice %1069 {offsets = [8, 16], sizes = [8, 8], strides = [1, 1]} : vector<16x64xf32> to vector<8x8xf32>
    %1197 = vector.extract_strided_slice %1069 {offsets = [8, 24], sizes = [8, 8], strides = [1, 1]} : vector<16x64xf32> to vector<8x8xf32>
    %1198 = vector.extract_strided_slice %1069 {offsets = [8, 32], sizes = [8, 8], strides = [1, 1]} : vector<16x64xf32> to vector<8x8xf32>
    %1199 = vector.extract_strided_slice %1069 {offsets = [8, 40], sizes = [8, 8], strides = [1, 1]} : vector<16x64xf32> to vector<8x8xf32>
    %1200 = vector.extract_strided_slice %1069 {offsets = [8, 48], sizes = [8, 8], strides = [1, 1]} : vector<16x64xf32> to vector<8x8xf32>
    %1201 = vector.extract_strided_slice %1069 {offsets = [8, 56], sizes = [8, 8], strides = [1, 1]} : vector<16x64xf32> to vector<8x8xf32>
    %1202 = vector.shape_cast %1194 : vector<8x8xf32> to vector<1x8x8xf32>
    %1203 = vector.shape_cast %1195 : vector<8x8xf32> to vector<1x8x8xf32>
    %1204 = vector.shape_cast %1196 : vector<8x8xf32> to vector<1x8x8xf32>
    %1205 = vector.shape_cast %1197 : vector<8x8xf32> to vector<1x8x8xf32>
    %1206 = vector.shape_cast %1198 : vector<8x8xf32> to vector<1x8x8xf32>
    %1207 = vector.shape_cast %1199 : vector<8x8xf32> to vector<1x8x8xf32>
    %1208 = vector.shape_cast %1200 : vector<8x8xf32> to vector<1x8x8xf32>
    %1209 = vector.shape_cast %1201 : vector<8x8xf32> to vector<1x8x8xf32>
    %1210 = tpu.concatenate %1202, %1203, %1204, %1205, %1206, %1207, %1208, %1209 in 0 : vector<1x8x8xf32>, vector<1x8x8xf32>, vector<1x8x8xf32>, vector<1x8x8xf32>, vector<1x8x8xf32>, vector<1x8x8xf32>, vector<1x8x8xf32>, vector<1x8x8xf32> -> vector<8x8x8xf32>
    "tpu.trace_start"() <{level = 10 : i32, message = "hqd,hkd->hqk"}> : () -> ()
    %cst_168 = arith.constant dense<0.000000e+00> : vector<8x8x8xf32>
    %1211 = tpu.matmul %1176, %1193, %cst_168 {dimension_numbers = #tpu.dot_dimension_numbers<[2], [2], [1], [1], [0, 0, 0, 1, 1, 1], [0], [0]>} : vector<8x8x8xf32>, vector<8x8x8xf32>, vector<8x8x8xf32> -> vector<8x8x8xf32>
    "tpu.trace_stop"() : () -> ()
    %1212 = vector.extract_strided_slice %0 {offsets = [8, 0], sizes = [8, 1], strides = [1, 1]} : vector<16x1xf32> to vector<8x1xf32>
    %1213 = vector.shape_cast %1212 : vector<8x1xf32> to vector<1x8x1xf32>
    %cst_169 = arith.constant 5.000000e-01 : f32
    %1214 = vector.broadcast %cst_169 : f32 to vector<1x8x1xf32>
    %1215 = arith.cmpf ogt, %1213, %1214 : vector<1x8x1xf32>
    %cst_170 = arith.constant 0.000000e+00 : f32
    %1216 = vector.shape_cast %1215 : vector<1x8x1xi1> to vector<1x8x1xi1>
    %1217 = vector.broadcast %1216 : vector<1x8x1xi1> to vector<8x8x8xi1>
    %1218 = vector.broadcast %cst_170 : f32 to vector<8x8x8xf32>
    %1219 = arith.select %1217, %1218, %1211 : vector<8x8x8xi1>, vector<8x8x8xf32>
    %cst_171 = arith.constant dense<0xFF800000> : vector<8x8xf32>
    %1220 = vector.multi_reduction <maximumf>, %1219, %cst_171 [2] : vector<8x8x8xf32> to vector<8x8xf32>
    %1221 = vector.shape_cast %1220 : vector<8x8xf32> to vector<8x8x1xf32>
    %1222 = vector.broadcast %1221 : vector<8x8x1xf32> to vector<8x8x8xf32>
    %1223 = arith.subf %1219, %1222 : vector<8x8x8xf32>
    %1224 = math.exp %1223 : vector<8x8x8xf32>
    %cst_172 = arith.constant dense<0.000000e+00> : vector<8x8xf32>
    %1225 = vector.multi_reduction <add>, %1224, %cst_172 [2] : vector<8x8x8xf32> to vector<8x8xf32>
    %1226 = vector.shape_cast %1225 : vector<8x8xf32> to vector<8x8x1xf32>
    %1227 = tpu.reciprocal %1226 {approx = true} : vector<8x8x1xf32> -> vector<8x8x1xf32>
    %1228 = vector.broadcast %1227 : vector<8x8x1xf32> to vector<8x8x8xf32>
    %1229 = arith.mulf %1224, %1228 : vector<8x8x8xf32>
    "tpu.trace_start"() <{level = 10 : i32, message = "hqk,hkd->hqd"}> : () -> ()
    %cst_173 = arith.constant dense<0.000000e+00> : vector<8x8x8xf32>
    %1230 = tpu.matmul %1229, %1210, %cst_173 {dimension_numbers = #tpu.dot_dimension_numbers<[2], [1], [1], [2], [0, 0, 0, 1, 1, 2], [0], [0]>} : vector<8x8x8xf32>, vector<8x8x8xf32>, vector<8x8x8xf32> -> vector<8x8x8xf32>
    "tpu.trace_stop"() : () -> ()
    %1231 = vector.extract_strided_slice %1230 {offsets = [0, 0, 0], sizes = [1, 8, 8], strides = [1, 1, 1]} : vector<8x8x8xf32> to vector<1x8x8xf32>
    %1232 = vector.shape_cast %1231 : vector<1x8x8xf32> to vector<8x8xf32>
    %1233 = vector.extract_strided_slice %1230 {offsets = [1, 0, 0], sizes = [1, 8, 8], strides = [1, 1, 1]} : vector<8x8x8xf32> to vector<1x8x8xf32>
    %1234 = vector.shape_cast %1233 : vector<1x8x8xf32> to vector<8x8xf32>
    %1235 = vector.extract_strided_slice %1230 {offsets = [2, 0, 0], sizes = [1, 8, 8], strides = [1, 1, 1]} : vector<8x8x8xf32> to vector<1x8x8xf32>
    %1236 = vector.shape_cast %1235 : vector<1x8x8xf32> to vector<8x8xf32>
    %1237 = vector.extract_strided_slice %1230 {offsets = [3, 0, 0], sizes = [1, 8, 8], strides = [1, 1, 1]} : vector<8x8x8xf32> to vector<1x8x8xf32>
    %1238 = vector.shape_cast %1237 : vector<1x8x8xf32> to vector<8x8xf32>
    %1239 = vector.extract_strided_slice %1230 {offsets = [4, 0, 0], sizes = [1, 8, 8], strides = [1, 1, 1]} : vector<8x8x8xf32> to vector<1x8x8xf32>
    %1240 = vector.shape_cast %1239 : vector<1x8x8xf32> to vector<8x8xf32>
    %1241 = vector.extract_strided_slice %1230 {offsets = [5, 0, 0], sizes = [1, 8, 8], strides = [1, 1, 1]} : vector<8x8x8xf32> to vector<1x8x8xf32>
    %1242 = vector.shape_cast %1241 : vector<1x8x8xf32> to vector<8x8xf32>
    %1243 = vector.extract_strided_slice %1230 {offsets = [6, 0, 0], sizes = [1, 8, 8], strides = [1, 1, 1]} : vector<8x8x8xf32> to vector<1x8x8xf32>
    %1244 = vector.shape_cast %1243 : vector<1x8x8xf32> to vector<8x8xf32>
    %1245 = vector.extract_strided_slice %1230 {offsets = [7, 0, 0], sizes = [1, 8, 8], strides = [1, 1, 1]} : vector<8x8x8xf32> to vector<1x8x8xf32>
    %1246 = vector.shape_cast %1245 : vector<1x8x8xf32> to vector<8x8xf32>
    %1247 = tpu.concatenate %1232, %1234, %1236, %1238, %1240, %1242, %1244, %1246 in 1 : vector<8x8xf32>, vector<8x8xf32>, vector<8x8xf32>, vector<8x8xf32>, vector<8x8xf32>, vector<8x8xf32>, vector<8x8xf32>, vector<8x8xf32> -> vector<8x64xf32>
    %1248 = tpu.concatenate %1159, %1247 in 0 : vector<8x64xf32>, vector<8x64xf32> -> vector<16x64xf32>
    %cst_174 = arith.constant dense<0.000000e+00> : vector<16xf32>
    %1249 = vector.multi_reduction <add>, %1248, %cst_174 [1] : vector<16x64xf32> to vector<16xf32>
    %1250 = vector.shape_cast %1249 : vector<16xf32> to vector<16x1xf32>
    %cst_175 = arith.constant 6.400000e+01 : f32
    %1251 = vector.broadcast %cst_175 : f32 to vector<16x1xf32>
    %1252 = arith.divf %1250, %1251 : vector<16x1xf32>
    %1253 = vector.broadcast %1252 : vector<16x1xf32> to vector<16x64xf32>
    %1254 = arith.subf %1248, %1253 : vector<16x64xf32>
    %1255 = arith.mulf %1254, %1254 : vector<16x64xf32>
    %cst_176 = arith.constant dense<0.000000e+00> : vector<16xf32>
    %1256 = vector.multi_reduction <add>, %1255, %cst_176 [1] : vector<16x64xf32> to vector<16xf32>
    %1257 = vector.shape_cast %1256 : vector<16xf32> to vector<16x1xf32>
    %cst_177 = arith.constant 0.0158730168 : f32
    %1258 = vector.broadcast %cst_177 : f32 to vector<16x1xf32>
    %1259 = arith.mulf %1257, %1258 : vector<16x1xf32>
    %1260 = math.rsqrt %1259 : vector<16x1xf32>
    %1261 = vector.broadcast %1260 : vector<16x1xf32> to vector<16x64xf32>
    %1262 = arith.mulf %1254, %1261 : vector<16x64xf32>
    %1263 = arith.addf %1059, %1262 : vector<16x64xf32>
    %c0_178 = arith.constant 0 : index
    %c0_179 = arith.constant 0 : index
    %1264 = vector.load %arg31[%c0_178, %c0_179] : memref<64x256xf32, #tpu.memory_space<vmem>>, vector<64x256xf32>
    %cst_180 = arith.constant dense<0.000000e+00> : vector<16x256xf32>
    %1265 = tpu.matmul %1263, %1264, %cst_180 {dimension_numbers = #tpu.dot_dimension_numbers<[1], [0], [0], [1], [0, 0, 1, 1], [], []>} : vector<16x64xf32>, vector<64x256xf32>, vector<16x256xf32> -> vector<16x256xf32>
    %c0_181 = arith.constant 0 : index
    %c0_182 = arith.constant 0 : index
    %1266 = vector.load %arg32[%c0_181, %c0_182] : memref<1x256xf32, #tpu.memory_space<vmem>>, vector<1x256xf32>
    %1267 = vector.broadcast %1266 : vector<1x256xf32> to vector<16x256xf32>
    %1268 = arith.addf %1265, %1267 : vector<16x256xf32>
    %cst_183 = arith.constant 0.000000e+00 : f32
    %1269 = vector.broadcast %cst_183 : f32 to vector<16x256xf32>
    %1270 = arith.maximumf %1268, %1269 : vector<16x256xf32>
    %c0_184 = arith.constant 0 : index
    %c0_185 = arith.constant 0 : index
    %1271 = vector.load %arg33[%c0_184, %c0_185] : memref<256x64xf32, #tpu.memory_space<vmem>>, vector<256x64xf32>
    %cst_186 = arith.constant dense<0.000000e+00> : vector<16x64xf32>
    %1272 = tpu.matmul %1270, %1271, %cst_186 {dimension_numbers = #tpu.dot_dimension_numbers<[1], [0], [0], [1], [0, 0, 1, 1], [], []>} : vector<16x256xf32>, vector<256x64xf32>, vector<16x64xf32> -> vector<16x64xf32>
    %c0_187 = arith.constant 0 : index
    %c0_188 = arith.constant 0 : index
    %1273 = vector.load %arg34[%c0_187, %c0_188] : memref<1x64xf32, #tpu.memory_space<vmem>>, vector<1x64xf32>
    %1274 = vector.broadcast %1273 : vector<1x64xf32> to vector<16x64xf32>
    %1275 = arith.addf %1272, %1274 : vector<16x64xf32>
    %cst_189 = arith.constant dense<0.000000e+00> : vector<16xf32>
    %1276 = vector.multi_reduction <add>, %1275, %cst_189 [1] : vector<16x64xf32> to vector<16xf32>
    %1277 = vector.shape_cast %1276 : vector<16xf32> to vector<16x1xf32>
    %cst_190 = arith.constant 6.400000e+01 : f32
    %1278 = vector.broadcast %cst_190 : f32 to vector<16x1xf32>
    %1279 = arith.divf %1277, %1278 : vector<16x1xf32>
    %1280 = vector.broadcast %1279 : vector<16x1xf32> to vector<16x64xf32>
    %1281 = arith.subf %1275, %1280 : vector<16x64xf32>
    %1282 = arith.mulf %1281, %1281 : vector<16x64xf32>
    %cst_191 = arith.constant dense<0.000000e+00> : vector<16xf32>
    %1283 = vector.multi_reduction <add>, %1282, %cst_191 [1] : vector<16x64xf32> to vector<16xf32>
    %1284 = vector.shape_cast %1283 : vector<16xf32> to vector<16x1xf32>
    %cst_192 = arith.constant 0.0158730168 : f32
    %1285 = vector.broadcast %cst_192 : f32 to vector<16x1xf32>
    %1286 = arith.mulf %1284, %1285 : vector<16x1xf32>
    %1287 = math.rsqrt %1286 : vector<16x1xf32>
    %1288 = vector.broadcast %1287 : vector<16x1xf32> to vector<16x64xf32>
    %1289 = arith.mulf %1281, %1288 : vector<16x64xf32>
    %1290 = arith.addf %1263, %1289 : vector<16x64xf32>
    %c0_193 = arith.constant 0 : index
    %c0_194 = arith.constant 0 : index
    %1291 = vector.load %arg35[%c0_193, %c0_194] : memref<64x128xf32, #tpu.memory_space<vmem>>, vector<64x128xf32>
    %cst_195 = arith.constant dense<0.000000e+00> : vector<16x128xf32>
    %1292 = tpu.matmul %1290, %1291, %cst_195 {dimension_numbers = #tpu.dot_dimension_numbers<[1], [0], [0], [1], [0, 0, 1, 1], [], []>} : vector<16x64xf32>, vector<64x128xf32>, vector<16x128xf32> -> vector<16x128xf32>
    %c0_196 = arith.constant 0 : index
    %c0_197 = arith.constant 0 : index
    %1293 = vector.load %arg36[%c0_196, %c0_197] : memref<1x128xf32, #tpu.memory_space<vmem>>, vector<1x128xf32>
    %1294 = vector.broadcast %1293 : vector<1x128xf32> to vector<16x128xf32>
    %1295 = arith.addf %1292, %1294 : vector<16x128xf32>
    %1296 = tpu.iota {dimensions = array<i32: 1>} : vector<16x128xi32>
    %c100_i32 = arith.constant 100 : i32
    %1297 = vector.broadcast %c100_i32 : i32 to vector<16x128xi32>
    %1298 = arith.cmpi slt, %1296, %1297 : vector<16x128xi32>
    %cst_198 = arith.constant 0xFF800000 : f32
    %1299 = vector.broadcast %cst_198 : f32 to vector<16x128xf32>
    %1300 = arith.select %1298, %1295, %1299 : vector<16x128xi1>, vector<16x128xf32>
    %cst_199 = arith.constant dense<0xFF800000> : vector<16xf32>
    %1301 = vector.multi_reduction <maximumf>, %1300, %cst_199 [1] : vector<16x128xf32> to vector<16xf32>
    %1302 = vector.shape_cast %1301 : vector<16xf32> to vector<16x1xf32>
    %1303 = vector.broadcast %1302 : vector<16x1xf32> to vector<16x128xf32>
    %1304 = arith.subf %1300, %1303 : vector<16x128xf32>
    %1305 = math.exp %1304 : vector<16x128xf32>
    %cst_200 = arith.constant dense<0.000000e+00> : vector<16xf32>
    %1306 = vector.multi_reduction <add>, %1305, %cst_200 [1] : vector<16x128xf32> to vector<16xf32>
    %1307 = vector.shape_cast %1306 : vector<16xf32> to vector<16x1xf32>
    %1308 = vector.broadcast %1307 : vector<16x1xf32> to vector<16x128xf32>
    %1309 = arith.divf %1305, %1308 : vector<16x128xf32>
    %c0_201 = arith.constant 0 : index
    %c0_202 = arith.constant 0 : index
    %1310 = vector.load %arg37[%c0_201, %c0_202] : memref<16x128xf32, #tpu.memory_space<vmem>>, vector<16x128xf32>
    tpu.vector_store %arg37[%c0_201, %c0_202], %1309 {strides = array<i32>} : memref<16x128xf32, #tpu.memory_space<vmem>>, vector<16x128xf32>,
    return
  }
}

</mosaic_0001>

<bundles_post_ra>
// kernel: transformer_forward.1
= control target key start
LH: loop header
LB: loop body
LE: loop exit
PB: predicated region body
PF: predicated region fallthrough
CT: control target
= control target key end

     0   :  { %s21430_s3 = smov 3   ;;  %v21431_v0 = vmov 0.0   ;;  %vm186_vm0 = vcmask 523264   ;;  %v176_v27 = vlaneseq  ;;  %s21432_s10 = smov 4   ;;  %vm21435_vm1 = vmmov 0   ;;  %s24812_s0 = inlined_call_operand.smem [shape: u32[38], index: -1, kind: input, shape index: {}] }
   0x1   :  { %s21489_s6 = sld [smem:[%s24812_s0 + %s21430_s3]]   ;;  %257 = vmatprep.mubr.f32.mxu0 %v21431_v0  ;;  %19552 = vmatprep.subr.mxu1 %v21431_v0  ;;  %s21433_s14 = smov 104   ;;  %vm309_vm2 = vcmask 64512   ;;  %vm1617_vm3 = vcmask 130048   ;;  %vm1619_vm4 = vcmask 195584   ;;  %vm1621_vm5 = vcmask 261120  }
   0x2   :  { %s21510_s9 = sld [smem:[%s24812_s0]]   ;;  %v21524_v28 = vshrl.u32 %v176_v27, 7  ;;  %s21434_s15 = smov 120   ;;  %19554 = vmatprep.mubr.msk.f32.mxu1 %vm21435_vm1, %v21431_v0  ;;  %vm1623_vm6 = vcmask 326656   ;;  %vm1625_vm7 = vcmask 392192   ;;  %vm1627_vm8 = vcmask 457728  }
   0x3   :  { %s18609_s13 = sld [smem:[%s24812_s0 + %s21432_s10]]   ;;  %s21436_s16 = smov 96  }
   0x4   :  { %v21527_v29 = vsub.s32 0, %v21524_v28  ;;  %s21437_s17 = smov 112   ;;  %s21438_s18 = smov 80   ;;  %v21588_v52 = vsub.s32 1, %v21524_v28 }
   0x5   :  { %s21439_s19 = smov 88   ;;  %s21440_s20 = smov 64  }
   0x6   :  { %s21441_s21 = smov 72   ;;  %s21442_s22 = smov 16  }
   0x7   :  { %v159_v1 = vld [vmem:[%s21489_s6 + $0x8] sm:$0xff]  ;;  %v161_v2 = vld [vmem:[%s21489_s6 + $0x18] sm:$0xff]  ;;  %v158_v3 = vld [vmem:[%s21489_s6] sm:$0xff]  ;;  %s21443_s23 = smov 24   ;;  %s21444_s24 = smov 40  }
   0x8   :  { %v20607_v4 = vpack.c.bf16 %v161_v2, %v159_v1  ;;  %v160_v5 = vld [vmem:[%s21489_s6 + $0x10] sm:$0xff]  ;;  %v163_v6 = vld [vmem:[%s21489_s6 + $0x28] sm:$0xff]  ;;  %v165_v7 = vld [vmem:[%s21489_s6 + $0x38] sm:$0xff]  ;;  %s21445_s25 = smov 8   ;;  %s21446_s26 = smov 56  }
   0x9   :  { %v20609_v8 = vpack.c.bf16 %v160_v5, %v158_v3  ;;  %v20611_v9 = vpack.c.bf16 %v165_v7, %v163_v6  ;;  %v162_v10 = vld [vmem:[%s21489_s6 + $0x20] sm:$0xff]  ;;  %v164_v11 = vld [vmem:[%s21489_s6 + $0x30] sm:$0xff]  ;;  %v167_v12 = vld [vmem:[%s21489_s6 + $0x48] sm:$0xff]  ;;  %s21447_s27 = smov 32   ;;  %s21448_s28 = smov 48  }
   0xa   :  { %20608 = vmatprep.subr.bf16.mxu0 %v20607_v4  ;;  %v169_v13 = vld [vmem:[%s21489_s6 + $0x58] sm:$0xff]  ;;  %v20613_v14 = vpack.c.bf16 %v164_v11, %v162_v10  ;;  %v166_v16 = vld [vmem:[%s21489_s6 + $0x40] sm:$0xff]  ;;  %v168_v17 = vld [vmem:[%s21489_s6 + $0x50] sm:$0xff]  ;;  %s21449_s29 = smov 5   ;;  %s21450_s3 = smov 7  }
   0xb   :  { %20610 = vmatpush1.bf16.msra.mxu0 %v20609_v8  ;;  %v20615_v15 = vpack.c.bf16 %v169_v13, %v167_v12  ;;  %v171_v18 = vld [vmem:[%s21489_s6 + $0x68] sm:$0xff]  ;;  %v173_v19 = vld [vmem:[%s21489_s6 + $0x78] sm:$0xff]  ;;  %v20617_v20 = vpack.c.bf16 %v168_v17, %v166_v16  ;;  %v170_v22 = vld [vmem:[%s21489_s6 + $0x60] sm:$0xff]  ;;  %s21930_s2 = sld [smem:[%s24812_s0 + %s21449_s29]]   ;;  %s21451_s7 = smov 6  }
   0xc   :  { %20612 = vmatprep.subr.bf16.mxu0 %v20611_v9  ;;  %v20619_v21 = vpack.c.bf16 %v173_v19, %v171_v18  ;;  %v172_v23 = vld [vmem:[%s21489_s6 + $0x70] sm:$0xff]  ;;  %v156_v25 = vld [vmem:[%s21510_s9] sm:$0xff]  ;;  %v157_v26 = vld [vmem:[%s21510_s9 + $0x8] sm:$0xff]  ;;  %s21967_s6 = sld [smem:[%s24812_s0 + %s21450_s3]]   ;;  %s21452_s30 = smov 9  }
   0xd   :  { %v20621_v24 = vpack.c.bf16 %v172_v23, %v170_v22  ;;  %v21529_v30 = vld [vmem:[%s18609_s13] sm:$0x3]  ;;  %s18611_s11 = sld [smem:[%s24812_s0 + %s21451_s7]]   ;;  %s21455_s7 = smov 2  }
   0xe   :  { %v179_v31 = vrot.slane %v21529_v30, %v21527_v29  ;;  %v21599_v53 = vrot.slane %v21529_v30, %v21588_v52  ;;  %s18613_s29 = sld [smem:[%s24812_s0 + %s21445_s25]]   ;;  %s21456_s12 = smov 11  }
   0xf   :  { %20614 = vmatpush1.bf16.msra.mxu0 %v20613_v14  ;;  %s18614_s3 = sld [smem:[%s24812_s0 + %s21452_s30]]   ;;  %s21457_s1 = smov 15  }
  0x10   :  { %20616 = vmatprep.subr.bf16.mxu0 %v20615_v15  ;;  %s18616_s30 = sld [smem:[%s24812_s0 + %s21456_s12]]   ;;  %s21458_s4 = smov 13  }
  0x11   :  { %s21459_s8 = smov 1   ;;  %s21465_s5 = smov 20  }
  0x12   :  { %s22587_s13 = sld [smem:[%s24812_s0 + %s21459_s8]]   ;;  %s21462_s8 = smov 17  }
  0x13   :  { %20618 = vmatpush1.bf16.msra.mxu0 %v20617_v20  ;;  %s21466_s10 = smov 21   ;;  %s21473_s12 = smov 29  }
  0x14   :  { %20620 = vmatprep.subr.bf16.mxu0 %v20619_v21 }
  0x17   :  { %20622 = vmatpush1.bf16.msra.mxu0 %v20621_v24 }
  0x18   :  { %19587 = vmatprep.subr.mxu0 %v21431_v0 }
  0x1a   :  { %18643 = vmatmul.mubr.msk.f32.vlgmr.msra.gmra.mrb[0].mxu0 %vm186_vm0, %v156_v25 }
  0x1b   :  { %263 = vmatprep.mubr.f32.mxu0 %v21431_v0 }
  0x1e   :  { %18644 = vmatmul.mubr.msk.f32.gmra.mrb[2].mxu0 %vm186_vm0, %v157_v26 }
  0x1f   :  { %19589 = vmatprep.mubr.msk.f32.mxu0 %vm21435_vm1, %v21431_v0 }
  0xed   :  { %v259_v32 = vpop.f32.mrb[0].mxu0 }
  0xee   :  { %v260_v33 = vadd.f32 %v259_v32, %v179_v31  ;;  %v21533_v34 = vpop.f32.mrb[1].mxu0 }
  0xef   :  { %v21610_v55 = vadd.f32 %v21533_v34, %v21599_v53 }
  0xf0   :  { %275 = vrot.lane.b32.xlu1 %v260_v33, %s21433_s14  ;;  %271 = vrot.lane.b32.xlu0 %v260_v33, %s21434_s15 }
  0xf1   :  { %v265_v43 = vpop.f32.mrb[2].mxu0 }
  0xf2   :  { %v21556_v44 = vadd.f32 %v265_v43, %v179_v31  ;;  %v21567_v45 = vpop.f32.mrb[3].mxu0 }
  0xf4   :  { %277 = vrot.lane.b32.xlu1 %v260_v33, %s21436_s16  ;;  %273 = vrot.lane.b32.xlu0 %v260_v33, %s21437_s17 }
  0xf8   :  { %281 = vrot.lane.b32.xlu1 %v260_v33, %s21438_s18  ;;  %279 = vrot.lane.b32.xlu0 %v260_v33, %s21439_s19 }
  0xfc   :  { %307 = vrot.lane.b32.xlu1 %v260_v33, %s21440_s20  ;;  %283 = vrot.lane.b32.xlu0 %v260_v33, %s21441_s21 }
 0x162   :  { %v276_v35 = vpop.permute.xlu1 %275  ;;  %v272_v36 = vpop.permute.xlu0 %271 }
 0x163   :  { %384 = vrot.lane.b32.xlu0 %v272_v36, %s21440_s20 }
 0x166   :  { %v278_v37 = vpop.permute.xlu1 %277  ;;  %v274_v38 = vpop.permute.xlu0 %273 }
 0x167   :  { %536 = vrot.lane.b32.xlu0 %v276_v35, %s21440_s20  ;;  %460 = vrot.lane.b32.xlu1 %v274_v38, %s21440_s20 }
 0x16a   :  { %v282_v39 = vpop.permute.xlu1 %281  ;;  %v280_v40 = vpop.permute.xlu0 %279 }
 0x16b   :  { %612 = vrot.lane.b32.xlu1 %v278_v37, %s21440_s20  ;;  %688 = vrot.lane.b32.xlu0 %v280_v40, %s21440_s20 }
 0x16e   :  { %v308_v41 = vpop.permute.xlu1 %307  ;;  %v284_v42 = vpop.permute.xlu0 %283 }
 0x16f   :  { %19553 = vmatpush3.xpose.msk.msra.mxu1 %vm309_vm2, %v308_v41  ;;  %764 = vrot.lane.b32.xlu1 %v282_v39, %s21440_s20 }
 0x170   :  { %840 = vrot.lane.b32.xlu0 %v284_v42, %s21440_s20  ;;  %19557 = vmatprep.subr.mxu1 %v21431_v0 }
 0x172   :  { %19555 = vmatmul.mubr.msk.f32.vlgmr.msra.gmra.mrb[0].mxu1 %vm309_vm2, %v260_v33 }
 0x173   :  { %19559 = vmatprep.mubr.msk.f32.mxu1 %vm21435_vm1, %v21431_v0  ;;  %1632 = vrot.lane.b32.xlu1 %v21556_v44, %s21437_s17 }
 0x174   :  { %1630 = vrot.lane.b32.xlu0 %v21556_v44, %s21434_s15 }
 0x177   :  { %1634 = vrot.lane.b32.xlu1 %v21556_v44, %s21433_s14 }
 0x1d5   :  { %v385_v46 = vpop.permute.xlu0 %384 }
 0x1d6   :  { %19558 = vmatpush3.xpose.msk.msra.mxu1 %vm309_vm2, %v385_v46 }
 0x1d7   :  { %19562 = vmatprep.subr.mxu1 %v21431_v0 }
 0x1d9   :  { %v461_v47 = vpop.permute.xlu1 %460  ;;  %19560 = vmatmul.mubr.msk.f32.vlgmr.msra.gmra.mrb[2].mxu1 %vm309_vm2, %v272_v36  ;;  %v537_v48 = vpop.permute.xlu0 %536 }
 0x1da   :  { %19563 = vmatpush3.xpose.msk.msra.mxu1 %vm309_vm2, %v461_v47  ;;  %19564 = vmatprep.mubr.msk.f32.mxu1 %vm21435_vm1, %v21431_v0 }
 0x1db   :  { %19567 = vmatprep.subr.mxu1 %v21431_v0 }
 0x1dd   :  { %19565 = vmatmul.mubr.msk.f32.vlgmr.msra.gmra.mrb[4].mxu1 %vm309_vm2, %v274_v38  ;;  %v689_v49 = vpop.permute.xlu0 %688  ;;  %v613_v50 = vpop.permute.xlu1 %612 }
 0x1de   :  { %19568 = vmatpush3.xpose.msk.msra.mxu1 %vm309_vm2, %v537_v48  ;;  %19569 = vmatprep.mubr.msk.f32.mxu1 %vm21435_vm1, %v21431_v0 }
 0x1df   :  { %19572 = vmatprep.subr.mxu1 %v21431_v0 }
 0x1e1   :  { %19570 = vmatmul.mubr.msk.f32.vlgmr.msra.gmra.mrb[6].mxu1 %vm309_vm2, %v276_v35  ;;  %v765_v54 = vpop.permute.xlu1 %764 }
 0x1e2   :  { %v841_v51 = vpop.permute.xlu0 %840  ;;  %19573 = vmatpush3.xpose.msk.msra.mxu1 %vm309_vm2, %v613_v50  ;;  %19574 = vmatprep.mubr.msk.f32.mxu1 %vm21435_vm1, %v21431_v0 }
 0x1e3   :  { %19588 = vmatpush3.xpose.msk.msra.mxu0 %vm309_vm2, %v841_v51  ;;  %19577 = vmatprep.subr.mxu1 %v21431_v0 }
 0x1e4   :  { %19597 = vmatprep.subr.mxu0 %v21431_v0 }
 0x1e5   :  { %19575 = vmatmul.mubr.msk.f32.vlgmr.msra.gmra.mrb[8].mxu1 %vm309_vm2, %v278_v37  ;;  %v21638_v17 = vpop.permute.xlu1 %1632 }
 0x1e6   :  { %19590 = vmatmul.mubr.msk.f32.vlgmr.msra.gmra.mrb[4].mxu0 %vm309_vm2, %v284_v42  ;;  %19578 = vmatpush3.xpose.msk.msra.mxu1 %vm309_vm2, %v689_v49  ;;  %v21656_v24 = vpop.permute.xlu0 %1630 }
 0x1e7   :  { %19579 = vmatprep.mubr.msk.f32.mxu1 %vm21435_vm1, %v21431_v0  ;;  %19582 = vmatprep.subr.mxu1 %v21431_v0 }
 0x1e8   :  { %19599 = vmatprep.mubr.msk.f32.mxu0 %vm21435_vm1, %v21431_v0 }
 0x1e9   :  { %19580 = vmatmul.mubr.msk.f32.vlgmr.msra.gmra.mrb[10].mxu1 %vm309_vm2, %v280_v40  ;;  %v21644_v18 = vpop.permute.xlu1 %1634 }
 0x1ea   :  { %19583 = vmatpush3.xpose.msk.msra.mxu1 %vm309_vm2, %v765_v54  ;;  %19584 = vmatprep.mubr.msk.f32.mxu1 %vm21435_vm1, %v21431_v0 }
 0x1eb   :  { %19592 = vmatprep.subr.mxu1 %v21431_v0 }
 0x1ed   :  { %19585 = vmatmul.mubr.msk.f32.vlgmr.msra.gmra.mrb[12].mxu1 %vm309_vm2, %v282_v39 }
 0x1ee   :  { %19593 = vmatpush3.msra.mxu1 %v21610_v55  ;;  %19594 = vmatprep.mubr.msk.f32.mxu1 %vm21435_vm1, %v21431_v0 }
 0x1ef   :  { %19602 = vmatprep.subr.mxu1 %v21431_v0 }
 0x245   :  { %v380_v56 = vpop.f32.mrb[0].mxu1 }
 0x246   :  { %v19556_v57 = vpop.f32.mrb[1].mxu1  ;;  %v916_v58 = vsel %vm309_vm2, %v380_v56, -inf }
 0x247   :  { %917 = vmax.xlane.f32.xlu1 %v916_v58 }
 0x2ac   :  { %v456_v59 = vpop.f32.mrb[2].mxu1 }
 0x2ad   :  { %v19561_v60 = vpop.f32.mrb[3].mxu1  ;;  %v919_v61 = vsel %vm309_vm2, %v456_v59, -inf }
 0x2ae   :  { %920 = vmax.xlane.f32.xlu0 %v919_v61 }
 0x2b0   :  { %v532_v62 = vpop.f32.mrb[4].mxu1 }
 0x2b1   :  { %v19566_v63 = vpop.f32.mrb[5].mxu1  ;;  %v922_v1 = vsel %vm309_vm2, %v532_v62, -inf }
 0x2b2   :  { %923 = vmax.xlane.f32.xlu0 %v922_v1 }
 0x2b4   :  { %v608_v2 = vpop.f32.mrb[6].mxu1 }
 0x2b5   :  { %v19571_v3 = vpop.f32.mrb[7].mxu1  ;;  %v925_v12 = vsel %vm309_vm2, %v608_v2, -inf }
 0x2b8   :  { %v684_v4 = vpop.f32.mrb[8].mxu1 }
 0x2b9   :  { %v912_v5 = vpop.f32.mrb[4].mxu0  ;;  %v19576_v6 = vpop.f32.mrb[9].mxu1  ;;  %v928_v7 = vsel %vm309_vm2, %v684_v4, -inf }
 0x2ba   :  { %v19591_v8 = vpop.f32.mrb[5].mxu0  ;;  %929 = vmax.xlane.f32.xlu0 %v928_v7  ;;  %v937_v9 = vsel %vm309_vm2, %v912_v5, -inf }
 0x2bb   :  { %938 = vmax.xlane.f32.xlu1 %v937_v9 }
 0x2bc   :  { %v760_v10 = vpop.f32.mrb[10].mxu1 }
 0x2bd   :  { %v19581_v11 = vpop.f32.mrb[11].mxu1  ;;  %v931_v16 = vsel %vm309_vm2, %v760_v10, -inf }
 0x2bf   :  { %926 = vmax.xlane.f32.xlu1 %v925_v12 }
 0x2c0   :  { %v21623_v13 = vpop.f32.mrb[12].mxu1 }
 0x2c1   :  { %v19586_v14 = vpop.f32.mrb[13].mxu1  ;;  %v934_v15 = vsel %vm309_vm2, %v21623_v13, -inf }
 0x2c2   :  { %935 = vmax.xlane.f32.xlu0 %v934_v15 }
 0x2c3   :  { %932 = vmax.xlane.f32.xlu1 %v931_v16 }
 0x2d4   :  { %1638 = vrot.lane.b32.xlu1 %v21556_v44, %s21439_s19  ;;  %v918_v19 = vpop.xlane.xlu1 %917 }
 0x2d5   :  { %v940_v20 = vsub.f32 %v380_v56, %v918_v19 }
 0x2d7   :  { %v948_v21 = vmul.f32 1.442695, %v940_v20 }
 0x2d8   :  { %1642 = vrot.lane.b32.xlu1 %v21556_v44, %s21441_s21  ;;  %1636 = vrot.lane.b32.xlu0 %v21556_v44, %s21436_s16 }
 0x2d9   :  { %20996 = vpow2.f32 %v948_v21 }
 0x2dc   :  { %286 = vrot.lane.b32.xlu1 %v21610_v55, %s21434_s15  ;;  %1640 = vrot.lane.b32.xlu0 %v21556_v44, %s21438_s18 }
 0x2e0   :  { %292 = vrot.lane.b32.xlu1 %v21610_v55, %s21433_s14  ;;  %289 = vrot.lane.b32.xlu0 %v21610_v55, %s21437_s17 }
 0x2e3   :  { %v21652_v22 = vpop.eup %20996 }
 0x2e4   :  { %295 = vrot.lane.b32.xlu1 %v21610_v55, %s21436_s16  ;;  %298 = vrot.lane.b32.xlu0 %v21610_v55, %s21439_s19  ;;  %v964_v23 = vsel %vm309_vm2, %v21652_v22, 0.0 }
 0x2e8   :  { %301 = vrot.lane.b32.xlu1 %v21610_v55, %s21438_s18 }
 0x303   :  { %965 = vadd.xlane.f32.xlu0 %v964_v23 }
 0x33b   :  { %v921_v25 = vpop.xlane.xlu0 %920 }
 0x33c   :  { %v941_v26 = vsub.f32 %v456_v59, %v921_v25 }
 0x33e   :  { %v950_v28 = vmul.f32 1.442695, %v941_v26 }
 0x33f   :  { %v924_v30 = vpop.xlane.xlu0 %923 }
 0x340   :  { %20998 = vpow2.f32 %v950_v28  ;;  %v942_v31 = vsub.f32 %v532_v62, %v924_v30 }
 0x342   :  { %v952_v38 = vmul.f32 1.442695, %v942_v31 }
 0x347   :  { %v930_v32 = vpop.xlane.xlu0 %929 }
 0x348   :  { %v939_v33 = vpop.xlane.xlu1 %938  ;;  %v944_v34 = vsub.f32 %v684_v4, %v930_v32 }
 0x349   :  { %v947_v35 = vsub.f32 %v912_v5, %v939_v33 }
 0x34a   :  { %v21658_v36 = vpop.eup %20998  ;;  %v956_v37 = vmul.f32 1.442695, %v944_v34 }
 0x34b   :  { %v962_v39 = vmul.f32 1.442695, %v947_v35  ;;  %v967_v40 = vsel %vm309_vm2, %v21658_v36, 0.0 }
 0x34c   :  { %21000 = vpow2.f32 %v956_v37  ;;  %v927_v41 = vpop.xlane.xlu1 %926  ;;  %968 = vadd.xlane.f32.xlu1 %v967_v40 }
 0x34d   :  { %21002 = vpow2.f32 %v962_v39  ;;  %v943_v42 = vsub.f32 %v608_v2, %v927_v41 }
 0x34e   :  { %21004 = vpow2.f32 %v952_v38 }
 0x34f   :  { %v954_v43 = vmul.f32 1.442695, %v943_v42  ;;  %v936_v2 = vpop.xlane.xlu0 %935 }
 0x350   :  { %v933_v46 = vpop.xlane.xlu1 %932  ;;  %v946_v4 = vsub.f32 %v21623_v13, %v936_v2 }
 0x351   :  { %v945_v47 = vsub.f32 %v760_v10, %v933_v46  ;;  %21006 = vpow2.f32 %v954_v43 }
 0x352   :  { %v960_v5 = vmul.f32 1.442695, %v946_v4 }
 0x353   :  { %v958_v48 = vmul.f32 1.442695, %v945_v47  ;;  %v21691_v3 = vpop.permute.xlu0 %1636 }
 0x354   :  { %v21662_v49 = vpop.permute.xlu1 %1638 }
 0x355   :  { %21008 = vpow2.f32 %v958_v48 }
 0x356   :  { %v21664_v50 = vpop.eup %21000  ;;  %21010 = vpow2.f32 %v960_v5 }
 0x357   :  { %v21666_v51 = vpop.eup %21002  ;;  %v976_v54 = vsel %vm309_vm2, %v21664_v50, 0.0  ;;  %v21698_v6 = vpop.permute.xlu0 %1640 }
 0x358   :  { %v21670_v56 = vpop.permute.xlu1 %1642  ;;  %v985_v57 = vsel %vm309_vm2, %v21666_v51, 0.0  ;;  %977 = vadd.xlane.f32.xlu1 %v976_v54  ;;  %v21674_v58 = vpop.eup %21004 }
 0x359   :  { %986 = vadd.xlane.f32.xlu0 %v985_v57  ;;  %v970_v60 = vsel %vm309_vm2, %v21674_v58, 0.0 }
 0x35b   :  { %v21678_v61 = vpop.eup %21006  ;;  %v290_v7 = vpop.permute.xlu0 %289 }
 0x35c   :  { %v287_v59 = vpop.permute.xlu1 %286  ;;  %v973_v62 = vsel %vm309_vm2, %v21678_v61, 0.0 }
 0x35d   :  { %19598 = vmatpush3.msra.mxu0 %v287_v59  ;;  %971 = vadd.xlane.f32.xlu0 %v970_v60 }
 0x35e   :  { %19607 = vmatprep.subr.mxu0 %v21431_v0 }
 0x35f   :  { %v21683_v63 = vpop.eup %21008  ;;  %v299_v8 = vpop.permute.xlu0 %298 }
 0x360   :  { %v979_v1 = vsel %vm309_vm2, %v21683_v63, 0.0  ;;  %v21706_v9 = vpop.eup %21010  ;;  %v293_v13 = vpop.permute.xlu1 %292 }
 0x361   :  { %974 = vadd.xlane.f32.xlu0 %v973_v62  ;;  %v982_v10 = vsel %vm309_vm2, %v21706_v9, 0.0 }
 0x364   :  { %v296_v14 = vpop.permute.xlu1 %295 }
 0x365   :  { %980 = vadd.xlane.f32.xlu0 %v979_v1 }
 0x368   :  { %v302_v15 = vpop.permute.xlu1 %301 }
 0x369   :  { %1666 = vrot.lane.b32.xlu1 %v21556_v44, %s21440_s20 }
 0x36d   :  { %1818 = vrot.lane.b32.xlu1 %v21638_v17, %s21440_s20 }
 0x37b   :  { %304 = vrot.lane.b32.xlu0 %v21610_v55, %s21441_s21 }
 0x37f   :  { %1742 = vrot.lane.b32.xlu0 %v21656_v24, %s21440_s20 }
 0x383   :  { %1894 = vrot.lane.b32.xlu0 %v21644_v18, %s21440_s20 }
 0x387   :  { %2046 = vrot.lane.b32.xlu0 %v21662_v49, %s21440_s20 }
 0x38b   :  { %2198 = vrot.lane.b32.xlu0 %v21670_v56, %s21440_s20 }
 0x390   :  { %v966_v55 = vpop.xlane.xlu0 %965 }
 0x391   :  { %21012 = vrcp.f32 %v966_v55  ;;  %983 = vadd.xlane.f32.xlu1 %v982_v10 }
 0x39b   :  { %v21013_v11 = vpop.eup %21012 }
 0x39c   :  { %v996_v12 = vmul.f32 %v21013_v11, %v21652_v22 }
 0x39e   :  { %19595 = vmatmul.mubr.msk.f32.vlgmr.msra.gmra.mrb[14].mxu1 %vm309_vm2, %v996_v12 }
 0x39f   :  { %19603 = vmatpush3.msra.mxu1 %v290_v7  ;;  %19604 = vmatprep.mubr.msk.f32.mxu1 %vm21435_vm1, %v21431_v0 }
 0x3a0   :  { %19612 = vmatprep.subr.mxu1 %v21431_v0 }
 0x3a2   :  { %1970 = vrot.lane.b32.xlu1 %v21691_v3, %s21440_s20 }
 0x3a6   :  { %2122 = vrot.lane.b32.xlu1 %v21698_v6, %s21440_s20 }
 0x3d9   :  { %v969_v16 = vpop.xlane.xlu1 %968 }
 0x3da   :  { %21014 = vrcp.f32 %v969_v16 }
 0x3e4   :  { %v21015_v19 = vpop.eup %21014 }
 0x3e5   :  { %v997_v20 = vmul.f32 %v21015_v19, %v21658_v36  ;;  %v978_v22 = vpop.xlane.xlu1 %977 }
 0x3e6   :  { %v987_v21 = vpop.xlane.xlu0 %986 }
 0x3e7   :  { %19600 = vmatmul.mubr.msk.f32.vlgmr.msra.gmra.mrb[6].mxu0 %vm309_vm2, %v997_v20 }
 0x3e8   :  { %19608 = vmatpush3.msra.mxu0 %v293_v13  ;;  %19609 = vmatprep.mubr.msk.f32.mxu0 %vm21435_vm1, %v21431_v0 }
 0x3e9   :  { %19617 = vmatprep.subr.mxu0 %v21431_v0 }
 0x3ea   :  { %v972_v23 = vpop.xlane.xlu0 %971 }
 0x3eb   :  { %21016 = vrcp.f32 %v972_v23 }
 0x3ec   :  { %21018 = vrcp.f32 %v978_v22 }
 0x3ee   :  { %v975_v25 = vpop.xlane.xlu0 %974 }
 0x3ef   :  { %21020 = vrcp.f32 %v975_v25 }
 0x3f2   :  { %v981_v26 = vpop.xlane.xlu0 %980 }
 0x3f3   :  { %21022 = vrcp.f32 %v981_v26 }
 0x3f4   :  { %21024 = vrcp.f32 %v987_v21 }
 0x3f5   :  { %v21017_v28 = vpop.eup %21016 }
 0x3f6   :  { %v998_v30 = vmul.f32 %v21017_v28, %v21674_v58  ;;  %v21019_v31 = vpop.eup %21018  ;;  %v305_v35 = vpop.permute.xlu0 %304 }
 0x3f7   :  { %v1000_v34 = vmul.f32 %v21019_v31, %v21664_v50 }
 0x3f8   :  { %19605 = vmatmul.mubr.msk.f32.vlgmr.msra.gmra.mrb[16].mxu1 %vm309_vm2, %v998_v30 }
 0x3f9   :  { %v21021_v32 = vpop.eup %21020  ;;  %19613 = vmatpush3.msra.mxu1 %v296_v14  ;;  %19614 = vmatprep.mubr.msk.f32.mxu1 %vm21435_vm1, %v21431_v0 }
 0x3fa   :  { %19622 = vmatprep.subr.mxu1 %v21431_v0  ;;  %v999_v33 = vmul.f32 %v21021_v32, %v21678_v61  ;;  %v1743_v39 = vpop.permute.xlu0 %1742 }
 0x3fc   :  { %19610 = vmatmul.mubr.msk.f32.vlgmr.msra.gmra.mrb[8].mxu0 %vm309_vm2, %v999_v33  ;;  %19615 = vmatmul.mubr.msk.f32.vlgmr.msra.gmra.mrb[18].mxu1 %vm309_vm2, %v1000_v34 }
 0x3fd   :  { %v21023_v36 = vpop.eup %21022  ;;  %19618 = vmatpush3.msra.mxu0 %v299_v8  ;;  %19623 = vmatpush3.msra.mxu1 %v302_v15 }
 0x3fe   :  { %19619 = vmatprep.mubr.msk.f32.mxu0 %vm21435_vm1, %v21431_v0  ;;  %19627 = vmatprep.subr.mxu0 %v21431_v0  ;;  %v1001_v37 = vmul.f32 %v21023_v36, %v21683_v63  ;;  %v21025_v38 = vpop.eup %21024  ;;  %v1895_v41 = vpop.permute.xlu0 %1894 }
 0x3ff   :  { %19624 = vmatprep.mubr.msk.f32.mxu1 %vm21435_vm1, %v21431_v0  ;;  %19632 = vmatprep.subr.mxu1 %v21431_v0  ;;  %v1003_v40 = vmul.f32 %v21025_v38, %v21666_v51 }
 0x400   :  { %19620 = vmatmul.mubr.msk.f32.vlgmr.msra.gmra.mrb[10].mxu0 %vm309_vm2, %v1001_v37 }
 0x401   :  { %19628 = vmatpush3.msra.mxu0 %v305_v35  ;;  %19629 = vmatprep.mubr.msk.f32.mxu0 %vm21435_vm1, %v21431_v0 }
 0x402   :  { %19637 = vmatprep.subr.mxu0 %v21431_v0  ;;  %v2047_v42 = vpop.permute.xlu0 %2046 }
 0x404   :  { %19630 = vmatmul.mubr.msk.f32.vlgmr.msra.gmra.mrb[12].mxu0 %vm309_vm2, %v1003_v40 }
 0x405   :  { %19639 = vmatprep.mubr.msk.f32.mxu0 %vm21435_vm1, %v21431_v0 }
 0x406   :  { %v2199_v43 = vpop.permute.xlu0 %2198 }
 0x408   :  { %19638 = vmatpush3.xpose.msk.msra.mxu0 %vm309_vm2, %v1743_v39 }
 0x409   :  { %19647 = vmatprep.subr.mxu0 %v21431_v0 }
 0x40b   :  { %19640 = vmatmul.mubr.msk.f32.vlgmr.msra.gmra.mrb[14].mxu0 %vm309_vm2, %v21656_v24  ;;  %v1667_v24 = vpop.permute.xlu1 %1666 }
 0x40c   :  { %19648 = vmatpush3.xpose.msk.msra.mxu0 %vm309_vm2, %v1895_v41  ;;  %19649 = vmatprep.mubr.msk.f32.mxu0 %vm21435_vm1, %v21431_v0 }
 0x40d   :  { %19657 = vmatprep.subr.mxu0 %v21431_v0 }
 0x40f   :  { %19650 = vmatmul.mubr.msk.f32.vlgmr.msra.gmra.mrb[16].mxu0 %vm309_vm2, %v21644_v18  ;;  %v1819_v18 = vpop.permute.xlu1 %1818 }
 0x410   :  { %19658 = vmatpush3.xpose.msk.msra.mxu0 %vm309_vm2, %v2047_v42  ;;  %19659 = vmatprep.mubr.msk.f32.mxu0 %vm21435_vm1, %v21431_v0 }
 0x411   :  { %19667 = vmatprep.subr.mxu0 %v21431_v0 }
 0x413   :  { %19660 = vmatmul.mubr.msk.f32.vlgmr.msra.gmra.mrb[18].mxu0 %vm309_vm2, %v21662_v49 }
 0x414   :  { %19668 = vmatpush3.xpose.msk.msra.mxu0 %vm309_vm2, %v2199_v43  ;;  %19669 = vmatprep.mubr.msk.f32.mxu0 %vm21435_vm1, %v21431_v0 }
 0x415   :  { %19677 = vmatprep.subr.mxu0 %v21431_v0 }
 0x417   :  { %19670 = vmatmul.mubr.msk.f32.vlgmr.msra.gmra.mrb[20].mxu0 %vm309_vm2, %v21670_v56 }
 0x418   :  { %19679 = vmatprep.mubr.msk.f32.mxu0 %vm21435_vm1, %v21431_v0 }
 0x41e   :  { %v984_v46 = vpop.xlane.xlu1 %983 }
 0x41f   :  { %21026 = vrcp.f32 %v984_v46 }
 0x422   :  { %v1971_v49 = vpop.permute.xlu1 %1970 }
 0x426   :  { %v2123_v50 = vpop.permute.xlu1 %2122 }
 0x429   :  { %v21027_v47 = vpop.eup %21026 }
 0x42a   :  { %v1002_v48 = vmul.f32 %v21027_v47, %v21706_v9 }
 0x42c   :  { %19625 = vmatmul.mubr.msk.f32.vlgmr.msra.gmra.mrb[20].mxu1 %vm309_vm2, %v1002_v48 }
 0x42d   :  { %19633 = vmatpush3.xpose.msk.msra.mxu1 %vm309_vm2, %v1667_v24  ;;  %19634 = vmatprep.mubr.msk.f32.mxu1 %vm21435_vm1, %v21431_v0 }
 0x42e   :  { %19642 = vmatprep.subr.mxu1 %v21431_v0 }
 0x430   :  { %19635 = vmatmul.mubr.msk.f32.vlgmr.msra.gmra.mrb[22].mxu1 %vm309_vm2, %v21556_v44  ;;  %v21798_v44 = vadd.f32 %v21567_v45, %v21599_v53 }
 0x431   :  { %19643 = vmatpush3.xpose.msk.msra.mxu1 %vm309_vm2, %v1819_v18  ;;  %19644 = vmatprep.mubr.msk.f32.mxu1 %vm21435_vm1, %v21431_v0 }
 0x432   :  { %19652 = vmatprep.subr.mxu1 %v21431_v0 }
 0x434   :  { %19645 = vmatmul.mubr.msk.f32.vlgmr.msra.gmra.mrb[24].mxu1 %vm309_vm2, %v21638_v17 }
 0x435   :  { %19653 = vmatpush3.xpose.msk.msra.mxu1 %vm309_vm2, %v1971_v49  ;;  %19654 = vmatprep.mubr.msk.f32.mxu1 %vm21435_vm1, %v21431_v0 }
 0x436   :  { %19662 = vmatprep.subr.mxu1 %v21431_v0 }
 0x438   :  { %19655 = vmatmul.mubr.msk.f32.vlgmr.msra.gmra.mrb[26].mxu1 %vm309_vm2, %v21691_v3 }
 0x439   :  { %19663 = vmatpush3.xpose.msk.msra.mxu1 %vm309_vm2, %v2123_v50  ;;  %19664 = vmatprep.mubr.msk.f32.mxu1 %vm21435_vm1, %v21431_v0 }
 0x43a   :  { %19672 = vmatprep.subr.mxu1 %v21431_v0 }
 0x43c   :  { %19665 = vmatmul.mubr.msk.f32.vlgmr.msra.gmra.mrb[28].mxu1 %vm309_vm2, %v21698_v6 }
 0x43d   :  { %19673 = vmatpush3.msra.mxu1 %v21798_v44  ;;  %19674 = vmatprep.mubr.msk.f32.mxu1 %vm21435_vm1, %v21431_v0 }
 0x43e   :  { %19682 = vmatprep.subr.mxu1 %v21431_v0 }
 0x471   :  { %v21806_v17 = vpop.f32.mrb[14].mxu1 }
 0x472   :  { %v19596_v51 = vpop.f32.mrb[15].mxu1 }
 0x4ba   :  { %v1146_v54 = vpop.f32.mrb[6].mxu0 }
 0x4bb   :  { %v19601_v56 = vpop.f32.mrb[7].mxu0 }
 0x4cb   :  { %v1219_v57 = vpop.f32.mrb[16].mxu1 }
 0x4cc   :  { %v19606_v58 = vpop.f32.mrb[17].mxu1 }
 0x4cf   :  { %v1292_v59 = vpop.f32.mrb[8].mxu0  ;;  %v1365_v45 = vpop.f32.mrb[18].mxu1 }
 0x4d0   :  { %v19611_v53 = vpop.f32.mrb[9].mxu0  ;;  %v19616_v60 = vpop.f32.mrb[19].mxu1 }
 0x4d3   :  { %v1438_v61 = vpop.f32.mrb[10].mxu0 }
 0x4d4   :  { %v19621_v62 = vpop.f32.mrb[11].mxu0 }
 0x4d7   :  { %v1584_v63 = vpop.f32.mrb[12].mxu0 }
 0x4d8   :  { %v19631_v1 = vpop.f32.mrb[13].mxu0 }
 0x4de   :  { %v1814_v2 = vpop.f32.mrb[14].mxu0 }
 0x4df   :  { %v19641_v3 = vpop.f32.mrb[15].mxu0  ;;  %v2277_v4 = vsel %vm309_vm2, %v1814_v2, -inf }
 0x4e0   :  { %2278 = vmax.xlane.f32.xlu0 %v2277_v4 }
 0x4e2   :  { %v21809_v5 = vpop.f32.mrb[16].mxu0 }
 0x4e3   :  { %v19651_v6 = vpop.f32.mrb[17].mxu0  ;;  %v2283_v20 = vsel %vm309_vm2, %v21809_v5, -inf }
 0x4e6   :  { %v21811_v7 = vpop.f32.mrb[18].mxu0 }
 0x4e7   :  { %v19661_v8 = vpop.f32.mrb[19].mxu0  ;;  %v2289_v25 = vsel %vm309_vm2, %v21811_v7, -inf }
 0x4ea   :  { %v21813_v9 = vpop.f32.mrb[20].mxu0 }
 0x4eb   :  { %v19671_v55 = vpop.f32.mrb[21].mxu0  ;;  %v2295_v31 = vsel %vm309_vm2, %v21813_v9, -inf }
 0x4ff   :  { %v1511_v10 = vpop.f32.mrb[20].mxu1 }
 0x500   :  { %v19626_v11 = vpop.f32.mrb[21].mxu1 }
 0x503   :  { %v1738_v12 = vpop.f32.mrb[22].mxu1 }
 0x504   :  { %v19636_v13 = vpop.f32.mrb[23].mxu1  ;;  %v2274_v14 = vsel %vm309_vm2, %v1738_v12, -inf }
 0x505   :  { %2275 = vmax.xlane.f32.xlu1 %v2274_v14 }
 0x507   :  { %v1890_v15 = vpop.f32.mrb[24].mxu1 }
 0x508   :  { %v19646_v16 = vpop.f32.mrb[25].mxu1  ;;  %v2280_v19 = vsel %vm309_vm2, %v1890_v15, -inf }
 0x509   :  { %2281 = vmax.xlane.f32.xlu0 %v2280_v19  ;;  %2284 = vmax.xlane.f32.xlu1 %v2283_v20 }
 0x50b   :  { %v2042_v21 = vpop.f32.mrb[26].mxu1 }
 0x50c   :  { %v19656_v22 = vpop.f32.mrb[27].mxu1  ;;  %v2286_v23 = vsel %vm309_vm2, %v2042_v21, -inf }
 0x50d   :  { %2287 = vmax.xlane.f32.xlu0 %v2286_v23  ;;  %2290 = vmax.xlane.f32.xlu1 %v2289_v25 }
 0x50f   :  { %v2194_v26 = vpop.f32.mrb[28].mxu1 }
 0x510   :  { %v19666_v28 = vpop.f32.mrb[29].mxu1  ;;  %v2292_v30 = vsel %vm309_vm2, %v2194_v26, -inf }
 0x511   :  { %2293 = vmax.xlane.f32.xlu0 %v2292_v30 }
 0x51e   :  { %1593 = vrot.lane.b32.xlu1 %v1219_v57, %s21442_s22 }
 0x522   :  { %1597 = vrot.lane.b32.xlu1 %v1292_v59, %s21443_s23 }
 0x526   :  { %1605 = vrot.lane.b32.xlu1 %v1438_v61, %s21444_s24 }
 0x527   :  { %1589 = vrot.lane.b32.xlu0 %v1146_v54, %s21445_s25 }
 0x52a   :  { %1613 = vrot.lane.b32.xlu1 %v1584_v63, %s21446_s26 }
 0x52b   :  { %1601 = vrot.lane.b32.xlu0 %v1365_v45, %s21447_s27 }
 0x52e   :  { %1645 = vrot.lane.b32.xlu1 %v21798_v44, %s21434_s15 }
 0x52f   :  { %1609 = vrot.lane.b32.xlu0 %v1511_v10, %s21448_s28 }
 0x533   :  { %1648 = vrot.lane.b32.xlu0 %v21798_v44, %s21437_s17 }
 0x537   :  { %1657 = vrot.lane.b32.xlu0 %v21798_v44, %s21439_s19 }
 0x552   :  { %2296 = vmax.xlane.f32.xlu1 %v2295_v31 }
 0x563   :  { %1651 = vrot.lane.b32.xlu1 %v21798_v44, %s21433_s14 }
 0x567   :  { %1654 = vrot.lane.b32.xlu1 %v21798_v44, %s21436_s16 }
 0x56d   :  { %v2279_v32 = vpop.xlane.xlu0 %2278 }
 0x56e   :  { %v2299_v33 = vsub.f32 %v1814_v2, %v2279_v32 }
 0x570   :  { %v2308_v34 = vmul.f32 1.442695, %v2299_v33 }
 0x572   :  { %21028 = vpow2.f32 %v2308_v34 }
 0x57c   :  { %v21842_v35 = vpop.eup %21028 }
 0x57d   :  { %v2325_v36 = vsel %vm309_vm2, %v21842_v35, 0.0 }
 0x58b   :  { %2326 = vadd.xlane.f32.xlu1 %v2325_v36 }
 0x592   :  { %v2276_v37 = vpop.xlane.xlu1 %2275 }
 0x593   :  { %v2298_v38 = vsub.f32 %v1738_v12, %v2276_v37 }
 0x595   :  { %v2306_v39 = vmul.f32 1.442695, %v2298_v38 }
 0x596   :  { %v2285_v40 = vpop.xlane.xlu1 %2284  ;;  %v2282_v41 = vpop.xlane.xlu0 %2281 }
 0x597   :  { %21030 = vpow2.f32 %v2306_v39  ;;  %v2301_v42 = vsub.f32 %v21809_v5, %v2285_v40  ;;  %v2300_v43 = vsub.f32 %v1890_v15, %v2282_v41 }
 0x599   :  { %v2310_v24 = vmul.f32 1.442695, %v2300_v43  ;;  %v2312_v18 = vmul.f32 1.442695, %v2301_v42 }
 0x59a   :  { %v2291_v46 = vpop.xlane.xlu1 %2290  ;;  %v2288_v47 = vpop.xlane.xlu0 %2287 }
 0x59b   :  { %v2303_v48 = vsub.f32 %v21811_v7, %v2291_v46  ;;  %v2302_v49 = vsub.f32 %v2042_v21, %v2288_v47  ;;  %21032 = vpow2.f32 %v2310_v24 }
 0x59c   :  { %21034 = vpow2.f32 %v2312_v18 }
 0x59d   :  { %v2314_v50 = vmul.f32 1.442695, %v2302_v49  ;;  %v2316_v51 = vmul.f32 1.442695, %v2303_v48 }
 0x59e   :  { %v1594_v54 = vpop.permute.xlu1 %1593  ;;  %v2294_v56 = vpop.xlane.xlu0 %2293 }
 0x59f   :  { %v2304_v57 = vsub.f32 %v2194_v26, %v2294_v56  ;;  %21036 = vpow2.f32 %v2314_v50 }
 0x5a0   :  { %21038 = vpow2.f32 %v2316_v51 }
 0x5a1   :  { %v21848_v58 = vpop.eup %21030  ;;  %v2318_v59 = vmul.f32 1.442695, %v2304_v57 }
 0x5a2   :  { %v1598_v45 = vpop.permute.xlu1 %1597  ;;  %v2322_v53 = vsel %vm309_vm2, %v21848_v58, 0.0  ;;  %v1590_v10 = vpop.permute.xlu0 %1589 }
 0x5a3   :  { %21040 = vpow2.f32 %v2318_v59  ;;  %2323 = vadd.xlane.f32.xlu0 %v2322_v53  ;;  %v1616_v11 = vsel %vm309_vm2, %v21806_v17, %v1590_v10  ;;  %v3012_v10 = vld [vmem:[%s21930_s2 + $0x20] sm:$0xff] }
 0x5a4   :  { %v1618_v12 = vsel %vm1617_vm3, %v1616_v11, %v1594_v54  ;;  %v3014_v11 = vld [vmem:[%s21930_s2 + $0x30] sm:$0xff] }
 0x5a5   :  { %v21852_v60 = vpop.eup %21032  ;;  %v1620_v14 = vsel %vm1619_vm4, %v1618_v12, %v1598_v45  ;;  %v20629_v12 = vpack.c.bf16 %v3014_v11, %v3012_v10 }
 0x5a6   :  { %v1606_v61 = vpop.permute.xlu1 %1605  ;;  %v2328_v62 = vsel %vm309_vm2, %v21852_v60, 0.0  ;;  %v21856_v63 = vpop.eup %21034 }
 0x5a7   :  { %2329 = vadd.xlane.f32.xlu0 %v2328_v62  ;;  %v2331_v3 = vsel %vm309_vm2, %v21856_v63, 0.0  ;;  %v1602_v13 = vpop.permute.xlu0 %1601 }
 0x5a8   :  { %v1622_v15 = vsel %vm1621_vm5, %v1620_v14, %v1602_v13  ;;  %v3017_v13 = vld [vmem:[%s21930_s2 + $0x48] sm:$0xff]  ;;  %v3019_v14 = vld [vmem:[%s21930_s2 + $0x58] sm:$0xff] }
 0x5a9   :  { %v21858_v1 = vpop.eup %21036  ;;  %v1624_v19 = vsel %vm1623_vm6, %v1622_v15, %v1606_v61  ;;  %v20631_v15 = vpack.c.bf16 %v3019_v14, %v3017_v13  ;;  %v3131_v14 = vld [vmem:[%s21967_s6 + $0x40] sm:$0xff] }
 0x5aa   :  { %v1614_v2 = vpop.permute.xlu1 %1613  ;;  %v2334_v4 = vsel %vm309_vm2, %v21858_v1, 0.0  ;;  %v21864_v5 = vpop.eup %21038 }
 0x5ab   :  { %2332 = vadd.xlane.f32.xlu0 %v2331_v3  ;;  %2335 = vadd.xlane.f32.xlu1 %v2334_v4  ;;  %v2337_v55 = vsel %vm309_vm2, %v21864_v5, 0.0  ;;  %v1610_v16 = vpop.permute.xlu0 %1609  ;;  %v3008_v4 = vld [vmem:[%s21930_s2] sm:$0xff] }
 0x5ac   :  { %v1626_v20 = vsel %vm1625_vm7, %v1624_v19, %v1610_v16  ;;  %v3016_v16 = vld [vmem:[%s21930_s2 + $0x40] sm:$0xff]  ;;  %v3018_v19 = vld [vmem:[%s21930_s2 + $0x50] sm:$0xff] }
 0x5ad   :  { %v21866_v6 = vpop.eup %21040  ;;  %v21884_v22 = vsel %vm1627_vm8, %v1626_v20, %v1614_v2  ;;  %v20633_v20 = vpack.c.bf16 %v3018_v19, %v3016_v16  ;;  %v3149_v16 = vld [vmem:[%s21967_s6 + $0xd0] sm:$0xff]  ;;  %v3150_v19 = vld [vmem:[%s21967_s6 + $0xd8] sm:$0xff] }
 0x5ae   :  { %v1646_v7 = vpop.permute.xlu1 %1645  ;;  %v2340_v8 = vsel %vm309_vm2, %v21866_v6, 0.0  ;;  %v2981_v25 = vsel %vm186_vm0, %v21884_v22, 0.0 }
 0x5af   :  { %19678 = vmatpush3.msra.mxu0 %v1646_v7  ;;  %2338 = vadd.xlane.f32.xlu0 %v2337_v55  ;;  %v1649_v34 = vpop.permute.xlu0 %1648  ;;  %v3013_v7 = vld [vmem:[%s21930_s2 + $0x28] sm:$0xff] }
 0x5b0   :  { %2341 = vadd.xlane.f32.xlu1 %v2340_v8  ;;  %19687 = vmatprep.subr.mxu0 %v21431_v0  ;;  %v3015_v8 = vld [vmem:[%s21930_s2 + $0x38] sm:$0xff] }
 0x5b1   :  { %v20627_v55 = vpack.c.bf16 %v3015_v8, %v3013_v7  ;;  %v3130_v7 = vld [vmem:[%s21967_s6 + $0x38] sm:$0xff]  ;;  %v3147_v8 = vld [vmem:[%s21967_s6 + $0xc0] sm:$0xff] }
 0x5b3   :  { %v1658_v36 = vpop.permute.xlu0 %1657 }
 0x5c1   :  { %1660 = vrot.lane.b32.xlu1 %v21798_v44, %s21438_s18 }
 0x5df   :  { %v2297_v21 = vpop.xlane.xlu1 %2296 }
 0x5e0   :  { %v2305_v17 = vsub.f32 %v21813_v9, %v2297_v21  ;;  %v3021_v21 = vld [vmem:[%s21930_s2 + $0x68] sm:$0xff] }
 0x5e2   :  { %v2320_v23 = vmul.f32 1.442695, %v2305_v17  ;;  %v3023_v17 = vld [vmem:[%s21930_s2 + $0x78] sm:$0xff] }
 0x5e3   :  { %v1652_v30 = vpop.permute.xlu1 %1651 }
 0x5e4   :  { %21042 = vpow2.f32 %v2320_v23  ;;  %v3020_v23 = vld [vmem:[%s21930_s2 + $0x60] sm:$0xff] }
 0x5e5   :  { %2982 = vadd.xlane.f32.xlu1 %v2981_v25  ;;  %v3022_v25 = vld [vmem:[%s21930_s2 + $0x70] sm:$0xff] }
 0x5e7   :  { %v1655_v9 = vpop.permute.xlu1 %1654 }
 0x5ee   :  { %v21888_v26 = vpop.eup %21042 }
 0x5ef   :  { %v2343_v28 = vsel %vm309_vm2, %v21888_v26, 0.0 }
 0x5f0   :  { %2344 = vadd.xlane.f32.xlu0 %v2343_v28 }
 0x606   :  { %1663 = vrot.lane.b32.xlu0 %v21798_v44, %s21441_s21 }
 0x618   :  { %v2327_v31 = vpop.xlane.xlu1 %2326 }
 0x619   :  { %21044 = vrcp.f32 %v2327_v31 }
 0x623   :  { %v21045_v32 = vpop.eup %21044 }
 0x624   :  { %v2355_v33 = vmul.f32 %v21045_v32, %v21842_v35 }
 0x626   :  { %19680 = vmatmul.mubr.msk.f32.vlgmr.msra.gmra.mrb[22].mxu0 %vm309_vm2, %v2355_v33 }
 0x627   :  { %19688 = vmatpush3.msra.mxu0 %v1652_v30  ;;  %19689 = vmatprep.mubr.msk.f32.mxu0 %vm21435_vm1, %v21431_v0 }
 0x628   :  { %19697 = vmatprep.subr.mxu0 %v21431_v0 }
 0x630   :  { %v2324_v37 = vpop.xlane.xlu0 %2323 }
 0x631   :  { %21046 = vrcp.f32 %v2324_v37 }
 0x634   :  { %v2330_v44 = vpop.xlane.xlu0 %2329 }
 0x635   :  { %21048 = vrcp.f32 %v2330_v44 }
 0x638   :  { %v2336_v38 = vpop.xlane.xlu1 %2335  ;;  %v2333_v39 = vpop.xlane.xlu0 %2332 }
 0x639   :  { %21050 = vrcp.f32 %v2336_v38  ;;  %v21428_v38 = vld [vmem:[%s21510_s9] sm:$0xff] }
 0x63a   :  { %21052 = vrcp.f32 %v2333_v39 }
 0x63b   :  { %v21047_v40 = vpop.eup %21046 }
 0x63c   :  { %v2354_v35 = vmul.f32 %v21047_v40, %v21848_v58  ;;  %v2339_v42 = vpop.xlane.xlu0 %2338 }
 0x63d   :  { %v2342_v41 = vpop.xlane.xlu1 %2341 }
 0x63e   :  { %21054 = vrcp.f32 %v2342_v41  ;;  %19675 = vmatmul.mubr.msk.f32.vlgmr.msra.gmra.mrb[30].mxu1 %vm309_vm2, %v2354_v35 }
 0x63f   :  { %21056 = vrcp.f32 %v2339_v42  ;;  %19683 = vmatpush3.msra.mxu1 %v1649_v34  ;;  %19684 = vmatprep.mubr.msk.f32.mxu1 %vm21435_vm1, %v21431_v0  ;;  %v21049_v43 = vpop.eup %21048 }
 0x640   :  { %19692 = vmatprep.subr.mxu1 %v21431_v0  ;;  %v2356_v24 = vmul.f32 %v21049_v43, %v21852_v60 }
 0x641   :  { %v1661_v49 = vpop.permute.xlu1 %1660 }
 0x642   :  { %19685 = vmatmul.mubr.msk.f32.vlgmr.msra.gmra.mrb[32].mxu1 %vm309_vm2, %v2356_v24 }
 0x643   :  { %v21051_v18 = vpop.eup %21050  ;;  %19693 = vmatpush3.msra.mxu1 %v1655_v9  ;;  %19694 = vmatprep.mubr.msk.f32.mxu1 %vm21435_vm1, %v21431_v0 }
 0x644   :  { %v21053_v46 = vpop.eup %21052  ;;  %19702 = vmatprep.subr.mxu1 %v21431_v0  ;;  %v2358_v47 = vmul.f32 %v21051_v18, %v21858_v1  ;;  %v3011_v1 = vld [vmem:[%s21930_s2 + $0x18] sm:$0xff] }
 0x645   :  { %v2357_v48 = vmul.f32 %v21053_v46, %v21856_v63  ;;  %v3009_v63 = vld [vmem:[%s21930_s2 + $0x8] sm:$0xff] }
 0x646   :  { %19695 = vmatmul.mubr.msk.f32.vlgmr.msra.gmra.mrb[34].mxu1 %vm309_vm2, %v2358_v47  ;;  %v20623_v3 = vpack.c.bf16 %v3011_v1, %v3009_v63  ;;  %v3139_v47 = vld [vmem:[%s21967_s6 + $0x80] sm:$0xff]  ;;  %v3128_v1 = vld [vmem:[%s21967_s6 + $0x28] sm:$0xff] }
 0x647   :  { %19690 = vmatmul.mubr.msk.f32.vlgmr.msra.gmra.mrb[24].mxu0 %vm309_vm2, %v2357_v48  ;;  %19703 = vmatpush3.msra.mxu1 %v1661_v49  ;;  %v3140_v48 = vld [vmem:[%s21967_s6 + $0x88] sm:$0xff]  ;;  %v3123_v49 = vld [vmem:[%s21967_s6] sm:$0xff] }
 0x648   :  { %v21055_v50 = vpop.eup %21054  ;;  %19698 = vmatpush3.msra.mxu0 %v1658_v36  ;;  %19699 = vmatprep.mubr.msk.f32.mxu0 %vm21435_vm1, %v21431_v0  ;;  %v3127_v63 = vld [vmem:[%s21967_s6 + $0x20] sm:$0xff] }
 0x649   :  { %v21057_v51 = vpop.eup %21056  ;;  %v2360_v54 = vmul.f32 %v21055_v50, %v21866_v6  ;;  %19704 = vmatprep.mubr.msk.f32.mxu1 %vm21435_vm1, %v21431_v0  ;;  %19707 = vmatprep.subr.mxu0 %v21431_v0  ;;  %v20639_v50 = vpack.c.bf16 %v3140_v48, %v3139_v47 }
 0x64a   :  { %v2359_v56 = vmul.f32 %v21057_v51, %v21864_v5  ;;  %v3010_v5 = vld [vmem:[%s21930_s2 + $0x10] sm:$0xff]  ;;  %20624 = vmatprep.subr.bf16.mxu1 %v20623_v3  ;;  %v3124_v51 = vld [vmem:[%s21967_s6 + $0x8] sm:$0xff]  ;;  %v3146_v3 = vld [vmem:[%s21967_s6 + $0xb8] sm:$0xff] }
 0x64b   :  { %19705 = vmatmul.mubr.msk.f32.vlgmr.msra.gmra.mrb[36].mxu1 %vm309_vm2, %v2360_v54  ;;  %v20625_v6 = vpack.c.bf16 %v3010_v5, %v3008_v4  ;;  %v20641_v54 = vpack.c.bf16 %v3124_v51, %v3123_v49  ;;  %v20649_v4 = vpack.c.bf16 %v3128_v1, %v3127_v63 }
 0x64c   :  { %19700 = vmatmul.mubr.msk.f32.vlgmr.msra.gmra.mrb[26].mxu0 %vm309_vm2, %v2359_v56  ;;  %3106 = vmatprep.mubr.f32.mxu1 %v21431_v0  ;;  %v3141_v56 = vld [vmem:[%s21967_s6 + $0x90] sm:$0xff] }
 0x64d   :  { %19709 = vmatprep.mubr.msk.f32.mxu0 %vm21435_vm1, %v21431_v0  ;;  %20626 = vmatpush1.bf16.msra.mxu1 %v20625_v6  ;;  %v3129_v6 = vld [vmem:[%s21967_s6 + $0x30] sm:$0xff] }
 0x64e   :  { %20628 = vmatprep.subr.bf16.mxu1 %v20627_v55  ;;  %v3148_v55 = vld [vmem:[%s21967_s6 + $0xc8] sm:$0xff]  ;;  %v20653_v11 = vpack.c.bf16 %v3130_v7, %v3129_v6  ;;  %v22028_v7 = vld [vmem:[%s18613_s29] ss:$0 sm:$0xff]  ;;  %s21460_s29 = smov 12  }
 0x64f   :  { %v20655_v13 = vpack.c.bf16 %v3148_v55, %v3147_v8  ;;  %s18617_s2 = sld [smem:[%s24812_s0 + %s21460_s29]]   ;;  %s21463_s29 = smov 18  }
 0x651   :  { %20630 = vmatpush1.bf16.msra.mxu1 %v20629_v12 }
 0x652   :  { %20632 = vmatprep.subr.bf16.mxu1 %v20631_v15  ;;  %v3132_v15 = vld [vmem:[%s21967_s6 + $0x48] sm:$0xff] }
 0x655   :  { %20634 = vmatpush1.bf16.msra.mxu1 %v20633_v20  ;;  %v20657_v20 = vpack.c.bf16 %v3132_v15, %v3131_v14  ;;  %v21429_v15 = vld [vmem:[%s21510_s9 + $0x8] sm:$0xff]  ;;  %s21453_s9 = smov 10  }
 0x672   :  { %v2983_v57 = vpop.xlane.xlu1 %2982 }
 0x673   :  { %v2988_v58 = vmul.f32 0.015625, %v2983_v57  ;;  %v3142_v57 = vld [vmem:[%s21967_s6 + $0x98] sm:$0xff] }
 0x675   :  { %v2990_v59 = vsub.f32 %v21884_v22, %v2988_v58  ;;  %v20635_v22 = vpack.c.bf16 %v3023_v17, %v3021_v21  ;;  %v3125_v58 = vld [vmem:[%s21967_s6 + $0x10] sm:$0xff]  ;;  %v20659_v21 = vpack.c.bf16 %v3150_v19, %v3149_v16 }
 0x676   :  { %v3133_v17 = vld [vmem:[%s21967_s6 + $0x50] sm:$0xff] }
 0x677   :  { %v2992_v45 = vmul.f32 %v2990_v59, %v2990_v59  ;;  %20636 = vmatprep.subr.bf16.mxu1 %v20635_v22  ;;  %v3134_v22 = vld [vmem:[%s21967_s6 + $0x58] sm:$0xff] }
 0x679   :  { %v2994_v53 = vsel %vm186_vm0, %v2992_v45, 0.0  ;;  %v3126_v45 = vld [vmem:[%s21967_s6 + $0x18] sm:$0xff] }
 0x67a   :  { %2995 = vadd.xlane.f32.xlu0 %v2994_v53  ;;  %v3143_v53 = vld [vmem:[%s21967_s6 + $0xa0] sm:$0xff] }
 0x67d   :  { %v2345_v60 = vpop.xlane.xlu0 %2344 }
 0x67e   :  { %21058 = vrcp.f32 %v2345_v60  ;;  %v3144_v60 = vld [vmem:[%s21967_s6 + $0xa8] sm:$0xff] }
 0x681   :  { %v1664_v61 = vpop.permute.xlu0 %1663 }
 0x682   :  { %19708 = vmatpush3.msra.mxu0 %v1664_v61  ;;  %v20645_v61 = vpack.c.bf16 %v3126_v45, %v3125_v58 }
 0x683   :  { %20640 = vmatprep.subr.bf16.mxu0 %v20639_v50 }
 0x688   :  { %v21059_v62 = vpop.eup %21058 }
 0x689   :  { %v2361_v2 = vmul.f32 %v21059_v62, %v21888_v26  ;;  %v20637_v26 = vpack.c.bf16 %v3022_v25, %v3020_v23  ;;  %v20647_v62 = vpack.c.bf16 %v3144_v60, %v3143_v53  ;;  %v3151_v23 = vld [vmem:[%s21967_s6 + $0xe0] sm:$0xff]  ;;  %v3152_v25 = vld [vmem:[%s21967_s6 + $0xe8] sm:$0xff] }
 0x68b   :  { %19710 = vmatmul.mubr.msk.f32.vlgmr.msra.gmra.mrb[28].mxu0 %vm309_vm2, %v2361_v2  ;;  %20638 = vmatpush1.bf16.msra.mxu1 %v20637_v26  ;;  %v3145_v2 = vld [vmem:[%s21967_s6 + $0xb0] sm:$0xff]  ;;  %v20661_v26 = vpack.c.bf16 %v3134_v22, %v3133_v17 }
 0x68c   :  { %20642 = vmatpush3.bf16.msra.mxu0 %v20641_v54  ;;  %v20651_v5 = vpack.c.bf16 %v3146_v3, %v3145_v2 }
 0x6f9   :  { %v2504_v28 = vpop.f32.mrb[22].mxu0 }
 0x6fa   :  { %v19681_v30 = vpop.f32.mrb[23].mxu0  ;;  %2947 = vrot.lane.b32.xlu0 %v2504_v28, %s21445_s25  ;;  %v20663_v28 = vpack.c.bf16 %v3152_v25, %v3151_v23  ;;  %v3264_v23 = vld [vmem:[%s18614_s3 + $0x8] sm:$0xff]  ;;  %v3266_v25 = vld [vmem:[%s18614_s3 + $0x18] sm:$0xff] }
 0x6fb   :  { %v3135_v30 = vld [vmem:[%s21967_s6 + $0x60] sm:$0xff] }
 0x707   :  { %v2996_v9 = vpop.xlane.xlu0 %2995 }
 0x708   :  { %v3000_v31 = vmul.f32 0.015873017, %v2996_v9  ;;  %v3136_v9 = vld [vmem:[%s21967_s6 + $0x68] sm:$0xff] }
 0x70a   :  { %21060 = vrsqrt.f32 %v3000_v31  ;;  %v20665_v31 = vpack.c.bf16 %v3136_v9, %v3135_v30  ;;  %v3265_v30 = vld [vmem:[%s18614_s3 + $0x10] sm:$0xff] }
 0x711   :  { %v21951_v32 = vpop.f32.mrb[30].mxu1 }
 0x712   :  { %v19676_v33 = vpop.f32.mrb[31].mxu1 }
 0x713   :  { %v3153_v33 = vld [vmem:[%s21967_s6 + $0xf0] sm:$0xff] }
 0x714   :  { %v21061_v34 = vpop.eup %21060 }
 0x715   :  { %v3004_v36 = vmul.f32 %v21061_v34, %v2990_v59  ;;  %v2577_v37 = vpop.f32.mrb[32].mxu1  ;;  %v20643_v59 = vpack.c.bf16 %v3142_v57, %v3141_v56  ;;  %v3154_v34 = vld [vmem:[%s21967_s6 + $0xf8] sm:$0xff] }
 0x716   :  { %2951 = vrot.lane.b32.xlu1 %v2577_v37, %s21442_s22  ;;  %v19686_v44 = vpop.f32.mrb[33].mxu1  ;;  %v3137_v37 = vld [vmem:[%s21967_s6 + $0x70] sm:$0xff] }
 0x717   :  { %v21955_v39 = vadd.f32 %v21428_v38, %v3004_v36  ;;  %20644 = vmatprep.subr.bf16.mxu0 %v20643_v59  ;;  %v20667_v36 = vpack.c.bf16 %v3154_v34, %v3153_v33  ;;  %v3138_v44 = vld [vmem:[%s21967_s6 + $0x78] sm:$0xff]  ;;  %s18615_s6 = sld [smem:[%s24812_s0 + %s21453_s9]]  }
 0x718   :  { %20646 = vmatpush3.bf16.msra.mxu0 %v20645_v61  ;;  %v20669_v38 = vpack.c.bf16 %v3138_v44, %v3137_v37  ;;  %v3270_v33 = vld [vmem:[%s18614_s3 + $0x38] sm:$0xff]  ;;  %v3269_v37 = vld [vmem:[%s18614_s3 + $0x30] sm:$0xff]  ;;  %s22527_s9 = sld [smem:[%s24812_s0 + %s21457_s1]]   ;;  %s21474_s1 = smov 30  }
 0x719   :  { %18693 = vmatmul.mubr.msk.f32.vlgmr.msra.gmra.mrb[38].mxu1 %vm186_vm0, %v21955_v39  ;;  %v2723_v40 = vpop.f32.mrb[34].mxu1  ;;  %20648 = vmatprep.subr.bf16.mxu0 %v20647_v62 }
 0x71a   :  { %3112 = vmatprep.mubr.f32.mxu1 %v21431_v0  ;;  %v2650_v35 = vpop.f32.mrb[24].mxu0  ;;  %2959 = vrot.lane.b32.xlu0 %v2723_v40, %s21447_s27  ;;  %v19696_v41 = vpop.f32.mrb[35].mxu1 }
 0x71b   :  { %2955 = vrot.lane.b32.xlu1 %v2650_v35, %s21443_s23  ;;  %v19691_v42 = vpop.f32.mrb[25].mxu0 }
 0x71c   :  { %20650 = vmatpush3.bf16.msra.mxu0 %v20649_v4 }
 0x71d   :  { %20652 = vmatprep.subr.bf16.mxu0 %v20651_v5 }
 0x71e   :  { %v2869_v43 = vpop.f32.mrb[36].mxu1 }
 0x71f   :  { %v2796_v24 = vpop.f32.mrb[26].mxu0  ;;  %2967 = vrot.lane.b32.xlu0 %v2869_v43, %s21448_s28  ;;  %v19706_v18 = vpop.f32.mrb[37].mxu1 }
 0x720   :  { %2963 = vrot.lane.b32.xlu1 %v2796_v24, %s21444_s24  ;;  %v19701_v46 = vpop.f32.mrb[27].mxu0  ;;  %20654 = vmatpush3.bf16.msra.mxu0 %v20653_v11 }
 0x721   :  { %20656 = vmatprep.subr.bf16.mxu0 %v20655_v13 }
 0x724   :  { %20658 = vmatpush3.bf16.msra.mxu0 %v20657_v20 }
 0x725   :  { %20660 = vmatprep.subr.bf16.mxu0 %v20659_v21 }
 0x728   :  { %20662 = vmatpush3.bf16.msra.mxu0 %v20661_v26  ;;  %v20671_v26 = vpack.c.bf16 %v3266_v25, %v3264_v23 }
 0x729   :  { %20664 = vmatprep.subr.bf16.mxu0 %v20663_v28  ;;  %v3263_v28 = vld [vmem:[%s18614_s3] sm:$0xff] }
 0x72a   :  { %v20673_v9 = vpack.c.bf16 %v3265_v30, %v3263_v28  ;;  %20672 = vmatprep.subr.bf16.mxu1 %v20671_v26 }
 0x72c   :  { %20666 = vmatpush3.bf16.msra.mxu0 %v20665_v31  ;;  %20674 = vmatpush1.bf16.msra.mxu1 %v20673_v9  ;;  %v3268_v31 = vld [vmem:[%s18614_s3 + $0x28] sm:$0xff] }
 0x72d   :  { %20668 = vmatprep.subr.bf16.mxu0 %v20667_v36  ;;  %v20675_v34 = vpack.c.bf16 %v3270_v33, %v3268_v31  ;;  %v3267_v36 = vld [vmem:[%s18614_s3 + $0x20] sm:$0xff] }
 0x72e   :  { %v20677_v44 = vpack.c.bf16 %v3269_v37, %v3267_v36 }
 0x72f   :  { %20676 = vmatprep.subr.bf16.mxu1 %v20675_v34 }
 0x730   :  { %20670 = vmatpush3.bf16.msra.mxu0 %v20669_v38  ;;  %20678 = vmatpush1.bf16.msra.mxu1 %v20677_v44  ;;  %v3272_v38 = vld [vmem:[%s18614_s3 + $0x48] sm:$0xff] }
 0x731   :  { %19717 = vmatprep.subr.mxu0 %v21431_v0 }
 0x75e   :  { %v2942_v10 = vpop.f32.mrb[28].mxu0 }
 0x75f   :  { %2971 = vrot.lane.b32.xlu1 %v2942_v10, %s21446_s26  ;;  %v19711_v12 = vpop.f32.mrb[29].mxu0 }
 0x76c   :  { %v2948_v35 = vpop.permute.xlu0 %2947 }
 0x76d   :  { %v2974_v42 = vsel %vm309_vm2, %v21951_v32, %v2948_v35  ;;  %v3024_v32 = vld [vmem:[%s18611_s11] sm:$0x3]  ;;  %s22504_s11 = sld [smem:[%s24812_s0 + %s21455_s7]]  }
 0x76e   :  { %v22016_v57 = vrot.slane %v3024_v32, %v21527_v29  ;;  %v22019_v58 = vrot.slane %v3024_v32, %v21588_v52  ;;  %s22534_s7 = sld [smem:[%s24812_s0 + %s21458_s4]]  }
 0x76f   :  { %s18621_s4 = sld [smem:[%s24812_s0 + %s21442_s22]]  }
 0x788   :  { %v2952_v40 = vpop.permute.xlu1 %2951 }
 0x789   :  { %v2975_v24 = vsel %vm1617_vm3, %v2974_v42, %v2952_v40  ;;  %v3274_v40 = vld [vmem:[%s18614_s3 + $0x58] sm:$0xff]  ;;  %v3273_v42 = vld [vmem:[%s18614_s3 + $0x50] sm:$0xff] }
 0x78a   :  { %v20679_v35 = vpack.c.bf16 %v3274_v40, %v3272_v38 }
 0x78c   :  { %v2960_v43 = vpop.permute.xlu0 %2959  ;;  %20680 = vmatprep.subr.bf16.mxu1 %v20679_v35 }
 0x78d   :  { %v2956_v41 = vpop.permute.xlu1 %2955 }
 0x78e   :  { %v2976_v18 = vsel %vm1619_vm4, %v2975_v24, %v2956_v41  ;;  %v3271_v41 = vld [vmem:[%s18614_s3 + $0x40] sm:$0xff]  ;;  %v3276_v24 = vld [vmem:[%s18614_s3 + $0x68] sm:$0xff] }
 0x78f   :  { %v2977_v47 = vsel %vm1621_vm5, %v2976_v18, %v2960_v43  ;;  %v20681_v43 = vpack.c.bf16 %v3273_v42, %v3271_v41  ;;  %v3278_v18 = vld [vmem:[%s18614_s3 + $0x78] sm:$0xff] }
 0x791   :  { %v2968_v49 = vpop.permute.xlu0 %2967  ;;  %20682 = vmatpush1.bf16.msra.mxu1 %v20681_v43 }
 0x792   :  { %v2964_v46 = vpop.permute.xlu1 %2963 }
 0x793   :  { %v2978_v48 = vsel %vm1623_vm6, %v2977_v47, %v2964_v46  ;;  %v20683_v46 = vpack.c.bf16 %v3278_v18, %v3276_v24  ;;  %v3275_v47 = vld [vmem:[%s18614_s3 + $0x60] sm:$0xff] }
 0x794   :  { %v2979_v50 = vsel %vm1625_vm7, %v2978_v48, %v2968_v49  ;;  %v3277_v48 = vld [vmem:[%s18614_s3 + $0x70] sm:$0xff]  ;;  %s21464_s3 = smov 19  }
 0x795   :  { %v20685_v49 = vpack.c.bf16 %v3277_v48, %v3275_v47  ;;  %20684 = vmatprep.subr.bf16.mxu1 %v20683_v46 }
 0x797   :  { %20686 = vmatpush1.bf16.msra.mxu1 %v20685_v49 }
 0x798   :  { %19712 = vmatprep.subr.mxu1 %v21431_v0 }
 0x7d1   :  { %v2972_v51 = vpop.permute.xlu1 %2971 }
 0x7d2   :  { %v2980_v54 = vsel %vm1627_vm8, %v2979_v50, %v2972_v51 }
 0x7d3   :  { %v2984_v56 = vsel %vm186_vm0, %v2980_v54, 0.0 }
 0x7d4   :  { %2985 = vadd.xlane.f32.xlu0 %v2984_v56 }
 0x7ec   :  { %v3108_v59 = vpop.f32.mrb[38].mxu1 }
 0x7ed   :  { %v3109_v45 = vadd.f32 %v3108_v59, %v22016_v57  ;;  %v3110_v53 = vpop.f32.mrb[39].mxu1 }
 0x7ee   :  { %v3111_v60 = vadd.f32 %v3110_v53, %v22019_v58 }
 0x7ef   :  { %v3119_v62 = vmax.f32 %v3109_v45, 0.0 }
 0x7f0   :  { %v3120_v61 = vmax.f32 %v3111_v60, 0.0 }
 0x7f2   :  { %3226 = vmatprep.mubr.f32.mxu0 %v3120_v61 }
 0x7f3   :  { %3227 = vmatmul.mubr.f32.vlgmr.msra.gmra.mrb[30].mxu0 %v3119_v62 }
 0x861   :  { %v2986_v63 = vpop.xlane.xlu0 %2985 }
 0x862   :  { %v2989_v1 = vmul.f32 0.015625, %v2986_v63 }
 0x864   :  { %v2991_v2 = vsub.f32 %v2980_v54, %v2989_v1 }
 0x866   :  { %v2993_v3 = vmul.f32 %v2991_v2, %v2991_v2 }
 0x868   :  { %v2997_v4 = vsel %vm186_vm0, %v2993_v3, 0.0 }
 0x869   :  { %2998 = vadd.xlane.f32.xlu1 %v2997_v4 }
 0x8c6   :  { %v19062_v5 = vpop.f32.mrb[30].mxu0 }
 0x8c7   :  { %v19063_v6 = vpop.f32.mrb[31].mxu0 }
 0x8c8   :  { %v19064_v8 = vadd.f32 %v19063_v6, %v19062_v5 }
 0x8ca   :  { %v3229_v55 = vadd.f32 %v19064_v8, %v22028_v7 }
 0x8cc   :  { %v3237_v10 = vsel %vm186_vm0, %v3229_v55, 0.0 }
 0x8cd   :  { %3238 = vadd.xlane.f32.xlu0 %v3237_v10 }
 0x8f6   :  { %v2999_v11 = vpop.xlane.xlu1 %2998 }
 0x8f7   :  { %v3001_v12 = vmul.f32 0.015873017, %v2999_v11 }
 0x8f9   :  { %21062 = vrsqrt.f32 %v3001_v12 }
 0x903   :  { %v21063_v13 = vpop.eup %21062 }
 0x904   :  { %v3005_v14 = vmul.f32 %v21063_v13, %v2991_v2 }
 0x906   :  { %v22033_v16 = vadd.f32 %v21429_v15, %v3005_v14 }
 0x908   :  { %18694 = vmatmul.mubr.msk.f32.gmra.mrb[40].mxu1 %vm186_vm0, %v22033_v16 }
 0x909   :  { %3361 = vmatprep.mubr.f32.mxu1 %v21431_v0 }
 0x95a   :  { %v3239_v19 = vpop.xlane.xlu0 %3238 }
 0x95b   :  { %v3243_v20 = vmul.f32 0.015625, %v3239_v19 }
 0x95d   :  { %v3245_v21 = vsub.f32 %v3229_v55, %v3243_v20 }
 0x95f   :  { %v3247_v17 = vmul.f32 %v3245_v21, %v3245_v21 }
 0x961   :  { %v3249_v22 = vsel %vm186_vm0, %v3247_v17, 0.0 }
 0x962   :  { %3250 = vadd.xlane.f32.xlu0 %v3249_v22 }
 0x9db   :  { %v3114_v50 = vpop.f32.mrb[40].mxu1 }
 0x9dc   :  { %v3115_v51 = vadd.f32 %v3114_v50, %v22016_v57  ;;  %v3116_v54 = vpop.f32.mrb[41].mxu1 }
 0x9dd   :  { %v3117_v56 = vadd.f32 %v3116_v54, %v22019_v58 }
 0x9de   :  { %v3121_v59 = vmax.f32 %v3115_v51, 0.0 }
 0x9df   :  { %v3122_v32 = vmax.f32 %v3117_v56, 0.0 }
 0x9e1   :  { %3231 = vmatprep.mubr.f32.mxu0 %v3122_v32 }
 0x9e2   :  { %3232 = vmatmul.mubr.f32.gmra.mrb[32].mxu0 %v3121_v59 }
 0x9e3   :  { %19719 = vmatprep.mubr.msk.f32.mxu0 %vm21435_vm1, %v21431_v0 }
 0x9ef   :  { %v3251_v45 = vpop.xlane.xlu0 %3250 }
 0x9f0   :  { %v3255_v53 = vmul.f32 0.015873017, %v3251_v45 }
 0x9f2   :  { %21064 = vrsqrt.f32 %v3255_v53 }
 0x9fc   :  { %v21065_v60 = vpop.eup %21064 }
 0x9fd   :  { %v3259_v61 = vmul.f32 %v21065_v60, %v3245_v21 }
 0x9ff   :  { %v22048_v62 = vadd.f32 %v3259_v61, %v21955_v39  ;;  %v22058_v39 = vld [vmem:[%s18615_s6] sm:$0x3]  ;;  %s21472_s6 = smov 28  }
 0xa00   :  { %v22062_v3 = vrot.slane %v22058_v39, %v21527_v29 }
 0xa01   :  { %18696 = vmatmul.mubr.msk.f32.vlgmr.msra.gmra.mrb[42].mxu1 %vm186_vm0, %v22048_v62 }
 0xa02   :  { %3367 = vmatprep.mubr.f32.mxu1 %v21431_v0 }
 0xab5   :  { %v19065_v57 = vpop.f32.mrb[32].mxu0 }
 0xab6   :  { %v19066_v58 = vpop.f32.mrb[33].mxu0 }
 0xab7   :  { %v19067_v63 = vadd.f32 %v19066_v58, %v19065_v57 }
 0xab9   :  { %v3234_v1 = vadd.f32 %v19067_v63, %v22028_v7 }
 0xabb   :  { %v3240_v2 = vsel %vm186_vm0, %v3234_v1, 0.0 }
 0xabc   :  { %3241 = vadd.xlane.f32.xlu1 %v3240_v2 }
 0xad4   :  { %v3363_v4 = vpop.f32.mrb[42].mxu1 }
 0xad5   :  { %v22065_v5 = vadd.f32 %v3363_v4, %v22062_v3  ;;  %v22067_v6 = vpop.f32.mrb[43].mxu1 }
 0xad7   :  { %3377 = vrot.lane.b32.xlu1 %v22065_v5, %s21437_s17  ;;  %3375 = vrot.lane.b32.xlu0 %v22065_v5, %s21434_s15 }
 0xadb   :  { %3379 = vrot.lane.b32.xlu1 %v22065_v5, %s21433_s14  ;;  %3381 = vrot.lane.b32.xlu0 %v22065_v5, %s21436_s16 }
 0xadf   :  { %3383 = vrot.lane.b32.xlu1 %v22065_v5, %s21439_s19  ;;  %3385 = vrot.lane.b32.xlu0 %v22065_v5, %s21438_s18 }
 0xae3   :  { %3387 = vrot.lane.b32.xlu1 %v22065_v5, %s21441_s21 }
 0xae7   :  { %3411 = vrot.lane.b32.xlu1 %v22065_v5, %s21440_s20 }
 0xb49   :  { %v3376_v7 = vpop.permute.xlu0 %3375  ;;  %v3242_v8 = vpop.xlane.xlu1 %3241 }
 0xb4a   :  { %v3244_v55 = vmul.f32 0.015625, %v3242_v8  ;;  %3487 = vrot.lane.b32.xlu1 %v3376_v7, %s21440_s20 }
 0xb4c   :  { %v3246_v10 = vsub.f32 %v3234_v1, %v3244_v55 }
 0xb4d   :  { %v3378_v11 = vpop.permute.xlu1 %3377  ;;  %v3382_v15 = vpop.permute.xlu0 %3381 }
 0xb4e   :  { %3563 = vrot.lane.b32.xlu1 %v3378_v11, %s21440_s20  ;;  %v3248_v12 = vmul.f32 %v3246_v10, %v3246_v10 }
 0xb50   :  { %v3252_v13 = vsel %vm186_vm0, %v3248_v12, 0.0 }
 0xb51   :  { %v3380_v14 = vpop.permute.xlu1 %3379  ;;  %3253 = vadd.xlane.f32.xlu0 %v3252_v13  ;;  %v3386_v21 = vpop.permute.xlu0 %3385 }
 0xb52   :  { %3639 = vrot.lane.b32.xlu1 %v3380_v14, %s21440_s20 }
 0xb55   :  { %v3384_v19 = vpop.permute.xlu1 %3383 }
 0xb56   :  { %3715 = vrot.lane.b32.xlu1 %v3382_v15, %s21440_s20 }
 0xb59   :  { %v3388_v20 = vpop.permute.xlu1 %3387 }
 0xb5a   :  { %3791 = vrot.lane.b32.xlu1 %v3384_v19, %s21440_s20 }
 0xb5d   :  { %v3412_v17 = vpop.permute.xlu1 %3411 }
 0xb5e   :  { %19713 = vmatpush3.xpose.msk.msra.mxu1 %vm309_vm2, %v3412_v17  ;;  %3867 = vrot.lane.b32.xlu1 %v3386_v21, %s21440_s20 }
 0xb5f   :  { %19722 = vmatprep.subr.mxu1 %v21431_v0 }
 0xb62   :  { %3943 = vrot.lane.b32.xlu1 %v3388_v20, %s21440_s20 }
 0xbbc   :  { %v3488_v22 = vpop.permute.xlu1 %3487 }
 0xbbd   :  { %19718 = vmatpush3.xpose.msk.msra.mxu0 %vm309_vm2, %v3488_v22 }
 0xbbe   :  { %19727 = vmatprep.subr.mxu0 %v21431_v0 }
 0xbc0   :  { %19720 = vmatmul.mubr.msk.f32.vlgmr.msra.gmra.mrb[34].mxu0 %vm309_vm2, %v3376_v7  ;;  %v3564_v23 = vpop.permute.xlu1 %3563 }
 0xbc1   :  { %19729 = vmatprep.mubr.msk.f32.mxu0 %vm21435_vm1, %v21431_v0 }
 0xbc4   :  { %v3640_v25 = vpop.permute.xlu1 %3639 }
 0xbc5   :  { %19728 = vmatpush3.xpose.msk.msra.mxu0 %vm309_vm2, %v3640_v25 }
 0xbc6   :  { %19737 = vmatprep.subr.mxu0 %v21431_v0 }
 0xbc8   :  { %19730 = vmatmul.mubr.msk.f32.vlgmr.msra.gmra.mrb[36].mxu0 %vm309_vm2, %v3380_v14  ;;  %v3716_v26 = vpop.permute.xlu1 %3715 }
 0xbc9   :  { %19739 = vmatprep.mubr.msk.f32.mxu0 %vm21435_vm1, %v21431_v0 }
 0xbcc   :  { %v3792_v28 = vpop.permute.xlu1 %3791 }
 0xbcd   :  { %19738 = vmatpush3.xpose.msk.msra.mxu0 %vm309_vm2, %v3792_v28 }
 0xbce   :  { %19747 = vmatprep.subr.mxu0 %v21431_v0 }
 0xbd0   :  { %19740 = vmatmul.mubr.msk.f32.vlgmr.msra.gmra.mrb[38].mxu0 %vm309_vm2, %v3384_v19  ;;  %v3868_v30 = vpop.permute.xlu1 %3867 }
 0xbd1   :  { %19749 = vmatprep.mubr.msk.f32.mxu0 %vm21435_vm1, %v21431_v0 }
 0xbd4   :  { %v3944_v9 = vpop.permute.xlu1 %3943 }
 0xbd5   :  { %19748 = vmatpush3.xpose.msk.msra.mxu0 %vm309_vm2, %v3944_v9 }
 0xbd6   :  { %19757 = vmatprep.subr.mxu0 %v21431_v0 }
 0xbd8   :  { %19750 = vmatmul.mubr.msk.f32.vlgmr.msra.gmra.mrb[40].mxu0 %vm309_vm2, %v3388_v20 }
 0xbd9   :  { %19759 = vmatprep.mubr.msk.f32.mxu0 %vm21435_vm1, %v21431_v0 }
 0xbde   :  { %v3254_v31 = vpop.xlane.xlu0 %3253 }
 0xbdf   :  { %v3256_v33 = vmul.f32 0.015873017, %v3254_v31 }
 0xbe1   :  { %21066 = vrsqrt.f32 %v3256_v33 }
 0xbeb   :  { %v21067_v34 = vpop.eup %21066 }
 0xbec   :  { %v3260_v36 = vmul.f32 %v21067_v34, %v3246_v10 }
 0xbee   :  { %v22116_v37 = vadd.f32 %v3260_v36, %v22033_v16  ;;  %v22135_v16 = vrot.slane %v22058_v39, %v21588_v52 }
 0xbf0   :  { %18697 = vmatmul.mubr.msk.f32.gmra.mrb[44].mxu1 %vm186_vm0, %v22116_v37  ;;  %v22144_v44 = vadd.f32 %v22067_v6, %v22135_v16 }
 0xbf1   :  { %19714 = vmatprep.mubr.msk.f32.mxu1 %vm21435_vm1, %v21431_v0 }
 0xbf4   :  { %19715 = vmatmul.mubr.msk.f32.vlgmr.msra.gmra.mrb[46].mxu1 %vm309_vm2, %v22065_v5 }
 0xbf5   :  { %19723 = vmatpush3.xpose.msk.msra.mxu1 %vm309_vm2, %v3564_v23  ;;  %19724 = vmatprep.mubr.msk.f32.mxu1 %vm21435_vm1, %v21431_v0 }
 0xbf6   :  { %19732 = vmatprep.subr.mxu1 %v21431_v0 }
 0xbf8   :  { %19725 = vmatmul.mubr.msk.f32.vlgmr.msra.gmra.mrb[48].mxu1 %vm309_vm2, %v3378_v11 }
 0xbf9   :  { %19733 = vmatpush3.xpose.msk.msra.mxu1 %vm309_vm2, %v3716_v26  ;;  %19734 = vmatprep.mubr.msk.f32.mxu1 %vm21435_vm1, %v21431_v0 }
 0xbfa   :  { %19742 = vmatprep.subr.mxu1 %v21431_v0 }
 0xbfc   :  { %19735 = vmatmul.mubr.msk.f32.vlgmr.msra.gmra.mrb[50].mxu1 %vm309_vm2, %v3382_v15 }
 0xbfd   :  { %19743 = vmatpush3.xpose.msk.msra.mxu1 %vm309_vm2, %v3868_v30  ;;  %19744 = vmatprep.mubr.msk.f32.mxu1 %vm21435_vm1, %v21431_v0 }
 0xbfe   :  { %19752 = vmatprep.subr.mxu1 %v21431_v0 }
 0xc00   :  { %19745 = vmatmul.mubr.msk.f32.vlgmr.msra.gmra.mrb[52].mxu1 %vm309_vm2, %v3386_v21 }
 0xc01   :  { %19753 = vmatpush3.msra.mxu1 %v22144_v44  ;;  %19754 = vmatprep.mubr.msk.f32.mxu1 %vm21435_vm1, %v21431_v0 }
 0xc02   :  { %19762 = vmatprep.subr.mxu1 %v21431_v0 }
 0xc93   :  { %v3559_v38 = vpop.f32.mrb[34].mxu0 }
 0xc94   :  { %v19721_v40 = vpop.f32.mrb[35].mxu0  ;;  %v4022_v35 = vsel %vm309_vm2, %v3559_v38, -inf }
 0xc95   :  { %4023 = vmax.xlane.f32.xlu1 %v4022_v35 }
 0xc9b   :  { %v3711_v41 = vpop.f32.mrb[36].mxu0 }
 0xc9c   :  { %v19731_v42 = vpop.f32.mrb[37].mxu0  ;;  %v4028_v43 = vsel %vm309_vm2, %v3711_v41, -inf }
 0xc9d   :  { %4029 = vmax.xlane.f32.xlu0 %v4028_v43 }
 0xca3   :  { %v3863_v24 = vpop.f32.mrb[38].mxu0 }
 0xca4   :  { %v19741_v18 = vpop.f32.mrb[39].mxu0  ;;  %v4034_v46 = vsel %vm309_vm2, %v3863_v24, -inf }
 0xca5   :  { %4035 = vmax.xlane.f32.xlu0 %v4034_v46 }
 0xcab   :  { %v4015_v47 = vpop.f32.mrb[40].mxu0 }
 0xcac   :  { %v19751_v48 = vpop.f32.mrb[41].mxu0  ;;  %v4040_v49 = vsel %vm309_vm2, %v4015_v47, -inf }
 0xcad   :  { %4041 = vmax.xlane.f32.xlu0 %v4040_v49 }
 0xcc3   :  { %v3369_v50 = vpop.f32.mrb[44].mxu1 }
 0xcc4   :  { %v22156_v51 = vadd.f32 %v3369_v50, %v22062_v3  ;;  %v22158_v54 = vpop.f32.mrb[45].mxu1 }
 0xcc6   :  { %4729 = vrot.lane.b32.xlu1 %v22156_v51, %s21437_s17  ;;  %4727 = vrot.lane.b32.xlu0 %v22156_v51, %s21434_s15 }
 0xcc7   :  { %v22164_v56 = vpop.f32.mrb[46].mxu1 }
 0xcc8   :  { %v19716_v32 = vpop.f32.mrb[47].mxu1  ;;  %v4019_v58 = vsel %vm309_vm2, %v22164_v56, -inf }
 0xcca   :  { %4735 = vrot.lane.b32.xlu1 %v22156_v51, %s21439_s19  ;;  %4731 = vrot.lane.b32.xlu0 %v22156_v51, %s21433_s14 }
 0xccb   :  { %v22170_v59 = vpop.f32.mrb[48].mxu1 }
 0xccc   :  { %v19726_v45 = vpop.f32.mrb[49].mxu1  ;;  %v4025_v63 = vsel %vm309_vm2, %v22170_v59, -inf }
 0xcce   :  { %4739 = vrot.lane.b32.xlu1 %v22156_v51, %s21441_s21 }
 0xccf   :  { %v22174_v53 = vpop.f32.mrb[50].mxu1 }
 0xcd0   :  { %v19736_v60 = vpop.f32.mrb[51].mxu1  ;;  %v4031_v1 = vsel %vm309_vm2, %v22174_v53, -inf }
 0xcd2   :  { %3390 = vrot.lane.b32.xlu1 %v22144_v44, %s21434_s15 }
 0xcd3   :  { %v22178_v61 = vpop.f32.mrb[52].mxu1 }
 0xcd4   :  { %v19746_v57 = vpop.f32.mrb[53].mxu1  ;;  %v4037_v2 = vsel %vm309_vm2, %v22178_v61, -inf }
 0xcd6   :  { %3396 = vrot.lane.b32.xlu1 %v22144_v44, %s21433_s14 }
 0xcda   :  { %3399 = vrot.lane.b32.xlu1 %v22144_v44, %s21436_s16 }
 0xce9   :  { %4020 = vmax.xlane.f32.xlu0 %v4019_v58 }
 0xced   :  { %4026 = vmax.xlane.f32.xlu0 %v4025_v63 }
 0xcf1   :  { %4032 = vmax.xlane.f32.xlu0 %v4031_v1 }
 0xcf5   :  { %4038 = vmax.xlane.f32.xlu0 %v4037_v2 }
 0xd0b   :  { %4733 = vrot.lane.b32.xlu0 %v22156_v51, %s21436_s16 }
 0xd0f   :  { %4737 = vrot.lane.b32.xlu0 %v22156_v51, %s21438_s18 }
 0xd13   :  { %3393 = vrot.lane.b32.xlu0 %v22144_v44, %s21437_s17 }
 0xd22   :  { %v4024_v39 = vpop.xlane.xlu1 %4023 }
 0xd23   :  { %v4044_v3 = vsub.f32 %v3559_v38, %v4024_v39 }
 0xd25   :  { %v4053_v4 = vmul.f32 1.442695, %v4044_v3 }
 0xd27   :  { %21068 = vpow2.f32 %v4053_v4 }
 0xd2a   :  { %v4030_v5 = vpop.xlane.xlu0 %4029 }
 0xd2b   :  { %v4046_v6 = vsub.f32 %v3711_v41, %v4030_v5 }
 0xd2d   :  { %v4057_v7 = vmul.f32 1.442695, %v4046_v6 }
 0xd2f   :  { %21070 = vpow2.f32 %v4057_v7 }
 0xd31   :  { %v22198_v8 = vpop.eup %21068 }
 0xd32   :  { %v4070_v55 = vsel %vm309_vm2, %v22198_v8, 0.0  ;;  %v4036_v10 = vpop.xlane.xlu0 %4035 }
 0xd33   :  { %4071 = vadd.xlane.f32.xlu1 %v4070_v55  ;;  %v4048_v11 = vsub.f32 %v3863_v24, %v4036_v10 }
 0xd35   :  { %v4061_v12 = vmul.f32 1.442695, %v4048_v11 }
 0xd37   :  { %21072 = vpow2.f32 %v4061_v12 }
 0xd38   :  { %v22202_v13 = vpop.permute.xlu1 %4729 }
 0xd39   :  { %v22204_v14 = vpop.eup %21070 }
 0xd3a   :  { %v4042_v15 = vpop.xlane.xlu0 %4041  ;;  %v4076_v19 = vsel %vm309_vm2, %v22204_v14, 0.0 }
 0xd3b   :  { %v4050_v20 = vsub.f32 %v4015_v47, %v4042_v15  ;;  %4077 = vadd.xlane.f32.xlu0 %v4076_v19 }
 0xd3c   :  { %v22208_v21 = vpop.permute.xlu1 %4735 }
 0xd3d   :  { %v4065_v17 = vmul.f32 1.442695, %v4050_v20 }
 0xd3e   :  { %v22225_v9 = vpop.permute.xlu0 %4727 }
 0xd3f   :  { %21074 = vpow2.f32 %v4065_v17 }
 0xd40   :  { %v22210_v22 = vpop.permute.xlu1 %4739 }
 0xd41   :  { %v22212_v23 = vpop.eup %21072 }
 0xd42   :  { %v4082_v25 = vsel %vm309_vm2, %v22212_v23, 0.0  ;;  %v22227_v31 = vpop.permute.xlu0 %4731 }
 0xd43   :  { %4083 = vadd.xlane.f32.xlu0 %v4082_v25 }
 0xd44   :  { %3405 = vrot.lane.b32.xlu1 %v22144_v44, %s21438_s18  ;;  %v3391_v26 = vpop.permute.xlu1 %3390 }
 0xd45   :  { %19758 = vmatpush3.msra.mxu0 %v3391_v26 }
 0xd46   :  { %19767 = vmatprep.subr.mxu0 %v21431_v0 }
 0xd48   :  { %4763 = vrot.lane.b32.xlu1 %v22156_v51, %s21440_s20 }
 0xd49   :  { %v22221_v28 = vpop.eup %21074 }
 0xd4a   :  { %v4088_v30 = vsel %vm309_vm2, %v22221_v28, 0.0 }
 0xd4b   :  { %4089 = vadd.xlane.f32.xlu0 %v4088_v30 }
 0xd76   :  { %v4021_v33 = vpop.xlane.xlu0 %4020 }
 0xd77   :  { %v4043_v34 = vsub.f32 %v22164_v56, %v4021_v33 }
 0xd79   :  { %v4051_v36 = vmul.f32 1.442695, %v4043_v34 }
 0xd7a   :  { %v4027_v38 = vpop.xlane.xlu0 %4026 }
 0xd7b   :  { %21076 = vpow2.f32 %v4051_v36  ;;  %v4045_v40 = vsub.f32 %v22170_v59, %v4027_v38  ;;  %v3397_v59 = vpop.permute.xlu1 %3396 }
 0xd7d   :  { %v4055_v35 = vmul.f32 1.442695, %v4045_v40 }
 0xd7e   :  { %v4033_v41 = vpop.xlane.xlu0 %4032 }
 0xd7f   :  { %21078 = vpow2.f32 %v4055_v35  ;;  %v4047_v42 = vsub.f32 %v22174_v53, %v4033_v41 }
 0xd81   :  { %v4059_v43 = vmul.f32 1.442695, %v4047_v42 }
 0xd82   :  { %v4039_v50 = vpop.xlane.xlu0 %4038 }
 0xd83   :  { %21080 = vpow2.f32 %v4059_v43  ;;  %v4049_v56 = vsub.f32 %v22178_v61, %v4039_v50 }
 0xd85   :  { %v22232_v24 = vpop.eup %21076  ;;  %v4063_v32 = vmul.f32 1.442695, %v4049_v56 }
 0xd86   :  { %v4067_v18 = vsel %vm309_vm2, %v22232_v24, 0.0  ;;  %v22259_v45 = vpop.permute.xlu0 %4733 }
 0xd87   :  { %4068 = vadd.xlane.f32.xlu0 %v4067_v18  ;;  %21082 = vpow2.f32 %v4063_v32 }
 0xd89   :  { %v22236_v46 = vpop.eup %21078 }
 0xd8a   :  { %v4073_v47 = vsel %vm309_vm2, %v22236_v46, 0.0  ;;  %v22261_v53 = vpop.permute.xlu0 %4737 }
 0xd8b   :  { %4074 = vadd.xlane.f32.xlu0 %v4073_v47 }
 0xd8d   :  { %v22240_v48 = vpop.eup %21080 }
 0xd8e   :  { %v4079_v49 = vsel %vm309_vm2, %v22240_v48, 0.0  ;;  %v3394_v58 = vpop.permute.xlu0 %3393 }
 0xd8f   :  { %4080 = vadd.xlane.f32.xlu1 %v4079_v49 }
 0xd91   :  { %v22263_v60 = vpop.eup %21082 }
 0xd92   :  { %v4085_v61 = vsel %vm309_vm2, %v22263_v60, 0.0 }
 0xda0   :  { %4915 = vrot.lane.b32.xlu1 %v22202_v13, %s21440_s20 }
 0xda1   :  { %3402 = vrot.lane.b32.xlu0 %v22144_v44, %s21439_s19 }
 0xda5   :  { %3408 = vrot.lane.b32.xlu0 %v22144_v44, %s21441_s21  ;;  %v3400_v44 = vpop.permute.xlu1 %3399 }
 0xda9   :  { %4839 = vrot.lane.b32.xlu0 %v22225_v9, %s21440_s20 }
 0xdad   :  { %4991 = vrot.lane.b32.xlu0 %v22227_v31, %s21440_s20 }
 0xdb1   :  { %5143 = vrot.lane.b32.xlu0 %v22208_v21, %s21440_s20 }
 0xdb5   :  { %5295 = vrot.lane.b32.xlu0 %v22210_v22, %s21440_s20 }
 0xdc0   :  { %v4072_v57 = vpop.xlane.xlu1 %4071 }
 0xdc1   :  { %21084 = vrcp.f32 %v4072_v57 }
 0xdc4   :  { %4086 = vadd.xlane.f32.xlu1 %v4085_v61  ;;  %v3406_v6 = vpop.permute.xlu1 %3405 }
 0xdc8   :  { %v4078_v63 = vpop.xlane.xlu0 %4077 }
 0xdc9   :  { %21086 = vrcp.f32 %v4078_v63 }
 0xdcb   :  { %v21085_v1 = vpop.eup %21084 }
 0xdcc   :  { %v4100_v2 = vmul.f32 %v21085_v1, %v22198_v8  ;;  %v22280_v8 = vpop.permute.xlu1 %4763 }
 0xdce   :  { %19760 = vmatmul.mubr.msk.f32.vlgmr.msra.gmra.mrb[42].mxu0 %vm309_vm2, %v4100_v2 }
 0xdcf   :  { %19768 = vmatpush3.msra.mxu0 %v3397_v59  ;;  %19769 = vmatprep.mubr.msk.f32.mxu0 %vm21435_vm1, %v21431_v0 }
 0xdd0   :  { %19777 = vmatprep.subr.mxu0 %v21431_v0  ;;  %v4084_v4 = vpop.xlane.xlu0 %4083 }
 0xdd1   :  { %21088 = vrcp.f32 %v4084_v4 }
 0xdd3   :  { %v21087_v39 = vpop.eup %21086 }
 0xdd4   :  { %v4102_v3 = vmul.f32 %v21087_v39, %v22204_v14 }
 0xdd5   :  { %5067 = vrot.lane.b32.xlu1 %v22259_v45, %s21440_s20 }
 0xdd6   :  { %19770 = vmatmul.mubr.msk.f32.vlgmr.msra.gmra.mrb[44].mxu0 %vm309_vm2, %v4102_v3 }
 0xdd7   :  { %19779 = vmatprep.mubr.msk.f32.mxu0 %vm21435_vm1, %v21431_v0 }
 0xdd8   :  { %v4090_v5 = vpop.xlane.xlu0 %4089 }
 0xdd9   :  { %5219 = vrot.lane.b32.xlu1 %v22261_v53, %s21440_s20  ;;  %21090 = vrcp.f32 %v4090_v5 }
 0xddb   :  { %v21089_v10 = vpop.eup %21088 }
 0xddc   :  { %v4104_v14 = vmul.f32 %v21089_v10, %v22212_v23 }
 0xde3   :  { %v21091_v15 = vpop.eup %21090 }
 0xde4   :  { %v4106_v25 = vmul.f32 %v21091_v15, %v22221_v28 }
 0xe14   :  { %v4069_v7 = vpop.xlane.xlu0 %4068 }
 0xe15   :  { %21092 = vrcp.f32 %v4069_v7 }
 0xe18   :  { %v4075_v55 = vpop.xlane.xlu0 %4074 }
 0xe19   :  { %21094 = vrcp.f32 %v4075_v55 }
 0xe1c   :  { %v4081_v11 = vpop.xlane.xlu1 %4080  ;;  %v3403_v12 = vpop.permute.xlu0 %3402 }
 0xe1d   :  { %21096 = vrcp.f32 %v4081_v11  ;;  %19778 = vmatpush3.msra.mxu0 %v3403_v12 }
 0xe1e   :  { %19780 = vmatmul.mubr.msk.f32.vlgmr.msra.gmra.mrb[46].mxu0 %vm309_vm2, %v4104_v14  ;;  %19787 = vmatprep.subr.mxu0 %v21431_v0 }
 0xe1f   :  { %v21093_v19 = vpop.eup %21092  ;;  %19789 = vmatprep.mubr.msk.f32.mxu0 %vm21435_vm1, %v21431_v0 }
 0xe20   :  { %v3409_v20 = vpop.permute.xlu0 %3408  ;;  %v4099_v17 = vmul.f32 %v21093_v19, %v22232_v24 }
 0xe21   :  { %19788 = vmatpush3.msra.mxu0 %v3409_v20 }
 0xe22   :  { %19755 = vmatmul.mubr.msk.f32.vlgmr.msra.gmra.mrb[54].mxu1 %vm309_vm2, %v4099_v17  ;;  %19790 = vmatmul.mubr.msk.f32.vlgmr.msra.gmra.mrb[48].mxu0 %vm309_vm2, %v4106_v25 }
 0xe23   :  { %v21095_v23 = vpop.eup %21094  ;;  %19763 = vmatpush3.msra.mxu1 %v3394_v58  ;;  %19764 = vmatprep.mubr.msk.f32.mxu1 %vm21435_vm1, %v21431_v0 }
 0xe24   :  { %v4840_v26 = vpop.permute.xlu0 %4839  ;;  %19772 = vmatprep.subr.mxu1 %v21431_v0  ;;  %v4101_v30 = vmul.f32 %v21095_v23, %v22236_v46  ;;  %19797 = vmatprep.subr.mxu0 %v21431_v0 }
 0xe25   :  { %19799 = vmatprep.mubr.msk.f32.mxu0 %vm21435_vm1, %v21431_v0 }
 0xe26   :  { %19765 = vmatmul.mubr.msk.f32.vlgmr.msra.gmra.mrb[56].mxu1 %vm309_vm2, %v4101_v30 }
 0xe27   :  { %v21097_v28 = vpop.eup %21096  ;;  %19773 = vmatpush3.msra.mxu1 %v3400_v44  ;;  %19774 = vmatprep.mubr.msk.f32.mxu1 %vm21435_vm1, %v21431_v0 }
 0xe28   :  { %19798 = vmatpush3.xpose.msk.msra.mxu0 %vm309_vm2, %v4840_v26  ;;  %v4992_v33 = vpop.permute.xlu0 %4991  ;;  %19782 = vmatprep.subr.mxu1 %v21431_v0  ;;  %v4103_v34 = vmul.f32 %v21097_v28, %v22240_v48 }
 0xe29   :  { %19807 = vmatprep.subr.mxu0 %v21431_v0 }
 0xe2a   :  { %19775 = vmatmul.mubr.msk.f32.vlgmr.msra.gmra.mrb[58].mxu1 %vm309_vm2, %v4103_v34 }
 0xe2b   :  { %19783 = vmatpush3.msra.mxu1 %v3406_v6  ;;  %19800 = vmatmul.mubr.msk.f32.vlgmr.msra.gmra.mrb[50].mxu0 %vm309_vm2, %v22225_v9 }
 0xe2c   :  { %19808 = vmatpush3.xpose.msk.msra.mxu0 %vm309_vm2, %v4992_v33  ;;  %19809 = vmatprep.mubr.msk.f32.mxu0 %vm21435_vm1, %v21431_v0  ;;  %v5144_v36 = vpop.permute.xlu0 %5143 }
 0xe2d   :  { %19817 = vmatprep.subr.mxu0 %v21431_v0  ;;  %19784 = vmatprep.mubr.msk.f32.mxu1 %vm21435_vm1, %v21431_v0 }
 0xe2e   :  { %19792 = vmatprep.subr.mxu1 %v21431_v0 }
 0xe2f   :  { %19810 = vmatmul.mubr.msk.f32.vlgmr.msra.gmra.mrb[52].mxu0 %vm309_vm2, %v22227_v31  ;;  %v4916_v31 = vpop.permute.xlu1 %4915 }
 0xe30   :  { %19818 = vmatpush3.xpose.msk.msra.mxu0 %vm309_vm2, %v5144_v36  ;;  %19819 = vmatprep.mubr.msk.f32.mxu0 %vm21435_vm1, %v21431_v0  ;;  %v5296_v9 = vpop.permute.xlu0 %5295 }
 0xe31   :  { %19827 = vmatprep.subr.mxu0 %v21431_v0 }
 0xe33   :  { %19820 = vmatmul.mubr.msk.f32.vlgmr.msra.gmra.mrb[54].mxu0 %vm309_vm2, %v22208_v21 }
 0xe34   :  { %19828 = vmatpush3.xpose.msk.msra.mxu0 %vm309_vm2, %v5296_v9  ;;  %19829 = vmatprep.mubr.msk.f32.mxu0 %vm21435_vm1, %v21431_v0 }
 0xe35   :  { %19837 = vmatprep.subr.mxu0 %v21431_v0 }
 0xe37   :  { %19830 = vmatmul.mubr.msk.f32.vlgmr.msra.gmra.mrb[56].mxu0 %vm309_vm2, %v22210_v22 }
 0xe38   :  { %19839 = vmatprep.mubr.msk.f32.mxu0 %vm21435_vm1, %v21431_v0 }
 0xe51   :  { %v4087_v38 = vpop.xlane.xlu1 %4086 }
 0xe52   :  { %21098 = vrcp.f32 %v4087_v38 }
 0xe55   :  { %v5068_v21 = vpop.permute.xlu1 %5067 }
 0xe59   :  { %v5220_v22 = vpop.permute.xlu1 %5219 }
 0xe5c   :  { %v21099_v40 = vpop.eup %21098 }
 0xe5d   :  { %v4105_v35 = vmul.f32 %v21099_v40, %v22263_v60 }
 0xe5f   :  { %19785 = vmatmul.mubr.msk.f32.vlgmr.msra.gmra.mrb[60].mxu1 %vm309_vm2, %v4105_v35 }
 0xe60   :  { %19793 = vmatpush3.xpose.msk.msra.mxu1 %vm309_vm2, %v22280_v8  ;;  %19794 = vmatprep.mubr.msk.f32.mxu1 %vm21435_vm1, %v21431_v0 }
 0xe61   :  { %19802 = vmatprep.subr.mxu1 %v21431_v0 }
 0xe63   :  { %19795 = vmatmul.mubr.msk.f32.vlgmr.msra.gmra.mrb[62].mxu1 %vm309_vm2, %v22156_v51  ;;  %v22358_v51 = vadd.f32 %v22158_v54, %v22135_v16 }
 0xe64   :  { %19803 = vmatpush3.xpose.msk.msra.mxu1 %vm309_vm2, %v4916_v31  ;;  %19804 = vmatprep.mubr.msk.f32.mxu1 %vm21435_vm1, %v21431_v0 }
 0xe65   :  { %19812 = vmatprep.subr.mxu1 %v21431_v0 }
 0xe67   :  { %19805 = vmatmul.mubr.msk.f32.vlgmr.msra.gmra.mrb[64].mxu1 %vm309_vm2, %v22202_v13 }
 0xe68   :  { %19813 = vmatpush3.xpose.msk.msra.mxu1 %vm309_vm2, %v5068_v21  ;;  %19814 = vmatprep.mubr.msk.f32.mxu1 %vm21435_vm1, %v21431_v0 }
 0xe69   :  { %19822 = vmatprep.subr.mxu1 %v21431_v0 }
 0xe6b   :  { %19815 = vmatmul.mubr.msk.f32.vlgmr.msra.gmra.mrb[66].mxu1 %vm309_vm2, %v22259_v45 }
 0xe6c   :  { %19823 = vmatpush3.xpose.msk.msra.mxu1 %vm309_vm2, %v5220_v22  ;;  %19824 = vmatprep.mubr.msk.f32.mxu1 %vm21435_vm1, %v21431_v0 }
 0xe6d   :  { %19832 = vmatprep.subr.mxu1 %v21431_v0 }
 0xe6f   :  { %19825 = vmatmul.mubr.msk.f32.vlgmr.msra.gmra.mrb[68].mxu1 %vm309_vm2, %v22261_v53 }
 0xe70   :  { %19833 = vmatpush3.msra.mxu1 %v22358_v51  ;;  %19834 = vmatprep.mubr.msk.f32.mxu1 %vm21435_vm1, %v21431_v0 }
 0xe71   :  { %19842 = vmatprep.subr.mxu1 %v21431_v0 }
 0xea1   :  { %v22366_v13 = vpop.f32.mrb[42].mxu0 }
 0xea2   :  { %v19761_v41 = vpop.f32.mrb[43].mxu0 }
 0xea9   :  { %v22368_v42 = vpop.f32.mrb[44].mxu0 }
 0xeaa   :  { %v19771_v43 = vpop.f32.mrb[45].mxu0 }
 0xef1   :  { %v22370_v24 = vpop.f32.mrb[46].mxu0 }
 0xef2   :  { %v19781_v16 = vpop.f32.mrb[47].mxu0 }
 0xef5   :  { %v22372_v54 = vpop.f32.mrb[54].mxu1  ;;  %v22374_v18 = vpop.f32.mrb[48].mxu0 }
 0xef6   :  { %v19756_v46 = vpop.f32.mrb[55].mxu1  ;;  %v19791_v47 = vpop.f32.mrb[49].mxu0 }
 0xef9   :  { %v22376_v48 = vpop.f32.mrb[56].mxu1 }
 0xefa   :  { %v19766_v49 = vpop.f32.mrb[57].mxu1 }
 0xefd   :  { %v22378_v50 = vpop.f32.mrb[58].mxu1 }
 0xefe   :  { %v19776_v56 = vpop.f32.mrb[59].mxu1  ;;  %v4911_v32 = vpop.f32.mrb[50].mxu0 }
 0xeff   :  { %v19801_v59 = vpop.f32.mrb[51].mxu0  ;;  %v5374_v45 = vsel %vm309_vm2, %v4911_v32, -inf }
 0xf00   :  { %5375 = vmax.xlane.f32.xlu0 %v5374_v45 }
 0xf02   :  { %v5063_v44 = vpop.f32.mrb[52].mxu0 }
 0xf03   :  { %v19811_v53 = vpop.f32.mrb[53].mxu0  ;;  %v5380_v7 = vsel %vm309_vm2, %v5063_v44, -inf }
 0xf06   :  { %v5215_v60 = vpop.f32.mrb[54].mxu0 }
 0xf07   :  { %v19821_v57 = vpop.f32.mrb[55].mxu0  ;;  %v5386_v11 = vsel %vm309_vm2, %v5215_v60, -inf }
 0xf0a   :  { %v22381_v61 = vpop.f32.mrb[56].mxu0 }
 0xf0b   :  { %v19831_v58 = vpop.f32.mrb[57].mxu0  ;;  %v5392_v19 = vsel %vm309_vm2, %v22381_v61, -inf }
 0xf32   :  { %v22383_v63 = vpop.f32.mrb[60].mxu1 }
 0xf33   :  { %v19786_v1 = vpop.f32.mrb[61].mxu1 }
 0xf36   :  { %v4835_v2 = vpop.f32.mrb[62].mxu1 }
 0xf37   :  { %v19796_v39 = vpop.f32.mrb[63].mxu1  ;;  %v5371_v3 = vsel %vm309_vm2, %v4835_v2, -inf }
 0xf38   :  { %5372 = vmax.xlane.f32.xlu1 %v5371_v3 }
 0xf3a   :  { %v4987_v4 = vpop.f32.mrb[64].mxu1 }
 0xf3b   :  { %v19806_v5 = vpop.f32.mrb[65].mxu1  ;;  %v5377_v6 = vsel %vm309_vm2, %v4987_v4, -inf }
 0xf3c   :  { %5378 = vmax.xlane.f32.xlu0 %v5377_v6  ;;  %5381 = vmax.xlane.f32.xlu1 %v5380_v7 }
 0xf3e   :  { %v5139_v8 = vpop.f32.mrb[66].mxu1 }
 0xf3f   :  { %v19816_v55 = vpop.f32.mrb[67].mxu1  ;;  %v5383_v10 = vsel %vm309_vm2, %v5139_v8, -inf }
 0xf40   :  { %5384 = vmax.xlane.f32.xlu0 %v5383_v10  ;;  %5387 = vmax.xlane.f32.xlu1 %v5386_v11 }
 0xf42   :  { %v5291_v12 = vpop.f32.mrb[68].mxu1 }
 0xf43   :  { %v19826_v14 = vpop.f32.mrb[69].mxu1  ;;  %v5389_v15 = vsel %vm309_vm2, %v5291_v12, -inf }
 0xf44   :  { %5390 = vmax.xlane.f32.xlu0 %v5389_v15  ;;  %5393 = vmax.xlane.f32.xlu1 %v5392_v19 }
 0xf55   :  { %4745 = vrot.lane.b32.xlu1 %v22358_v51, %s21437_s17 }
 0xf59   :  { %4748 = vrot.lane.b32.xlu1 %v22358_v51, %s21433_s14 }
 0xf5a   :  { %4742 = vrot.lane.b32.xlu0 %v22358_v51, %s21434_s15 }
 0xf5d   :  { %4754 = vrot.lane.b32.xlu1 %v22358_v51, %s21439_s19 }
 0xf5e   :  { %4751 = vrot.lane.b32.xlu0 %v22358_v51, %s21436_s16 }
 0xf8d   :  { %v5376_v20 = vpop.xlane.xlu0 %5375 }
 0xf8e   :  { %v5396_v17 = vsub.f32 %v4911_v32, %v5376_v20 }
 0xf90   :  { %v5405_v25 = vmul.f32 1.442695, %v5396_v17 }
 0xf92   :  { %21100 = vpow2.f32 %v5405_v25 }
 0xf9c   :  { %v22403_v23 = vpop.eup %21100 }
 0xf9d   :  { %v5422_v26 = vsel %vm309_vm2, %v22403_v23, 0.0 }
 0xf9e   :  { %5423 = vadd.xlane.f32.xlu1 %v5422_v26 }
 0xfc5   :  { %v5373_v30 = vpop.xlane.xlu1 %5372 }
 0xfc6   :  { %v5395_v28 = vsub.f32 %v4835_v2, %v5373_v30 }
 0xfc8   :  { %v5403_v33 = vmul.f32 1.442695, %v5395_v28 }
 0xfc9   :  { %v5382_v34 = vpop.xlane.xlu1 %5381  ;;  %v5379_v36 = vpop.xlane.xlu0 %5378 }
 0xfca   :  { %21102 = vpow2.f32 %v5403_v33  ;;  %v5398_v9 = vsub.f32 %v5063_v44, %v5382_v34  ;;  %v5397_v31 = vsub.f32 %v4987_v4, %v5379_v36 }
 0xfcc   :  { %v5409_v38 = vmul.f32 1.442695, %v5398_v9  ;;  %v5407_v40 = vmul.f32 1.442695, %v5397_v31 }
 0xfcd   :  { %v5388_v35 = vpop.xlane.xlu1 %5387  ;;  %v5385_v21 = vpop.xlane.xlu0 %5384 }
 0xfce   :  { %21104 = vpow2.f32 %v5409_v38  ;;  %v5400_v22 = vsub.f32 %v5215_v60, %v5388_v35  ;;  %v5399_v41 = vsub.f32 %v5139_v8, %v5385_v21 }
 0xfcf   :  { %21106 = vpow2.f32 %v5407_v40 }
 0xfd0   :  { %v5413_v43 = vmul.f32 1.442695, %v5400_v22  ;;  %v5411_v16 = vmul.f32 1.442695, %v5399_v41 }
 0xfd1   :  { %v5394_v46 = vpop.xlane.xlu1 %5393  ;;  %v5391_v47 = vpop.xlane.xlu0 %5390 }
 0xfd2   :  { %21108 = vpow2.f32 %v5413_v43  ;;  %v5402_v49 = vsub.f32 %v22381_v61, %v5394_v46  ;;  %v5401_v56 = vsub.f32 %v5291_v12, %v5391_v47 }
 0xfd3   :  { %21110 = vpow2.f32 %v5411_v16 }
 0xfd4   :  { %v21103_v32 = vpop.eup %21102  ;;  %v5417_v59 = vmul.f32 1.442695, %v5402_v49  ;;  %v5415_v45 = vmul.f32 1.442695, %v5401_v56 }
 0xfd5   :  { %v4743_v44 = vpop.permute.xlu0 %4742  ;;  %v5419_v53 = vsel %vm309_vm2, %v21103_v32, 0.0 }
 0xfd6   :  { %21112 = vpow2.f32 %v5417_v59  ;;  %5420 = vadd.xlane.f32.xlu0 %v5419_v53  ;;  %19838 = vmatpush3.msra.mxu0 %v4743_v44 }
 0xfd7   :  { %21114 = vpow2.f32 %v5415_v45  ;;  %19847 = vmatprep.subr.mxu0 %v21431_v0 }
 0xfd8   :  { %v21105_v60 = vpop.eup %21104 }
 0xfd9   :  { %v21107_v57 = vpop.eup %21106  ;;  %v5428_v58 = vsel %vm309_vm2, %v21105_v60, 0.0 }
 0xfda   :  { %5429 = vadd.xlane.f32.xlu1 %v5428_v58  ;;  %v5425_v61 = vsel %vm309_vm2, %v21107_v57, 0.0 }
 0xfdb   :  { %5426 = vadd.xlane.f32.xlu0 %v5425_v61 }
 0xfdc   :  { %v22412_v1 = vpop.eup %21108 }
 0xfdd   :  { %v22414_v2 = vpop.eup %21110  ;;  %v5434_v39 = vsel %vm309_vm2, %v22412_v1, 0.0 }
 0xfde   :  { %5435 = vadd.xlane.f32.xlu1 %v5434_v39  ;;  %v5431_v3 = vsel %vm309_vm2, %v22414_v2, 0.0 }
 0xfdf   :  { %5432 = vadd.xlane.f32.xlu0 %v5431_v3 }
 0xfe0   :  { %v22420_v4 = vpop.eup %21112 }
 0xfe1   :  { %v22422_v5 = vpop.eup %21114  ;;  %v5440_v6 = vsel %vm309_vm2, %v22420_v4, 0.0 }
 0xfe2   :  { %5441 = vadd.xlane.f32.xlu1 %v5440_v6  ;;  %v5437_v7 = vsel %vm309_vm2, %v22422_v5, 0.0 }
 0xfe3   :  { %5438 = vadd.xlane.f32.xlu0 %v5437_v7 }
 0xff3   :  { %4760 = vrot.lane.b32.xlu1 %v22358_v51, %s21441_s21 }
 0xff7   :  { %4696 = vrot.lane.b32.xlu1 %v22376_v48, %s21442_s22  ;;  %v4746_v48 = vpop.permute.xlu1 %4745 }
 0xff9   :  { %4757 = vrot.lane.b32.xlu0 %v22358_v51, %s21438_s18 }
 0xffb   :  { %4704 = vrot.lane.b32.xlu1 %v22378_v50, %s21447_s27  ;;  %v4749_v51 = vpop.permute.xlu1 %4748 }
 0xffd   :  { %4692 = vrot.lane.b32.xlu0 %v22366_v13, %s21445_s25 }
 0xfff   :  { %4712 = vrot.lane.b32.xlu1 %v22383_v63, %s21448_s28  ;;  %v4755_v8 = vpop.permute.xlu1 %4754 }
0x1001   :  { %4700 = vrot.lane.b32.xlu0 %v22368_v42, %s21443_s23  ;;  %v4752_v42 = vpop.permute.xlu0 %4751 }
0x1005   :  { %4708 = vrot.lane.b32.xlu0 %v22370_v24, %s21444_s24 }
0x1009   :  { %4716 = vrot.lane.b32.xlu0 %v22374_v18, %s21446_s26 }
0x102b   :  { %v5424_v55 = vpop.xlane.xlu1 %5423 }
0x102c   :  { %21116 = vrcp.f32 %v5424_v55 }
0x1036   :  { %v21117_v50 = vpop.eup %21116 }
0x1037   :  { %v5452_v13 = vmul.f32 %v21117_v50, %v22403_v23 }
0x1039   :  { %19840 = vmatmul.mubr.msk.f32.vlgmr.msra.gmra.mrb[58].mxu0 %vm309_vm2, %v5452_v13 }
0x103a   :  { %19848 = vmatpush3.msra.mxu0 %v4749_v51  ;;  %19849 = vmatprep.mubr.msk.f32.mxu0 %vm21435_vm1, %v21431_v0 }
0x103b   :  { %19857 = vmatprep.subr.mxu0 %v21431_v0 }
0x1063   :  { %v5421_v24 = vpop.xlane.xlu0 %5420 }
0x1064   :  { %21118 = vrcp.f32 %v5421_v24 }
0x1067   :  { %v5430_v18 = vpop.xlane.xlu1 %5429 }
0x1068   :  { %21120 = vrcp.f32 %v5430_v18  ;;  %v5427_v63 = vpop.xlane.xlu0 %5426 }
0x1069   :  { %21122 = vrcp.f32 %v5427_v63 }
0x106b   :  { %v5436_v10 = vpop.xlane.xlu1 %5435 }
0x106c   :  { %21124 = vrcp.f32 %v5436_v10  ;;  %v5433_v11 = vpop.xlane.xlu0 %5432 }
0x106d   :  { %21126 = vrcp.f32 %v5433_v11 }
0x106e   :  { %v21119_v12 = vpop.eup %21118 }
0x106f   :  { %v5442_v14 = vpop.xlane.xlu1 %5441  ;;  %v5451_v15 = vmul.f32 %v21119_v12, %v21103_v32 }
0x1070   :  { %21128 = vrcp.f32 %v5442_v14  ;;  %v5439_v19 = vpop.xlane.xlu0 %5438 }
0x1071   :  { %21130 = vrcp.f32 %v5439_v19  ;;  %19835 = vmatmul.mubr.msk.f32.vlgmr.msra.gmra.mrb[70].mxu1 %vm309_vm2, %v5451_v15 }
0x1072   :  { %v21121_v20 = vpop.eup %21120  ;;  %19843 = vmatpush3.msra.mxu1 %v4746_v48  ;;  %19844 = vmatprep.mubr.msk.f32.mxu1 %vm21435_vm1, %v21431_v0 }
0x1073   :  { %v21123_v17 = vpop.eup %21122  ;;  %19852 = vmatprep.subr.mxu1 %v21431_v0  ;;  %v5454_v25 = vmul.f32 %v21121_v20, %v21105_v60  ;;  %v4761_v34 = vpop.permute.xlu1 %4760 }
0x1074   :  { %v5453_v23 = vmul.f32 %v21123_v17, %v21107_v57  ;;  %v4758_v9 = vpop.permute.xlu0 %4757 }
0x1075   :  { %19850 = vmatmul.mubr.msk.f32.vlgmr.msra.gmra.mrb[60].mxu0 %vm309_vm2, %v5454_v25  ;;  %v21454_v25 = vmov 0  }
0x1076   :  { %v21125_v26 = vpop.eup %21124  ;;  %19845 = vmatmul.mubr.msk.f32.vlgmr.msra.gmra.mrb[72].mxu1 %vm309_vm2, %v5453_v23  ;;  %19858 = vmatpush3.msra.mxu0 %v4755_v8  ;;  %v22508_v23 = vld [vmem:[%s22504_s11] sm:$0xff] }
0x1077   :  { %v21127_v30 = vpop.eup %21126  ;;  %19853 = vmatpush3.msra.mxu1 %v4752_v42  ;;  %19854 = vmatprep.mubr.msk.f32.mxu1 %vm21435_vm1, %v21431_v0  ;;  %v5456_v28 = vmul.f32 %v21125_v26, %v22412_v1  ;;  %v4697_v58 = vpop.permute.xlu1 %4696  ;;  %v6361_v26 = vsub.f32 1.0, %v22508_v23  ;;  %vm7131_vm9 = vcmp.gt.f32.partialorder %v22508_v23, 0.5  ;;  %v6360_v23 = vld [vmem:[%s22587_s13 + $0x8] sm:$0xff] }
0x1078   :  { %19859 = vmatprep.mubr.msk.f32.mxu0 %vm21435_vm1, %v21431_v0  ;;  %19862 = vmatprep.subr.mxu1 %v21431_v0  ;;  %v5455_v33 = vmul.f32 %v21127_v30, %v22414_v2  ;;  %v4693_v57 = vpop.permute.xlu0 %4692 }
0x1079   :  { %19867 = vmatprep.subr.mxu0 %v21431_v0  ;;  %19860 = vmatmul.mubr.msk.f32.vlgmr.msra.gmra.mrb[62].mxu0 %vm309_vm2, %v5456_v28  ;;  %v4719_v1 = vsel %vm309_vm2, %v22372_v54, %v4693_v57 }
0x107a   :  { %v21129_v36 = vpop.eup %21128  ;;  %19855 = vmatmul.mubr.msk.f32.vlgmr.msra.gmra.mrb[74].mxu1 %vm309_vm2, %v5455_v33  ;;  %19868 = vmatpush3.msra.mxu0 %v4761_v34  ;;  %v4720_v39 = vsel %vm1617_vm3, %v4719_v1, %v4697_v58  ;;  %v6116_v58 = vld [vmem:[%s18616_s30 + $0x60] sm:$0xff] }
0x107b   :  { %v21131_v31 = vpop.eup %21130  ;;  %19863 = vmatpush3.msra.mxu1 %v4758_v9  ;;  %19864 = vmatprep.mubr.msk.f32.mxu1 %vm21435_vm1, %v21431_v0  ;;  %v5458_v38 = vmul.f32 %v21129_v36, %v22420_v4  ;;  %v4705_v2 = vpop.permute.xlu1 %4704  ;;  %v6105_v9 = vld [vmem:[%s18616_s30 + $0x8] sm:$0xff] }
0x107c   :  { %19869 = vmatprep.mubr.msk.f32.mxu0 %vm21435_vm1, %v21431_v0  ;;  %v5457_v40 = vmul.f32 %v21131_v31, %v22422_v5  ;;  %v4701_v61 = vpop.permute.xlu0 %4700  ;;  %20994 = vset.pattern.permute.xlu1 %v21454_v25  ;;  %v6107_v31 = vld [vmem:[%s18616_s30 + $0x18] sm:$0xff] }
0x107d   :  { %19870 = vmatmul.mubr.msk.f32.vlgmr.msra.gmra.mrb[64].mxu0 %vm309_vm2, %v5458_v38  ;;  %v4721_v4 = vsel %vm1619_vm4, %v4720_v39, %v4701_v61  ;;  %20995 = vset.pattern.permute.xlu0 %v21454_v25  ;;  %v20687_v38 = vpack.c.bf16 %v6107_v31, %v6105_v9  ;;  %v6118_v61 = vld [vmem:[%s18616_s30 + $0x70] sm:$0xff]  ;;  %v6243_v9 = vld [vmem:[%s22534_s7 + $0xc0] sm:$0xff]  ;;  %v6244_v31 = vld [vmem:[%s22534_s7 + $0xc8] sm:$0xff] }
0x107e   :  { %19865 = vmatmul.mubr.msk.f32.vlgmr.msra.gmra.mrb[76].mxu1 %vm309_vm2, %v5457_v40  ;;  %v4722_v5 = vsel %vm1621_vm5, %v4721_v4, %v4705_v2  ;;  %v6104_v40 = vld [vmem:[%s18616_s30] sm:$0xff]  ;;  %v20701_v1 = vpack.c.bf16 %v6118_v61, %v6116_v58  ;;  %v6380_v58 = vld [vmem:[%s22527_s9 + $0x28] sm:$0xff]  ;;  %v6382_v61 = vld [vmem:[%s22527_s9 + $0x38] sm:$0xff] }
0x107f   :  { %6202 = vmatprep.mubr.f32.mxu1 %v21431_v0  ;;  %v4713_v6 = vpop.permute.xlu1 %4712  ;;  %20688 = vmatprep.subr.bf16.mxu1 %v20687_v38 }
0x1080   :  { %v4709_v3 = vpop.permute.xlu0 %4708 }
0x1081   :  { %v4723_v7 = vsel %vm1623_vm6, %v4722_v5, %v4709_v3 }
0x1082   :  { %v4724_v51 = vsel %vm1625_vm7, %v4723_v7, %v4713_v6  ;;  %v6376_v6 = vld [vmem:[%s22527_s9 + $0x8] sm:$0xff]  ;;  %v6378_v7 = vld [vmem:[%s22527_s9 + $0x18] sm:$0xff] }
0x1084   :  { %v4717_v48 = vpop.permute.xlu0 %4716 }
0x1085   :  { %v4725_v8 = vsel %vm1627_vm8, %v4724_v51, %v4717_v48  ;;  %v20735_v48 = vpack.c.bf16 %v6378_v7, %v6376_v6  ;;  %v6235_v51 = vld [vmem:[%s22534_s7 + $0x80] sm:$0xff]  ;;  %v6381_v6 = vld [vmem:[%s22527_s9 + $0x30] sm:$0xff]  ;;  %v6384_v7 = vld [vmem:[%s22527_s9 + $0x48] sm:$0xff] }
0x1086   :  { %v6078_v55 = vsel %vm186_vm0, %v4725_v8, 0.0 }
0x110c   :  { %v5601_v35 = vpop.f32.mrb[58].mxu0 }
0x110d   :  { %6044 = vrot.lane.b32.xlu1 %v5601_v35, %s21445_s25  ;;  %v19841_v21 = vpop.f32.mrb[59].mxu0  ;;  %v6106_v35 = vld [vmem:[%s18616_s30 + $0x10] sm:$0xff] }
0x110e   :  { %v20689_v21 = vpack.c.bf16 %v6106_v35, %v6104_v40 }
0x1110   :  { %20690 = vmatpush1.bf16.msra.mxu1 %v20689_v21  ;;  %v20719_v21 = vpack.c.bf16 %v6244_v31, %v6243_v9  ;;  %v6234_v9 = vld [vmem:[%s22534_s7 + $0x78] sm:$0xff] }
0x1144   :  { %v5528_v22 = vpop.f32.mrb[70].mxu1 }
0x1145   :  { %v19836_v41 = vpop.f32.mrb[71].mxu1 }
0x1146   :  { %v6111_v41 = vld [vmem:[%s18616_s30 + $0x38] sm:$0xff] }
0x1148   :  { %v5747_v43 = vpop.f32.mrb[60].mxu0 }
0x1149   :  { %v5674_v16 = vpop.f32.mrb[72].mxu1  ;;  %6052 = vrot.lane.b32.xlu1 %v5747_v43, %s21443_s23  ;;  %v19851_v46 = vpop.f32.mrb[61].mxu0 }
0x114a   :  { %6048 = vrot.lane.b32.xlu0 %v5674_v16, %s21442_s22  ;;  %v19846_v47 = vpop.f32.mrb[73].mxu1  ;;  %v6108_v16 = vld [vmem:[%s18616_s30 + $0x20] sm:$0xff]  ;;  %v6110_v46 = vld [vmem:[%s18616_s30 + $0x30] sm:$0xff] }
0x114b   :  { %v20693_v47 = vpack.c.bf16 %v6110_v46, %v6108_v16  ;;  %v6246_v16 = vld [vmem:[%s22534_s7 + $0xd8] sm:$0xff] }
0x114c   :  { %v5893_v49 = vpop.f32.mrb[62].mxu0 }
0x114d   :  { %v5820_v56 = vpop.f32.mrb[74].mxu1  ;;  %6060 = vrot.lane.b32.xlu1 %v5893_v49, %s21444_s24  ;;  %v19861_v32 = vpop.f32.mrb[63].mxu0  ;;  %v6113_v49 = vld [vmem:[%s18616_s30 + $0x48] sm:$0xff] }
0x114e   :  { %6056 = vrot.lane.b32.xlu0 %v5820_v56, %s21447_s27  ;;  %v19856_v59 = vpop.f32.mrb[75].mxu1  ;;  %v6115_v56 = vld [vmem:[%s18616_s30 + $0x58] sm:$0xff] }
0x114f   :  { %v20695_v32 = vpack.c.bf16 %v6115_v56, %v6113_v49  ;;  %v6112_v59 = vld [vmem:[%s18616_s30 + $0x40] sm:$0xff]  ;;  %v6229_v49 = vld [vmem:[%s22534_s7 + $0x50] sm:$0xff]  ;;  %v6230_v56 = vld [vmem:[%s22534_s7 + $0x58] sm:$0xff] }
0x1150   :  { %v6039_v45 = vpop.f32.mrb[64].mxu0 }
0x1151   :  { %v5966_v44 = vpop.f32.mrb[76].mxu1  ;;  %6068 = vrot.lane.b32.xlu1 %v6039_v45, %s21446_s26  ;;  %v19871_v53 = vpop.f32.mrb[65].mxu0  ;;  %v6114_v45 = vld [vmem:[%s18616_s30 + $0x50] sm:$0xff] }
0x1152   :  { %6064 = vrot.lane.b32.xlu0 %v5966_v44, %s21448_s28  ;;  %v19866_v60 = vpop.f32.mrb[77].mxu1  ;;  %v20697_v44 = vpack.c.bf16 %v6114_v45, %v6112_v59  ;;  %v6117_v53 = vld [vmem:[%s18616_s30 + $0x68] sm:$0xff]  ;;  %v20725_v45 = vpack.c.bf16 %v6230_v56, %v6229_v49 }
0x1153   :  { %v6119_v60 = vld [vmem:[%s18616_s30 + $0x78] sm:$0xff]  ;;  %v6248_v59 = vld [vmem:[%s22534_s7 + $0xe8] sm:$0xff] }
0x1154   :  { %v20699_v57 = vpack.c.bf16 %v6119_v60, %v6117_v53  ;;  %v6375_v53 = vld [vmem:[%s22527_s9] sm:$0xff]  ;;  %v6377_v60 = vld [vmem:[%s22527_s9 + $0x10] sm:$0xff] }
0x1171   :  { %6079 = vadd.xlane.f32.xlu0 %v6078_v55  ;;  %v6219_v55 = vld [vmem:[%s22534_s7] sm:$0xff] }
0x117f   :  { %v6045_v54 = vpop.permute.xlu1 %6044 }
0x1180   :  { %v6071_v13 = vsel %vm309_vm2, %v5528_v22, %v6045_v54  ;;  %v6109_v22 = vld [vmem:[%s18616_s30 + $0x28] sm:$0xff]  ;;  %s21467_s30 = smov 23  }
0x1181   :  { %v20691_v43 = vpack.c.bf16 %v6111_v41, %v6109_v22  ;;  %v6227_v22 = vld [vmem:[%s22534_s7 + $0x40] sm:$0xff]  ;;  %v6228_v41 = vld [vmem:[%s22534_s7 + $0x48] sm:$0xff] }
0x1182   :  { %v20721_v46 = vpack.c.bf16 %v6228_v41, %v6227_v22 }
0x1183   :  { %20692 = vmatprep.subr.bf16.mxu1 %v20691_v43  ;;  %v6245_v43 = vld [vmem:[%s22534_s7 + $0xd0] sm:$0xff] }
0x1184   :  { %20694 = vmatpush1.bf16.msra.mxu1 %v20693_v47  ;;  %v20723_v47 = vpack.c.bf16 %v6246_v16, %v6245_v43 }
0x1185   :  { %20696 = vmatprep.subr.bf16.mxu1 %v20695_v32  ;;  %v6247_v32 = vld [vmem:[%s22534_s7 + $0xe0] sm:$0xff] }
0x1188   :  { %20698 = vmatpush1.bf16.msra.mxu1 %v20697_v44  ;;  %v20727_v44 = vpack.c.bf16 %v6248_v59, %v6247_v32 }
0x1189   :  { %20700 = vmatprep.subr.bf16.mxu1 %v20699_v57 }
0x118c   :  { %20702 = vmatpush1.bf16.msra.mxu1 %v20701_v1 }
0x118d   :  { %20736 = vmatprep.subr.bf16.mxu1 %v20735_v48  ;;  %v6386_v48 = vld [vmem:[%s22527_s9 + $0x58] sm:$0xff] }
0x11bb   :  { %v6053_v50 = vpop.permute.xlu1 %6052 }
0x11bc   :  { %v6049_v42 = vpop.permute.xlu0 %6048 }
0x11bd   :  { %v6072_v24 = vsel %vm1617_vm3, %v6071_v13, %v6049_v42  ;;  %v6237_v13 = vld [vmem:[%s22534_s7 + $0x90] sm:$0xff]  ;;  %v6238_v42 = vld [vmem:[%s22534_s7 + $0x98] sm:$0xff] }
0x11be   :  { %v6073_v63 = vsel %vm1619_vm4, %v6072_v24, %v6053_v50  ;;  %v6220_v50 = vld [vmem:[%s22534_s7 + $0x8] sm:$0xff] }
0x11bf   :  { %v6061_v18 = vpop.permute.xlu1 %6060  ;;  %v20705_v24 = vpack.c.bf16 %v6220_v50, %v6219_v55  ;;  %v6385_v55 = vld [vmem:[%s22527_s9 + $0x50] sm:$0xff] }
0x11c0   :  { %v6057_v10 = vpop.permute.xlu0 %6056 }
0x11c1   :  { %v6074_v11 = vsel %vm1621_vm5, %v6073_v63, %v6057_v10  ;;  %v6221_v63 = vld [vmem:[%s22534_s7 + $0x10] sm:$0xff]  ;;  %v6222_v10 = vld [vmem:[%s22534_s7 + $0x18] sm:$0xff] }
0x11c2   :  { %v6075_v14 = vsel %vm1623_vm6, %v6074_v11, %v6061_v18  ;;  %v20707_v18 = vpack.c.bf16 %v6238_v42, %v6237_v13  ;;  %v6239_v11 = vld [vmem:[%s22534_s7 + $0xa0] sm:$0xff] }
0x11c3   :  { %v6069_v12 = vpop.permute.xlu1 %6068  ;;  %v6387_v42 = vld [vmem:[%s22527_s9 + $0x60] sm:$0xff] }
0x11c4   :  { %v6065_v15 = vpop.permute.xlu0 %6064 }
0x11c5   :  { %v6076_v19 = vsel %vm1625_vm7, %v6075_v14, %v6065_v15  ;;  %v20709_v14 = vpack.c.bf16 %v6222_v10, %v6221_v63 }
0x11c6   :  { %v6077_v20 = vsel %vm1627_vm8, %v6076_v19, %v6069_v12  ;;  %v6240_v12 = vld [vmem:[%s22534_s7 + $0xa8] sm:$0xff]  ;;  %v6223_v19 = vld [vmem:[%s22534_s7 + $0x20] sm:$0xff] }
0x11c7   :  { %v6081_v17 = vsel %vm186_vm0, %v6077_v20, 0.0  ;;  %v20711_v15 = vpack.c.bf16 %v6240_v12, %v6239_v11  ;;  %v6231_v12 = vld [vmem:[%s22534_s7 + $0x60] sm:$0xff] }
0x11c8   :  { %6082 = vadd.xlane.f32.xlu1 %v6081_v17  ;;  %v6241_v17 = vld [vmem:[%s22534_s7 + $0xb0] sm:$0xff] }
0x11d9   :  { %6365 = vperm.xlu1 %20994, %v6361_v26   ;;  %v6242_v26 = vld [vmem:[%s22534_s7 + $0xb8] sm:$0xff] }
0x11fe   :  { %v6080_v30 = vpop.xlane.xlu0 %6079 }
0x11ff   :  { %v6084_v28 = vmul.f32 0.015625, %v6080_v30 }
0x1201   :  { %v22511_v33 = vsub.f32 %v4725_v8, %v6084_v28  ;;  %v6236_v8 = vld [vmem:[%s22534_s7 + $0x88] sm:$0xff]  ;;  %v20715_v28 = vpack.c.bf16 %v6242_v26, %v6241_v17 }
0x1202   :  { %v20703_v54 = vpack.c.bf16 %v6236_v8, %v6235_v51  ;;  %v6383_v8 = vld [vmem:[%s22527_s9 + $0x40] sm:$0xff] }
0x1203   :  { %v6088_v34 = vmul.f32 %v22511_v33, %v22511_v33  ;;  %v20745_v50 = vpack.c.bf16 %v6385_v55, %v6383_v8 }
0x1204   :  { %20704 = vmatprep.subr.bf16.mxu0 %v20703_v54  ;;  %v6390_v54 = vld [vmem:[%s22527_s9 + $0x78] sm:$0xff] }
0x1205   :  { %v6090_v36 = vsel %vm186_vm0, %v6088_v34, 0.0  ;;  %20706 = vmatpush3.bf16.msra.mxu0 %v20705_v24  ;;  %v6225_v34 = vld [vmem:[%s22534_s7 + $0x30] sm:$0xff] }
0x1206   :  { %6091 = vadd.xlane.f32.xlu0 %v6090_v36  ;;  %20708 = vmatprep.subr.bf16.mxu0 %v20707_v18  ;;  %v6226_v36 = vld [vmem:[%s22534_s7 + $0x38] sm:$0xff]  ;;  %v6389_v24 = vld [vmem:[%s22527_s9 + $0x70] sm:$0xff] }
0x1207   :  { %v20717_v40 = vpack.c.bf16 %v6226_v36, %v6225_v34  ;;  %v20749_v18 = vpack.c.bf16 %v6389_v24, %v6387_v42  ;;  %v6233_v36 = vld [vmem:[%s22534_s7 + $0x70] sm:$0xff] }
0x1209   :  { %20710 = vmatpush3.bf16.msra.mxu0 %v20709_v14  ;;  %v6232_v14 = vld [vmem:[%s22534_s7 + $0x68] sm:$0xff] }
0x120a   :  { %20712 = vmatprep.subr.bf16.mxu0 %v20711_v15 }
0x1255   :  { %v6083_v2 = vpop.xlane.xlu1 %6082 }
0x1256   :  { %v6085_v39 = vmul.f32 0.015625, %v6083_v2  ;;  %v20737_v2 = vpack.c.bf16 %v6377_v60, %v6375_v53 }
0x1258   :  { %v22519_v3 = vsub.f32 %v6077_v20, %v6085_v39  ;;  %v6224_v20 = vld [vmem:[%s22534_s7 + $0x28] sm:$0xff] }
0x1259   :  { %v20713_v30 = vpack.c.bf16 %v6224_v20, %v6223_v19  ;;  %v20729_v19 = vpack.c.bf16 %v6232_v14, %v6231_v12  ;;  %v6359_v20 = vld [vmem:[%s22587_s13] sm:$0xff]  ;;  %v6366_v17 = vpop.permute.xlu1 %6365  ;;  %s18622_s13 = sld [smem:[%s24812_s0 + %s21462_s8]]  }
0x125a   :  { %v6089_v4 = vmul.f32 %v22519_v3, %v22519_v3  ;;  %v22602_v31 = vmul.f32 %v6366_v17, %v6359_v20  ;;  %s18625_s8 = sld [smem:[%s24812_s0 + %s21465_s5]]  }
0x125b   :  { %20714 = vmatpush3.bf16.msra.mxu0 %v20713_v30  ;;  %v6249_v30 = vld [vmem:[%s22534_s7 + $0xf0] sm:$0xff] }
0x125c   :  { %v6093_v5 = vsel %vm186_vm0, %v6089_v4, 0.0  ;;  %20716 = vmatprep.subr.bf16.mxu0 %v20715_v28  ;;  %v20739_v4 = vpack.c.bf16 %v6382_v61, %v6380_v58  ;;  %v6250_v28 = vld [vmem:[%s22534_s7 + $0xf8] sm:$0xff]  ;;  %v22634_v58 = vld [vmem:[%s22504_s11 + $0x8] sm:$0xff]  ;;  %s21461_s11 = smov 14  }
0x125d   :  { %6094 = vadd.xlane.f32.xlu0 %v6093_v5  ;;  %v6379_v5 = vld [vmem:[%s22527_s9 + $0x20] sm:$0xff]  ;;  %v20731_v34 = vpack.c.bf16 %v6250_v28, %v6249_v30  ;;  %v6362_v61 = vsub.f32 1.0, %v22634_v58  ;;  %vm8497_vm11 = vcmp.gt.f32.partialorder %v22634_v58, 0.5  ;;  %s18619_s7 = sld [smem:[%s24812_s0 + %s21461_s11]]  }
0x125e   :  { %v20741_v51 = vpack.c.bf16 %v6381_v6, %v6379_v5  ;;  %s18624_s11 = sld [smem:[%s24812_s0 + %s21464_s3]]  }
0x125f   :  { %20718 = vmatpush3.bf16.msra.mxu0 %v20717_v40  ;;  %s23629_s3 = sld [smem:[%s24812_s0 + %s21467_s30]]   ;;  %s21470_s30 = smov 26  }
0x1260   :  { %20720 = vmatprep.subr.bf16.mxu0 %v20719_v21 }
0x1263   :  { %20722 = vmatpush3.bf16.msra.mxu0 %v20721_v46  ;;  %v22618_v46 = vld [vmem:[%s18621_s4] sm:$0x3]  ;;  %s21478_s4 = smov 35  }
0x1264   :  { %20724 = vmatprep.subr.bf16.mxu0 %v20723_v47  ;;  %v22622_v56 = vrot.slane %v22618_v46, %v21527_v29  ;;  %v22680_v12 = vrot.slane %v22618_v46, %v21588_v52 }
0x1267   :  { %20726 = vmatpush3.bf16.msra.mxu0 %v20725_v45 }
0x1268   :  { %20728 = vmatprep.subr.bf16.mxu0 %v20727_v44 }
0x126b   :  { %20730 = vmatpush3.bf16.msra.mxu0 %v20729_v19 }
0x126c   :  { %20732 = vmatprep.subr.bf16.mxu0 %v20731_v34 }
0x1293   :  { %v6092_v38 = vpop.xlane.xlu0 %6091 }
0x1294   :  { %v6096_v35 = vmul.f32 0.015873017, %v6092_v38  ;;  %v20733_v38 = vpack.c.bf16 %v6234_v9, %v6233_v36 }
0x1296   :  { %21132 = vrsqrt.f32 %v6096_v35  ;;  %20734 = vmatpush3.bf16.msra.mxu0 %v20733_v38 }
0x1297   :  { %19877 = vmatprep.subr.mxu0 %v21431_v0 }
0x12a0   :  { %v21133_v57 = vpop.eup %21132 }
0x12a1   :  { %v6100_v1 = vmul.f32 %v21133_v57, %v22511_v33  ;;  %v20743_v33 = vpack.c.bf16 %v6386_v48, %v6384_v7 }
0x12a3   :  { %v22568_v39 = vadd.f32 %v6100_v1, %v22048_v62  ;;  %v6388_v62 = vld [vmem:[%s22527_s9 + $0x68] sm:$0xff]  ;;  %s21468_s9 = smov 22  }
0x12a4   :  { %v20747_v13 = vpack.c.bf16 %v6390_v54, %v6388_v62  ;;  %s18627_s5 = sld [smem:[%s24812_s0 + %s21468_s9]]   ;;  %s21471_s9 = smov 27  }
0x12a5   :  { %18746 = vmatmul.mubr.msk.f32.vlgmr.msra.gmra.mrb[78].mxu1 %vm186_vm0, %v22568_v39 }
0x12a6   :  { %20738 = vmatpush1.bf16.msra.mxu1 %v20737_v2  ;;  %6208 = vmatprep.mubr.f32.mxu1 %v21431_v0 }
0x12a7   :  { %20740 = vmatprep.subr.bf16.mxu1 %v20739_v4 }
0x12aa   :  { %20742 = vmatpush1.bf16.msra.mxu1 %v20741_v51  ;;  %v7132_v51 = vsel %vm7131_vm9, 1, %v21454_v25 }
0x12ab   :  { %20744 = vmatprep.subr.bf16.mxu1 %v20743_v33 }
0x12ae   :  { %20746 = vmatpush1.bf16.msra.mxu1 %v20745_v50 }
0x12af   :  { %20748 = vmatprep.subr.bf16.mxu1 %v20747_v13 }
0x12b2   :  { %20750 = vmatpush1.bf16.msra.mxu1 %v20749_v18 }
0x12b3   :  { %19872 = vmatprep.subr.mxu1 %v21431_v0 }
0x12ea   :  { %v6095_v63 = vpop.xlane.xlu0 %6094 }
0x12eb   :  { %v6097_v10 = vmul.f32 0.015873017, %v6095_v63 }
0x12ed   :  { %21134 = vrsqrt.f32 %v6097_v10 }
0x12f7   :  { %v21135_v11 = vpop.eup %21134 }
0x12f8   :  { %v6101_v15 = vmul.f32 %v21135_v11, %v22519_v3 }
0x12fa   :  { %v22594_v26 = vadd.f32 %v6101_v15, %v22116_v37  ;;  %v6120_v37 = vld [vmem:[%s18617_s2] sm:$0x3]  ;;  %s18623_s2 = sld [smem:[%s24812_s0 + %s21463_s29]]  }
0x12fb   :  { %v6125_v3 = vrot.slane %v6120_v37, %v21527_v29  ;;  %v6129_v40 = vrot.slane %v6120_v37, %v21588_v52  ;;  %s23593_s29 = sld [smem:[%s24812_s0 + %s21466_s10]]   ;;  %s21469_s10 = smov 25  }
0x12fc   :  { %18747 = vmatmul.mubr.msk.f32.gmra.mrb[80].mxu1 %vm186_vm0, %v22594_v26 }
0x12fd   :  { %6473 = vmatprep.mubr.f32.mxu1 %v21431_v0 }
0x1300   :  { %18749 = vmatmul.mubr.msk.f32.vlgmr.msra.gmra.mrb[82].mxu1 %vm186_vm0, %v22602_v31 }
0x1301   :  { %6479 = vmatprep.mubr.f32.mxu1 %v21431_v0 }
0x1378   :  { %v6204_v35 = vpop.f32.mrb[78].mxu1 }
0x1379   :  { %v6205_v21 = vadd.f32 %v6204_v35, %v6125_v3  ;;  %v6206_v22 = vpop.f32.mrb[79].mxu1 }
0x137a   :  { %v6207_v41 = vadd.f32 %v6206_v22, %v6129_v40 }
0x137b   :  { %v6215_v16 = vmax.f32 %v6205_v21, 0.0 }
0x137c   :  { %v6216_v43 = vmax.f32 %v6207_v41, 0.0 }
0x137e   :  { %6322 = vmatprep.mubr.f32.mxu0 %v6216_v43 }
0x137f   :  { %6323 = vmatmul.mubr.f32.vlgmr.msra.gmra.mrb[66].mxu0 %v6215_v16 }
0x13cf   :  { %v6210_v47 = vpop.f32.mrb[80].mxu1 }
0x13d0   :  { %v6212_v49 = vpop.f32.mrb[81].mxu1  ;;  %v6211_v32 = vadd.f32 %v6210_v47, %v6125_v3 }
0x13d1   :  { %v6213_v59 = vadd.f32 %v6212_v49, %v6129_v40 }
0x13d2   :  { %v6217_v57 = vmax.f32 %v6211_v32, 0.0 }
0x13d3   :  { %v6218_v45 = vmax.f32 %v6213_v59, 0.0  ;;  %v6475_v44 = vpop.f32.mrb[82].mxu1 }
0x13d4   :  { %v6476_v53 = vadd.f32 %v6475_v44, %v22622_v56  ;;  %v22625_v60 = vpop.f32.mrb[83].mxu1 }
0x13d5   :  { %6327 = vmatprep.mubr.f32.mxu0 %v6218_v45  ;;  %v22694_v19 = vadd.f32 %v22625_v60, %v22680_v12 }
0x13d6   :  { %6489 = vrot.lane.b32.xlu1 %v6476_v53, %s21437_s17  ;;  %6487 = vrot.lane.b32.xlu0 %v6476_v53, %s21434_s15 }
0x13d7   :  { %6328 = vmatmul.mubr.f32.gmra.mrb[68].mxu0 %v6217_v57 }
0x13d8   :  { %19879 = vmatprep.mubr.msk.f32.mxu0 %vm21435_vm1, %v21431_v0 }
0x13da   :  { %6491 = vrot.lane.b32.xlu1 %v6476_v53, %s21433_s14  ;;  %6493 = vrot.lane.b32.xlu0 %v6476_v53, %s21436_s16 }
0x13de   :  { %6495 = vrot.lane.b32.xlu1 %v6476_v53, %s21439_s19  ;;  %6497 = vrot.lane.b32.xlu0 %v6476_v53, %s21438_s18 }
0x13e2   :  { %6499 = vrot.lane.b32.xlu1 %v6476_v53, %s21441_s21  ;;  %6370 = vperm.xlu0 %20995, %v6362_v61  }
0x13e6   :  { %6523 = vrot.lane.b32.xlu1 %v6476_v53, %s21440_s20 }
0x1448   :  { %v6490_v1 = vpop.permute.xlu1 %6489  ;;  %v6488_v2 = vpop.permute.xlu0 %6487 }
0x1449   :  { %6675 = vrot.lane.b32.xlu0 %v6490_v1, %s21440_s20  ;;  %6599 = vrot.lane.b32.xlu1 %v6488_v2, %s21440_s20 }
0x144c   :  { %v6492_v4 = vpop.permute.xlu1 %6491  ;;  %v6494_v5 = vpop.permute.xlu0 %6493 }
0x144d   :  { %6751 = vrot.lane.b32.xlu1 %v6492_v4, %s21440_s20  ;;  %6827 = vrot.lane.b32.xlu0 %v6494_v5, %s21440_s20 }
0x1450   :  { %v6496_v6 = vpop.permute.xlu1 %6495  ;;  %v6498_v7 = vpop.permute.xlu0 %6497 }
0x1451   :  { %6903 = vrot.lane.b32.xlu1 %v6496_v6, %s21440_s20  ;;  %6979 = vrot.lane.b32.xlu0 %v6498_v7, %s21440_s20 }
0x1452   :  { %v19164_v48 = vpop.f32.mrb[66].mxu0 }
0x1453   :  { %v19165_v33 = vpop.f32.mrb[67].mxu0 }
0x1454   :  { %v22649_v8 = vadd.f32 %v19165_v33, %v19164_v48  ;;  %v6500_v55 = vpop.permute.xlu1 %6499 }
0x1455   :  { %7055 = vrot.lane.b32.xlu1 %v6500_v55, %s21440_s20  ;;  %7134 = vperm.xlu0 %20995, %v7132_v51  }
0x1458   :  { %v6524_v62 = vpop.permute.xlu1 %6523 }
0x1459   :  { %19873 = vmatpush3.xpose.msk.msra.mxu1 %vm309_vm2, %v6524_v62 }
0x145a   :  { %19882 = vmatprep.subr.mxu1 %v21431_v0 }
0x1461   :  { %v6371_v54 = vpop.permute.xlu0 %6370 }
0x1462   :  { %v22655_v50 = vmul.f32 %v6371_v54, %v6360_v23 }
0x1464   :  { %18750 = vmatmul.mubr.msk.f32.gmra.mrb[84].mxu1 %vm186_vm0, %v22655_v50 }
0x1465   :  { %19874 = vmatprep.mubr.msk.f32.mxu1 %vm21435_vm1, %v21431_v0 }
0x1468   :  { %19875 = vmatmul.mubr.msk.f32.vlgmr.msra.gmra.mrb[86].mxu1 %vm309_vm2, %v6476_v53 }
0x1469   :  { %19884 = vmatprep.mubr.msk.f32.mxu1 %vm21435_vm1, %v21431_v0 }
0x14aa   :  { %v19167_v13 = vpop.f32.mrb[68].mxu0 }
0x14ab   :  { %v19168_v42 = vpop.f32.mrb[69].mxu0 }
0x14ac   :  { %v22664_v24 = vadd.f32 %v19168_v42, %v19167_v13 }
0x14bb   :  { %v6600_v18 = vpop.permute.xlu1 %6599  ;;  %v6676_v63 = vpop.permute.xlu0 %6675 }
0x14bc   :  { %19878 = vmatpush3.xpose.msk.msra.mxu0 %vm309_vm2, %v6600_v18  ;;  %19883 = vmatpush3.xpose.msk.msra.mxu1 %vm309_vm2, %v6676_v63 }
0x14bd   :  { %19887 = vmatprep.subr.mxu0 %v21431_v0  ;;  %19892 = vmatprep.subr.mxu1 %v21431_v0 }
0x14bf   :  { %v6752_v10 = vpop.permute.xlu1 %6751  ;;  %19885 = vmatmul.mubr.msk.f32.vlgmr.msra.gmra.mrb[88].mxu1 %vm309_vm2, %v6490_v1  ;;  %v6828_v11 = vpop.permute.xlu0 %6827  ;;  %19880 = vmatmul.mubr.msk.f32.vlgmr.msra.gmra.mrb[70].mxu0 %vm309_vm2, %v6488_v2 }
0x14c0   :  { %19888 = vmatpush3.xpose.msk.msra.mxu0 %vm309_vm2, %v6752_v10  ;;  %19893 = vmatpush3.xpose.msk.msra.mxu1 %vm309_vm2, %v6828_v11 }
0x14c1   :  { %19889 = vmatprep.mubr.msk.f32.mxu0 %vm21435_vm1, %v21431_v0  ;;  %19894 = vmatprep.mubr.msk.f32.mxu1 %vm21435_vm1, %v21431_v0 }
0x14c2   :  { %19902 = vmatprep.subr.mxu1 %v21431_v0  ;;  %19897 = vmatprep.subr.mxu0 %v21431_v0 }
0x14c3   :  { %v6904_v14 = vpop.permute.xlu1 %6903  ;;  %19895 = vmatmul.mubr.msk.f32.vlgmr.msra.gmra.mrb[90].mxu1 %vm309_vm2, %v6494_v5  ;;  %v6980_v15 = vpop.permute.xlu0 %6979  ;;  %19890 = vmatmul.mubr.msk.f32.vlgmr.msra.gmra.mrb[72].mxu0 %vm309_vm2, %v6492_v4 }
0x14c4   :  { %19898 = vmatpush3.xpose.msk.msra.mxu0 %vm309_vm2, %v6904_v14  ;;  %19903 = vmatpush3.xpose.msk.msra.mxu1 %vm309_vm2, %v6980_v15 }
0x14c5   :  { %19899 = vmatprep.mubr.msk.f32.mxu0 %vm21435_vm1, %v21431_v0  ;;  %19904 = vmatprep.mubr.msk.f32.mxu1 %vm21435_vm1, %v21431_v0 }
0x14c6   :  { %19907 = vmatprep.subr.mxu0 %v21431_v0  ;;  %19912 = vmatprep.subr.mxu1 %v21431_v0 }
0x14c7   :  { %v7056_v20 = vpop.permute.xlu1 %7055  ;;  %19900 = vmatmul.mubr.msk.f32.vlgmr.msra.gmra.mrb[74].mxu0 %vm309_vm2, %v6496_v6  ;;  %19905 = vmatmul.mubr.msk.f32.vlgmr.msra.gmra.mrb[92].mxu1 %vm309_vm2, %v6498_v7 }
0x14c8   :  { %19908 = vmatpush3.xpose.msk.msra.mxu0 %vm309_vm2, %v7056_v20  ;;  %19913 = vmatpush3.msra.mxu1 %v22694_v19 }
0x14c9   :  { %19909 = vmatprep.mubr.msk.f32.mxu0 %vm21435_vm1, %v21431_v0  ;;  %19917 = vmatprep.subr.mxu0 %v21431_v0 }
0x14ca   :  { %19914 = vmatprep.mubr.msk.f32.mxu1 %vm21435_vm1, %v21431_v0  ;;  %19922 = vmatprep.subr.mxu1 %v21431_v0 }
0x14cb   :  { %19910 = vmatmul.mubr.msk.f32.vlgmr.msra.gmra.mrb[76].mxu0 %vm309_vm2, %v6500_v55 }
0x14cc   :  { %19919 = vmatprep.mubr.msk.f32.mxu0 %vm21435_vm1, %v21431_v0 }
0x14d4   :  { %v22711_v30 = vpop.permute.xlu0 %7134 }
0x14d5   :  { %vm7136_vm10 = vcmp.eq.s32.totalorder %v22711_v30, 1 }
0x1537   :  { %v6481_v17 = vpop.f32.mrb[84].mxu1 }
0x1538   :  { %v22713_v28 = vpop.f32.mrb[85].mxu1  ;;  %v22744_v48 = vadd.f32 %v6481_v17, %v22622_v56 }
0x1539   :  { %v22847_v58 = vadd.f32 %v22713_v28, %v22680_v12 }
0x153b   :  { %v6595_v34 = vpop.f32.mrb[86].mxu1 }
0x153c   :  { %v7137_v36 = vsel %vm7136_vm10, 0.0, %v6595_v34  ;;  %v19876_v9 = vpop.f32.mrb[87].mxu1 }
0x153d   :  { %v7145_v38 = vsel %vm309_vm2, %v7137_v36, -inf }
0x153e   :  { %7146 = vmax.xlane.f32.xlu1 %v7145_v38 }
0x1592   :  { %v6671_v37 = vpop.f32.mrb[70].mxu0  ;;  %v6747_v3 = vpop.f32.mrb[88].mxu1 }
0x1593   :  { %v7138_v40 = vsel %vm7136_vm10, 0.0, %v6671_v37  ;;  %v19881_v35 = vpop.f32.mrb[71].mxu0  ;;  %v19886_v21 = vpop.f32.mrb[89].mxu1  ;;  %v7139_v41 = vsel %vm7136_vm10, 0.0, %v6747_v3 }
0x1594   :  { %v7148_v22 = vsel %vm309_vm2, %v7138_v40, -inf  ;;  %v7151_v32 = vsel %vm309_vm2, %v7139_v41, -inf }
0x1595   :  { %7149 = vmax.xlane.f32.xlu0 %v7148_v22 }
0x1596   :  { %v6823_v43 = vpop.f32.mrb[72].mxu0  ;;  %v6899_v16 = vpop.f32.mrb[90].mxu1 }
0x1597   :  { %v7140_v46 = vsel %vm7136_vm10, 0.0, %v6823_v43  ;;  %v19891_v47 = vpop.f32.mrb[73].mxu0  ;;  %v19896_v49 = vpop.f32.mrb[91].mxu1  ;;  %v22730_v45 = vsel %vm7136_vm10, 0.0, %v6899_v16 }
0x1598   :  { %v7154_v59 = vsel %vm309_vm2, %v7140_v46, -inf  ;;  %v7157_v1 = vsel %vm309_vm2, %v22730_v45, -inf }
0x1599   :  { %7152 = vmax.xlane.f32.xlu0 %v7151_v32  ;;  %7155 = vmax.xlane.f32.xlu1 %v7154_v59 }
0x159a   :  { %v6975_v44 = vpop.f32.mrb[74].mxu0  ;;  %v7051_v53 = vpop.f32.mrb[92].mxu1 }
0x159b   :  { %v7142_v60 = vsel %vm7136_vm10, 0.0, %v6975_v44  ;;  %v19901_v57 = vpop.f32.mrb[75].mxu0  ;;  %v19906_v61 = vpop.f32.mrb[93].mxu1  ;;  %v22739_v4 = vsel %vm7136_vm10, 0.0, %v7051_v53 }
0x159c   :  { %v7160_v2 = vsel %vm309_vm2, %v7142_v60, -inf  ;;  %v7163_v7 = vsel %vm309_vm2, %v22739_v4, -inf }
0x159d   :  { %7158 = vmax.xlane.f32.xlu0 %v7157_v1  ;;  %7161 = vmax.xlane.f32.xlu1 %v7160_v2 }
0x159e   :  { %v7127_v5 = vpop.f32.mrb[76].mxu0 }
0x159f   :  { %v19911_v6 = vpop.f32.mrb[77].mxu0  ;;  %v22776_v62 = vsel %vm7136_vm10, 0.0, %v7127_v5 }
0x15a0   :  { %v7166_v23 = vsel %vm309_vm2, %v22776_v62, -inf }
0x15a1   :  { %7164 = vmax.xlane.f32.xlu0 %v7163_v7 }
0x15ae   :  { %7855 = vrot.lane.b32.xlu1 %v22744_v48, %s21437_s17 }
0x15b2   :  { %7857 = vrot.lane.b32.xlu1 %v22744_v48, %s21433_s14 }
0x15b6   :  { %7861 = vrot.lane.b32.xlu1 %v22744_v48, %s21439_s19 }
0x15b7   :  { %7853 = vrot.lane.b32.xlu0 %v22744_v48, %s21434_s15 }
0x15ba   :  { %7865 = vrot.lane.b32.xlu1 %v22744_v48, %s21441_s21 }
0x15bb   :  { %7859 = vrot.lane.b32.xlu0 %v22744_v48, %s21436_s16 }
0x15be   :  { %6502 = vrot.lane.b32.xlu1 %v22694_v19, %s21434_s15 }
0x15bf   :  { %7863 = vrot.lane.b32.xlu0 %v22744_v48, %s21438_s18 }
0x15c2   :  { %6508 = vrot.lane.b32.xlu1 %v22694_v19, %s21433_s14 }
0x15c3   :  { %6505 = vrot.lane.b32.xlu0 %v22694_v19, %s21437_s17 }
0x15c6   :  { %6511 = vrot.lane.b32.xlu1 %v22694_v19, %s21436_s16 }
0x15c7   :  { %6514 = vrot.lane.b32.xlu0 %v22694_v19, %s21439_s19 }
0x15cb   :  { %6520 = vrot.lane.b32.xlu0 %v22694_v19, %s21441_s21  ;;  %v7147_v56 = vpop.xlane.xlu1 %7146 }
0x15cc   :  { %v7169_v51 = vsub.f32 %v7137_v36, %v7147_v56 }
0x15ce   :  { %v7177_v33 = vmul.f32 1.442695, %v7169_v51 }
0x15d0   :  { %21136 = vpow2.f32 %v7177_v33 }
0x15da   :  { %v22772_v55 = vpop.eup %21136 }
0x15db   :  { %v7193_v54 = vsel %vm309_vm2, %v22772_v55, 0.0 }
0x15ea   :  { %7194 = vadd.xlane.f32.xlu0 %v7193_v54  ;;  %7167 = vmax.xlane.f32.xlu1 %v7166_v23 }
0x15fb   :  { %6517 = vrot.lane.b32.xlu1 %v22694_v19, %s21438_s18 }
0x1622   :  { %v7150_v13 = vpop.xlane.xlu0 %7149 }
0x1623   :  { %v7170_v42 = vsub.f32 %v7138_v40, %v7150_v13 }
0x1625   :  { %v7179_v18 = vmul.f32 1.442695, %v7170_v42 }
0x1626   :  { %v7153_v63 = vpop.xlane.xlu0 %7152  ;;  %v7156_v10 = vpop.xlane.xlu1 %7155 }
0x1627   :  { %21138 = vpow2.f32 %v7179_v18  ;;  %v7171_v11 = vsub.f32 %v7139_v41, %v7153_v63  ;;  %v7172_v14 = vsub.f32 %v7140_v46, %v7156_v10 }
0x1629   :  { %v7181_v15 = vmul.f32 1.442695, %v7171_v11  ;;  %v7183_v20 = vmul.f32 1.442695, %v7172_v14 }
0x162a   :  { %v7162_v17 = vpop.xlane.xlu1 %7161  ;;  %v7159_v47 = vpop.xlane.xlu0 %7158 }
0x162b   :  { %21140 = vpow2.f32 %v7181_v15  ;;  %v7174_v34 = vsub.f32 %v7142_v60, %v7162_v17  ;;  %v7173_v32 = vsub.f32 %v22730_v45, %v7159_v47 }
0x162c   :  { %21142 = vpow2.f32 %v7183_v20 }
0x162d   :  { %v7187_v36 = vmul.f32 1.442695, %v7174_v34  ;;  %v7185_v44 = vmul.f32 1.442695, %v7173_v32 }
0x162e   :  { %v22784_v9 = vpop.permute.xlu1 %7855  ;;  %v7165_v49 = vpop.xlane.xlu0 %7164 }
0x162f   :  { %21144 = vpow2.f32 %v7187_v36  ;;  %v7175_v53 = vsub.f32 %v22739_v4, %v7165_v49 }
0x1630   :  { %21146 = vpow2.f32 %v7185_v44 }
0x1631   :  { %v22786_v38 = vpop.eup %21138  ;;  %v7189_v60 = vmul.f32 1.442695, %v7175_v53 }
0x1632   :  { %v22788_v19 = vpop.permute.xlu1 %7857  ;;  %v7196_v37 = vsel %vm309_vm2, %v22786_v38, 0.0  ;;  %v22812_v59 = vpop.permute.xlu0 %7853 }
0x1633   :  { %7197 = vadd.xlane.f32.xlu1 %v7196_v37  ;;  %21148 = vpow2.f32 %v7189_v60 }
0x1635   :  { %v22792_v3 = vpop.eup %21140 }
0x1636   :  { %v22794_v40 = vpop.permute.xlu1 %7861  ;;  %v7199_v35 = vsel %vm309_vm2, %v22792_v3, 0.0  ;;  %v22798_v21 = vpop.eup %21142 }
0x1637   :  { %7200 = vadd.xlane.f32.xlu0 %v7199_v35  ;;  %v7202_v41 = vsel %vm309_vm2, %v22798_v21, 0.0  ;;  %v22815_v57 = vpop.permute.xlu0 %7859 }
0x1639   :  { %v22804_v43 = vpop.eup %21144 }
0x163a   :  { %v22800_v22 = vpop.permute.xlu1 %7865  ;;  %v7208_v46 = vsel %vm309_vm2, %v22804_v43, 0.0  ;;  %v22819_v1 = vpop.eup %21146 }
0x163b   :  { %7203 = vadd.xlane.f32.xlu0 %v7202_v41  ;;  %v22817_v61 = vpop.permute.xlu0 %7863  ;;  %v7205_v5 = vsel %vm309_vm2, %v22819_v1, 0.0 }
0x163d   :  { %v22823_v6 = vpop.eup %21148 }
0x163e   :  { %v6503_v16 = vpop.permute.xlu1 %6502  ;;  %v7211_v45 = vsel %vm309_vm2, %v22823_v6, 0.0 }
0x163f   :  { %7209 = vadd.xlane.f32.xlu0 %v7208_v46  ;;  %19918 = vmatpush3.msra.mxu0 %v6503_v16  ;;  %v6506_v2 = vpop.permute.xlu0 %6505 }
0x1640   :  { %19927 = vmatprep.subr.mxu0 %v21431_v0 }
0x1642   :  { %v6509_v7 = vpop.permute.xlu1 %6508 }
0x1643   :  { %v6515_v4 = vpop.permute.xlu0 %6514 }
0x1644   :  { %7889 = vrot.lane.b32.xlu1 %v22744_v48, %s21440_s20 }
0x1646   :  { %v6512_v51 = vpop.permute.xlu1 %6511 }
0x1647   :  { %v6521_v56 = vpop.permute.xlu0 %6520 }
0x1668   :  { %7206 = vadd.xlane.f32.xlu1 %v7205_v5 }
0x166c   :  { %7212 = vadd.xlane.f32.xlu1 %v7211_v45 }
0x1677   :  { %v7195_v33 = vpop.xlane.xlu0 %7194  ;;  %v7168_v23 = vpop.xlane.xlu1 %7167 }
0x1678   :  { %21150 = vrcp.f32 %v7195_v33  ;;  %v7176_v54 = vsub.f32 %v22776_v62, %v7168_v23  ;;  %v8498_v62 = vsel %vm8497_vm11, 1, %v21454_v25 }
0x167a   :  { %v7191_v13 = vmul.f32 1.442695, %v7176_v54 }
0x167b   :  { %v6518_v25 = vpop.permute.xlu1 %6517 }
0x167c   :  { %21152 = vpow2.f32 %v7191_v13 }
0x167d   :  { %8041 = vrot.lane.b32.xlu1 %v22784_v9, %s21440_s20 }
0x1681   :  { %8193 = vrot.lane.b32.xlu1 %v22815_v57, %s21440_s20 }
0x1682   :  { %v21151_v42 = vpop.eup %21150 }
0x1683   :  { %v7225_v18 = vmul.f32 %v21151_v42, %v22772_v55 }
0x1685   :  { %19915 = vmatmul.mubr.msk.f32.vlgmr.msra.gmra.mrb[94].mxu1 %vm309_vm2, %v7225_v18  ;;  %8345 = vrot.lane.b32.xlu1 %v22817_v61, %s21440_s20 }
0x1686   :  { %v22837_v63 = vpop.eup %21152  ;;  %19923 = vmatpush3.msra.mxu1 %v6506_v2  ;;  %19924 = vmatprep.mubr.msk.f32.mxu1 %vm21435_vm1, %v21431_v0 }
0x1687   :  { %v7214_v10 = vsel %vm309_vm2, %v22837_v63, 0.0  ;;  %19932 = vmatprep.subr.mxu1 %v21431_v0 }
0x1688   :  { %7215 = vadd.xlane.f32.xlu0 %v7214_v10 }
0x1689   :  { %8500 = vperm.xlu1 %20994, %v8498_v62  }
0x168d   :  { %7868 = vrot.lane.b32.xlu1 %v22847_v58, %s21434_s15 }
0x169e   :  { %7965 = vrot.lane.b32.xlu0 %v22812_v59, %s21440_s20 }
0x16a2   :  { %8117 = vrot.lane.b32.xlu0 %v22788_v19, %s21440_s20 }
0x16a6   :  { %8269 = vrot.lane.b32.xlu0 %v22794_v40, %s21440_s20 }
0x16aa   :  { %8421 = vrot.lane.b32.xlu0 %v22800_v22, %s21440_s20 }
0x16c0   :  { %v7198_v55 = vpop.xlane.xlu1 %7197 }
0x16c1   :  { %21154 = vrcp.f32 %v7198_v55 }
0x16c4   :  { %v7201_v12 = vpop.xlane.xlu0 %7200 }
0x16c5   :  { %21156 = vrcp.f32 %v7201_v12 }
0x16c8   :  { %v7204_v28 = vpop.xlane.xlu0 %7203 }
0x16c9   :  { %21158 = vrcp.f32 %v7204_v28 }
0x16cb   :  { %v21155_v11 = vpop.eup %21154 }
0x16cc   :  { %v7210_v14 = vpop.xlane.xlu0 %7209  ;;  %v7226_v15 = vmul.f32 %v21155_v11, %v22786_v38 }
0x16cd   :  { %21160 = vrcp.f32 %v7210_v14 }
0x16ce   :  { %19920 = vmatmul.mubr.msk.f32.vlgmr.msra.gmra.mrb[78].mxu0 %vm309_vm2, %v7226_v15 }
0x16cf   :  { %v21157_v20 = vpop.eup %21156  ;;  %19928 = vmatpush3.msra.mxu0 %v6509_v7  ;;  %19929 = vmatprep.mubr.msk.f32.mxu0 %vm21435_vm1, %v21431_v0 }
0x16d0   :  { %v7227_v17 = vmul.f32 %v21157_v20, %v22792_v3  ;;  %19937 = vmatprep.subr.mxu0 %v21431_v0  ;;  %v7890_v3 = vpop.permute.xlu1 %7889 }
0x16d2   :  { %19925 = vmatmul.mubr.msk.f32.vlgmr.msra.gmra.mrb[96].mxu1 %vm309_vm2, %v7227_v17 }
0x16d3   :  { %v21159_v34 = vpop.eup %21158  ;;  %19933 = vmatpush3.msra.mxu1 %v6512_v51  ;;  %19934 = vmatprep.mubr.msk.f32.mxu1 %vm21435_vm1, %v21431_v0 }
0x16d4   :  { %v7228_v36 = vmul.f32 %v21159_v34, %v22798_v21  ;;  %19942 = vmatprep.subr.mxu1 %v21431_v0 }
0x16d6   :  { %19930 = vmatmul.mubr.msk.f32.vlgmr.msra.gmra.mrb[80].mxu0 %vm309_vm2, %v7228_v36 }
0x16d7   :  { %v21161_v38 = vpop.eup %21160  ;;  %19938 = vmatpush3.msra.mxu0 %v6515_v4  ;;  %19939 = vmatprep.mubr.msk.f32.mxu0 %vm21435_vm1, %v21431_v0 }
0x16d8   :  { %19947 = vmatprep.subr.mxu0 %v21431_v0  ;;  %v7230_v37 = vmul.f32 %v21161_v38, %v22804_v43 }
0x16da   :  { %19940 = vmatmul.mubr.msk.f32.vlgmr.msra.gmra.mrb[82].mxu0 %vm309_vm2, %v7230_v37 }
0x16db   :  { %19948 = vmatpush3.msra.mxu0 %v6521_v56  ;;  %19949 = vmatprep.mubr.msk.f32.mxu0 %vm21435_vm1, %v21431_v0 }
0x16dc   :  { %19957 = vmatprep.subr.mxu0 %v21431_v0 }
0x16f5   :  { %v7207_v35 = vpop.xlane.xlu1 %7206 }
0x16f6   :  { %21162 = vrcp.f32 %v7207_v35 }
0x16f9   :  { %v7213_v21 = vpop.xlane.xlu1 %7212 }
0x16fa   :  { %21164 = vrcp.f32 %v7213_v21 }
0x16fd   :  { %v8042_v47 = vpop.permute.xlu1 %8041 }
0x1700   :  { %v21163_v41 = vpop.eup %21162 }
0x1701   :  { %v7229_v16 = vmul.f32 %v21163_v41, %v22819_v1  ;;  %v8194_v49 = vpop.permute.xlu1 %8193 }
0x1703   :  { %19935 = vmatmul.mubr.msk.f32.vlgmr.msra.gmra.mrb[98].mxu1 %vm309_vm2, %v7229_v16 }
0x1704   :  { %v21165_v46 = vpop.eup %21164  ;;  %19943 = vmatpush3.msra.mxu1 %v6518_v25  ;;  %19944 = vmatprep.mubr.msk.f32.mxu1 %vm21435_vm1, %v21431_v0 }
0x1705   :  { %v7231_v43 = vmul.f32 %v21165_v46, %v22823_v6  ;;  %19952 = vmatprep.subr.mxu1 %v21431_v0 }
0x1707   :  { %19945 = vmatmul.mubr.msk.f32.vlgmr.msra.gmra.mrb[100].mxu1 %vm309_vm2, %v7231_v43 }
0x1708   :  { %19954 = vmatprep.mubr.msk.f32.mxu1 %vm21435_vm1, %v21431_v0 }
0x170b   :  { %19953 = vmatpush3.xpose.msk.msra.mxu1 %vm309_vm2, %v7890_v3 }
0x170c   :  { %19962 = vmatprep.subr.mxu1 %v21431_v0 }
0x170e   :  { %19955 = vmatmul.mubr.msk.f32.vlgmr.msra.gmra.mrb[102].mxu1 %vm309_vm2, %v22744_v48  ;;  %v8346_v48 = vpop.permute.xlu1 %8345 }
0x170f   :  { %19963 = vmatpush3.xpose.msk.msra.mxu1 %vm309_vm2, %v8042_v47  ;;  %19964 = vmatprep.mubr.msk.f32.mxu1 %vm21435_vm1, %v21431_v0 }
0x1710   :  { %19972 = vmatprep.subr.mxu1 %v21431_v0 }
0x1712   :  { %19965 = vmatmul.mubr.msk.f32.vlgmr.msra.gmra.mrb[104].mxu1 %vm309_vm2, %v22784_v9 }
0x1713   :  { %19973 = vmatpush3.xpose.msk.msra.mxu1 %vm309_vm2, %v8194_v49  ;;  %19974 = vmatprep.mubr.msk.f32.mxu1 %vm21435_vm1, %v21431_v0 }
0x1714   :  { %19982 = vmatprep.subr.mxu1 %v21431_v0 }
0x1715   :  { %v7216_v32 = vpop.xlane.xlu0 %7215 }
0x1716   :  { %21166 = vrcp.f32 %v7216_v32  ;;  %19975 = vmatmul.mubr.msk.f32.vlgmr.msra.gmra.mrb[106].mxu1 %vm309_vm2, %v22815_v57 }
0x1717   :  { %19983 = vmatpush3.xpose.msk.msra.mxu1 %vm309_vm2, %v8346_v48  ;;  %19984 = vmatprep.mubr.msk.f32.mxu1 %vm21435_vm1, %v21431_v0 }
0x1718   :  { %19992 = vmatprep.subr.mxu1 %v21431_v0 }
0x1719   :  { %v7966_v9 = vpop.permute.xlu0 %7965 }
0x171a   :  { %19985 = vmatmul.mubr.msk.f32.vlgmr.msra.gmra.mrb[108].mxu1 %vm309_vm2, %v22817_v61  ;;  %v22931_v61 = vpop.permute.xlu1 %8500 }
0x171b   :  { %19993 = vmatpush3.msra.mxu1 %v22847_v58  ;;  %19994 = vmatprep.mubr.msk.f32.mxu1 %vm21435_vm1, %v21431_v0  ;;  %vm8502_vm12 = vcmp.eq.s32.totalorder %v22931_v61, 1 }
0x171c   :  { %20002 = vmatprep.subr.mxu1 %v21431_v0 }
0x171d   :  { %v8118_v60 = vpop.permute.xlu0 %8117 }
0x1720   :  { %v21167_v44 = vpop.eup %21166 }
0x1721   :  { %v7232_v53 = vmul.f32 %v21167_v44, %v22837_v63  ;;  %v8270_v57 = vpop.permute.xlu0 %8269 }
0x1723   :  { %19950 = vmatmul.mubr.msk.f32.vlgmr.msra.gmra.mrb[84].mxu0 %vm309_vm2, %v7232_v53 }
0x1724   :  { %19958 = vmatpush3.xpose.msk.msra.mxu0 %vm309_vm2, %v7966_v9  ;;  %19959 = vmatprep.mubr.msk.f32.mxu0 %vm21435_vm1, %v21431_v0 }
0x1725   :  { %19967 = vmatprep.subr.mxu0 %v21431_v0 }
0x1727   :  { %19960 = vmatmul.mubr.msk.f32.vlgmr.msra.gmra.mrb[86].mxu0 %vm309_vm2, %v22812_v59  ;;  %v8422_v59 = vpop.permute.xlu0 %8421 }
0x1728   :  { %19968 = vmatpush3.xpose.msk.msra.mxu0 %vm309_vm2, %v8118_v60  ;;  %19969 = vmatprep.mubr.msk.f32.mxu0 %vm21435_vm1, %v21431_v0 }
0x1729   :  { %19977 = vmatprep.subr.mxu0 %v21431_v0 }
0x172b   :  { %19970 = vmatmul.mubr.msk.f32.vlgmr.msra.gmra.mrb[88].mxu0 %vm309_vm2, %v22788_v19  ;;  %v7869_v19 = vpop.permute.xlu1 %7868 }
0x172c   :  { %19978 = vmatpush3.xpose.msk.msra.mxu0 %vm309_vm2, %v8270_v57  ;;  %19979 = vmatprep.mubr.msk.f32.mxu0 %vm21435_vm1, %v21431_v0 }
0x172d   :  { %19987 = vmatprep.subr.mxu0 %v21431_v0 }
0x172f   :  { %19980 = vmatmul.mubr.msk.f32.vlgmr.msra.gmra.mrb[90].mxu0 %vm309_vm2, %v22794_v40 }
0x1730   :  { %19988 = vmatpush3.xpose.msk.msra.mxu0 %vm309_vm2, %v8422_v59  ;;  %19989 = vmatprep.mubr.msk.f32.mxu0 %vm21435_vm1, %v21431_v0 }
0x1731   :  { %19997 = vmatprep.subr.mxu0 %v21431_v0 }
0x1733   :  { %19990 = vmatmul.mubr.msk.f32.vlgmr.msra.gmra.mrb[92].mxu0 %vm309_vm2, %v22800_v22 }
0x1734   :  { %19998 = vmatpush3.msra.mxu0 %v7869_v19  ;;  %19999 = vmatprep.mubr.msk.f32.mxu0 %vm21435_vm1, %v21431_v0 }
0x1735   :  { %20007 = vmatprep.subr.mxu0 %v21431_v0 }
0x1758   :  { %v22945_v1 = vpop.f32.mrb[94].mxu1 }
0x1759   :  { %v19916_v40 = vpop.f32.mrb[95].mxu1 }
0x17a1   :  { %v22947_v2 = vpop.f32.mrb[78].mxu0 }
0x17a2   :  { %v19921_v5 = vpop.f32.mrb[79].mxu0 }
0x17a5   :  { %v22949_v6 = vpop.f32.mrb[96].mxu1 }
0x17a6   :  { %v19926_v45 = vpop.f32.mrb[97].mxu1 }
0x17a9   :  { %v22951_v4 = vpop.f32.mrb[80].mxu0 }
0x17aa   :  { %v19931_v7 = vpop.f32.mrb[81].mxu0 }
0x17ad   :  { %v22953_v56 = vpop.f32.mrb[82].mxu0 }
0x17ae   :  { %v19941_v22 = vpop.f32.mrb[83].mxu0 }
0x17d6   :  { %v22955_v51 = vpop.f32.mrb[98].mxu1 }
0x17d7   :  { %v19936_v33 = vpop.f32.mrb[99].mxu1 }
0x17da   :  { %v22957_v23 = vpop.f32.mrb[100].mxu1 }
0x17db   :  { %v19946_v54 = vpop.f32.mrb[101].mxu1 }
0x17e1   :  { %v7961_v13 = vpop.f32.mrb[102].mxu1 }
0x17e2   :  { %v8503_v42 = vsel %vm8502_vm12, 0.0, %v7961_v13  ;;  %v19956_v18 = vpop.f32.mrb[103].mxu1 }
0x17e3   :  { %v8511_v63 = vsel %vm309_vm2, %v8503_v42, -inf }
0x17e4   :  { %8512 = vmax.xlane.f32.xlu0 %v8511_v63 }
0x17e5   :  { %v8113_v62 = vpop.f32.mrb[104].mxu1 }
0x17e6   :  { %v8505_v10 = vsel %vm8502_vm12, 0.0, %v8113_v62  ;;  %v19966_v25 = vpop.f32.mrb[105].mxu1 }
0x17e7   :  { %v8517_v55 = vsel %vm309_vm2, %v8505_v10, -inf }
0x17e8   :  { %8518 = vmax.xlane.f32.xlu0 %v8517_v55 }
0x17e9   :  { %v8265_v12 = vpop.f32.mrb[106].mxu1 }
0x17ea   :  { %v19976_v28 = vpop.f32.mrb[107].mxu1  ;;  %v8507_v37 = vsel %vm8502_vm12, 0.0, %v8265_v12 }
0x17eb   :  { %v8523_v41 = vsel %vm309_vm2, %v8507_v37, -inf }
0x17ed   :  { %v8417_v11 = vpop.f32.mrb[108].mxu1 }
0x17ee   :  { %v19986_v14 = vpop.f32.mrb[109].mxu1  ;;  %v8509_v46 = vsel %vm8502_vm12, 0.0, %v8417_v11 }
0x17ef   :  { %v8529_v32 = vsel %vm309_vm2, %v8509_v46, -inf }
0x17f6   :  { %v22966_v15 = vpop.f32.mrb[84].mxu0 }
0x17f7   :  { %v19951_v20 = vpop.f32.mrb[85].mxu0 }
0x17fa   :  { %v8037_v17 = vpop.f32.mrb[86].mxu0 }
0x17fb   :  { %v8504_v34 = vsel %vm8502_vm12, 0.0, %v8037_v17  ;;  %v19961_v36 = vpop.f32.mrb[87].mxu0 }
0x17fc   :  { %v8514_v38 = vsel %vm309_vm2, %v8504_v34, -inf }
0x17fd   :  { %8515 = vmax.xlane.f32.xlu1 %v8514_v38 }
0x17fe   :  { %v8189_v3 = vpop.f32.mrb[88].mxu0 }
0x17ff   :  { %v8506_v35 = vsel %vm8502_vm12, 0.0, %v8189_v3  ;;  %v19971_v21 = vpop.f32.mrb[89].mxu0 }
0x1800   :  { %v8520_v16 = vsel %vm309_vm2, %v8506_v35, -inf }
0x1801   :  { %8524 = vmax.xlane.f32.xlu1 %v8523_v41  ;;  %8521 = vmax.xlane.f32.xlu0 %v8520_v16 }
0x1802   :  { %v8341_v43 = vpop.f32.mrb[90].mxu0 }
0x1803   :  { %v8508_v47 = vsel %vm8502_vm12, 0.0, %v8341_v43  ;;  %v19981_v49 = vpop.f32.mrb[91].mxu0 }
0x1804   :  { %v8526_v48 = vsel %vm309_vm2, %v8508_v47, -inf }
0x1805   :  { %8530 = vmax.xlane.f32.xlu1 %v8529_v32  ;;  %8527 = vmax.xlane.f32.xlu0 %v8526_v48 }
0x1806   :  { %v8493_v9 = vpop.f32.mrb[92].mxu0 }
0x1807   :  { %v8510_v44 = vsel %vm8502_vm12, 0.0, %v8493_v9  ;;  %v19991_v53 = vpop.f32.mrb[93].mxu0 }
0x1808   :  { %v8532_v60 = vsel %vm309_vm2, %v8510_v44, -inf }
0x1809   :  { %8533 = vmax.xlane.f32.xlu0 %v8532_v60 }
0x1816   :  { %7874 = vrot.lane.b32.xlu1 %v22847_v58, %s21433_s14 }
0x181a   :  { %7877 = vrot.lane.b32.xlu1 %v22847_v58, %s21436_s16 }
0x181f   :  { %7871 = vrot.lane.b32.xlu0 %v22847_v58, %s21437_s17 }
0x1871   :  { %v8513_v57 = vpop.xlane.xlu0 %8512 }
0x1872   :  { %v8535_v59 = vsub.f32 %v8503_v42, %v8513_v57 }
0x1874   :  { %v8543_v19 = vmul.f32 1.442695, %v8535_v59 }
0x1875   :  { %v8519_v40 = vpop.xlane.xlu0 %8518 }
0x1876   :  { %21168 = vpow2.f32 %v8543_v19  ;;  %v8537_v5 = vsub.f32 %v8505_v10, %v8519_v40 }
0x1878   :  { %v8547_v45 = vmul.f32 1.442695, %v8537_v5 }
0x187a   :  { %21170 = vpow2.f32 %v8547_v45 }
0x1880   :  { %v22992_v7 = vpop.eup %21168 }
0x1881   :  { %v8559_v22 = vsel %vm309_vm2, %v22992_v7, 0.0 }
0x1882   :  { %8560 = vadd.xlane.f32.xlu1 %v8559_v22 }
0x1884   :  { %v22996_v33 = vpop.eup %21170 }
0x1885   :  { %v8565_v54 = vsel %vm309_vm2, %v22996_v33, 0.0 }
0x1886   :  { %8566 = vadd.xlane.f32.xlu1 %v8565_v54 }
0x188a   :  { %v8516_v13 = vpop.xlane.xlu1 %8515 }
0x188b   :  { %v8536_v42 = vsub.f32 %v8504_v34, %v8516_v13 }
0x188d   :  { %v8545_v18 = vmul.f32 1.442695, %v8536_v42 }
0x188e   :  { %v8525_v63 = vpop.xlane.xlu1 %8524  ;;  %v8522_v62 = vpop.xlane.xlu0 %8521 }
0x188f   :  { %21172 = vpow2.f32 %v8545_v18  ;;  %v8539_v10 = vsub.f32 %v8507_v37, %v8525_v63  ;;  %v8538_v25 = vsub.f32 %v8506_v35, %v8522_v62 }
0x1891   :  { %v8551_v55 = vmul.f32 1.442695, %v8539_v10  ;;  %v8549_v12 = vmul.f32 1.442695, %v8538_v25 }
0x1892   :  { %v8531_v28 = vpop.xlane.xlu1 %8530  ;;  %v8528_v11 = vpop.xlane.xlu0 %8527 }
0x1893   :  { %21174 = vpow2.f32 %v8551_v55  ;;  %v8541_v14 = vsub.f32 %v8509_v46, %v8531_v28  ;;  %v8540_v20 = vsub.f32 %v8508_v47, %v8528_v11 }
0x1894   :  { %21176 = vpow2.f32 %v8549_v12 }
0x1895   :  { %v8555_v17 = vmul.f32 1.442695, %v8541_v14  ;;  %v8553_v36 = vmul.f32 1.442695, %v8540_v20 }
0x1896   :  { %v8534_v38 = vpop.xlane.xlu0 %8533 }
0x1897   :  { %21178 = vpow2.f32 %v8555_v17  ;;  %v8542_v3 = vsub.f32 %v8510_v44, %v8534_v38  ;;  %v18748_v44 = vld [vmem:[%s18619_s7] ss:$0 sm:$0xff]  ;;  %s21479_s7 = smov 36  }
0x1898   :  { %21180 = vpow2.f32 %v8553_v36  ;;  %v23034_v53 = vadd.f32 %v22664_v24, %v18748_v44  ;;  %v23037_v60 = vadd.f32 %v22649_v8, %v18748_v44 }
0x1899   :  { %v23000_v34 = vpop.eup %21172  ;;  %v8557_v21 = vmul.f32 1.442695, %v8542_v3 }
0x189a   :  { %v8562_v37 = vsel %vm309_vm2, %v23000_v34, 0.0  ;;  %v6336_v57 = vsel %vm186_vm0, %v23034_v53, 0.0  ;;  %v6333_v59 = vsel %vm186_vm0, %v23037_v60, 0.0  ;;  %v7872_v45 = vpop.permute.xlu0 %7871 }
0x189b   :  { %21182 = vpow2.f32 %v8557_v21  ;;  %8563 = vadd.xlane.f32.xlu0 %v8562_v37 }
0x189d   :  { %v23004_v35 = vpop.eup %21174 }
0x189e   :  { %v23006_v41 = vpop.eup %21176  ;;  %v8571_v16 = vsel %vm309_vm2, %v23004_v35, 0.0 }
0x189f   :  { %8572 = vadd.xlane.f32.xlu1 %v8571_v16  ;;  %v8568_v46 = vsel %vm309_vm2, %v23006_v41, 0.0 }
0x18a0   :  { %8569 = vadd.xlane.f32.xlu0 %v8568_v46 }
0x18a1   :  { %v23012_v43 = vpop.eup %21178 }
0x18a2   :  { %v23014_v47 = vpop.eup %21180  ;;  %v8577_v49 = vsel %vm309_vm2, %v23012_v43, 0.0 }
0x18a3   :  { %8578 = vadd.xlane.f32.xlu1 %v8577_v49  ;;  %v8574_v32 = vsel %vm309_vm2, %v23014_v47, 0.0 }
0x18a4   :  { %8575 = vadd.xlane.f32.xlu0 %v8574_v32 }
0x18a5   :  { %v23020_v48 = vpop.eup %21182 }
0x18a6   :  { %v8580_v9 = vsel %vm309_vm2, %v23020_v48, 0.0 }
0x18a8   :  { %8581 = vadd.xlane.f32.xlu0 %v8580_v9  ;;  %v9245_v9 = vld [vmem:[%s18622_s13 + $0x8] sm:$0xff] }
0x18b4   :  { %7883 = vrot.lane.b32.xlu1 %v22847_v58, %s21438_s18 }
0x18b8   :  { %7886 = vrot.lane.b32.xlu1 %v22847_v58, %s21441_s21 }
0x18be   :  { %7880 = vrot.lane.b32.xlu0 %v22847_v58, %s21439_s19  ;;  %v7875_v58 = vpop.permute.xlu1 %7874 }
0x18c2   :  { %v7878_v19 = vpop.permute.xlu1 %7877 }
0x18dc   :  { %6337 = vadd.xlane.f32.xlu1 %v6336_v57 }
0x18dd   :  { %6334 = vadd.xlane.f32.xlu0 %v6333_v59  ;;  %v9248_v59 = vld [vmem:[%s18622_s13 + $0x20] sm:$0xff] }
0x18ed   :  { %7822 = vrot.lane.b32.xlu1 %v22949_v6, %s21442_s22 }
0x190f   :  { %v8561_v40 = vpop.xlane.xlu1 %8560 }
0x1910   :  { %21184 = vrcp.f32 %v8561_v40  ;;  %v9250_v40 = vld [vmem:[%s18622_s13 + $0x30] sm:$0xff] }
0x1913   :  { %v8567_v24 = vpop.xlane.xlu1 %8566 }
0x1914   :  { %21186 = vrcp.f32 %v8567_v24  ;;  %v9251_v24 = vld [vmem:[%s18622_s13 + $0x38] sm:$0xff] }
0x191a   :  { %v21185_v5 = vpop.eup %21184 }
0x191b   :  { %v8591_v8 = vmul.f32 %v21185_v5, %v22992_v7  ;;  %v20763_v5 = vpack.c.bf16 %v9251_v24, %v9250_v40 }
0x191d   :  { %19995 = vmatmul.mubr.msk.f32.vlgmr.msra.gmra.mrb[110].mxu1 %vm309_vm2, %v8591_v8 }
0x191e   :  { %v21187_v22 = vpop.eup %21186  ;;  %20003 = vmatpush3.msra.mxu1 %v7872_v45  ;;  %20004 = vmatprep.mubr.msk.f32.mxu1 %vm21435_vm1, %v21431_v0 }
0x191f   :  { %20012 = vmatprep.subr.mxu1 %v21431_v0  ;;  %v8593_v6 = vmul.f32 %v21187_v22, %v22996_v33 }
0x1921   :  { %20005 = vmatmul.mubr.msk.f32.vlgmr.msra.gmra.mrb[112].mxu1 %vm309_vm2, %v8593_v6 }
0x1922   :  { %20013 = vmatpush3.msra.mxu1 %v7878_v19  ;;  %20014 = vmatprep.mubr.msk.f32.mxu1 %vm21435_vm1, %v21431_v0 }
0x1923   :  { %20022 = vmatprep.subr.mxu1 %v21431_v0 }
0x1928   :  { %v8564_v7 = vpop.xlane.xlu0 %8563 }
0x1929   :  { %21188 = vrcp.f32 %v8564_v7 }
0x192c   :  { %v8573_v54 = vpop.xlane.xlu1 %8572 }
0x192d   :  { %21190 = vrcp.f32 %v8573_v54  ;;  %v8570_v13 = vpop.xlane.xlu0 %8569 }
0x192e   :  { %21192 = vrcp.f32 %v8570_v13 }
0x1930   :  { %v8579_v42 = vpop.xlane.xlu1 %8578 }
0x1931   :  { %21194 = vrcp.f32 %v8579_v42  ;;  %v8576_v18 = vpop.xlane.xlu0 %8575 }
0x1932   :  { %21196 = vrcp.f32 %v8576_v18 }
0x1933   :  { %v21189_v63 = vpop.eup %21188 }
0x1934   :  { %v8592_v33 = vmul.f32 %v21189_v63, %v23000_v34  ;;  %v7884_v12 = vpop.permute.xlu1 %7883 }
0x1935   :  { %v8582_v62 = vpop.xlane.xlu0 %8581 }
0x1936   :  { %21198 = vrcp.f32 %v8582_v62  ;;  %20000 = vmatmul.mubr.msk.f32.vlgmr.msra.gmra.mrb[94].mxu0 %vm309_vm2, %v8592_v33 }
0x1937   :  { %v21191_v10 = vpop.eup %21190  ;;  %20008 = vmatpush3.msra.mxu0 %v7875_v58  ;;  %20009 = vmatprep.mubr.msk.f32.mxu0 %vm21435_vm1, %v21431_v0  ;;  %v9249_v58 = vld [vmem:[%s18622_s13 + $0x28] sm:$0xff] }
0x1938   :  { %v21193_v25 = vpop.eup %21192  ;;  %20017 = vmatprep.subr.mxu0 %v21431_v0  ;;  %v8595_v55 = vmul.f32 %v21191_v10, %v23004_v35  ;;  %v7887_v38 = vpop.permute.xlu1 %7886  ;;  %v20759_v19 = vpack.c.bf16 %v9249_v58, %v9248_v59 }
0x1939   :  { %v7881_v28 = vpop.permute.xlu0 %7880  ;;  %v8594_v11 = vmul.f32 %v21193_v25, %v23006_v41 }
0x193a   :  { %20015 = vmatmul.mubr.msk.f32.vlgmr.msra.gmra.mrb[114].mxu1 %vm309_vm2, %v8595_v55 }
0x193b   :  { %v21195_v14 = vpop.eup %21194  ;;  %20010 = vmatmul.mubr.msk.f32.vlgmr.msra.gmra.mrb[96].mxu0 %vm309_vm2, %v8594_v11  ;;  %20023 = vmatpush3.msra.mxu1 %v7884_v12 }
0x193c   :  { %v21197_v20 = vpop.eup %21196  ;;  %20018 = vmatpush3.msra.mxu0 %v7881_v28  ;;  %20019 = vmatprep.mubr.msk.f32.mxu0 %vm21435_vm1, %v21431_v0  ;;  %v8597_v17 = vmul.f32 %v21195_v14, %v23012_v43 }
0x193d   :  { %20024 = vmatprep.mubr.msk.f32.mxu1 %vm21435_vm1, %v21431_v0  ;;  %20027 = vmatprep.subr.mxu0 %v21431_v0  ;;  %v8596_v36 = vmul.f32 %v21197_v20, %v23014_v47 }
0x193e   :  { %20025 = vmatmul.mubr.msk.f32.vlgmr.msra.gmra.mrb[116].mxu1 %vm309_vm2, %v8597_v17 }
0x193f   :  { %20020 = vmatmul.mubr.msk.f32.vlgmr.msra.gmra.mrb[98].mxu0 %vm309_vm2, %v8596_v36 }
0x1940   :  { %v21199_v3 = vpop.eup %21198  ;;  %20028 = vmatpush3.msra.mxu0 %v7887_v38  ;;  %20029 = vmatprep.mubr.msk.f32.mxu0 %vm21435_vm1, %v21431_v0 }
0x1941   :  { %v8598_v34 = vmul.f32 %v21199_v3, %v23020_v48  ;;  %v9244_v48 = vld [vmem:[%s18622_s13] sm:$0xff] }
0x1942   :  { %v20751_v44 = vpack.c.bf16 %v9245_v9, %v9244_v48 }
0x1943   :  { %20030 = vmatmul.mubr.msk.f32.vlgmr.msra.gmra.mrb[100].mxu0 %vm309_vm2, %v8598_v34 }
0x1944   :  { %20752 = vmatprep.subr.bf16.mxu1 %v20751_v44 }
0x1945   :  { %20754 = vmatpush3.bf16.msra.mxu1 %v20751_v44 }
0x1969   :  { %v6338_v21 = vpop.xlane.xlu1 %6337 }
0x196a   :  { %v6335_v37 = vpop.xlane.xlu0 %6334  ;;  %v6340_v35 = vmul.f32 0.015625, %v6338_v21 }
0x196b   :  { %v6339_v41 = vmul.f32 0.015625, %v6335_v37 }
0x196c   :  { %v6342_v46 = vsub.f32 %v23034_v53, %v6340_v35  ;;  %v9247_v53 = vld [vmem:[%s18622_s13 + $0x18] sm:$0xff] }
0x196d   :  { %v6341_v16 = vsub.f32 %v23037_v60, %v6339_v41  ;;  %v9246_v60 = vld [vmem:[%s18622_s13 + $0x10] sm:$0xff]  ;;  %v7823_v34 = vpop.permute.xlu1 %7822  ;;  %s21480_s13 = smov 37  }
0x196e   :  { %v6344_v49 = vmul.f32 %v6342_v46, %v6342_v46  ;;  %v20755_v57 = vpack.c.bf16 %v9247_v53, %v9246_v60 }
0x196f   :  { %v6343_v43 = vmul.f32 %v6341_v16, %v6341_v16 }
0x1970   :  { %v6348_v32 = vsel %vm186_vm0, %v6344_v49, 0.0  ;;  %20756 = vmatprep.subr.bf16.mxu1 %v20755_v57 }
0x1971   :  { %v6345_v47 = vsel %vm186_vm0, %v6343_v43, 0.0  ;;  %20758 = vmatpush3.bf16.msra.mxu1 %v20755_v57 }
0x1972   :  { %6346 = vadd.xlane.f32.xlu0 %v6345_v47  ;;  %20760 = vmatprep.subr.bf16.mxu1 %v20759_v19 }
0x1975   :  { %20762 = vmatpush3.bf16.msra.mxu1 %v20759_v19 }
0x1976   :  { %6349 = vadd.xlane.f32.xlu0 %v6348_v32  ;;  %20764 = vmatprep.subr.bf16.mxu1 %v20763_v5 }
0x1979   :  { %20766 = vmatpush3.bf16.msra.mxu1 %v20763_v5 }
0x197a   :  { %20070 = vmatprep.subr.mxu1 %v21431_v0 }
0x198c   :  { %7818 = vrot.lane.b32.xlu0 %v22947_v2, %s21445_s25 }
0x1990   :  { %7826 = vrot.lane.b32.xlu0 %v22951_v4, %s21443_s23 }
0x1994   :  { %7830 = vrot.lane.b32.xlu0 %v22955_v51, %s21447_s27 }
0x1998   :  { %7834 = vrot.lane.b32.xlu0 %v22953_v56, %s21444_s24 }
0x199c   :  { %7838 = vrot.lane.b32.xlu0 %v22957_v23, %s21448_s28 }
0x19a0   :  { %7842 = vrot.lane.b32.xlu0 %v22966_v15, %s21446_s26 }
0x19f0   :  { %v8668_v2 = vpop.f32.mrb[110].mxu1 }
0x19f1   :  { %v19996_v8 = vpop.f32.mrb[111].mxu1 }
0x19f4   :  { %v8814_v4 = vpop.f32.mrb[112].mxu1 }
0x19f5   :  { %v20006_v45 = vpop.f32.mrb[113].mxu1 }
0x19ff   :  { %v6347_v22 = vpop.xlane.xlu0 %6346 }
0x1a00   :  { %v6351_v6 = vmul.f32 0.015873017, %v6347_v22 }
0x1a02   :  { %21200 = vrsqrt.f32 %v6351_v6 }
0x1a03   :  { %v6350_v7 = vpop.xlane.xlu0 %6349 }
0x1a04   :  { %v6352_v51 = vmul.f32 0.015873017, %v6350_v7 }
0x1a06   :  { %21202 = vrsqrt.f32 %v6352_v51 }
0x1a07   :  { %v7819_v20 = vpop.permute.xlu0 %7818 }
0x1a08   :  { %v7845_v3 = vsel %vm309_vm2, %v22945_v1, %v7819_v20 }
0x1a09   :  { %v8741_v54 = vpop.f32.mrb[94].mxu0  ;;  %v7846_v21 = vsel %vm1617_vm3, %v7845_v3, %v7823_v34  ;;  %v9346_v34 = vld [vmem:[%s18624_s11 + $0x30] sm:$0xff] }
0x1a0a   :  { %v20001_v13 = vpop.f32.mrb[95].mxu0  ;;  %9184 = vrot.lane.b32.xlu1 %v8741_v54, %s21445_s25 }
0x1a0b   :  { %v7827_v17 = vpop.permute.xlu0 %7826 }
0x1a0c   :  { %v21201_v56 = vpop.eup %21200  ;;  %v7847_v37 = vsel %vm1619_vm4, %v7846_v21, %v7827_v17  ;;  %v9347_v21 = vld [vmem:[%s18624_s11 + $0x38] sm:$0xff] }
0x1a0d   :  { %v8960_v42 = vpop.f32.mrb[114].mxu1  ;;  %v6355_v23 = vmul.f32 %v21201_v56, %v6341_v16 }
0x1a0e   :  { %v8887_v18 = vpop.f32.mrb[96].mxu0  ;;  %v20016_v63 = vpop.f32.mrb[115].mxu1  ;;  %9188 = vrot.lane.b32.xlu1 %v8814_v4, %s21442_s22 }
0x1a0f   :  { %v20011_v15 = vpop.f32.mrb[97].mxu0  ;;  %v23100_v33 = vadd.f32 %v6355_v23, %v22568_v39 }
0x1a10   :  { %v21203_v62 = vpop.eup %21202  ;;  %v9340_v15 = vld [vmem:[%s18624_s11] sm:$0xff] }
0x1a11   :  { %v6356_v10 = vmul.f32 %v21203_v62, %v6342_v46  ;;  %20048 = vmatprep.mubr.msk.f32.mxu1 %vm186_vm0, %v23100_v33  ;;  %v9106_v25 = vpop.f32.mrb[116].mxu1  ;;  %v9341_v62 = vld [vmem:[%s18624_s11 + $0x8] sm:$0xff] }
0x1a12   :  { %v9033_v55 = vpop.f32.mrb[98].mxu0  ;;  %v20026_v12 = vpop.f32.mrb[117].mxu1  ;;  %9192 = vrot.lane.b32.xlu1 %v8887_v18, %s21443_s23 }
0x1a13   :  { %v20021_v28 = vpop.f32.mrb[99].mxu0  ;;  %v23106_v11 = vadd.f32 %v6356_v10, %v22594_v26  ;;  %v7831_v26 = vpop.permute.xlu0 %7830  ;;  %v9342_v10 = vld [vmem:[%s18624_s11 + $0x10] sm:$0xff] }
0x1a14   :  { %v7848_v35 = vsel %vm1621_vm5, %v7847_v37, %v7831_v26  ;;  %v9344_v26 = vld [vmem:[%s18624_s11 + $0x20] sm:$0xff]  ;;  %v20779_v37 = vpack.c.bf16 %v9347_v21, %v9346_v34 }
0x1a15   :  { %20049 = vmatmul.mubr.msk.f32.vlgmr.msra.gmra.mrb[118].mxu1 %vm186_vm0, %v23106_v11 }
0x1a16   :  { %v9179_v14 = vpop.f32.mrb[100].mxu0  ;;  %9196 = vrot.lane.b32.xlu1 %v8960_v42, %s21447_s27  ;;  %20072 = vmatprep.mubr.msk.f32.mxu1 %vm21435_vm1, %v21431_v0 }
0x1a17   :  { %v20031_v39 = vpop.f32.mrb[101].mxu0  ;;  %9208 = vrot.lane.b32.xlu0 %v9179_v14, %s21446_s26  ;;  %v7835_v36 = vpop.permute.xlu0 %7834 }
0x1a18   :  { %v7849_v16 = vsel %vm1623_vm6, %v7848_v35, %v7835_v36  ;;  %v9345_v36 = vld [vmem:[%s18624_s11 + $0x28] sm:$0xff] }
0x1a1a   :  { %9200 = vrot.lane.b32.xlu1 %v9033_v55, %s21444_s24  ;;  %v9343_v55 = vld [vmem:[%s18624_s11 + $0x18] sm:$0xff] }
0x1a1b   :  { %v7839_v38 = vpop.permute.xlu0 %7838  ;;  %v20771_v12 = vpack.c.bf16 %v9343_v55, %v9342_v10 }
0x1a1c   :  { %v7850_v46 = vsel %vm1625_vm7, %v7849_v16, %v7839_v38  ;;  %v20775_v38 = vpack.c.bf16 %v9345_v36, %v9344_v26 }
0x1a1e   :  { %9204 = vrot.lane.b32.xlu1 %v9106_v25, %s21448_s28  ;;  %v20767_v25 = vpack.c.bf16 %v9341_v62, %v9340_v15 }
0x1a1f   :  { %v7843_v41 = vpop.permute.xlu0 %7842 }
0x1a20   :  { %v7851_v43 = vsel %vm1627_vm8, %v7850_v46, %v7843_v41  ;;  %20768 = vmatprep.subr.bf16.mxu0 %v20767_v25 }
0x1a21   :  { %v9218_v47 = vsel %vm186_vm0, %v7851_v43, 0.0  ;;  %20770 = vmatpush3.bf16.msra.mxu0 %v20767_v25 }
0x1a22   :  { %20772 = vmatprep.subr.bf16.mxu0 %v20771_v12 }
0x1a25   :  { %20774 = vmatpush3.bf16.msra.mxu0 %v20771_v12 }
0x1a26   :  { %20776 = vmatprep.subr.bf16.mxu0 %v20775_v38 }
0x1a29   :  { %20778 = vmatpush3.bf16.msra.mxu0 %v20775_v38 }
0x1a2a   :  { %20780 = vmatprep.subr.bf16.mxu0 %v20779_v37 }
0x1a2d   :  { %20782 = vmatpush3.bf16.msra.mxu0 %v20779_v37 }
0x1a2e   :  { %20075 = vmatprep.subr.mxu0 %v21431_v0 }
0x1a42   :  { %9219 = vadd.xlane.f32.xlu1 %v9218_v47 }
0x1a7c   :  { %v9185_v49 = vpop.permute.xlu1 %9184 }
0x1a7d   :  { %v9211_v9 = vsel %vm309_vm2, %v8668_v2, %v9185_v49  ;;  %v18799_v2 = vld [vmem:[%s18623_s2] ss:$0 sm:$0xff] }
0x1a80   :  { %v9189_v32 = vpop.permute.xlu1 %9188 }
0x1a81   :  { %v9212_v60 = vsel %vm1617_vm3, %v9211_v9, %v9189_v32 }
0x1a84   :  { %v9193_v1 = vpop.permute.xlu1 %9192 }
0x1a85   :  { %v9213_v53 = vsel %vm1619_vm4, %v9212_v60, %v9193_v1 }
0x1a88   :  { %v9197_v48 = vpop.permute.xlu1 %9196 }
0x1a89   :  { %v9214_v57 = vsel %vm1621_vm5, %v9213_v53, %v9197_v48  ;;  %v9209_v19 = vpop.permute.xlu0 %9208 }
0x1a8c   :  { %v9201_v44 = vpop.permute.xlu1 %9200 }
0x1a8d   :  { %v9215_v59 = vsel %vm1623_vm6, %v9214_v57, %v9201_v44 }
0x1a90   :  { %v9205_v58 = vpop.permute.xlu1 %9204 }
0x1a91   :  { %v9216_v40 = vsel %vm1625_vm7, %v9215_v59, %v9205_v58 }
0x1a92   :  { %v9217_v24 = vsel %vm1627_vm8, %v9216_v40, %v9209_v19 }
0x1a93   :  { %v9221_v5 = vsel %vm186_vm0, %v9217_v24, 0.0 }
0x1a94   :  { %9222 = vadd.xlane.f32.xlu0 %v9221_v5 }
0x1acf   :  { %v9220_v6 = vpop.xlane.xlu1 %9219 }
0x1ad0   :  { %v9224_v7 = vmul.f32 0.015625, %v9220_v6 }
0x1ad2   :  { %v23154_v51 = vsub.f32 %v7851_v43, %v9224_v7 }
0x1ad4   :  { %v9228_v54 = vmul.f32 %v23154_v51, %v23154_v51 }
0x1ad6   :  { %v9230_v13 = vsel %vm186_vm0, %v9228_v54, 0.0 }
0x1ae8   :  { %v20050_v8 = vpop.f32.mrb[118].mxu1 }
0x1ae9   :  { %v23136_v4 = vadd.f32 %v20050_v8, %v18799_v2  ;;  %v9331_v45 = vpop.f32.mrb[119].mxu1 }
0x1aea   :  { %v23138_v22 = vadd.f32 %v18799_v2, %v9331_v45 }
0x1aec   :  { %9439 = vrot.lane.b32.xlu1 %v23138_v22, %s21437_s17  ;;  %9437 = vrot.lane.b32.xlu0 %v23138_v22, %s21434_s15 }
0x1af0   :  { %9441 = vrot.lane.b32.xlu1 %v23138_v22, %s21433_s14  ;;  %9443 = vrot.lane.b32.xlu0 %v23138_v22, %s21436_s16 }
0x1af4   :  { %9445 = vrot.lane.b32.xlu1 %v23138_v22, %s21439_s19  ;;  %9447 = vrot.lane.b32.xlu0 %v23138_v22, %s21438_s18 }
0x1af8   :  { %9449 = vrot.lane.b32.xlu1 %v23138_v22, %s21441_s21 }
0x1b13   :  { %9231 = vadd.xlane.f32.xlu0 %v9230_v13 }
0x1b21   :  { %v9223_v56 = vpop.xlane.xlu0 %9222 }
0x1b22   :  { %v9225_v28 = vmul.f32 0.015625, %v9223_v56 }
0x1b24   :  { %v9227_v14 = vsub.f32 %v9217_v24, %v9225_v28 }
0x1b26   :  { %v9229_v39 = vmul.f32 %v9227_v14, %v9227_v14 }
0x1b28   :  { %v9233_v20 = vsel %vm186_vm0, %v9229_v39, 0.0 }
0x1b29   :  { %9473 = vrot.lane.b32.xlu0 %v23138_v22, %s21440_s20 }
0x1b5e   :  { %v23161_v42 = vpop.permute.xlu0 %9437  ;;  %v9440_v23 = vpop.permute.xlu1 %9439 }
0x1b5f   :  { %9549 = vrot.lane.b32.xlu1 %v23161_v42, %s21440_s20  ;;  %9625 = vrot.lane.b32.xlu0 %v9440_v23, %s21440_s20 }
0x1b62   :  { %v23166_v18 = vpop.permute.xlu0 %9443  ;;  %v23182_v17 = vpop.permute.xlu1 %9441 }
0x1b63   :  { %9777 = vrot.lane.b32.xlu0 %v23166_v18, %s21440_s20 }
0x1b66   :  { %v23173_v63 = vpop.permute.xlu0 %9447  ;;  %v23186_v3 = vpop.permute.xlu1 %9445 }
0x1b67   :  { %9929 = vrot.lane.b32.xlu0 %v23173_v63, %s21440_s20 }
0x1b6a   :  { %v9450_v35 = vpop.permute.xlu1 %9449 }
0x1b6b   :  { %10799 = vrot.lane.b32.xlu0 %v23136_v4, %s21437_s17 }
0x1b6f   :  { %10805 = vrot.lane.b32.xlu0 %v23136_v4, %s21439_s19 }
0x1b83   :  { %9234 = vadd.xlane.f32.xlu1 %v9233_v20 }
0x1b94   :  { %9701 = vrot.lane.b32.xlu1 %v23182_v17, %s21440_s20 }
0x1b98   :  { %9853 = vrot.lane.b32.xlu1 %v23186_v3, %s21440_s20 }
0x1b9c   :  { %10005 = vrot.lane.b32.xlu1 %v9450_v35, %s21440_s20 }
0x1ba0   :  { %v9232_v41 = vpop.xlane.xlu0 %9231  ;;  %10797 = vrot.lane.b32.xlu1 %v23136_v4, %s21434_s15 }
0x1ba1   :  { %v9236_v16 = vmul.f32 0.015873017, %v9232_v41 }
0x1ba3   :  { %21204 = vrsqrt.f32 %v9236_v16 }
0x1ba4   :  { %v9474_v46 = vpop.permute.xlu0 %9473  ;;  %10801 = vrot.lane.b32.xlu1 %v23136_v4, %s21433_s14 }
0x1ba5   :  { %20071 = vmatpush3.xpose.msk.msra.mxu1 %vm309_vm2, %v9474_v46 }
0x1ba6   :  { %20080 = vmatprep.subr.mxu1 %v21431_v0 }
0x1ba8   :  { %20073 = vmatmul.mubr.msk.f32.vlgmr.msra.gmra.mrb[120].mxu1 %vm309_vm2, %v23138_v22  ;;  %10803 = vrot.lane.b32.xlu1 %v23136_v4, %s21436_s16 }
0x1ba9   :  { %20082 = vmatprep.mubr.msk.f32.mxu1 %vm21435_vm1, %v21431_v0 }
0x1bac   :  { %10807 = vrot.lane.b32.xlu1 %v23136_v4, %s21438_s18 }
0x1bad   :  { %v21205_v43 = vpop.eup %21204 }
0x1bae   :  { %v9240_v47 = vmul.f32 %v21205_v43, %v23154_v51 }
0x1bb0   :  { %v23208_v49 = vadd.f32 %v9240_v47, %v22602_v31 }
0x1bb2   :  { %20067 = vmatprep.mubr.msk.f32.mxu0 %vm186_vm0, %v23208_v49 }
0x1bd1   :  { %v9626_v32 = vpop.permute.xlu0 %9625  ;;  %v9550_v48 = vpop.permute.xlu1 %9549 }
0x1bd2   :  { %20081 = vmatpush3.xpose.msk.msra.mxu1 %vm309_vm2, %v9626_v32 }
0x1bd3   :  { %20090 = vmatprep.subr.mxu1 %v21431_v0 }
0x1bd5   :  { %20083 = vmatmul.mubr.msk.f32.vlgmr.msra.gmra.mrb[122].mxu1 %vm309_vm2, %v9440_v23  ;;  %v9778_v1 = vpop.permute.xlu0 %9777 }
0x1bd6   :  { %20091 = vmatpush3.xpose.msk.msra.mxu1 %vm309_vm2, %v9778_v1  ;;  %20092 = vmatprep.mubr.msk.f32.mxu1 %vm21435_vm1, %v21431_v0 }
0x1bd7   :  { %20100 = vmatprep.subr.mxu1 %v21431_v0 }
0x1bd9   :  { %20093 = vmatmul.mubr.msk.f32.vlgmr.msra.gmra.mrb[124].mxu1 %vm309_vm2, %v23166_v18  ;;  %v9930_v31 = vpop.permute.xlu0 %9929  ;;  %v18802_v18 = vld [vmem:[%s18625_s8] ss:$0 sm:$0xff]  ;;  %s18629_s8 = sld [smem:[%s24812_s0 + %s21443_s23]]  }
0x1bda   :  { %20101 = vmatpush3.xpose.msk.msra.mxu1 %vm309_vm2, %v9930_v31  ;;  %20102 = vmatprep.mubr.msk.f32.mxu1 %vm21435_vm1, %v21431_v0 }
0x1bdb   :  { %20110 = vmatprep.subr.mxu1 %v21431_v0 }
0x1bdd   :  { %20103 = vmatmul.mubr.msk.f32.vlgmr.msra.gmra.mrb[126].mxu1 %vm309_vm2, %v23173_v63  ;;  %v23295_v26 = vpop.permute.xlu0 %10799 }
0x1bde   :  { %20112 = vmatprep.mubr.msk.f32.mxu1 %vm21435_vm1, %v21431_v0 }
0x1be1   :  { %v23304_v41 = vpop.permute.xlu0 %10805 }
0x1c10   :  { %v9235_v9 = vpop.xlane.xlu1 %9234 }
0x1c11   :  { %v9237_v44 = vmul.f32 0.015873017, %v9235_v9 }
0x1c13   :  { %21206 = vrsqrt.f32 %v9237_v44 }
0x1c14   :  { %v9702_v59 = vpop.permute.xlu1 %9701 }
0x1c1d   :  { %v21207_v60 = vpop.eup %21206 }
0x1c1e   :  { %v9241_v53 = vmul.f32 %v21207_v60, %v9227_v14 }
0x1c20   :  { %v23230_v57 = vadd.f32 %v9241_v53, %v22655_v50  ;;  %v9854_v50 = vpop.permute.xlu1 %9853 }
0x1c22   :  { %20068 = vmatmul.mubr.msk.f32.vlgmr.msra.gmra.mrb[102].mxu0 %vm186_vm0, %v23230_v57 }
0x1c23   :  { %20076 = vmatpush3.xpose.msk.msra.mxu0 %vm309_vm2, %v9550_v48  ;;  %20077 = vmatprep.mubr.msk.f32.mxu0 %vm21435_vm1, %v21431_v0 }
0x1c24   :  { %20085 = vmatprep.subr.mxu0 %v21431_v0  ;;  %v10006_v58 = vpop.permute.xlu1 %10005 }
0x1c26   :  { %20078 = vmatmul.mubr.msk.f32.vlgmr.msra.gmra.mrb[104].mxu0 %vm309_vm2, %v23161_v42 }
0x1c27   :  { %20086 = vmatpush3.xpose.msk.msra.mxu0 %vm309_vm2, %v9702_v59  ;;  %20087 = vmatprep.mubr.msk.f32.mxu0 %vm21435_vm1, %v21431_v0 }
0x1c28   :  { %20095 = vmatprep.subr.mxu0 %v21431_v0  ;;  %v23311_v31 = vpop.permute.xlu1 %10797 }
0x1c2a   :  { %20088 = vmatmul.mubr.msk.f32.vlgmr.msra.gmra.mrb[106].mxu0 %vm309_vm2, %v23182_v17 }
0x1c2b   :  { %20096 = vmatpush3.xpose.msk.msra.mxu0 %vm309_vm2, %v9854_v50  ;;  %20097 = vmatprep.mubr.msk.f32.mxu0 %vm21435_vm1, %v21431_v0 }
0x1c2c   :  { %20105 = vmatprep.subr.mxu0 %v21431_v0  ;;  %v23313_v48 = vpop.permute.xlu1 %10801 }
0x1c2e   :  { %20098 = vmatmul.mubr.msk.f32.vlgmr.msra.gmra.mrb[108].mxu0 %vm309_vm2, %v23186_v3 }
0x1c2f   :  { %20106 = vmatpush3.xpose.msk.msra.mxu0 %vm309_vm2, %v10006_v58  ;;  %20107 = vmatprep.mubr.msk.f32.mxu0 %vm21435_vm1, %v21431_v0 }
0x1c30   :  { %20115 = vmatprep.subr.mxu0 %v21431_v0  ;;  %v23319_v9 = vpop.permute.xlu1 %10803 }
0x1c32   :  { %20108 = vmatmul.mubr.msk.f32.vlgmr.msra.gmra.mrb[110].mxu0 %vm309_vm2, %v9450_v35 }
0x1c33   :  { %20117 = vmatprep.mubr.msk.f32.mxu0 %vm21435_vm1, %v21431_v0 }
0x1c34   :  { %v23323_v44 = vpop.permute.xlu1 %10807 }
0x1c7b   :  { %v9545_v19 = vpop.f32.mrb[120].mxu1 }
0x1c7c   :  { %v10081_v40 = vsel %vm7136_vm10, 0.0, %v9545_v19  ;;  %v20074_v24 = vpop.f32.mrb[121].mxu1 }
0x1c7d   :  { %v10089_v5 = vsel %vm309_vm2, %v10081_v40, -inf }
0x1c7e   :  { %10090 = vmax.xlane.f32.xlu0 %v10089_v5 }
0x1ca8   :  { %v9697_v2 = vpop.f32.mrb[122].mxu1 }
0x1ca9   :  { %v23264_v8 = vsel %vm7136_vm10, 0.0, %v9697_v2  ;;  %v20084_v45 = vpop.f32.mrb[123].mxu1 }
0x1caa   :  { %v10095_v22 = vsel %vm309_vm2, %v23264_v8, -inf }
0x1cab   :  { %10096 = vmax.xlane.f32.xlu0 %v10095_v22 }
0x1cac   :  { %v9849_v6 = vpop.f32.mrb[124].mxu1 }
0x1cad   :  { %v23270_v7 = vsel %vm7136_vm10, 0.0, %v9849_v6  ;;  %v20094_v51 = vpop.f32.mrb[125].mxu1 }
0x1cae   :  { %v10101_v54 = vsel %vm309_vm2, %v23270_v7, -inf }
0x1caf   :  { %10102 = vmax.xlane.f32.xlu1 %v10101_v54 }
0x1cb0   :  { %v10001_v13 = vpop.f32.mrb[126].mxu1 }
0x1cb1   :  { %v10087_v56 = vsel %vm7136_vm10, 0.0, %v10001_v13  ;;  %v20104_v42 = vpop.f32.mrb[127].mxu1 }
0x1cb2   :  { %v10107_v23 = vsel %vm309_vm2, %v10087_v56, -inf }
0x1cb3   :  { %10108 = vmax.xlane.f32.xlu1 %v10107_v23 }
0x1cf5   :  { %v20069_v63 = vpop.f32.mrb[102].mxu0 }
0x1cf6   :  { %v23280_v15 = vadd.f32 %v20069_v63, %v18802_v18  ;;  %v9427_v62 = vpop.f32.mrb[103].mxu0 }
0x1cf7   :  { %v23282_v10 = vadd.f32 %v18802_v18, %v9427_v62 }
0x1cf9   :  { %v9621_v25 = vpop.f32.mrb[104].mxu0  ;;  %20111 = vmatpush3.msra.mxu1 %v23282_v10 }
0x1cfa   :  { %v23287_v55 = vsel %vm7136_vm10, 0.0, %v9621_v25  ;;  %v20079_v12 = vpop.f32.mrb[105].mxu0  ;;  %20120 = vmatprep.subr.mxu1 %v21431_v0 }
0x1cfb   :  { %v10092_v28 = vsel %vm309_vm2, %v23287_v55, -inf }
0x1cfc   :  { %10093 = vmax.xlane.f32.xlu1 %v10092_v28 }
0x1cfd   :  { %v9773_v14 = vpop.f32.mrb[106].mxu0 }
0x1cfe   :  { %v10084_v39 = vsel %vm7136_vm10, 0.0, %v9773_v14  ;;  %v20089_v20 = vpop.f32.mrb[107].mxu0 }
0x1cff   :  { %v10098_v17 = vsel %vm309_vm2, %v10084_v39, -inf }
0x1d00   :  { %10099 = vmax.xlane.f32.xlu0 %v10098_v17 }
0x1d01   :  { %v9925_v36 = vpop.f32.mrb[108].mxu0 }
0x1d02   :  { %v10086_v38 = vsel %vm7136_vm10, 0.0, %v9925_v36  ;;  %v20099_v3 = vpop.f32.mrb[109].mxu0 }
0x1d03   :  { %v10104_v34 = vsel %vm309_vm2, %v10086_v38, -inf }
0x1d04   :  { %10105 = vmax.xlane.f32.xlu0 %v10104_v34 }
0x1d05   :  { %v10077_v21 = vpop.f32.mrb[110].mxu0 }
0x1d06   :  { %v23302_v37 = vsel %vm7136_vm10, 0.0, %v10077_v21  ;;  %v20109_v35 = vpop.f32.mrb[111].mxu0 }
0x1d07   :  { %v10110_v16 = vsel %vm309_vm2, %v23302_v37, -inf }
0x1d08   :  { %10111 = vmax.xlane.f32.xlu0 %v10110_v16 }
0x1d0b   :  { %v10091_v46 = vpop.xlane.xlu0 %10090 }
0x1d0c   :  { %v10113_v43 = vsub.f32 %v10081_v40, %v10091_v46 }
0x1d0e   :  { %v10121_v47 = vmul.f32 1.442695, %v10113_v43 }
0x1d10   :  { %21208 = vpow2.f32 %v10121_v47 }
0x1d1a   :  { %v21209_v32 = vpop.eup %21208 }
0x1d1b   :  { %v10137_v1 = vsel %vm309_vm2, %v21209_v32, 0.0 }
0x1d1c   :  { %10138 = vadd.xlane.f32.xlu1 %v10137_v1 }
0x1d1e   :  { %10809 = vrot.lane.b32.xlu0 %v23136_v4, %s21441_s21 }
0x1d2d   :  { %9455 = vrot.lane.b32.xlu1 %v23282_v10, %s21437_s17 }
0x1d31   :  { %9458 = vrot.lane.b32.xlu1 %v23282_v10, %s21433_s14 }
0x1d35   :  { %9464 = vrot.lane.b32.xlu1 %v23282_v10, %s21439_s19 }
0x1d38   :  { %v10097_v60 = vpop.xlane.xlu0 %10096 }
0x1d39   :  { %v10115_v53 = vsub.f32 %v23264_v8, %v10097_v60  ;;  %9470 = vrot.lane.b32.xlu1 %v23282_v10, %s21441_s21 }
0x1d3b   :  { %v10125_v59 = vmul.f32 1.442695, %v10115_v53 }
0x1d3c   :  { %v10103_v50 = vpop.xlane.xlu1 %10102 }
0x1d3d   :  { %21210 = vpow2.f32 %v10125_v59  ;;  %v10117_v58 = vsub.f32 %v23270_v7, %v10103_v50  ;;  %10909 = vrot.lane.b32.xlu1 %v23311_v31, %s21440_s20 }
0x1d3f   :  { %v10129_v19 = vmul.f32 1.442695, %v10117_v58 }
0x1d40   :  { %v10109_v40 = vpop.xlane.xlu1 %10108 }
0x1d41   :  { %21212 = vpow2.f32 %v10129_v19  ;;  %v10119_v24 = vsub.f32 %v10087_v56, %v10109_v40 }
0x1d43   :  { %v10133_v5 = vmul.f32 1.442695, %v10119_v24 }
0x1d45   :  { %21214 = vpow2.f32 %v10133_v5 }
0x1d47   :  { %v21211_v2 = vpop.eup %21210 }
0x1d48   :  { %v10143_v8 = vsel %vm309_vm2, %v21211_v2, 0.0 }
0x1d49   :  { %10144 = vadd.xlane.f32.xlu0 %v10143_v8 }
0x1d4b   :  { %v23332_v45 = vpop.eup %21212 }
0x1d4c   :  { %v10149_v22 = vsel %vm309_vm2, %v23332_v45, 0.0 }
0x1d4d   :  { %10150 = vadd.xlane.f32.xlu0 %v10149_v22 }
0x1d4f   :  { %v23336_v6 = vpop.eup %21214 }
0x1d50   :  { %v10155_v7 = vsel %vm309_vm2, %v23336_v6, 0.0 }
0x1d51   :  { %10156 = vadd.xlane.f32.xlu0 %v10155_v7 }
0x1d67   :  { %9452 = vrot.lane.b32.xlu0 %v23282_v10, %s21434_s15 }
0x1d89   :  { %v10094_v51 = vpop.xlane.xlu1 %10093 }
0x1d8a   :  { %v10114_v54 = vsub.f32 %v23287_v55, %v10094_v51 }
0x1d8c   :  { %v10123_v13 = vmul.f32 1.442695, %v10114_v54 }
0x1d8d   :  { %v10100_v56 = vpop.xlane.xlu0 %10099 }
0x1d8e   :  { %21216 = vpow2.f32 %v10123_v13  ;;  %v10116_v42 = vsub.f32 %v10084_v39, %v10100_v56 }
0x1d90   :  { %v10127_v23 = vmul.f32 1.442695, %v10116_v42 }
0x1d91   :  { %v10106_v18 = vpop.xlane.xlu0 %10105 }
0x1d92   :  { %21218 = vpow2.f32 %v10127_v23  ;;  %v10118_v63 = vsub.f32 %v10086_v38, %v10106_v18 }
0x1d94   :  { %v10131_v62 = vmul.f32 1.442695, %v10118_v63 }
0x1d95   :  { %v10112_v3 = vpop.xlane.xlu0 %10111 }
0x1d96   :  { %21220 = vpow2.f32 %v10131_v62 }
0x1d98   :  { %v23343_v25 = vpop.eup %21216 }
0x1d99   :  { %v10140_v12 = vsel %vm309_vm2, %v23343_v25, 0.0  ;;  %v23374_v21 = vpop.permute.xlu0 %10809 }
0x1d9a   :  { %10141 = vadd.xlane.f32.xlu0 %v10140_v12 }
0x1d9c   :  { %v23347_v28 = vpop.eup %21218 }
0x1d9d   :  { %v10146_v55 = vsel %vm309_vm2, %v23347_v28, 0.0 }
0x1d9e   :  { %10147 = vadd.xlane.f32.xlu1 %v10146_v55 }
0x1da0   :  { %v23351_v14 = vpop.eup %21220 }
0x1da1   :  { %v10152_v39 = vsel %vm309_vm2, %v23351_v14, 0.0 }
0x1da2   :  { %10153 = vadd.xlane.f32.xlu1 %v10152_v39 }
0x1da9   :  { %v10139_v20 = vpop.xlane.xlu1 %10138 }
0x1daa   :  { %21222 = vrcp.f32 %v10139_v20 }
0x1dad   :  { %v9456_v38 = vpop.permute.xlu1 %9455 }
0x1db0   :  { %9461 = vrot.lane.b32.xlu0 %v23282_v10, %s21436_s16 }
0x1db1   :  { %v9459_v60 = vpop.permute.xlu1 %9458 }
0x1db3   :  { %11061 = vrot.lane.b32.xlu1 %v23313_v48, %s21440_s20 }
0x1db4   :  { %v21223_v17 = vpop.eup %21222  ;;  %9467 = vrot.lane.b32.xlu0 %v23282_v10, %s21438_s18  ;;  %v10120_v10 = vsub.f32 %v23302_v37, %v10112_v3 }
0x1db5   :  { %v10169_v36 = vmul.f32 %v21223_v17, %v21209_v32  ;;  %v9465_v53 = vpop.permute.xlu1 %9464 }
0x1db6   :  { %v10135_v34 = vmul.f32 1.442695, %v10120_v10 }
0x1db7   :  { %20113 = vmatmul.mubr.msk.f32.vlgmr.msra.gmra.mrb[128].mxu1 %vm309_vm2, %v10169_v36 }
0x1db8   :  { %20121 = vmatpush3.msra.mxu1 %v9456_v38  ;;  %10833 = vrot.lane.b32.xlu0 %v23136_v4, %s21440_s20  ;;  %21224 = vpow2.f32 %v10135_v34 }
0x1db9   :  { %20122 = vmatprep.mubr.msk.f32.mxu1 %vm21435_vm1, %v21431_v0  ;;  %20130 = vmatprep.subr.mxu1 %v21431_v0  ;;  %v9471_v59 = vpop.permute.xlu1 %9470 }
0x1dbc   :  { %10985 = vrot.lane.b32.xlu0 %v23295_v26, %s21440_s20 }
0x1dbd   :  { %v23388_v50 = vpop.permute.xlu1 %10909 }
0x1dc0   :  { %11137 = vrot.lane.b32.xlu0 %v23319_v9, %s21440_s20 }
0x1dc2   :  { %v23376_v35 = vpop.eup %21224 }
0x1dc3   :  { %v10158_v46 = vsel %vm309_vm2, %v23376_v35, 0.0 }
0x1dc4   :  { %11289 = vrot.lane.b32.xlu0 %v23323_v44, %s21440_s20 }
0x1dd6   :  { %v10145_v16 = vpop.xlane.xlu0 %10144 }
0x1dd7   :  { %21226 = vrcp.f32 %v10145_v16  ;;  %10159 = vadd.xlane.f32.xlu1 %v10158_v46 }
0x1dda   :  { %v10151_v43 = vpop.xlane.xlu0 %10150 }
0x1ddb   :  { %21228 = vrcp.f32 %v10151_v43 }
0x1dde   :  { %v10157_v47 = vpop.xlane.xlu0 %10156 }
0x1ddf   :  { %21230 = vrcp.f32 %v10157_v47 }
0x1de1   :  { %v21227_v32 = vpop.eup %21226 }
0x1de2   :  { %v9453_v1 = vpop.permute.xlu0 %9452  ;;  %v10171_v37 = vmul.f32 %v21227_v32, %v21211_v2 }
0x1de3   :  { %20116 = vmatpush3.msra.mxu0 %v9453_v1 }
0x1de4   :  { %20123 = vmatmul.mubr.msk.f32.vlgmr.msra.gmra.mrb[130].mxu1 %vm309_vm2, %v10171_v37  ;;  %20125 = vmatprep.subr.mxu0 %v21431_v0 }
0x1de5   :  { %20132 = vmatprep.mubr.msk.f32.mxu1 %vm21435_vm1, %v21431_v0  ;;  %v21229_v19 = vpop.eup %21228 }
0x1de6   :  { %v10173_v5 = vmul.f32 %v21229_v19, %v23332_v45 }
0x1de8   :  { %11213 = vrot.lane.b32.xlu1 %v23304_v41, %s21440_s20 }
0x1de9   :  { %v21231_v2 = vpop.eup %21230 }
0x1dea   :  { %v10175_v7 = vmul.f32 %v21231_v2, %v23336_v6 }
0x1dec   :  { %11365 = vrot.lane.b32.xlu1 %v23374_v21, %s21440_s20 }
0x1e27   :  { %v10142_v58 = vpop.xlane.xlu0 %10141 }
0x1e28   :  { %21232 = vrcp.f32 %v10142_v58 }
0x1e2b   :  { %v9462_v40 = vpop.permute.xlu0 %9461  ;;  %v10148_v24 = vpop.xlane.xlu1 %10147 }
0x1e2c   :  { %21234 = vrcp.f32 %v10148_v24  ;;  %20131 = vmatpush3.msra.mxu1 %v9462_v40 }
0x1e2d   :  { %20133 = vmatmul.mubr.msk.f32.vlgmr.msra.gmra.mrb[132].mxu1 %vm309_vm2, %v10173_v5  ;;  %20140 = vmatprep.subr.mxu1 %v21431_v0 }
0x1e2e   :  { %20142 = vmatprep.mubr.msk.f32.mxu1 %vm21435_vm1, %v21431_v0 }
0x1e2f   :  { %v9468_v8 = vpop.permute.xlu0 %9467  ;;  %v10154_v22 = vpop.xlane.xlu1 %10153 }
0x1e30   :  { %21236 = vrcp.f32 %v10154_v22  ;;  %20141 = vmatpush3.msra.mxu1 %v9468_v8 }
0x1e31   :  { %20143 = vmatmul.mubr.msk.f32.vlgmr.msra.gmra.mrb[134].mxu1 %vm309_vm2, %v10175_v7  ;;  %20150 = vmatprep.subr.mxu1 %v21431_v0 }
0x1e32   :  { %v21233_v45 = vpop.eup %21232  ;;  %20152 = vmatprep.mubr.msk.f32.mxu1 %vm21435_vm1, %v21431_v0 }
0x1e33   :  { %v10834_v51 = vpop.permute.xlu0 %10833  ;;  %v10170_v54 = vmul.f32 %v21233_v45, %v23343_v25 }
0x1e35   :  { %20118 = vmatmul.mubr.msk.f32.vlgmr.msra.gmra.mrb[112].mxu0 %vm309_vm2, %v10170_v54 }
0x1e36   :  { %v21235_v13 = vpop.eup %21234  ;;  %20126 = vmatpush3.msra.mxu0 %v9459_v60  ;;  %20127 = vmatprep.mubr.msk.f32.mxu0 %vm21435_vm1, %v21431_v0 }
0x1e37   :  { %v10986_v6 = vpop.permute.xlu0 %10985  ;;  %20151 = vmatpush3.xpose.msk.msra.mxu1 %vm309_vm2, %v10834_v51  ;;  %20135 = vmatprep.subr.mxu0 %v21431_v0  ;;  %v10172_v56 = vmul.f32 %v21235_v13, %v23347_v28 }
0x1e38   :  { %20160 = vmatprep.subr.mxu1 %v21431_v0 }
0x1e39   :  { %20128 = vmatmul.mubr.msk.f32.vlgmr.msra.gmra.mrb[114].mxu0 %vm309_vm2, %v10172_v56 }
0x1e3a   :  { %v21237_v42 = vpop.eup %21236  ;;  %20136 = vmatpush3.msra.mxu0 %v9465_v53  ;;  %20153 = vmatmul.mubr.msk.f32.vlgmr.msra.gmra.mrb[136].mxu1 %vm309_vm2, %v23136_v4 }
0x1e3b   :  { %20161 = vmatpush3.xpose.msk.msra.mxu1 %vm309_vm2, %v10986_v6  ;;  %20137 = vmatprep.mubr.msk.f32.mxu0 %vm21435_vm1, %v21431_v0  ;;  %v10174_v23 = vmul.f32 %v21237_v42, %v23351_v14  ;;  %v11138_v18 = vpop.permute.xlu0 %11137 }
0x1e3c   :  { %20145 = vmatprep.subr.mxu0 %v21431_v0  ;;  %20162 = vmatprep.mubr.msk.f32.mxu1 %vm21435_vm1, %v21431_v0 }
0x1e3d   :  { %20138 = vmatmul.mubr.msk.f32.vlgmr.msra.gmra.mrb[116].mxu0 %vm309_vm2, %v10174_v23  ;;  %20170 = vmatprep.subr.mxu1 %v21431_v0 }
0x1e3e   :  { %20146 = vmatpush3.msra.mxu0 %v9471_v59  ;;  %20163 = vmatmul.mubr.msk.f32.vlgmr.msra.gmra.mrb[138].mxu1 %vm309_vm2, %v23295_v26  ;;  %v11062_v26 = vpop.permute.xlu1 %11061 }
0x1e3f   :  { %20171 = vmatpush3.xpose.msk.msra.mxu1 %vm309_vm2, %v11138_v18  ;;  %20172 = vmatprep.mubr.msk.f32.mxu1 %vm21435_vm1, %v21431_v0  ;;  %v11290_v4 = vpop.permute.xlu0 %11289 }
0x1e40   :  { %20180 = vmatprep.subr.mxu1 %v21431_v0  ;;  %20147 = vmatprep.mubr.msk.f32.mxu0 %vm21435_vm1, %v21431_v0 }
0x1e41   :  { %20155 = vmatprep.subr.mxu0 %v21431_v0 }
0x1e42   :  { %20173 = vmatmul.mubr.msk.f32.vlgmr.msra.gmra.mrb[140].mxu1 %vm309_vm2, %v23319_v9 }
0x1e43   :  { %20181 = vmatpush3.xpose.msk.msra.mxu1 %vm309_vm2, %v11290_v4  ;;  %20182 = vmatprep.mubr.msk.f32.mxu1 %vm21435_vm1, %v21431_v0 }
0x1e44   :  { %20190 = vmatprep.subr.mxu1 %v21431_v0 }
0x1e46   :  { %20183 = vmatmul.mubr.msk.f32.vlgmr.msra.gmra.mrb[142].mxu1 %vm309_vm2, %v23323_v44 }
0x1e47   :  { %20191 = vmatpush3.msra.mxu1 %v23280_v15  ;;  %20192 = vmatprep.mubr.msk.f32.mxu1 %vm21435_vm1, %v21431_v0 }
0x1e48   :  { %20200 = vmatprep.subr.mxu1 %v21431_v0 }
0x1e64   :  { %v10160_v63 = vpop.xlane.xlu1 %10159 }
0x1e65   :  { %21238 = vrcp.f32 %v10160_v63 }
0x1e68   :  { %v11214_v44 = vpop.permute.xlu1 %11213 }
0x1e6c   :  { %v11366_v25 = vpop.permute.xlu1 %11365 }
0x1e6f   :  { %v21239_v9 = vpop.eup %21238 }
0x1e70   :  { %v10176_v62 = vmul.f32 %v21239_v9, %v23376_v35 }
0x1e72   :  { %20148 = vmatmul.mubr.msk.f32.vlgmr.msra.gmra.mrb[118].mxu0 %vm309_vm2, %v10176_v62 }
0x1e73   :  { %20156 = vmatpush3.xpose.msk.msra.mxu0 %vm309_vm2, %v23388_v50  ;;  %20157 = vmatprep.mubr.msk.f32.mxu0 %vm21435_vm1, %v21431_v0 }
0x1e74   :  { %20165 = vmatprep.subr.mxu0 %v21431_v0 }
0x1e76   :  { %20158 = vmatmul.mubr.msk.f32.vlgmr.msra.gmra.mrb[120].mxu0 %vm309_vm2, %v23311_v31 }
0x1e77   :  { %20166 = vmatpush3.xpose.msk.msra.mxu0 %vm309_vm2, %v11062_v26  ;;  %20167 = vmatprep.mubr.msk.f32.mxu0 %vm21435_vm1, %v21431_v0 }
0x1e78   :  { %20175 = vmatprep.subr.mxu0 %v21431_v0 }
0x1e7a   :  { %20168 = vmatmul.mubr.msk.f32.vlgmr.msra.gmra.mrb[122].mxu0 %vm309_vm2, %v23313_v48 }
0x1e7b   :  { %20176 = vmatpush3.xpose.msk.msra.mxu0 %vm309_vm2, %v11214_v44  ;;  %20177 = vmatprep.mubr.msk.f32.mxu0 %vm21435_vm1, %v21431_v0 }
0x1e7c   :  { %20185 = vmatprep.subr.mxu0 %v21431_v0 }
0x1e7e   :  { %20178 = vmatmul.mubr.msk.f32.vlgmr.msra.gmra.mrb[124].mxu0 %vm309_vm2, %v23304_v41 }
0x1e7f   :  { %20186 = vmatpush3.xpose.msk.msra.mxu0 %vm309_vm2, %v11366_v25  ;;  %20187 = vmatprep.mubr.msk.f32.mxu0 %vm21435_vm1, %v21431_v0 }
0x1e80   :  { %20195 = vmatprep.subr.mxu0 %v21431_v0 }
0x1e82   :  { %20188 = vmatmul.mubr.msk.f32.vlgmr.msra.gmra.mrb[126].mxu0 %vm309_vm2, %v23374_v21 }
0x1e83   :  { %20197 = vmatprep.mubr.msk.f32.mxu0 %vm21435_vm1, %v21431_v0 }
0x1e8a   :  { %v23470_v31 = vpop.f32.mrb[128].mxu1 }
0x1e8b   :  { %v20114_v48 = vpop.f32.mrb[129].mxu1 }
0x1eb7   :  { %v10392_v12 = vpop.f32.mrb[130].mxu1 }
0x1eb8   :  { %10766 = vrot.lane.b32.xlu0 %v10392_v12, %s21442_s22  ;;  %v20124_v41 = vpop.f32.mrb[131].mxu1 }
0x1f00   :  { %v10538_v28 = vpop.f32.mrb[132].mxu1 }
0x1f01   :  { %10774 = vrot.lane.b32.xlu1 %v10538_v28, %s21447_s27  ;;  %v20134_v55 = vpop.f32.mrb[133].mxu1 }
0x1f04   :  { %v10684_v14 = vpop.f32.mrb[134].mxu1 }
0x1f05   :  { %v20144_v39 = vpop.f32.mrb[135].mxu1 }
0x1f08   :  { %v10319_v20 = vpop.f32.mrb[112].mxu0 }
0x1f09   :  { %v20119_v17 = vpop.f32.mrb[113].mxu0 }
0x1f0c   :  { %v10465_v36 = vpop.f32.mrb[114].mxu0 }
0x1f0d   :  { %v20129_v38 = vpop.f32.mrb[115].mxu0  ;;  %v10905_v3 = vpop.f32.mrb[136].mxu1 }
0x1f0e   :  { %v11441_v10 = vsel %vm8502_vm12, 0.0, %v10905_v3  ;;  %v20154_v34 = vpop.f32.mrb[137].mxu1 }
0x1f0f   :  { %v11449_v21 = vsel %vm309_vm2, %v11441_v10, -inf }
0x1f10   :  { %11450 = vmax.xlane.f32.xlu0 %v11449_v21  ;;  %v10611_v35 = vpop.f32.mrb[116].mxu0 }
0x1f11   :  { %v20139_v16 = vpop.f32.mrb[117].mxu0  ;;  %v11057_v46 = vpop.f32.mrb[138].mxu1 }
0x1f12   :  { %v11443_v43 = vsel %vm8502_vm12, 0.0, %v11057_v46  ;;  %v20164_v47 = vpop.f32.mrb[139].mxu1 }
0x1f13   :  { %v11455_v32 = vsel %vm309_vm2, %v11443_v43, -inf }
0x1f14   :  { %11456 = vmax.xlane.f32.xlu0 %v11455_v32 }
0x1f15   :  { %v11209_v1 = vpop.f32.mrb[140].mxu1 }
0x1f16   :  { %v20174_v37 = vpop.f32.mrb[141].mxu1  ;;  %v11445_v59 = vsel %vm8502_vm12, 0.0, %v11209_v1 }
0x1f17   :  { %v11461_v50 = vsel %vm309_vm2, %v11445_v59, -inf }
0x1f19   :  { %v11361_v60 = vpop.f32.mrb[142].mxu1 }
0x1f1a   :  { %v20184_v53 = vpop.f32.mrb[143].mxu1  ;;  %v11447_v58 = vsel %vm8502_vm12, 0.0, %v11361_v60 }
0x1f1b   :  { %v11467_v19 = vsel %vm309_vm2, %v11447_v58, -inf }
0x1f25   :  { %11462 = vmax.xlane.f32.xlu1 %v11461_v50 }
0x1f29   :  { %11468 = vmax.xlane.f32.xlu1 %v11467_v19 }
0x1f2a   :  { %10778 = vrot.lane.b32.xlu0 %v10611_v35, %s21444_s24  ;;  %v10767_v56 = vpop.permute.xlu0 %10766 }
0x1f3a   :  { %10762 = vrot.lane.b32.xlu1 %v10319_v20, %s21445_s25 }
0x1f3e   :  { %10770 = vrot.lane.b32.xlu1 %v10465_v36, %s21443_s23 }
0x1f45   :  { %v10757_v40 = vpop.f32.mrb[118].mxu0 }
0x1f46   :  { %10786 = vrot.lane.b32.xlu0 %v10757_v40, %s21446_s26  ;;  %v20149_v24 = vpop.f32.mrb[119].mxu0 }
0x1f49   :  { %v10981_v5 = vpop.f32.mrb[120].mxu0 }
0x1f4a   :  { %v20159_v2 = vpop.f32.mrb[121].mxu0  ;;  %v11442_v13 = vsel %vm8502_vm12, 0.0, %v10981_v5 }
0x1f4b   :  { %v11452_v6 = vsel %vm309_vm2, %v11442_v13, -inf }
0x1f4d   :  { %v11133_v8 = vpop.f32.mrb[122].mxu0 }
0x1f4e   :  { %v20169_v22 = vpop.f32.mrb[123].mxu0  ;;  %v11444_v12 = vsel %vm8502_vm12, 0.0, %v11133_v8 }
0x1f4f   :  { %v11458_v55 = vsel %vm309_vm2, %v11444_v12, -inf }
0x1f51   :  { %v11285_v7 = vpop.f32.mrb[124].mxu0 }
0x1f52   :  { %v20179_v45 = vpop.f32.mrb[125].mxu0  ;;  %v11446_v39 = vsel %vm8502_vm12, 0.0, %v11285_v7 }
0x1f53   :  { %v11464_v36 = vsel %vm309_vm2, %v11446_v39, -inf }
0x1f55   :  { %v11437_v51 = vpop.f32.mrb[126].mxu0 }
0x1f56   :  { %v20189_v54 = vpop.f32.mrb[127].mxu0  ;;  %v11448_v3 = vsel %vm8502_vm12, 0.0, %v11437_v51 }
0x1f62   :  { %11453 = vmax.xlane.f32.xlu1 %v11452_v6 }
0x1f73   :  { %10782 = vrot.lane.b32.xlu1 %v10684_v14, %s21448_s28  ;;  %v10775_v44 = vpop.permute.xlu1 %10774 }
0x1f9d   :  { %v11451_v42 = vpop.xlane.xlu0 %11450 }
0x1f9e   :  { %v11473_v23 = vsub.f32 %v11441_v10, %v11451_v42  ;;  %v11470_v10 = vsel %vm309_vm2, %v11448_v3, -inf }
0x1fa0   :  { %v11481_v18 = vmul.f32 1.442695, %v11473_v23 }
0x1fa1   :  { %v11457_v4 = vpop.xlane.xlu0 %11456 }
0x1fa2   :  { %21240 = vpow2.f32 %v11481_v18  ;;  %v11475_v26 = vsub.f32 %v11443_v43, %v11457_v4 }
0x1fa4   :  { %v11485_v63 = vmul.f32 1.442695, %v11475_v26 }
0x1fa5   :  { %v10779_v40 = vpop.permute.xlu0 %10778 }
0x1fa6   :  { %21242 = vpow2.f32 %v11485_v63 }
0x1fac   :  { %v23494_v9 = vpop.eup %21240 }
0x1fad   :  { %v11497_v62 = vsel %vm309_vm2, %v23494_v9, 0.0 }
0x1fae   :  { %11498 = vadd.xlane.f32.xlu1 %v11497_v62 }
0x1fb0   :  { %v23498_v25 = vpop.eup %21242 }
0x1fb1   :  { %v11503_v48 = vsel %vm309_vm2, %v23498_v25, 0.0 }
0x1fb2   :  { %11504 = vadd.xlane.f32.xlu0 %v11503_v48  ;;  %v11463_v41 = vpop.xlane.xlu1 %11462 }
0x1fb3   :  { %v11477_v28 = vsub.f32 %v11445_v59, %v11463_v41 }
0x1fb5   :  { %v11489_v14 = vmul.f32 1.442695, %v11477_v28 }
0x1fb6   :  { %11459 = vmax.xlane.f32.xlu0 %v11458_v55  ;;  %v11469_v20 = vpop.xlane.xlu1 %11468 }
0x1fb7   :  { %21244 = vpow2.f32 %v11489_v14  ;;  %v11479_v17 = vsub.f32 %v11447_v58, %v11469_v20 }
0x1fb8   :  { %v10787_v2 = vpop.permute.xlu0 %10786 }
0x1fb9   :  { %v11493_v38 = vmul.f32 1.442695, %v11479_v17 }
0x1fba   :  { %11465 = vmax.xlane.f32.xlu0 %v11464_v36  ;;  %v10763_v46 = vpop.permute.xlu1 %10762 }
0x1fbb   :  { %21246 = vpow2.f32 %v11493_v38  ;;  %v10789_v53 = vsel %vm309_vm2, %v23470_v31, %v10763_v46 }
0x1fbc   :  { %v10790_v59 = vsel %vm1617_vm3, %v10789_v53, %v10767_v56  ;;  %v12182_v53 = vld [vmem:[%s23593_s29] sm:$0xff] }
0x1fbe   :  { %11471 = vmax.xlane.f32.xlu0 %v11470_v10  ;;  %v10771_v43 = vpop.permute.xlu1 %10770 }
0x1fbf   :  { %10815 = vrot.lane.b32.xlu1 %v23280_v15, %s21437_s17  ;;  %v10791_v50 = vsel %vm1619_vm4, %v10790_v59, %v10771_v43  ;;  %v12184_v59 = vld [vmem:[%s23593_s29 + $0x10] sm:$0xff] }
0x1fc0   :  { %v10792_v58 = vsel %vm1621_vm5, %v10791_v50, %v10775_v44  ;;  %v20785_v50 = vpack.c.bf16 %v12184_v59, %v12182_v53  ;;  %v12300_v53 = vld [vmem:[%s23629_s3 + $0x18] sm:$0xff]  ;;  %v12317_v59 = vld [vmem:[%s23629_s3 + $0xa0] sm:$0xff] }
0x1fc1   :  { %v23513_v34 = vpop.eup %21244  ;;  %v10793_v24 = vsel %vm1623_vm6, %v10792_v58, %v10779_v40  ;;  %v12187_v58 = vld [vmem:[%s23593_s29 + $0x28] sm:$0xff] }
0x1fc2   :  { %v11509_v21 = vsel %vm309_vm2, %v23513_v34, 0.0 }
0x1fc3   :  { %10818 = vrot.lane.b32.xlu1 %v23280_v15, %s21433_s14  ;;  %11510 = vadd.xlane.f32.xlu0 %v11509_v21 }
0x1fc5   :  { %v23519_v35 = vpop.eup %21246 }
0x1fc6   :  { %v11515_v16 = vsel %vm309_vm2, %v23519_v35, 0.0 }
0x1fc7   :  { %10824 = vrot.lane.b32.xlu1 %v23280_v15, %s21439_s19  ;;  %11516 = vadd.xlane.f32.xlu0 %v11515_v16 }
0x1fdd   :  { %10812 = vrot.lane.b32.xlu0 %v23280_v15, %s21434_s15 }
0x1fe1   :  { %10821 = vrot.lane.b32.xlu0 %v23280_v15, %s21436_s16 }
0x1fef   :  { %v11454_v47 = vpop.xlane.xlu1 %11453 }
0x1ff0   :  { %v11474_v32 = vsub.f32 %v11442_v13, %v11454_v47 }
0x1ff2   :  { %v11483_v1 = vmul.f32 1.442695, %v11474_v32 }
0x1ff3   :  { %v10783_v19 = vpop.permute.xlu1 %10782 }
0x1ff4   :  { %21248 = vpow2.f32 %v11483_v1  ;;  %v10794_v5 = vsel %vm1625_vm7, %v10793_v24, %v10783_v19  ;;  %v12183_v1 = vld [vmem:[%s23593_s29 + $0x8] sm:$0xff]  ;;  %v12189_v19 = vld [vmem:[%s23593_s29 + $0x38] sm:$0xff]  ;;  %v12186_v24 = vld [vmem:[%s23593_s29 + $0x20] sm:$0xff] }
0x1ff5   :  { %v23543_v8 = vsel %vm1627_vm8, %v10794_v5, %v10787_v2  ;;  %v20787_v40 = vpack.c.bf16 %v12189_v19, %v12187_v58  ;;  %v12188_v5 = vld [vmem:[%s23593_s29 + $0x30] sm:$0xff] }
0x1ff6   :  { %v12156_v22 = vsel %vm186_vm0, %v23543_v8, 0.0 }
0x1ffe   :  { %v23529_v37 = vpop.eup %21248 }
0x1fff   :  { %v11500_v60 = vsel %vm309_vm2, %v23529_v37, 0.0 }
0x2000   :  { %11501 = vadd.xlane.f32.xlu0 %v11500_v60 }
0x2016   :  { %10827 = vrot.lane.b32.xlu0 %v23280_v15, %s21438_s18 }
0x2035   :  { %12157 = vadd.xlane.f32.xlu0 %v12156_v22  ;;  %v12191_v22 = vld [vmem:[%s23593_s29 + $0x48] sm:$0xff] }
0x203b   :  { %v11499_v31 = vpop.xlane.xlu1 %11498 }
0x203c   :  { %21250 = vrcp.f32 %v11499_v31  ;;  %v12193_v31 = vld [vmem:[%s23593_s29 + $0x58] sm:$0xff] }
0x203f   :  { %v11505_v7 = vpop.xlane.xlu0 %11504  ;;  %v10816_v23 = vpop.permute.xlu1 %10815 }
0x2040   :  { %21252 = vrcp.f32 %v11505_v7  ;;  %v20791_v7 = vpack.c.bf16 %v12193_v31, %v12191_v22  ;;  %v12320_v22 = vld [vmem:[%s23629_s3 + $0xb8] sm:$0xff] }
0x2043   :  { %v11460_v45 = vpop.xlane.xlu0 %11459  ;;  %v10819_v46 = vpop.permute.xlu1 %10818 }
0x2044   :  { %v11476_v51 = vsub.f32 %v11444_v12, %v11460_v45  ;;  %v12190_v45 = vld [vmem:[%s23593_s29 + $0x40] sm:$0xff] }
0x2046   :  { %v21251_v54 = vpop.eup %21250  ;;  %v11487_v13 = vmul.f32 1.442695, %v11476_v51  ;;  %v12192_v51 = vld [vmem:[%s23593_s29 + $0x50] sm:$0xff] }
0x2047   :  { %v11466_v6 = vpop.xlane.xlu0 %11465  ;;  %v11529_v56 = vmul.f32 %v21251_v54, %v23494_v9  ;;  %v10825_v2 = vpop.permute.xlu1 %10824 }
0x2048   :  { %21254 = vpow2.f32 %v11487_v13  ;;  %v11478_v42 = vsub.f32 %v11446_v39, %v11466_v6  ;;  %v20793_v13 = vpack.c.bf16 %v12192_v51, %v12190_v45  ;;  %v12195_v6 = vld [vmem:[%s23593_s29 + $0x68] sm:$0xff]  ;;  %v12303_v45 = vld [vmem:[%s23629_s3 + $0x30] sm:$0xff]  ;;  %v12304_v51 = vld [vmem:[%s23629_s3 + $0x38] sm:$0xff] }
0x2049   :  { %20193 = vmatmul.mubr.msk.f32.vlgmr.msra.gmra.mrb[144].mxu1 %vm309_vm2, %v11529_v56  ;;  %v12197_v56 = vld [vmem:[%s23593_s29 + $0x78] sm:$0xff] }
0x204a   :  { %v21253_v18 = vpop.eup %21252  ;;  %v11491_v4 = vmul.f32 1.442695, %v11478_v42  ;;  %20201 = vmatpush3.msra.mxu1 %v10816_v23  ;;  %20202 = vmatprep.mubr.msk.f32.mxu1 %vm21435_vm1, %v21431_v0  ;;  %v20795_v42 = vpack.c.bf16 %v12197_v56, %v12195_v6  ;;  %v12194_v23 = vld [vmem:[%s23593_s29 + $0x60] sm:$0xff]  ;;  %v20813_v6 = vpack.c.bf16 %v12304_v51, %v12303_v45 }
0x204b   :  { %v11472_v26 = vpop.xlane.xlu0 %11471  ;;  %v11531_v63 = vmul.f32 %v21253_v18, %v23498_v25  ;;  %20210 = vmatprep.subr.mxu1 %v21431_v0  ;;  %v12196_v18 = vld [vmem:[%s23593_s29 + $0x70] sm:$0xff] }
0x204c   :  { %21256 = vpow2.f32 %v11491_v4  ;;  %v11480_v62 = vsub.f32 %v11448_v3, %v11472_v26  ;;  %v20797_v26 = vpack.c.bf16 %v12196_v18, %v12194_v23  ;;  %v12306_v23 = vld [vmem:[%s23629_s3 + $0x48] sm:$0xff] }
0x204d   :  { %20203 = vmatmul.mubr.msk.f32.vlgmr.msra.gmra.mrb[146].mxu1 %vm309_vm2, %v11531_v63 }
0x204e   :  { %v11495_v9 = vmul.f32 1.442695, %v11480_v62  ;;  %20212 = vmatprep.mubr.msk.f32.mxu1 %vm21435_vm1, %v21431_v0 }
0x2050   :  { %21258 = vpow2.f32 %v11495_v9  ;;  %v11511_v44 = vpop.xlane.xlu0 %11510 }
0x2051   :  { %21260 = vrcp.f32 %v11511_v44 }
0x2052   :  { %v23556_v48 = vpop.eup %21254 }
0x2053   :  { %v11506_v12 = vsel %vm309_vm2, %v23556_v48, 0.0 }
0x2054   :  { %11507 = vadd.xlane.f32.xlu1 %v11506_v12  ;;  %v11517_v25 = vpop.xlane.xlu0 %11516 }
0x2055   :  { %21262 = vrcp.f32 %v11517_v25 }
0x2056   :  { %v23560_v41 = vpop.eup %21256 }
0x2057   :  { %v11512_v28 = vsel %vm309_vm2, %v23560_v41, 0.0 }
0x2058   :  { %11513 = vadd.xlane.f32.xlu1 %v11512_v28  ;;  %v10813_v55 = vpop.permute.xlu0 %10812 }
0x2059   :  { %20196 = vmatpush3.msra.mxu0 %v10813_v55 }
0x205a   :  { %v23564_v14 = vpop.eup %21258  ;;  %20205 = vmatprep.subr.mxu0 %v21431_v0 }
0x205b   :  { %v21261_v39 = vpop.eup %21260  ;;  %v11518_v20 = vsel %vm309_vm2, %v23564_v14, 0.0 }
0x205c   :  { %11519 = vadd.xlane.f32.xlu1 %v11518_v20  ;;  %v10822_v17 = vpop.permute.xlu0 %10821  ;;  %v11533_v36 = vmul.f32 %v21261_v39, %v23513_v34 }
0x205d   :  { %20211 = vmatpush3.msra.mxu1 %v10822_v17 }
0x205e   :  { %20213 = vmatmul.mubr.msk.f32.vlgmr.msra.gmra.mrb[148].mxu1 %vm309_vm2, %v11533_v36  ;;  %20220 = vmatprep.subr.mxu1 %v21431_v0 }
0x205f   :  { %20222 = vmatprep.mubr.msk.f32.mxu1 %vm21435_vm1, %v21431_v0  ;;  %v21263_v3 = vpop.eup %21262 }
0x2060   :  { %v11535_v21 = vmul.f32 %v21263_v3, %v23519_v35 }
0x206d   :  { %10830 = vrot.lane.b32.xlu1 %v23280_v15, %s21441_s21 }
0x208d   :  { %v11502_v38 = vpop.xlane.xlu0 %11501 }
0x208e   :  { %21264 = vrcp.f32 %v11502_v38 }
0x2091   :  { %v10828_v10 = vpop.permute.xlu0 %10827 }
0x2092   :  { %20221 = vmatpush3.msra.mxu1 %v10828_v10 }
0x2093   :  { %20223 = vmatmul.mubr.msk.f32.vlgmr.msra.gmra.mrb[150].mxu1 %vm309_vm2, %v11535_v21 }
0x2094   :  { %12280 = vmatprep.mubr.f32.mxu1 %v21431_v0 }
0x2098   :  { %v21265_v34 = vpop.eup %21264 }
0x2099   :  { %v11530_v16 = vmul.f32 %v21265_v34, %v23529_v37  ;;  %v12185_v37 = vld [vmem:[%s23593_s29 + $0x18] sm:$0xff]  ;;  %s18630_s29 = sld [smem:[%s24812_s0 + %s21469_s10]]  }
0x209a   :  { %v20783_v60 = vpack.c.bf16 %v12185_v37, %v12183_v1  ;;  %v12316_v1 = vld [vmem:[%s23629_s3 + $0x98] sm:$0xff]  ;;  %s18633_s10 = sld [smem:[%s24812_s0 + %s21472_s6]]  }
0x209b   :  { %20198 = vmatmul.mubr.msk.f32.vlgmr.msra.gmra.mrb[128].mxu0 %vm309_vm2, %v11530_v16  ;;  %s18640_s6 = sld [smem:[%s24812_s0 + %s21478_s4]]  }
0x209c   :  { %20206 = vmatpush3.msra.mxu0 %v10819_v46  ;;  %20207 = vmatprep.mubr.msk.f32.mxu0 %vm21435_vm1, %v21431_v0  ;;  %v12313_v46 = vld [vmem:[%s23629_s3 + $0x80] sm:$0xff] }
0x209d   :  { %20215 = vmatprep.subr.mxu0 %v21431_v0  ;;  %20784 = vmatprep.subr.bf16.mxu1 %v20783_v60 }
0x209e   :  { %20786 = vmatpush1.bf16.msra.mxu1 %v20785_v50  ;;  %v12318_v50 = vld [vmem:[%s23629_s3 + $0xa8] sm:$0xff] }
0x209f   :  { %20788 = vmatprep.subr.bf16.mxu1 %v20787_v40  ;;  %v20807_v40 = vpack.c.bf16 %v12318_v50, %v12317_v59 }
0x20c2   :  { %v12158_v15 = vpop.xlane.xlu0 %12157 }
0x20c3   :  { %v12162_v43 = vmul.f32 0.015625, %v12158_v15  ;;  %v12314_v15 = vld [vmem:[%s23629_s3 + $0x88] sm:$0xff] }
0x20c5   :  { %v23585_v35 = vsub.f32 %v23543_v8, %v12162_v43  ;;  %v20789_v8 = vpack.c.bf16 %v12188_v5, %v12186_v24  ;;  %v12297_v43 = vld [vmem:[%s23629_s3] sm:$0xff]  ;;  %v12302_v5 = vld [vmem:[%s23629_s3 + $0x28] sm:$0xff] }
0x20c6   :  { %v12301_v24 = vld [vmem:[%s23629_s3 + $0x20] sm:$0xff] }
0x20c7   :  { %v12166_v47 = vmul.f32 %v23585_v35, %v23585_v35  ;;  %20790 = vmatpush1.bf16.msra.mxu1 %v20789_v8  ;;  %v12319_v8 = vld [vmem:[%s23629_s3 + $0xb0] sm:$0xff]  ;;  %v20809_v31 = vpack.c.bf16 %v12302_v5, %v12301_v24 }
0x20c8   :  { %20792 = vmatprep.subr.bf16.mxu1 %v20791_v7  ;;  %v20811_v7 = vpack.c.bf16 %v12320_v22, %v12319_v8 }
0x20c9   :  { %v12168_v32 = vsel %vm186_vm0, %v12166_v47, 0.0  ;;  %v20799_v47 = vpack.c.bf16 %v12314_v15, %v12313_v46 }
0x20ca   :  { %12169 = vadd.xlane.f32.xlu1 %v12168_v32  ;;  %v12298_v32 = vld [vmem:[%s23629_s3 + $0x8] sm:$0xff] }
0x20cb   :  { %20794 = vmatpush1.bf16.msra.mxu1 %v20793_v13  ;;  %v20801_v37 = vpack.c.bf16 %v12298_v32, %v12297_v43  ;;  %v12322_v13 = vld [vmem:[%s23629_s3 + $0xc8] sm:$0xff] }
0x20cc   :  { %20796 = vmatprep.subr.bf16.mxu1 %v20795_v42  ;;  %v12305_v42 = vld [vmem:[%s23629_s3 + $0x40] sm:$0xff] }
0x20cd   :  { %v20817_v18 = vpack.c.bf16 %v12306_v23, %v12305_v42 }
0x20cf   :  { %20798 = vmatpush1.bf16.msra.mxu1 %v20797_v26  ;;  %v12324_v26 = vld [vmem:[%s23629_s3 + $0xd8] sm:$0xff] }
0x20e1   :  { %v11508_v54 = vpop.xlane.xlu1 %11507 }
0x20e2   :  { %21266 = vrcp.f32 %v11508_v54  ;;  %v12321_v54 = vld [vmem:[%s23629_s3 + $0xc0] sm:$0xff] }
0x20e3   :  { %v20815_v56 = vpack.c.bf16 %v12322_v13, %v12321_v54 }
0x20e5   :  { %v11514_v4 = vpop.xlane.xlu1 %11513 }
0x20e6   :  { %21268 = vrcp.f32 %v11514_v4  ;;  %v12323_v4 = vld [vmem:[%s23629_s3 + $0xd0] sm:$0xff] }
0x20e9   :  { %v11520_v63 = vpop.xlane.xlu1 %11519 }
0x20ea   :  { %21270 = vrcp.f32 %v11520_v63  ;;  %v20819_v63 = vpack.c.bf16 %v12324_v26, %v12323_v4  ;;  %v23701_v4 = vld [vmem:[%s18629_s8] ss:$0 sm:$0xff] }
0x20ec   :  { %v21267_v62 = vpop.eup %21266 }
0x20ed   :  { %v11532_v9 = vmul.f32 %v21267_v62, %v23556_v48  ;;  %v10831_v25 = vpop.permute.xlu1 %10830  ;;  %v12307_v62 = vld [vmem:[%s23629_s3 + $0x50] sm:$0xff] }
0x20ef   :  { %20208 = vmatmul.mubr.msk.f32.vlgmr.msra.gmra.mrb[130].mxu0 %vm309_vm2, %v11532_v9  ;;  %v12308_v9 = vld [vmem:[%s23629_s3 + $0x58] sm:$0xff] }
0x20f0   :  { %v21269_v44 = vpop.eup %21268  ;;  %20216 = vmatpush3.msra.mxu0 %v10825_v2  ;;  %20217 = vmatprep.mubr.msk.f32.mxu0 %vm21435_vm1, %v21431_v0 }
0x20f1   :  { %20225 = vmatprep.subr.mxu0 %v21431_v0  ;;  %v11534_v12 = vmul.f32 %v21269_v44, %v23560_v41  ;;  %v20821_v44 = vpack.c.bf16 %v12308_v9, %v12307_v62 }
0x20f3   :  { %20218 = vmatmul.mubr.msk.f32.vlgmr.msra.gmra.mrb[132].mxu0 %vm309_vm2, %v11534_v12  ;;  %v12325_v12 = vld [vmem:[%s23629_s3 + $0xe0] sm:$0xff] }
0x20f4   :  { %v21271_v28 = vpop.eup %21270  ;;  %20226 = vmatpush3.msra.mxu0 %v10831_v25  ;;  %20227 = vmatprep.mubr.msk.f32.mxu0 %vm21435_vm1, %v21431_v0  ;;  %v12326_v25 = vld [vmem:[%s23629_s3 + $0xe8] sm:$0xff] }
0x20f5   :  { %v11536_v48 = vmul.f32 %v21271_v28, %v23564_v14  ;;  %20800 = vmatprep.subr.bf16.mxu0 %v20799_v47  ;;  %v20823_v28 = vpack.c.bf16 %v12326_v25, %v12325_v12 }
0x20f7   :  { %20228 = vmatmul.mubr.msk.f32.vlgmr.msra.gmra.mrb[134].mxu0 %vm309_vm2, %v11536_v48  ;;  %v12309_v48 = vld [vmem:[%s23629_s3 + $0x60] sm:$0xff] }
0x20f8   :  { %20802 = vmatpush3.bf16.msra.mxu0 %v20801_v37 }
0x211c   :  { %v23622_v55 = vpop.f32.mrb[144].mxu1 }
0x211d   :  { %v20194_v39 = vpop.f32.mrb[145].mxu1 }
0x211e   :  { %v12310_v39 = vld [vmem:[%s23629_s3 + $0x68] sm:$0xff] }
0x2120   :  { %v11752_v20 = vpop.f32.mrb[146].mxu1 }
0x2121   :  { %12126 = vrot.lane.b32.xlu1 %v11752_v20, %s21442_s22  ;;  %v20204_v17 = vpop.f32.mrb[147].mxu1  ;;  %v20825_v20 = vpack.c.bf16 %v12310_v39, %v12309_v48 }
0x2122   :  { %v12327_v17 = vld [vmem:[%s23629_s3 + $0xf0] sm:$0xff] }
0x2131   :  { %v11898_v41 = vpop.f32.mrb[148].mxu1 }
0x2132   :  { %12134 = vrot.lane.b32.xlu1 %v11898_v41, %s21447_s27  ;;  %v20214_v36 = vpop.f32.mrb[149].mxu1  ;;  %v12328_v41 = vld [vmem:[%s23629_s3 + $0xf8] sm:$0xff] }
0x2133   :  { %v20827_v36 = vpack.c.bf16 %v12328_v41, %v12327_v17 }
0x2157   :  { %v12170_v38 = vpop.xlane.xlu1 %12169 }
0x2158   :  { %v12174_v3 = vmul.f32 0.015873017, %v12170_v38  ;;  %v12311_v38 = vld [vmem:[%s23629_s3 + $0x70] sm:$0xff] }
0x215a   :  { %21272 = vrsqrt.f32 %v12174_v3  ;;  %v12312_v3 = vld [vmem:[%s23629_s3 + $0x78] sm:$0xff] }
0x2164   :  { %v21273_v14 = vpop.eup %21272 }
0x2165   :  { %v12178_v10 = vmul.f32 %v21273_v14, %v23585_v35  ;;  %v12315_v35 = vld [vmem:[%s23629_s3 + $0x90] sm:$0xff]  ;;  %v20829_v14 = vpack.c.bf16 %v12312_v3, %v12311_v38  ;;  %v12438_v38 = vld [vmem:[%s18630_s29 + $0x8] sm:$0xff] }
0x2166   :  { %v12044_v21 = vpop.f32.mrb[150].mxu1  ;;  %v20803_v60 = vpack.c.bf16 %v12316_v1, %v12315_v35 }
0x2167   :  { %12142 = vrot.lane.b32.xlu1 %v12044_v21, %s21448_s28  ;;  %v20224_v34 = vpop.f32.mrb[151].mxu1  ;;  %v23634_v16 = vadd.f32 %v12178_v10, %v23208_v49  ;;  %v12299_v49 = vld [vmem:[%s23629_s3 + $0x10] sm:$0xff]  ;;  %s18631_s3 = sld [smem:[%s24812_s0 + %s21470_s30]]  }
0x2168   :  { %v20805_v58 = vpack.c.bf16 %v12300_v53, %v12299_v49  ;;  %20804 = vmatprep.subr.bf16.mxu0 %v20803_v60  ;;  %v12198_v49 = vld [vmem:[%s18627_s5] sm:$0x3]  ;;  %s24160_s5 = sld [smem:[%s24812_s0 + %s21471_s9]]  }
0x2169   :  { %18853 = vmatmul.mubr.msk.f32.vlgmr.msra.gmra.mrb[152].mxu1 %vm186_vm0, %v23634_v16  ;;  %s18634_s30 = sld [smem:[%s24812_s0 + %s21473_s12]]  }
0x216a   :  { %12286 = vmatprep.mubr.f32.mxu1 %v21431_v0  ;;  %20806 = vmatpush3.bf16.msra.mxu0 %v20805_v58  ;;  %v23685_v58 = vrot.slane %v12198_v49, %v21527_v29  ;;  %s18635_s9 = sld [smem:[%s24812_s0 + %s21474_s1]]  }
0x216b   :  { %20808 = vmatprep.subr.bf16.mxu0 %v20807_v40  ;;  %v23689_v40 = vrot.slane %v12198_v49, %v21588_v52  ;;  %v12447_v49 = vld [vmem:[%s18630_s29 + $0x50] sm:$0xff]  ;;  %s18641_s12 = sld [smem:[%s24812_s0 + %s21479_s7]]  }
0x216c   :  { %s18642_s1 = sld [smem:[%s24812_s0 + %s21480_s13]]  }
0x216e   :  { %v11679_v19 = vpop.f32.mrb[128].mxu0  ;;  %20810 = vmatpush3.bf16.msra.mxu0 %v20809_v31 }
0x216f   :  { %v20199_v2 = vpop.f32.mrb[129].mxu0  ;;  %12122 = vrot.lane.b32.xlu0 %v11679_v19, %s21445_s25  ;;  %20812 = vmatprep.subr.bf16.mxu0 %v20811_v7 }
0x2172   :  { %20814 = vmatpush3.bf16.msra.mxu0 %v20813_v6 }
0x2173   :  { %20816 = vmatprep.subr.bf16.mxu0 %v20815_v56 }
0x2176   :  { %20818 = vmatpush3.bf16.msra.mxu0 %v20817_v18 }
0x2177   :  { %20820 = vmatprep.subr.bf16.mxu0 %v20819_v63 }
0x217a   :  { %20822 = vmatpush3.bf16.msra.mxu0 %v20821_v44 }
0x217b   :  { %20824 = vmatprep.subr.bf16.mxu0 %v20823_v28 }
0x217e   :  { %20826 = vmatpush3.bf16.msra.mxu0 %v20825_v20 }
0x217f   :  { %20828 = vmatprep.subr.bf16.mxu0 %v20827_v36 }
0x2182   :  { %20830 = vmatpush3.bf16.msra.mxu0 %v20829_v14  ;;  %v12437_v14 = vld [vmem:[%s18630_s29] sm:$0xff] }
0x2183   :  { %20235 = vmatprep.subr.mxu0 %v21431_v0 }
0x2193   :  { %v12127_v35 = vpop.permute.xlu1 %12126 }
0x21a4   :  { %v12135_v53 = vpop.permute.xlu1 %12134 }
0x21c2   :  { %v11825_v10 = vpop.f32.mrb[130].mxu0 }
0x21c3   :  { %12130 = vrot.lane.b32.xlu0 %v11825_v10, %s21443_s23  ;;  %v20209_v21 = vpop.f32.mrb[131].mxu0  ;;  %v12439_v10 = vld [vmem:[%s18630_s29 + $0x10] sm:$0xff] }
0x21c4   :  { %v20833_v21 = vpack.c.bf16 %v12439_v10, %v12437_v14 }
0x21c6   :  { %v11971_v34 = vpop.f32.mrb[132].mxu0 }
0x21c7   :  { %12138 = vrot.lane.b32.xlu0 %v11971_v34, %s21444_s24  ;;  %v20219_v46 = vpop.f32.mrb[133].mxu0  ;;  %v12442_v34 = vld [vmem:[%s18630_s29 + $0x28] sm:$0xff] }
0x21c8   :  { %v12444_v46 = vld [vmem:[%s18630_s29 + $0x38] sm:$0xff] }
0x21ca   :  { %v12117_v15 = vpop.f32.mrb[134].mxu0 }
0x21cb   :  { %12146 = vrot.lane.b32.xlu0 %v12117_v15, %s21446_s26  ;;  %v20229_v43 = vpop.f32.mrb[135].mxu0  ;;  %v20835_v15 = vpack.c.bf16 %v12444_v46, %v12442_v34 }
0x21cc   :  { %v12441_v43 = vld [vmem:[%s18630_s29 + $0x20] sm:$0xff] }
0x21e1   :  { %v12123_v47 = vpop.permute.xlu0 %12122 }
0x21e2   :  { %v12149_v32 = vsel %vm309_vm2, %v23622_v55, %v12123_v47  ;;  %v12143_v55 = vpop.permute.xlu1 %12142  ;;  %v12443_v47 = vld [vmem:[%s18630_s29 + $0x30] sm:$0xff] }
0x21e3   :  { %v12150_v37 = vsel %vm1617_vm3, %v12149_v32, %v12127_v35  ;;  %v20837_v32 = vpack.c.bf16 %v12443_v47, %v12441_v43  ;;  %v12446_v35 = vld [vmem:[%s18630_s29 + $0x48] sm:$0xff] }
0x2235   :  { %v12131_v1 = vpop.permute.xlu0 %12130 }
0x2236   :  { %v12151_v60 = vsel %vm1619_vm4, %v12150_v37, %v12131_v1  ;;  %v12448_v1 = vld [vmem:[%s18630_s29 + $0x58] sm:$0xff] }
0x2237   :  { %v12152_v50 = vsel %vm1621_vm5, %v12151_v60, %v12135_v53  ;;  %v20839_v37 = vpack.c.bf16 %v12448_v1, %v12446_v35  ;;  %v12445_v60 = vld [vmem:[%s18630_s29 + $0x40] sm:$0xff] }
0x2238   :  { %v20841_v53 = vpack.c.bf16 %v12447_v49, %v12445_v60 }
0x2239   :  { %v12139_v59 = vpop.permute.xlu0 %12138 }
0x223a   :  { %v12153_v19 = vsel %vm1623_vm6, %v12152_v50, %v12139_v59  ;;  %v12450_v59 = vld [vmem:[%s18630_s29 + $0x68] sm:$0xff]  ;;  %v12452_v50 = vld [vmem:[%s18630_s29 + $0x78] sm:$0xff] }
0x223b   :  { %v12154_v8 = vsel %vm1625_vm7, %v12153_v19, %v12143_v55  ;;  %v20843_v19 = vpack.c.bf16 %v12452_v50, %v12450_v59  ;;  %v12449_v55 = vld [vmem:[%s18630_s29 + $0x60] sm:$0xff] }
0x223c   :  { %v12282_v24 = vpop.f32.mrb[152].mxu1 }
0x223d   :  { %v12283_v5 = vadd.f32 %v12282_v24, %v23685_v58  ;;  %v12147_v2 = vpop.permute.xlu0 %12146  ;;  %v12284_v22 = vpop.f32.mrb[153].mxu1  ;;  %v12451_v24 = vld [vmem:[%s18630_s29 + $0x70] sm:$0xff] }
0x223e   :  { %v12155_v31 = vsel %vm1627_vm8, %v12154_v8, %v12147_v2  ;;  %v12285_v7 = vadd.f32 %v12284_v22, %v23689_v40 }
0x223f   :  { %v12159_v45 = vsel %vm186_vm0, %v12155_v31, 0.0  ;;  %v12293_v54 = vmax.f32 %v12283_v5, 0.0  ;;  %v20845_v5 = vpack.c.bf16 %v12451_v24, %v12449_v55 }
0x2240   :  { %v12294_v51 = vmax.f32 %v12285_v7, 0.0  ;;  %12160 = vadd.xlane.f32.xlu1 %v12159_v45 }
0x2242   :  { %12400 = vmatprep.mubr.f32.mxu0 %v12294_v51 }
0x2243   :  { %12401 = vmatmul.mubr.f32.vlgmr.msra.gmra.mrb[136].mxu0 %v12293_v54 }
0x22cd   :  { %v12161_v13 = vpop.xlane.xlu1 %12160 }
0x22ce   :  { %v12163_v6 = vmul.f32 0.015625, %v12161_v13 }
0x22d0   :  { %v12165_v56 = vsub.f32 %v12155_v31, %v12163_v6 }
0x22d2   :  { %v12167_v42 = vmul.f32 %v12165_v56, %v12165_v56 }
0x22d4   :  { %v12171_v23 = vsel %vm186_vm0, %v12167_v42, 0.0 }
0x22d5   :  { %12172 = vadd.xlane.f32.xlu0 %v12171_v23 }
0x2316   :  { %v19350_v18 = vpop.f32.mrb[136].mxu0 }
0x2317   :  { %v19351_v26 = vpop.f32.mrb[137].mxu0 }
0x2318   :  { %v19352_v63 = vadd.f32 %v19351_v26, %v19350_v18 }
0x231a   :  { %v12403_v62 = vadd.f32 %v19352_v63, %v23701_v4 }
0x231c   :  { %v12411_v9 = vsel %vm186_vm0, %v12403_v62, 0.0 }
0x231d   :  { %12412 = vadd.xlane.f32.xlu0 %v12411_v9 }
0x2362   :  { %v12173_v44 = vpop.xlane.xlu0 %12172 }
0x2363   :  { %v12175_v12 = vmul.f32 0.015873017, %v12173_v44 }
0x2365   :  { %21274 = vrsqrt.f32 %v12175_v12 }
0x236f   :  { %v21275_v25 = vpop.eup %21274 }
0x2370   :  { %v12179_v28 = vmul.f32 %v21275_v25, %v12165_v56 }
0x2372   :  { %v23706_v48 = vadd.f32 %v12179_v28, %v23230_v57  ;;  %v12440_v57 = vld [vmem:[%s18630_s29 + $0x18] sm:$0xff] }
0x2373   :  { %v20831_v3 = vpack.c.bf16 %v12440_v57, %v12438_v38 }
0x2374   :  { %18854 = vmatmul.mubr.msk.f32.gmra.mrb[154].mxu1 %vm186_vm0, %v23706_v48 }
0x2375   :  { %12535 = vmatprep.mubr.f32.mxu1 %v21431_v0  ;;  %20832 = vmatprep.subr.bf16.mxu1 %v20831_v3 }
0x2376   :  { %20834 = vmatpush1.bf16.msra.mxu1 %v20833_v21 }
0x2377   :  { %20836 = vmatprep.subr.bf16.mxu1 %v20835_v15 }
0x237a   :  { %20838 = vmatpush1.bf16.msra.mxu1 %v20837_v32 }
0x237b   :  { %20840 = vmatprep.subr.bf16.mxu1 %v20839_v37 }
0x237e   :  { %20842 = vmatpush1.bf16.msra.mxu1 %v20841_v53 }
0x237f   :  { %20844 = vmatprep.subr.bf16.mxu1 %v20843_v19 }
0x2382   :  { %20846 = vmatpush1.bf16.msra.mxu1 %v20845_v5 }
0x2383   :  { %20230 = vmatprep.subr.mxu1 %v21431_v0 }
0x23aa   :  { %v12413_v39 = vpop.xlane.xlu0 %12412 }
0x23ab   :  { %v12417_v20 = vmul.f32 0.015625, %v12413_v39 }
0x23ad   :  { %v12419_v17 = vsub.f32 %v12403_v62, %v12417_v20 }
0x23af   :  { %v12421_v41 = vmul.f32 %v12419_v17, %v12419_v17 }
0x23b1   :  { %v12423_v36 = vsel %vm186_vm0, %v12421_v41, 0.0 }
0x23b2   :  { %12424 = vadd.xlane.f32.xlu1 %v12423_v36 }
0x243f   :  { %v12425_v2 = vpop.xlane.xlu1 %12424 }
0x2440   :  { %v12429_v8 = vmul.f32 0.015873017, %v12425_v2 }
0x2442   :  { %21276 = vrsqrt.f32 %v12429_v8 }
0x2447   :  { %v12288_v22 = vpop.f32.mrb[154].mxu1 }
0x2448   :  { %v12289_v31 = vadd.f32 %v12288_v22, %v23685_v58  ;;  %v12290_v7 = vpop.f32.mrb[155].mxu1  ;;  %v23729_v58 = vld [vmem:[%s18631_s3] sm:$0x3] }
0x2449   :  { %v12291_v45 = vadd.f32 %v12290_v7, %v23689_v40 }
0x244a   :  { %v12295_v13 = vmax.f32 %v12289_v31, 0.0 }
0x244b   :  { %v12296_v51 = vmax.f32 %v12291_v45, 0.0 }
0x244c   :  { %v21277_v54 = vpop.eup %21276 }
0x244d   :  { %v12433_v6 = vmul.f32 %v21277_v54, %v12419_v17  ;;  %12405 = vmatprep.mubr.f32.mxu0 %v12296_v51 }
0x244e   :  { %12406 = vmatmul.mubr.f32.gmra.mrb[138].mxu0 %v12295_v13 }
0x244f   :  { %v23719_v56 = vadd.f32 %v12433_v6, %v23634_v16  ;;  %20237 = vmatprep.mubr.msk.f32.mxu0 %vm21435_vm1, %v21431_v0  ;;  %v23733_v16 = vrot.slane %v23729_v58, %v21527_v29 }
0x2451   :  { %18856 = vmatmul.mubr.msk.f32.vlgmr.msra.gmra.mrb[156].mxu1 %vm186_vm0, %v23719_v56 }
0x2452   :  { %12541 = vmatprep.mubr.f32.mxu1 %v21431_v0 }
0x2521   :  { %v19353_v40 = vpop.f32.mrb[138].mxu0 }
0x2522   :  { %v19354_v42 = vpop.f32.mrb[139].mxu0 }
0x2523   :  { %v19355_v23 = vadd.f32 %v19354_v42, %v19353_v40 }
0x2524   :  { %v12537_v18 = vpop.f32.mrb[156].mxu1 }
0x2525   :  { %v12408_v26 = vadd.f32 %v19355_v23, %v23701_v4  ;;  %v23737_v63 = vadd.f32 %v12537_v18, %v23733_v16  ;;  %v23739_v62 = vpop.f32.mrb[157].mxu1 }
0x2527   :  { %12549 = vrot.lane.b32.xlu1 %v23737_v63, %s21434_s15  ;;  %v12414_v9 = vsel %vm186_vm0, %v12408_v26, 0.0 }
0x2528   :  { %12415 = vadd.xlane.f32.xlu0 %v12414_v9 }
0x252b   :  { %12553 = vrot.lane.b32.xlu1 %v23737_v63, %s21433_s14 }
0x252f   :  { %12555 = vrot.lane.b32.xlu1 %v23737_v63, %s21436_s16 }
0x2533   :  { %12559 = vrot.lane.b32.xlu1 %v23737_v63, %s21438_s18 }
0x253e   :  { %12551 = vrot.lane.b32.xlu0 %v23737_v63, %s21437_s17 }
0x2542   :  { %12557 = vrot.lane.b32.xlu0 %v23737_v63, %s21439_s19 }
0x2546   :  { %12561 = vrot.lane.b32.xlu0 %v23737_v63, %s21441_s21 }
0x254a   :  { %12585 = vrot.lane.b32.xlu0 %v23737_v63, %s21440_s20 }
0x2599   :  { %v12550_v4 = vpop.permute.xlu1 %12549 }
0x259a   :  { %12661 = vrot.lane.b32.xlu0 %v12550_v4, %s21440_s20 }
0x259d   :  { %v12554_v20 = vpop.permute.xlu1 %12553 }
0x25a1   :  { %v12556_v36 = vpop.permute.xlu1 %12555 }
0x25a5   :  { %v12560_v3 = vpop.permute.xlu1 %12559 }
0x25b5   :  { %v12416_v44 = vpop.xlane.xlu0 %12415 }
0x25b6   :  { %v12418_v12 = vmul.f32 0.015625, %v12416_v44 }
0x25b8   :  { %v12420_v25 = vsub.f32 %v12408_v26, %v12418_v12 }
0x25b9   :  { %v12552_v28 = vpop.permute.xlu0 %12551 }
0x25ba   :  { %12737 = vrot.lane.b32.xlu0 %v12552_v28, %s21440_s20  ;;  %v12422_v39 = vmul.f32 %v12420_v25, %v12420_v25 }
0x25bc   :  { %v12426_v17 = vsel %vm186_vm0, %v12422_v39, 0.0 }
0x25bd   :  { %12427 = vadd.xlane.f32.xlu1 %v12426_v17  ;;  %v12558_v41 = vpop.permute.xlu0 %12557 }
0x25be   :  { %12813 = vrot.lane.b32.xlu0 %v12554_v20, %s21440_s20 }
0x25c1   :  { %v12562_v38 = vpop.permute.xlu0 %12561 }
0x25c2   :  { %12889 = vrot.lane.b32.xlu0 %v12556_v36, %s21440_s20 }
0x25c5   :  { %v12586_v57 = vpop.permute.xlu0 %12585 }
0x25c6   :  { %12965 = vrot.lane.b32.xlu0 %v12558_v41, %s21440_s20  ;;  %20231 = vmatpush3.xpose.msk.msra.mxu1 %vm309_vm2, %v12586_v57 }
0x25c7   :  { %20240 = vmatprep.subr.mxu1 %v21431_v0 }
0x25ca   :  { %13041 = vrot.lane.b32.xlu0 %v12560_v3, %s21440_s20 }
0x25ce   :  { %13117 = vrot.lane.b32.xlu0 %v12562_v38, %s21440_s20 }
0x260c   :  { %v12662_v14 = vpop.permute.xlu0 %12661 }
0x260d   :  { %20236 = vmatpush3.xpose.msk.msra.mxu0 %vm309_vm2, %v12662_v14 }
0x260e   :  { %20245 = vmatprep.subr.mxu0 %v21431_v0 }
0x2610   :  { %20238 = vmatmul.mubr.msk.f32.vlgmr.msra.gmra.mrb[140].mxu0 %vm309_vm2, %v12550_v4 }
0x2611   :  { %20247 = vmatprep.mubr.msk.f32.mxu0 %vm21435_vm1, %v21431_v0 }
0x262c   :  { %v12738_v10 = vpop.permute.xlu0 %12737 }
0x2630   :  { %v12814_v21 = vpop.permute.xlu0 %12813 }
0x2631   :  { %20246 = vmatpush3.xpose.msk.msra.mxu0 %vm309_vm2, %v12814_v21 }
0x2632   :  { %20255 = vmatprep.subr.mxu0 %v21431_v0 }
0x2634   :  { %20248 = vmatmul.mubr.msk.f32.vlgmr.msra.gmra.mrb[142].mxu0 %vm309_vm2, %v12554_v20  ;;  %v12890_v34 = vpop.permute.xlu0 %12889 }
0x2635   :  { %20257 = vmatprep.mubr.msk.f32.mxu0 %vm21435_vm1, %v21431_v0 }
0x2638   :  { %v12966_v46 = vpop.permute.xlu0 %12965 }
0x2639   :  { %20256 = vmatpush3.xpose.msk.msra.mxu0 %vm309_vm2, %v12966_v46 }
0x263a   :  { %20265 = vmatprep.subr.mxu0 %v21431_v0 }
0x263c   :  { %20258 = vmatmul.mubr.msk.f32.vlgmr.msra.gmra.mrb[144].mxu0 %vm309_vm2, %v12558_v41  ;;  %v13042_v15 = vpop.permute.xlu0 %13041 }
0x263d   :  { %20267 = vmatprep.mubr.msk.f32.mxu0 %vm21435_vm1, %v21431_v0 }
0x2640   :  { %v13118_v43 = vpop.permute.xlu0 %13117 }
0x2641   :  { %20266 = vmatpush3.xpose.msk.msra.mxu0 %vm309_vm2, %v13118_v43 }
0x2642   :  { %20275 = vmatprep.subr.mxu0 %v21431_v0 }
0x2644   :  { %20268 = vmatmul.mubr.msk.f32.vlgmr.msra.gmra.mrb[146].mxu0 %vm309_vm2, %v12562_v38 }
0x2645   :  { %20277 = vmatprep.mubr.msk.f32.mxu0 %vm21435_vm1, %v21431_v0 }
0x264a   :  { %v12428_v47 = vpop.xlane.xlu1 %12427 }
0x264b   :  { %v12430_v32 = vmul.f32 0.015873017, %v12428_v47 }
0x264d   :  { %21278 = vrsqrt.f32 %v12430_v32 }
0x2657   :  { %v21279_v35 = vpop.eup %21278 }
0x2658   :  { %v12434_v1 = vmul.f32 %v21279_v35, %v12420_v25 }
0x265a   :  { %v23789_v37 = vadd.f32 %v12434_v1, %v23706_v48  ;;  %v23808_v48 = vrot.slane %v23729_v58, %v21588_v52 }
0x265c   :  { %18857 = vmatmul.mubr.msk.f32.gmra.mrb[158].mxu1 %vm186_vm0, %v23789_v37  ;;  %v23817_v60 = vadd.f32 %v23739_v62, %v23808_v48 }
0x265d   :  { %20232 = vmatprep.mubr.msk.f32.mxu1 %vm21435_vm1, %v21431_v0 }
0x2660   :  { %20233 = vmatmul.mubr.msk.f32.vlgmr.msra.gmra.mrb[160].mxu1 %vm309_vm2, %v23737_v63 }
0x2661   :  { %20241 = vmatpush3.xpose.msk.msra.mxu1 %vm309_vm2, %v12738_v10  ;;  %20242 = vmatprep.mubr.msk.f32.mxu1 %vm21435_vm1, %v21431_v0 }
0x2662   :  { %20250 = vmatprep.subr.mxu1 %v21431_v0 }
0x2664   :  { %20243 = vmatmul.mubr.msk.f32.vlgmr.msra.gmra.mrb[162].mxu1 %vm309_vm2, %v12552_v28 }
0x2665   :  { %20251 = vmatpush3.xpose.msk.msra.mxu1 %vm309_vm2, %v12890_v34  ;;  %20252 = vmatprep.mubr.msk.f32.mxu1 %vm21435_vm1, %v21431_v0 }
0x2666   :  { %20260 = vmatprep.subr.mxu1 %v21431_v0 }
0x2668   :  { %20253 = vmatmul.mubr.msk.f32.vlgmr.msra.gmra.mrb[164].mxu1 %vm309_vm2, %v12556_v36 }
0x2669   :  { %20261 = vmatpush3.xpose.msk.msra.mxu1 %vm309_vm2, %v13042_v15  ;;  %20262 = vmatprep.mubr.msk.f32.mxu1 %vm21435_vm1, %v21431_v0 }
0x266a   :  { %20270 = vmatprep.subr.mxu1 %v21431_v0 }
0x266c   :  { %20263 = vmatmul.mubr.msk.f32.vlgmr.msra.gmra.mrb[166].mxu1 %vm309_vm2, %v12560_v3 }
0x266d   :  { %20271 = vmatpush3.msra.mxu1 %v23817_v60  ;;  %20272 = vmatprep.mubr.msk.f32.mxu1 %vm21435_vm1, %v21431_v0 }
0x266e   :  { %20280 = vmatprep.subr.mxu1 %v21431_v0 }
0x26e3   :  { %v12733_v49 = vpop.f32.mrb[140].mxu0 }
0x26e4   :  { %v13194_v53 = vsel %vm7136_vm10, 0.0, %v12733_v49  ;;  %v20239_v59 = vpop.f32.mrb[141].mxu0 }
0x26e5   :  { %v13204_v50 = vsel %vm309_vm2, %v13194_v53, -inf }
0x26e6   :  { %13205 = vmax.xlane.f32.xlu1 %v13204_v50 }
0x2707   :  { %v12885_v19 = vpop.f32.mrb[142].mxu0 }
0x2708   :  { %v13196_v55 = vsel %vm7136_vm10, 0.0, %v12885_v19  ;;  %v20249_v24 = vpop.f32.mrb[143].mxu0 }
0x2709   :  { %v13210_v5 = vsel %vm309_vm2, %v13196_v55, -inf }
0x270a   :  { %13211 = vmax.xlane.f32.xlu1 %v13210_v5 }
0x270f   :  { %v13037_v2 = vpop.f32.mrb[144].mxu0 }
0x2710   :  { %v13198_v8 = vsel %vm7136_vm10, 0.0, %v13037_v2  ;;  %v20259_v22 = vpop.f32.mrb[145].mxu0 }
0x2711   :  { %v13216_v31 = vsel %vm309_vm2, %v13198_v8, -inf }
0x2712   :  { %13217 = vmax.xlane.f32.xlu1 %v13216_v31 }
0x2717   :  { %v13189_v7 = vpop.f32.mrb[146].mxu0 }
0x2718   :  { %v13200_v45 = vsel %vm7136_vm10, 0.0, %v13189_v7  ;;  %v20269_v51 = vpop.f32.mrb[147].mxu0 }
0x2719   :  { %v13222_v54 = vsel %vm309_vm2, %v13200_v45, -inf }
0x271a   :  { %13223 = vmax.xlane.f32.xlu1 %v13222_v54 }
0x272f   :  { %v12543_v13 = vpop.f32.mrb[158].mxu1 }
0x2730   :  { %v23837_v6 = vadd.f32 %v12543_v13, %v23733_v16  ;;  %v23839_v58 = vpop.f32.mrb[159].mxu1 }
0x2732   :  { %13909 = vrot.lane.b32.xlu1 %v23837_v6, %s21434_s15 }
0x2733   :  { %v12657_v40 = vpop.f32.mrb[160].mxu1 }
0x2734   :  { %v13193_v42 = vsel %vm7136_vm10, 0.0, %v12657_v40  ;;  %v20234_v23 = vpop.f32.mrb[161].mxu1 }
0x2735   :  { %v13201_v18 = vsel %vm309_vm2, %v13193_v42, -inf }
0x2736   :  { %13202 = vmax.xlane.f32.xlu0 %v13201_v18  ;;  %13913 = vrot.lane.b32.xlu1 %v23837_v6, %s21433_s14 }
0x2737   :  { %v12809_v26 = vpop.f32.mrb[162].mxu1 }
0x2738   :  { %v20244_v63 = vpop.f32.mrb[163].mxu1  ;;  %v23860_v44 = vsel %vm7136_vm10, 0.0, %v12809_v26 }
0x2739   :  { %v13207_v12 = vsel %vm309_vm2, %v23860_v44, -inf }
0x273a   :  { %13915 = vrot.lane.b32.xlu1 %v23837_v6, %s21436_s16 }
0x273b   :  { %v12961_v16 = vpop.f32.mrb[164].mxu1 }
0x273c   :  { %v20254_v62 = vpop.f32.mrb[165].mxu1  ;;  %v23868_v25 = vsel %vm7136_vm10, 0.0, %v12961_v16 }
0x273d   :  { %v13213_v28 = vsel %vm309_vm2, %v23868_v25, -inf }
0x273f   :  { %v13113_v9 = vpop.f32.mrb[166].mxu1 }
0x2740   :  { %v20264_v4 = vpop.f32.mrb[167].mxu1  ;;  %v23876_v39 = vsel %vm7136_vm10, 0.0, %v13113_v9 }
0x2741   :  { %v13219_v20 = vsel %vm309_vm2, %v23876_v39, -inf }
0x274c   :  { %13911 = vrot.lane.b32.xlu0 %v23837_v6, %s21437_s17 }
0x2750   :  { %13917 = vrot.lane.b32.xlu0 %v23837_v6, %s21439_s19 }
0x2754   :  { %13921 = vrot.lane.b32.xlu0 %v23837_v6, %s21441_s21 }
0x2758   :  { %12564 = vrot.lane.b32.xlu0 %v23817_v60, %s21434_s15 }
0x275c   :  { %12573 = vrot.lane.b32.xlu0 %v23817_v60, %s21436_s16 }
0x275e   :  { %13208 = vmax.xlane.f32.xlu1 %v13207_v12 }
0x2760   :  { %12579 = vrot.lane.b32.xlu0 %v23817_v60, %s21438_s18 }
0x2762   :  { %13214 = vmax.xlane.f32.xlu1 %v13213_v28 }
0x2766   :  { %13220 = vmax.xlane.f32.xlu1 %v13219_v20 }
0x2773   :  { %v13206_v17 = vpop.xlane.xlu1 %13205 }
0x2774   :  { %v13226_v41 = vsub.f32 %v13194_v53, %v13206_v17 }
0x2776   :  { %v13235_v36 = vmul.f32 1.442695, %v13226_v41 }
0x2777   :  { %13919 = vrot.lane.b32.xlu1 %v23837_v6, %s21438_s18 }
0x2778   :  { %21280 = vpow2.f32 %v13235_v36 }
0x277b   :  { %12567 = vrot.lane.b32.xlu1 %v23817_v60, %s21437_s17 }
0x277f   :  { %12570 = vrot.lane.b32.xlu1 %v23817_v60, %s21433_s14 }
0x2782   :  { %v23886_v38 = vpop.eup %21280 }
0x2783   :  { %12576 = vrot.lane.b32.xlu1 %v23817_v60, %s21439_s19  ;;  %v13252_v57 = vsel %vm309_vm2, %v23886_v38, 0.0 }
0x2784   :  { %13253 = vadd.xlane.f32.xlu0 %v13252_v57 }
0x2797   :  { %v13212_v3 = vpop.xlane.xlu1 %13211 }
0x2798   :  { %v13228_v14 = vsub.f32 %v13196_v55, %v13212_v3 }
0x279a   :  { %v13239_v10 = vmul.f32 1.442695, %v13228_v14 }
0x279c   :  { %21282 = vpow2.f32 %v13239_v10 }
0x279f   :  { %v13218_v21 = vpop.xlane.xlu1 %13217 }
0x27a0   :  { %v13230_v34 = vsub.f32 %v13198_v8, %v13218_v21 }
0x27a2   :  { %v13243_v46 = vmul.f32 1.442695, %v13230_v34 }
0x27a4   :  { %21284 = vpow2.f32 %v13243_v46 }
0x27a6   :  { %v23892_v15 = vpop.eup %21282 }
0x27a7   :  { %v13224_v43 = vpop.xlane.xlu1 %13223  ;;  %v13258_v47 = vsel %vm309_vm2, %v23892_v15, 0.0 }
0x27a8   :  { %v13232_v32 = vsub.f32 %v13200_v45, %v13224_v43  ;;  %13259 = vadd.xlane.f32.xlu1 %v13258_v47 }
0x27aa   :  { %v13247_v35 = vmul.f32 1.442695, %v13232_v32 }
0x27ab   :  { %v23915_v7 = vpop.permute.xlu1 %13909 }
0x27ac   :  { %21286 = vpow2.f32 %v13247_v35 }
0x27ae   :  { %v23896_v1 = vpop.eup %21284 }
0x27af   :  { %v13264_v49 = vsel %vm309_vm2, %v23896_v1, 0.0  ;;  %v23917_v45 = vpop.permute.xlu1 %13913 }
0x27b0   :  { %13265 = vadd.xlane.f32.xlu1 %v13264_v49 }
0x27b3   :  { %v23921_v51 = vpop.permute.xlu1 %13915 }
0x27b6   :  { %v23900_v53 = vpop.eup %21286 }
0x27b7   :  { %v13270_v59 = vsel %vm309_vm2, %v23900_v53, 0.0 }
0x27b8   :  { %13271 = vadd.xlane.f32.xlu1 %v13270_v59 }
0x27c3   :  { %v13203_v50 = vpop.xlane.xlu0 %13202 }
0x27c4   :  { %v13225_v19 = vsub.f32 %v13193_v42, %v13203_v50 }
0x27c6   :  { %v13233_v55 = vmul.f32 1.442695, %v13225_v19 }
0x27c7   :  { %v23904_v24 = vpop.permute.xlu0 %13911 }
0x27c8   :  { %21288 = vpow2.f32 %v13233_v55 }
0x27cb   :  { %v23906_v5 = vpop.permute.xlu0 %13917 }
0x27cf   :  { %v23908_v2 = vpop.permute.xlu0 %13921 }
0x27d2   :  { %v23910_v8 = vpop.eup %21288 }
0x27d3   :  { %v12565_v22 = vpop.permute.xlu0 %12564  ;;  %v13249_v31 = vsel %vm309_vm2, %v23910_v8, 0.0 }
0x27d4   :  { %13250 = vadd.xlane.f32.xlu1 %v13249_v31  ;;  %20276 = vmatpush3.msra.mxu0 %v12565_v22 }
0x27d5   :  { %20285 = vmatprep.subr.mxu0 %v21431_v0 }
0x27e5   :  { %12582 = vrot.lane.b32.xlu1 %v23817_v60, %s21441_s21 }
0x27e9   :  { %14021 = vrot.lane.b32.xlu1 %v23915_v7, %s21440_s20 }
0x27eb   :  { %v13209_v54 = vpop.xlane.xlu1 %13208 }
0x27ec   :  { %v13227_v13 = vsub.f32 %v23860_v44, %v13209_v54 }
0x27ed   :  { %14173 = vrot.lane.b32.xlu1 %v23917_v45, %s21440_s20 }
0x27ee   :  { %v13237_v40 = vmul.f32 1.442695, %v13227_v13 }
0x27ef   :  { %v13215_v42 = vpop.xlane.xlu1 %13214 }
0x27f0   :  { %21290 = vpow2.f32 %v13237_v40  ;;  %v13229_v23 = vsub.f32 %v23868_v25, %v13215_v42  ;;  %v23946_v25 = vpop.permute.xlu0 %12573 }
0x27f1   :  { %14325 = vrot.lane.b32.xlu1 %v23906_v5, %s21440_s20 }
0x27f2   :  { %v13241_v60 = vmul.f32 1.442695, %v13229_v23 }
0x27f3   :  { %v13221_v18 = vpop.xlane.xlu1 %13220 }
0x27f4   :  { %21292 = vpow2.f32 %v13241_v60  ;;  %v13231_v26 = vsub.f32 %v23876_v39, %v13221_v18  ;;  %v23948_v28 = vpop.permute.xlu0 %12579 }
0x27f5   :  { %14477 = vrot.lane.b32.xlu1 %v23908_v2, %s21440_s20 }
0x27f6   :  { %v13245_v63 = vmul.f32 1.442695, %v13231_v26 }
0x27f7   :  { %v23950_v20 = vpop.permute.xlu1 %13919 }
0x27f8   :  { %21294 = vpow2.f32 %v13245_v63 }
0x27fa   :  { %v23934_v16 = vpop.eup %21290 }
0x27fb   :  { %v13255_v62 = vsel %vm309_vm2, %v23934_v16, 0.0  ;;  %v12568_v17 = vpop.permute.xlu1 %12567 }
0x27fc   :  { %13256 = vadd.xlane.f32.xlu0 %v13255_v62 }
0x27fe   :  { %v23938_v9 = vpop.eup %21292 }
0x27ff   :  { %v13261_v4 = vsel %vm309_vm2, %v23938_v9, 0.0  ;;  %v12571_v57 = vpop.permute.xlu1 %12570 }
0x2800   :  { %13262 = vadd.xlane.f32.xlu0 %v13261_v4 }
0x2802   :  { %v23942_v44 = vpop.eup %21294 }
0x2803   :  { %v13267_v12 = vsel %vm309_vm2, %v23942_v44, 0.0  ;;  %v12577_v3 = vpop.permute.xlu1 %12576 }
0x2804   :  { %13268 = vadd.xlane.f32.xlu0 %v13267_v12 }
0x2811   :  { %v13254_v39 = vpop.xlane.xlu0 %13253 }
0x2812   :  { %21296 = vrcp.f32 %v13254_v39 }
0x281a   :  { %13945 = vrot.lane.b32.xlu0 %v23837_v6, %s21440_s20 }
0x281c   :  { %v21297_v41 = vpop.eup %21296 }
0x281d   :  { %v13282_v36 = vmul.f32 %v21297_v41, %v23886_v38 }
0x281e   :  { %14097 = vrot.lane.b32.xlu0 %v23904_v24, %s21440_s20 }
0x281f   :  { %20278 = vmatmul.mubr.msk.f32.vlgmr.msra.gmra.mrb[148].mxu0 %vm309_vm2, %v13282_v36 }
0x2820   :  { %20286 = vmatpush3.msra.mxu0 %v12571_v57  ;;  %20287 = vmatprep.mubr.msk.f32.mxu0 %vm21435_vm1, %v21431_v0 }
0x2821   :  { %20295 = vmatprep.subr.mxu0 %v21431_v0 }
0x2822   :  { %14249 = vrot.lane.b32.xlu0 %v23921_v51, %s21440_s20 }
0x2826   :  { %14401 = vrot.lane.b32.xlu0 %v23950_v20, %s21440_s20 }
0x2835   :  { %v13260_v38 = vpop.xlane.xlu1 %13259 }
0x2836   :  { %21298 = vrcp.f32 %v13260_v38 }
0x283d   :  { %v13266_v14 = vpop.xlane.xlu1 %13265 }
0x283e   :  { %21300 = vrcp.f32 %v13266_v14 }
0x2840   :  { %v21299_v10 = vpop.eup %21298 }
0x2841   :  { %v13284_v21 = vmul.f32 %v21299_v10, %v23892_v15 }
0x2843   :  { %20288 = vmatmul.mubr.msk.f32.vlgmr.msra.gmra.mrb[150].mxu0 %vm309_vm2, %v13284_v21 }
0x2844   :  { %20296 = vmatpush3.msra.mxu0 %v12577_v3  ;;  %20297 = vmatprep.mubr.msk.f32.mxu0 %vm21435_vm1, %v21431_v0 }
0x2845   :  { %20305 = vmatprep.subr.mxu0 %v21431_v0  ;;  %v13272_v43 = vpop.xlane.xlu1 %13271 }
0x2846   :  { %21302 = vrcp.f32 %v13272_v43 }
0x2848   :  { %v21301_v34 = vpop.eup %21300 }
0x2849   :  { %v13286_v46 = vmul.f32 %v21301_v34, %v23896_v1 }
0x284b   :  { %20298 = vmatmul.mubr.msk.f32.vlgmr.msra.gmra.mrb[152].mxu0 %vm309_vm2, %v13286_v46 }
0x284c   :  { %20307 = vmatprep.mubr.msk.f32.mxu0 %vm21435_vm1, %v21431_v0 }
0x2850   :  { %v21303_v15 = vpop.eup %21302 }
0x2851   :  { %v13288_v35 = vmul.f32 %v21303_v15, %v23900_v53 }
0x2861   :  { %v13251_v47 = vpop.xlane.xlu1 %13250 }
0x2862   :  { %21304 = vrcp.f32 %v13251_v47 }
0x2865   :  { %v12583_v32 = vpop.permute.xlu1 %12582 }
0x2866   :  { %20306 = vmatpush3.msra.mxu0 %v12583_v32 }
0x2867   :  { %20308 = vmatmul.mubr.msk.f32.vlgmr.msra.gmra.mrb[154].mxu0 %vm309_vm2, %v13288_v35  ;;  %20315 = vmatprep.subr.mxu0 %v21431_v0 }
0x2868   :  { %20317 = vmatprep.mubr.msk.f32.mxu0 %vm21435_vm1, %v21431_v0 }
0x2869   :  { %v14022_v1 = vpop.permute.xlu1 %14021 }
0x286c   :  { %v21305_v49 = vpop.eup %21304 }
0x286d   :  { %v14174_v59 = vpop.permute.xlu1 %14173  ;;  %20316 = vmatpush3.xpose.msk.msra.mxu0 %vm309_vm2, %v14022_v1  ;;  %v13281_v50 = vmul.f32 %v21305_v49, %v23910_v8 }
0x286e   :  { %20325 = vmatprep.subr.mxu0 %v21431_v0 }
0x286f   :  { %20273 = vmatmul.mubr.msk.f32.vlgmr.msra.gmra.mrb[168].mxu1 %vm309_vm2, %v13281_v50 }
0x2870   :  { %20281 = vmatpush3.msra.mxu1 %v12568_v17  ;;  %20318 = vmatmul.mubr.msk.f32.vlgmr.msra.gmra.mrb[156].mxu0 %vm309_vm2, %v23915_v7 }
0x2871   :  { %20326 = vmatpush3.xpose.msk.msra.mxu0 %vm309_vm2, %v14174_v59  ;;  %20327 = vmatprep.mubr.msk.f32.mxu0 %vm21435_vm1, %v21431_v0  ;;  %v14326_v53 = vpop.permute.xlu1 %14325 }
0x2872   :  { %20335 = vmatprep.subr.mxu0 %v21431_v0  ;;  %20282 = vmatprep.mubr.msk.f32.mxu1 %vm21435_vm1, %v21431_v0 }
0x2873   :  { %20290 = vmatprep.subr.mxu1 %v21431_v0 }
0x2874   :  { %20328 = vmatmul.mubr.msk.f32.vlgmr.msra.gmra.mrb[158].mxu0 %vm309_vm2, %v23917_v45 }
0x2875   :  { %20336 = vmatpush3.xpose.msk.msra.mxu0 %vm309_vm2, %v14326_v53  ;;  %20337 = vmatprep.mubr.msk.f32.mxu0 %vm21435_vm1, %v21431_v0  ;;  %v14478_v19 = vpop.permute.xlu1 %14477 }
0x2876   :  { %20345 = vmatprep.subr.mxu0 %v21431_v0 }
0x2878   :  { %20338 = vmatmul.mubr.msk.f32.vlgmr.msra.gmra.mrb[160].mxu0 %vm309_vm2, %v23906_v5 }
0x2879   :  { %20346 = vmatpush3.xpose.msk.msra.mxu0 %vm309_vm2, %v14478_v19  ;;  %20347 = vmatprep.mubr.msk.f32.mxu0 %vm21435_vm1, %v21431_v0 }
0x287a   :  { %20355 = vmatprep.subr.mxu0 %v21431_v0 }
0x287c   :  { %20348 = vmatmul.mubr.msk.f32.vlgmr.msra.gmra.mrb[162].mxu0 %vm309_vm2, %v23908_v2 }
0x287d   :  { %20357 = vmatprep.mubr.msk.f32.mxu0 %vm21435_vm1, %v21431_v0 }
0x2889   :  { %v13257_v55 = vpop.xlane.xlu0 %13256 }
0x288a   :  { %21306 = vrcp.f32 %v13257_v55 }
0x288d   :  { %v13263_v8 = vpop.xlane.xlu0 %13262 }
0x288e   :  { %21308 = vrcp.f32 %v13263_v8 }
0x2891   :  { %v13269_v22 = vpop.xlane.xlu0 %13268 }
0x2892   :  { %21310 = vrcp.f32 %v13269_v22 }
0x2894   :  { %v21307_v5 = vpop.eup %21306 }
0x2895   :  { %v13283_v31 = vmul.f32 %v21307_v5, %v23934_v16  ;;  %v13946_v54 = vpop.permute.xlu0 %13945 }
0x2897   :  { %20283 = vmatmul.mubr.msk.f32.vlgmr.msra.gmra.mrb[170].mxu1 %vm309_vm2, %v13283_v31 }
0x2898   :  { %v21309_v7 = vpop.eup %21308  ;;  %20291 = vmatpush3.msra.mxu1 %v23946_v25  ;;  %20292 = vmatprep.mubr.msk.f32.mxu1 %vm21435_vm1, %v21431_v0 }
0x2899   :  { %20300 = vmatprep.subr.mxu1 %v21431_v0  ;;  %v13285_v2 = vmul.f32 %v21309_v7, %v23938_v9  ;;  %v14098_v40 = vpop.permute.xlu0 %14097 }
0x289b   :  { %20293 = vmatmul.mubr.msk.f32.vlgmr.msra.gmra.mrb[172].mxu1 %vm309_vm2, %v13285_v2 }
0x289c   :  { %v21311_v45 = vpop.eup %21310  ;;  %20301 = vmatpush3.msra.mxu1 %v23948_v28  ;;  %20302 = vmatprep.mubr.msk.f32.mxu1 %vm21435_vm1, %v21431_v0 }
0x289d   :  { %v13287_v13 = vmul.f32 %v21311_v45, %v23942_v44  ;;  %20310 = vmatprep.subr.mxu1 %v21431_v0  ;;  %v14250_v42 = vpop.permute.xlu0 %14249 }
0x289f   :  { %20303 = vmatmul.mubr.msk.f32.vlgmr.msra.gmra.mrb[174].mxu1 %vm309_vm2, %v13287_v13 }
0x28a0   :  { %20312 = vmatprep.mubr.msk.f32.mxu1 %vm21435_vm1, %v21431_v0 }
0x28a1   :  { %v14402_v23 = vpop.permute.xlu0 %14401 }
0x28a3   :  { %20311 = vmatpush3.xpose.msk.msra.mxu1 %vm309_vm2, %v13946_v54 }
0x28a4   :  { %20320 = vmatprep.subr.mxu1 %v21431_v0 }
0x28a6   :  { %20313 = vmatmul.mubr.msk.f32.vlgmr.msra.gmra.mrb[176].mxu1 %vm309_vm2, %v23837_v6  ;;  %v24046_v6 = vadd.f32 %v23839_v58, %v23808_v48 }
0x28a7   :  { %20321 = vmatpush3.xpose.msk.msra.mxu1 %vm309_vm2, %v14098_v40  ;;  %20322 = vmatprep.mubr.msk.f32.mxu1 %vm21435_vm1, %v21431_v0 }
0x28a8   :  { %20330 = vmatprep.subr.mxu1 %v21431_v0 }
0x28aa   :  { %20323 = vmatmul.mubr.msk.f32.vlgmr.msra.gmra.mrb[178].mxu1 %vm309_vm2, %v23904_v24 }
0x28ab   :  { %20331 = vmatpush3.xpose.msk.msra.mxu1 %vm309_vm2, %v14250_v42  ;;  %20332 = vmatprep.mubr.msk.f32.mxu1 %vm21435_vm1, %v21431_v0 }
0x28ac   :  { %20340 = vmatprep.subr.mxu1 %v21431_v0 }
0x28ae   :  { %20333 = vmatmul.mubr.msk.f32.vlgmr.msra.gmra.mrb[180].mxu1 %vm309_vm2, %v23921_v51 }
0x28af   :  { %20341 = vmatpush3.xpose.msk.msra.mxu1 %vm309_vm2, %v14402_v23  ;;  %20342 = vmatprep.mubr.msk.f32.mxu1 %vm21435_vm1, %v21431_v0 }
0x28b0   :  { %20350 = vmatprep.subr.mxu1 %v21431_v0 }
0x28b2   :  { %20343 = vmatmul.mubr.msk.f32.vlgmr.msra.gmra.mrb[182].mxu1 %vm309_vm2, %v23950_v20 }
0x28b3   :  { %20351 = vmatpush3.msra.mxu1 %v24046_v6  ;;  %20352 = vmatprep.mubr.msk.f32.mxu1 %vm21435_vm1, %v21431_v0 }
0x28b4   :  { %20360 = vmatprep.subr.mxu1 %v21431_v0 }
0x28f2   :  { %v24054_v24 = vpop.f32.mrb[148].mxu0 }
0x28f3   :  { %v20279_v51 = vpop.f32.mrb[149].mxu0 }
0x2916   :  { %v24056_v60 = vpop.f32.mrb[150].mxu0 }
0x2917   :  { %v20289_v18 = vpop.f32.mrb[151].mxu0 }
0x291e   :  { %v24058_v26 = vpop.f32.mrb[152].mxu0 }
0x291f   :  { %v20299_v48 = vpop.f32.mrb[153].mxu0 }
0x293a   :  { %v24060_v58 = vpop.f32.mrb[154].mxu0 }
0x293b   :  { %v20309_v63 = vpop.f32.mrb[155].mxu0 }
0x2942   :  { %v24062_v16 = vpop.f32.mrb[168].mxu1 }
0x2943   :  { %v20274_v62 = vpop.f32.mrb[169].mxu1  ;;  %v14093_v9 = vpop.f32.mrb[156].mxu0 }
0x2944   :  { %v14554_v4 = vsel %vm8502_vm12, 0.0, %v14093_v9  ;;  %v20319_v44 = vpop.f32.mrb[157].mxu0 }
0x2945   :  { %v14564_v12 = vsel %vm309_vm2, %v14554_v4, -inf }
0x2946   :  { %14565 = vmax.xlane.f32.xlu1 %v14564_v12 }
0x2947   :  { %v14245_v25 = vpop.f32.mrb[158].mxu0 }
0x2948   :  { %v20329_v28 = vpop.f32.mrb[159].mxu0  ;;  %v14556_v1 = vsel %vm8502_vm12, 0.0, %v14245_v25 }
0x2949   :  { %v14570_v53 = vsel %vm309_vm2, %v14556_v1, -inf }
0x294b   :  { %v14397_v39 = vpop.f32.mrb[160].mxu0 }
0x294c   :  { %v20339_v20 = vpop.f32.mrb[161].mxu0  ;;  %v14558_v55 = vsel %vm8502_vm12, 0.0, %v14397_v39 }
0x294d   :  { %v14576_v31 = vsel %vm309_vm2, %v14558_v55, -inf }
0x294f   :  { %v14549_v17 = vpop.f32.mrb[162].mxu0 }
0x2950   :  { %v20349_v41 = vpop.f32.mrb[163].mxu0  ;;  %v14560_v2 = vsel %vm8502_vm12, 0.0, %v14549_v17 }
0x2951   :  { %v14582_v45 = vsel %vm309_vm2, %v14560_v2, -inf }
0x296a   :  { %v24067_v36 = vpop.f32.mrb[170].mxu1 }
0x296b   :  { %v20284_v57 = vpop.f32.mrb[171].mxu1 }
0x296e   :  { %v24069_v3 = vpop.f32.mrb[172].mxu1 }
0x296f   :  { %v20294_v38 = vpop.f32.mrb[173].mxu1 }
0x2972   :  { %v24071_v14 = vpop.f32.mrb[174].mxu1 }
0x2973   :  { %v20304_v10 = vpop.f32.mrb[175].mxu1 }
0x2979   :  { %v14017_v21 = vpop.f32.mrb[176].mxu1 }
0x297a   :  { %v14553_v34 = vsel %vm8502_vm12, 0.0, %v14017_v21  ;;  %v20314_v46 = vpop.f32.mrb[177].mxu1 }
0x297b   :  { %v14561_v43 = vsel %vm309_vm2, %v14553_v34, -inf }
0x297c   :  { %14562 = vmax.xlane.f32.xlu0 %v14561_v43 }
0x297d   :  { %v14169_v47 = vpop.f32.mrb[178].mxu1 }
0x297e   :  { %v14555_v15 = vsel %vm8502_vm12, 0.0, %v14169_v47  ;;  %v20324_v32 = vpop.f32.mrb[179].mxu1 }
0x297f   :  { %v14567_v35 = vsel %vm309_vm2, %v14555_v15, -inf }
0x2980   :  { %14568 = vmax.xlane.f32.xlu0 %v14567_v35 }
0x2981   :  { %v14321_v49 = vpop.f32.mrb[180].mxu1 }
0x2982   :  { %v14557_v59 = vsel %vm8502_vm12, 0.0, %v14321_v49  ;;  %v20334_v50 = vpop.f32.mrb[181].mxu1 }
0x2983   :  { %v14573_v19 = vsel %vm309_vm2, %v14557_v59, -inf }
0x2984   :  { %14571 = vmax.xlane.f32.xlu0 %v14570_v53  ;;  %14574 = vmax.xlane.f32.xlu1 %v14573_v19 }
0x2985   :  { %v14473_v8 = vpop.f32.mrb[182].mxu1 }
0x2986   :  { %v14559_v22 = vsel %vm8502_vm12, 0.0, %v14473_v8  ;;  %v20344_v5 = vpop.f32.mrb[183].mxu1 }
0x2987   :  { %v14579_v7 = vsel %vm309_vm2, %v14559_v22, -inf }
0x2988   :  { %14577 = vmax.xlane.f32.xlu0 %v14576_v31  ;;  %14580 = vmax.xlane.f32.xlu1 %v14579_v7 }
0x298c   :  { %14583 = vmax.xlane.f32.xlu0 %v14582_v45 }
0x2999   :  { %13924 = vrot.lane.b32.xlu1 %v24046_v6, %s21434_s15 }
0x299d   :  { %13930 = vrot.lane.b32.xlu1 %v24046_v6, %s21433_s14 }
0x29a1   :  { %13933 = vrot.lane.b32.xlu1 %v24046_v6, %s21436_s16 }
0x29a2   :  { %13927 = vrot.lane.b32.xlu0 %v24046_v6, %s21437_s17 }
0x29a6   :  { %13936 = vrot.lane.b32.xlu0 %v24046_v6, %s21439_s19 }
0x29d3   :  { %v14566_v54 = vpop.xlane.xlu1 %14565 }
0x29d4   :  { %v14586_v13 = vsub.f32 %v14554_v4, %v14566_v54 }
0x29d6   :  { %v14595_v40 = vmul.f32 1.442695, %v14586_v13 }
0x29d8   :  { %21312 = vpow2.f32 %v14595_v40 }
0x29e2   :  { %v24104_v42 = vpop.eup %21312 }
0x29e3   :  { %v14612_v23 = vsel %vm309_vm2, %v24104_v42, 0.0 }
0x29e4   :  { %14613 = vadd.xlane.f32.xlu0 %v14612_v23 }
0x2a09   :  { %v14563_v51 = vpop.xlane.xlu0 %14562 }
0x2a0a   :  { %v14585_v18 = vsub.f32 %v14553_v34, %v14563_v51 }
0x2a0c   :  { %v14593_v48 = vmul.f32 1.442695, %v14585_v18 }
0x2a0d   :  { %v14569_v63 = vpop.xlane.xlu0 %14568 }
0x2a0e   :  { %21314 = vpow2.f32 %v14593_v48  ;;  %v14587_v62 = vsub.f32 %v14555_v15, %v14569_v63  ;;  %v15294_v48 = vld [vmem:[%s24160_s5] sm:$0xff]  ;;  %v15295_v63 = vld [vmem:[%s24160_s5 + $0x8] sm:$0xff] }
0x2a10   :  { %v14597_v9 = vmul.f32 1.442695, %v14587_v62 }
0x2a11   :  { %v14575_v44 = vpop.xlane.xlu1 %14574  ;;  %v14572_v12 = vpop.xlane.xlu0 %14571 }
0x2a12   :  { %21316 = vpow2.f32 %v14597_v9  ;;  %v14589_v25 = vsub.f32 %v14557_v59, %v14575_v44  ;;  %v14588_v4 = vsub.f32 %v14556_v1, %v14572_v12 }
0x2a14   :  { %v14601_v28 = vmul.f32 1.442695, %v14589_v25  ;;  %v14599_v39 = vmul.f32 1.442695, %v14588_v4  ;;  %v20847_v25 = vpack.c.bf16 %v15295_v63, %v15294_v48  ;;  %v15296_v4 = vld [vmem:[%s24160_s5 + $0x10] sm:$0xff] }
0x2a15   :  { %v14581_v20 = vpop.xlane.xlu1 %14580  ;;  %v14578_v17 = vpop.xlane.xlu0 %14577 }
0x2a16   :  { %21318 = vpow2.f32 %v14601_v28  ;;  %v14591_v41 = vsub.f32 %v14559_v22, %v14581_v20  ;;  %v14590_v57 = vsub.f32 %v14558_v55, %v14578_v17  ;;  %v15297_v28 = vld [vmem:[%s24160_s5 + $0x18] sm:$0xff] }
0x2a17   :  { %21320 = vpow2.f32 %v14599_v39 }
0x2a18   :  { %v24108_v38 = vpop.eup %21314  ;;  %v14605_v10 = vmul.f32 1.442695, %v14591_v41  ;;  %v14603_v21 = vmul.f32 1.442695, %v14590_v57  ;;  %v20851_v57 = vpack.c.bf16 %v15297_v28, %v15296_v4 }
0x2a19   :  { %v13925_v34 = vpop.permute.xlu1 %13924  ;;  %v14584_v46 = vpop.xlane.xlu0 %14583  ;;  %v14609_v43 = vsel %vm309_vm2, %v24108_v38, 0.0 }
0x2a1a   :  { %21322 = vpow2.f32 %v14605_v10  ;;  %v14592_v47 = vsub.f32 %v14560_v2, %v14584_v46  ;;  %20356 = vmatpush3.msra.mxu0 %v13925_v34  ;;  %14610 = vadd.xlane.f32.xlu1 %v14609_v43  ;;  %v15299_v10 = vld [vmem:[%s24160_s5 + $0x28] sm:$0xff] }
0x2a1b   :  { %21324 = vpow2.f32 %v14603_v21  ;;  %20365 = vmatprep.subr.mxu0 %v21431_v0 }
0x2a1c   :  { %v21317_v15 = vpop.eup %21316  ;;  %v14607_v32 = vmul.f32 1.442695, %v14592_v47  ;;  %v15300_v47 = vld [vmem:[%s24160_s5 + $0x30] sm:$0xff] }
0x2a1d   :  { %v14615_v35 = vsel %vm309_vm2, %v21317_v15, 0.0 }
0x2a1e   :  { %21326 = vpow2.f32 %v14607_v32  ;;  %14616 = vadd.xlane.f32.xlu1 %v14615_v35 }
0x2a20   :  { %v24114_v1 = vpop.eup %21318 }
0x2a21   :  { %v24116_v49 = vpop.eup %21320  ;;  %v14621_v59 = vsel %vm309_vm2, %v24114_v1, 0.0 }
0x2a22   :  { %14622 = vadd.xlane.f32.xlu1 %v14621_v59  ;;  %v14618_v50 = vsel %vm309_vm2, %v24116_v49, 0.0 }
0x2a23   :  { %14619 = vadd.xlane.f32.xlu0 %v14618_v50 }
0x2a24   :  { %v24122_v53 = vpop.eup %21322 }
0x2a25   :  { %v24124_v19 = vpop.eup %21324  ;;  %v14627_v55 = vsel %vm309_vm2, %v24122_v53, 0.0 }
0x2a26   :  { %14628 = vadd.xlane.f32.xlu1 %v14627_v55  ;;  %v14624_v8 = vsel %vm309_vm2, %v24124_v19, 0.0 }
0x2a27   :  { %14625 = vadd.xlane.f32.xlu0 %v14624_v8 }
0x2a28   :  { %v24130_v22 = vpop.eup %21326 }
0x2a29   :  { %v14630_v5 = vsel %vm309_vm2, %v24130_v22, 0.0 }
0x2a2b   :  { %14631 = vadd.xlane.f32.xlu0 %v14630_v5 }
0x2a37   :  { %13939 = vrot.lane.b32.xlu1 %v24046_v6, %s21438_s18 }
0x2a3b   :  { %13874 = vrot.lane.b32.xlu1 %v24054_v24, %s21445_s25  ;;  %v13928_v24 = vpop.permute.xlu0 %13927 }
0x2a41   :  { %13942 = vrot.lane.b32.xlu0 %v24046_v6, %s21441_s21  ;;  %v13937_v6 = vpop.permute.xlu0 %13936 }
0x2a45   :  { %13878 = vrot.lane.b32.xlu0 %v24067_v36, %s21442_s22 }
0x2a49   :  { %13882 = vrot.lane.b32.xlu0 %v24056_v60, %s21443_s23  ;;  %v13931_v60 = vpop.permute.xlu1 %13930 }
0x2a4d   :  { %13886 = vrot.lane.b32.xlu0 %v24069_v3, %s21447_s27 }
0x2a51   :  { %13890 = vrot.lane.b32.xlu0 %v24058_v26, %s21444_s24  ;;  %v13934_v26 = vpop.permute.xlu1 %13933 }
0x2a55   :  { %13894 = vrot.lane.b32.xlu0 %v24071_v14, %s21448_s28 }
0x2a59   :  { %13898 = vrot.lane.b32.xlu0 %v24060_v58, %s21446_s26 }
0x2a71   :  { %v14614_v31 = vpop.xlane.xlu0 %14613 }
0x2a72   :  { %21328 = vrcp.f32 %v14614_v31 }
0x2a7c   :  { %v21329_v36 = vpop.eup %21328 }
0x2a7d   :  { %v14642_v7 = vmul.f32 %v21329_v36, %v24104_v42 }
0x2a7f   :  { %20358 = vmatmul.mubr.msk.f32.vlgmr.msra.gmra.mrb[164].mxu0 %vm309_vm2, %v14642_v7  ;;  %v18906_v7 = vld [vmem:[%s18633_s10] ss:$0 sm:$0xff] }
0x2a80   :  { %20366 = vmatpush3.msra.mxu0 %v13931_v60  ;;  %20367 = vmatprep.mubr.msk.f32.mxu0 %vm21435_vm1, %v21431_v0 }
0x2a81   :  { %20375 = vmatprep.subr.mxu0 %v21431_v0 }
0x2aa7   :  { %v14611_v3 = vpop.xlane.xlu1 %14610 }
0x2aa8   :  { %21330 = vrcp.f32 %v14611_v3 }
0x2aab   :  { %v14617_v58 = vpop.xlane.xlu1 %14616 }
0x2aac   :  { %21332 = vrcp.f32 %v14617_v58 }
0x2aaf   :  { %v14623_v14 = vpop.xlane.xlu1 %14622 }
0x2ab0   :  { %21334 = vrcp.f32 %v14623_v14  ;;  %v14620_v2 = vpop.xlane.xlu0 %14619 }
0x2ab1   :  { %21336 = vrcp.f32 %v14620_v2 }
0x2ab2   :  { %v21331_v45 = vpop.eup %21330 }
0x2ab3   :  { %v14629_v54 = vpop.xlane.xlu1 %14628  ;;  %v14641_v13 = vmul.f32 %v21331_v45, %v24108_v38  ;;  %v15298_v38 = vld [vmem:[%s24160_s5 + $0x20] sm:$0xff] }
0x2ab4   :  { %21338 = vrcp.f32 %v14629_v54  ;;  %v14626_v40 = vpop.xlane.xlu0 %14625  ;;  %v20855_v46 = vpack.c.bf16 %v15299_v10, %v15298_v38 }
0x2ab5   :  { %21340 = vrcp.f32 %v14626_v40  ;;  %20353 = vmatmul.mubr.msk.f32.vlgmr.msra.gmra.mrb[184].mxu1 %vm309_vm2, %v14641_v13 }
0x2ab6   :  { %v21333_v42 = vpop.eup %21332  ;;  %20361 = vmatpush3.msra.mxu1 %v13928_v24  ;;  %20362 = vmatprep.mubr.msk.f32.mxu1 %vm21435_vm1, %v21431_v0 }
0x2ab7   :  { %20370 = vmatprep.subr.mxu1 %v21431_v0  ;;  %v14643_v23 = vmul.f32 %v21333_v42, %v21317_v15  ;;  %v13940_v12 = vpop.permute.xlu1 %13939  ;;  %v15301_v15 = vld [vmem:[%s24160_s5 + $0x38] sm:$0xff] }
0x2ab8   :  { %v14632_v51 = vpop.xlane.xlu0 %14631  ;;  %v20859_v32 = vpack.c.bf16 %v15301_v15, %v15300_v47 }
0x2ab9   :  { %21342 = vrcp.f32 %v14632_v51  ;;  %20363 = vmatmul.mubr.msk.f32.vlgmr.msra.gmra.mrb[186].mxu1 %vm309_vm2, %v14643_v23 }
0x2aba   :  { %v21335_v18 = vpop.eup %21334  ;;  %20371 = vmatpush3.msra.mxu1 %v13934_v26  ;;  %20372 = vmatprep.mubr.msk.f32.mxu1 %vm21435_vm1, %v21431_v0 }
0x2abb   :  { %v21337_v62 = vpop.eup %21336  ;;  %20380 = vmatprep.subr.mxu1 %v21431_v0  ;;  %v14645_v9 = vmul.f32 %v21335_v18, %v24114_v1  ;;  %v13875_v45 = vpop.permute.xlu1 %13874 }
0x2abc   :  { %v14644_v44 = vmul.f32 %v21337_v62, %v24116_v49  ;;  %v13943_v21 = vpop.permute.xlu0 %13942  ;;  %v13901_v13 = vsel %vm309_vm2, %v24062_v16, %v13875_v45 }
0x2abd   :  { %20373 = vmatmul.mubr.msk.f32.vlgmr.msra.gmra.mrb[188].mxu1 %vm309_vm2, %v14645_v9 }
0x2abe   :  { %v21339_v39 = vpop.eup %21338  ;;  %20368 = vmatmul.mubr.msk.f32.vlgmr.msra.gmra.mrb[166].mxu0 %vm309_vm2, %v14644_v44  ;;  %20381 = vmatpush3.msra.mxu1 %v13940_v12 }
0x2abf   :  { %v21341_v20 = vpop.eup %21340  ;;  %20376 = vmatpush3.msra.mxu0 %v13937_v6  ;;  %20377 = vmatprep.mubr.msk.f32.mxu0 %vm21435_vm1, %v21431_v0  ;;  %v14647_v17 = vmul.f32 %v21339_v39, %v24122_v53 }
0x2ac0   :  { %20382 = vmatprep.mubr.msk.f32.mxu1 %vm21435_vm1, %v21431_v0  ;;  %20385 = vmatprep.subr.mxu0 %v21431_v0  ;;  %v14646_v41 = vmul.f32 %v21341_v20, %v24124_v19  ;;  %v13879_v36 = vpop.permute.xlu0 %13878 }
0x2ac1   :  { %20848 = vmatprep.subr.bf16.mxu1 %v20847_v25  ;;  %20383 = vmatmul.mubr.msk.f32.vlgmr.msra.gmra.mrb[190].mxu1 %vm309_vm2, %v14647_v17  ;;  %v13902_v40 = vsel %vm1617_vm3, %v13901_v13, %v13879_v36  ;;  %v15388_v36 = vld [vmem:[%s18634_s30 + $0x20] sm:$0xff] }
0x2ac2   :  { %20378 = vmatmul.mubr.msk.f32.vlgmr.msra.gmra.mrb[168].mxu0 %vm309_vm2, %v14646_v41  ;;  %20850 = vmatpush3.bf16.msra.mxu1 %v20847_v25 }
0x2ac3   :  { %v21343_v34 = vpop.eup %21342  ;;  %20386 = vmatpush3.msra.mxu0 %v13943_v21  ;;  %20406 = vmatprep.mubr.msk.f32.mxu1 %vm186_vm0, %v23100_v33 }
0x2ac4   :  { %20387 = vmatprep.mubr.msk.f32.mxu0 %vm21435_vm1, %v21431_v0  ;;  %20852 = vmatprep.subr.bf16.mxu1 %v20851_v57  ;;  %v14648_v43 = vmul.f32 %v21343_v34, %v24130_v22  ;;  %v13883_v58 = vpop.permute.xlu0 %13882 }
0x2ac5   :  { %v13903_v42 = vsel %vm1619_vm4, %v13902_v40, %v13883_v58  ;;  %v15390_v58 = vld [vmem:[%s18634_s30 + $0x30] sm:$0xff] }
0x2ac6   :  { %20388 = vmatmul.mubr.msk.f32.vlgmr.msra.gmra.mrb[170].mxu0 %vm309_vm2, %v14648_v43  ;;  %20854 = vmatpush3.bf16.msra.mxu1 %v20851_v57 }
0x2ac7   :  { %20856 = vmatprep.subr.bf16.mxu1 %v20855_v46 }
0x2ac8   :  { %v13887_v14 = vpop.permute.xlu0 %13886 }
0x2ac9   :  { %v13904_v23 = vsel %vm1621_vm5, %v13903_v42, %v13887_v14  ;;  %v15391_v14 = vld [vmem:[%s18634_s30 + $0x38] sm:$0xff] }
0x2aca   :  { %20858 = vmatpush3.bf16.msra.mxu1 %v20855_v46 }
0x2acb   :  { %20860 = vmatprep.subr.bf16.mxu1 %v20859_v32 }
0x2acc   :  { %v13891_v2 = vpop.permute.xlu0 %13890 }
0x2acd   :  { %v13905_v18 = vsel %vm1623_vm6, %v13904_v23, %v13891_v2  ;;  %v20875_v2 = vpack.c.bf16 %v15391_v14, %v15390_v58 }
0x2ace   :  { %20862 = vmatpush3.bf16.msra.mxu1 %v20859_v32 }
0x2acf   :  { %20428 = vmatprep.subr.mxu1 %v21431_v0 }
0x2ad0   :  { %v13895_v54 = vpop.permute.xlu0 %13894 }
0x2ad1   :  { %20407 = vmatmul.mubr.msk.f32.vlgmr.msra.gmra.mrb[192].mxu1 %vm186_vm0, %v23106_v11  ;;  %v13906_v48 = vsel %vm1625_vm7, %v13905_v18, %v13895_v54 }
0x2ad2   :  { %20430 = vmatprep.mubr.msk.f32.mxu1 %vm21435_vm1, %v21431_v0 }
0x2ad4   :  { %v13899_v51 = vpop.permute.xlu0 %13898 }
0x2ad5   :  { %v13907_v63 = vsel %vm1627_vm8, %v13906_v48, %v13899_v51 }
0x2ad6   :  { %v15268_v62 = vsel %vm186_vm0, %v13907_v63, 0.0 }
0x2b52   :  { %v14791_v33 = vpop.f32.mrb[164].mxu0 }
0x2b53   :  { %15234 = vrot.lane.b32.xlu1 %v14791_v33, %s21445_s25  ;;  %v20359_v35 = vpop.f32.mrb[165].mxu0 }
0x2b88   :  { %v14718_v1 = vpop.f32.mrb[184].mxu1 }
0x2b89   :  { %v20354_v49 = vpop.f32.mrb[185].mxu1 }
0x2b8c   :  { %v14864_v59 = vpop.f32.mrb[186].mxu1 }
0x2b8d   :  { %v20364_v50 = vpop.f32.mrb[187].mxu1 }
0x2b8e   :  { %v15384_v50 = vld [vmem:[%s18634_s30] sm:$0xff] }
0x2b90   :  { %v15010_v53 = vpop.f32.mrb[188].mxu1 }
0x2b91   :  { %v14937_v19 = vpop.f32.mrb[166].mxu0  ;;  %v20374_v55 = vpop.f32.mrb[189].mxu1 }
0x2b92   :  { %15242 = vrot.lane.b32.xlu1 %v14937_v19, %s21443_s23  ;;  %v20369_v8 = vpop.f32.mrb[167].mxu0  ;;  %v15386_v19 = vld [vmem:[%s18634_s30 + $0x10] sm:$0xff] }
0x2b93   :  { %v15387_v8 = vld [vmem:[%s18634_s30 + $0x18] sm:$0xff] }
0x2b94   :  { %v15156_v22 = vpop.f32.mrb[190].mxu1 }
0x2b95   :  { %v15083_v5 = vpop.f32.mrb[168].mxu0  ;;  %v20384_v11 = vpop.f32.mrb[191].mxu1 }
0x2b96   :  { %15250 = vrot.lane.b32.xlu1 %v15083_v5, %s21444_s24  ;;  %v20379_v24 = vpop.f32.mrb[169].mxu0 }
0x2b99   :  { %v15229_v6 = vpop.f32.mrb[170].mxu0 }
0x2b9a   :  { %15238 = vrot.lane.b32.xlu1 %v14864_v59, %s21442_s22  ;;  %15258 = vrot.lane.b32.xlu0 %v15229_v6, %s21446_s26  ;;  %v20389_v31 = vpop.f32.mrb[171].mxu0 }
0x2b9e   :  { %15246 = vrot.lane.b32.xlu1 %v15010_v53, %s21447_s27  ;;  %v15385_v53 = vld [vmem:[%s18634_s30 + $0x8] sm:$0xff] }
0x2b9f   :  { %v20863_v55 = vpack.c.bf16 %v15385_v53, %v15384_v50 }
0x2ba1   :  { %20864 = vmatprep.subr.bf16.mxu0 %v20863_v55 }
0x2ba2   :  { %15254 = vrot.lane.b32.xlu1 %v15156_v22, %s21448_s28  ;;  %v20867_v22 = vpack.c.bf16 %v15387_v8, %v15386_v19  ;;  %20866 = vmatpush3.bf16.msra.mxu0 %v20863_v55 }
0x2ba4   :  { %v20408_v60 = vpop.f32.mrb[192].mxu1  ;;  %20868 = vmatprep.subr.bf16.mxu0 %v20867_v22 }
0x2ba5   :  { %v24213_v26 = vadd.f32 %v20408_v60, %v18906_v7  ;;  %v15375_v3 = vpop.f32.mrb[193].mxu1 }
0x2ba6   :  { %v24224_v9 = vadd.f32 %v18906_v7, %v15375_v3  ;;  %20870 = vmatpush3.bf16.msra.mxu0 %v20867_v22  ;;  %v15389_v7 = vld [vmem:[%s18634_s30 + $0x28] sm:$0xff] }
0x2ba7   :  { %v20871_v60 = vpack.c.bf16 %v15389_v7, %v15388_v36 }
0x2ba9   :  { %20872 = vmatprep.subr.bf16.mxu0 %v20871_v60 }
0x2baa   :  { %20874 = vmatpush3.bf16.msra.mxu0 %v20871_v60 }
0x2bab   :  { %20876 = vmatprep.subr.bf16.mxu0 %v20875_v2 }
0x2bae   :  { %20878 = vmatpush3.bf16.msra.mxu0 %v20875_v2 }
0x2baf   :  { %20433 = vmatprep.subr.mxu0 %v21431_v0 }
0x2bc5   :  { %v15235_v16 = vpop.permute.xlu1 %15234 }
0x2bc6   :  { %15269 = vadd.xlane.f32.xlu1 %v15268_v62  ;;  %v15261_v25 = vsel %vm309_vm2, %v14718_v1, %v15235_v16 }
0x2bd7   :  { %15483 = vrot.lane.b32.xlu1 %v24224_v9, %s21437_s17 }
0x2bdb   :  { %15485 = vrot.lane.b32.xlu1 %v24224_v9, %s21433_s14 }
0x2bdf   :  { %15489 = vrot.lane.b32.xlu1 %v24224_v9, %s21439_s19 }
0x2be3   :  { %15493 = vrot.lane.b32.xlu1 %v24224_v9, %s21441_s21 }
0x2c04   :  { %v15243_v44 = vpop.permute.xlu1 %15242 }
0x2c08   :  { %v15251_v12 = vpop.permute.xlu1 %15250 }
0x2c0c   :  { %v15239_v4 = vpop.permute.xlu1 %15238  ;;  %v15259_v38 = vpop.permute.xlu0 %15258 }
0x2c0d   :  { %v15262_v28 = vsel %vm1617_vm3, %v15261_v25, %v15239_v4 }
0x2c0e   :  { %v15263_v39 = vsel %vm1619_vm4, %v15262_v28, %v15243_v44 }
0x2c10   :  { %v15247_v20 = vpop.permute.xlu1 %15246 }
0x2c11   :  { %v15264_v17 = vsel %vm1621_vm5, %v15263_v39, %v15247_v20 }
0x2c12   :  { %v15265_v41 = vsel %vm1623_vm6, %v15264_v17, %v15251_v12 }
0x2c14   :  { %v15255_v57 = vpop.permute.xlu1 %15254 }
0x2c15   :  { %v15266_v10 = vsel %vm1625_vm7, %v15265_v41, %v15255_v57 }
0x2c16   :  { %v15267_v21 = vsel %vm1627_vm8, %v15266_v10, %v15259_v38 }
0x2c17   :  { %v15271_v34 = vsel %vm186_vm0, %v15267_v21, 0.0 }
0x2c18   :  { %15272 = vadd.xlane.f32.xlu0 %v15271_v34 }
0x2c2e   :  { %15481 = vrot.lane.b32.xlu0 %v24224_v9, %s21434_s15 }
0x2c32   :  { %15487 = vrot.lane.b32.xlu0 %v24224_v9, %s21436_s16 }
0x2c36   :  { %15491 = vrot.lane.b32.xlu0 %v24224_v9, %s21438_s18 }
0x2c53   :  { %v15270_v46 = vpop.xlane.xlu1 %15269 }
0x2c54   :  { %v15274_v43 = vmul.f32 0.015625, %v15270_v46 }
0x2c56   :  { %v24248_v47 = vsub.f32 %v13907_v63, %v15274_v43 }
0x2c57   :  { %v15484_v33 = vpop.permute.xlu1 %15483 }
0x2c58   :  { %v15278_v15 = vmul.f32 %v24248_v47, %v24248_v47 }
0x2c5a   :  { %v15280_v32 = vsel %vm186_vm0, %v15278_v15, 0.0 }
0x2c5b   :  { %15281 = vadd.xlane.f32.xlu0 %v15280_v32  ;;  %v24276_v31 = vpop.permute.xlu1 %15485 }
0x2c5f   :  { %v24280_v3 = vpop.permute.xlu1 %15489 }
0x2c63   :  { %v15494_v45 = vpop.permute.xlu1 %15493 }
0x2c71   :  { %15517 = vrot.lane.b32.xlu0 %v24224_v9, %s21440_s20 }
0x2c75   :  { %15669 = vrot.lane.b32.xlu0 %v15484_v33, %s21440_s20 }
0x2ca5   :  { %v15273_v35 = vpop.xlane.xlu0 %15272 }
0x2ca6   :  { %v15275_v5 = vmul.f32 0.015625, %v15273_v35  ;;  %v18909_v35 = vld [vmem:[%s18635_s9] ss:$0 sm:$0xff] }
0x2ca8   :  { %v15277_v11 = vsub.f32 %v15267_v21, %v15275_v5 }
0x2ca9   :  { %v24256_v1 = vpop.permute.xlu0 %15481 }
0x2caa   :  { %15593 = vrot.lane.b32.xlu1 %v24256_v1, %s21440_s20  ;;  %v15279_v24 = vmul.f32 %v15277_v11, %v15277_v11 }
0x2cac   :  { %v15283_v6 = vsel %vm186_vm0, %v15279_v24, 0.0 }
0x2cad   :  { %v24260_v49 = vpop.permute.xlu0 %15487 }
0x2cae   :  { %15821 = vrot.lane.b32.xlu0 %v24260_v49, %s21440_s20 }
0x2cb1   :  { %v24267_v59 = vpop.permute.xlu0 %15491 }
0x2cb2   :  { %15973 = vrot.lane.b32.xlu0 %v24267_v59, %s21440_s20 }
0x2cb6   :  { %16843 = vrot.lane.b32.xlu0 %v24213_v26, %s21437_s17 }
0x2cba   :  { %16849 = vrot.lane.b32.xlu0 %v24213_v26, %s21439_s19 }
0x2cce   :  { %15284 = vadd.xlane.f32.xlu1 %v15283_v6 }
0x2cdf   :  { %15745 = vrot.lane.b32.xlu1 %v24276_v31, %s21440_s20 }
0x2ce3   :  { %15897 = vrot.lane.b32.xlu1 %v24280_v3, %s21440_s20 }
0x2ce7   :  { %16049 = vrot.lane.b32.xlu1 %v15494_v45, %s21440_s20 }
0x2ce8   :  { %v15282_v54 = vpop.xlane.xlu0 %15281 }
0x2ce9   :  { %v15286_v13 = vmul.f32 0.015873017, %v15282_v54 }
0x2ceb   :  { %21344 = vrsqrt.f32 %v15286_v13  ;;  %16841 = vrot.lane.b32.xlu1 %v24213_v26, %s21434_s15 }
0x2cec   :  { %v15518_v40 = vpop.permute.xlu0 %15517 }
0x2ced   :  { %20429 = vmatpush3.xpose.msk.msra.mxu1 %vm309_vm2, %v15518_v40 }
0x2cee   :  { %20438 = vmatprep.subr.mxu1 %v21431_v0 }
0x2cef   :  { %16845 = vrot.lane.b32.xlu1 %v24213_v26, %s21433_s14 }
0x2cf0   :  { %20431 = vmatmul.mubr.msk.f32.vlgmr.msra.gmra.mrb[194].mxu1 %vm309_vm2, %v24224_v9  ;;  %v15670_v42 = vpop.permute.xlu0 %15669 }
0x2cf1   :  { %20439 = vmatpush3.xpose.msk.msra.mxu1 %vm309_vm2, %v15670_v42  ;;  %20440 = vmatprep.mubr.msk.f32.mxu1 %vm21435_vm1, %v21431_v0 }
0x2cf2   :  { %20448 = vmatprep.subr.mxu1 %v21431_v0 }
0x2cf3   :  { %16847 = vrot.lane.b32.xlu1 %v24213_v26, %s21436_s16 }
0x2cf4   :  { %20441 = vmatmul.mubr.msk.f32.vlgmr.msra.gmra.mrb[196].mxu1 %vm309_vm2, %v15484_v33 }
0x2cf5   :  { %v21345_v23 = vpop.eup %21344  ;;  %20450 = vmatprep.mubr.msk.f32.mxu1 %vm21435_vm1, %v21431_v0 }
0x2cf6   :  { %v15290_v51 = vmul.f32 %v21345_v23, %v24248_v47 }
0x2cf7   :  { %16851 = vrot.lane.b32.xlu1 %v24213_v26, %s21438_s18 }
0x2cf8   :  { %v24307_v18 = vadd.f32 %v15290_v51, %v23719_v56 }
0x2cfa   :  { %20425 = vmatprep.mubr.msk.f32.mxu0 %vm186_vm0, %v24307_v18 }
0x2d1c   :  { %v15594_v56 = vpop.permute.xlu1 %15593 }
0x2d20   :  { %v15822_v48 = vpop.permute.xlu0 %15821 }
0x2d21   :  { %20449 = vmatpush3.xpose.msk.msra.mxu1 %vm309_vm2, %v15822_v48 }
0x2d22   :  { %20458 = vmatprep.subr.mxu1 %v21431_v0 }
0x2d24   :  { %20451 = vmatmul.mubr.msk.f32.vlgmr.msra.gmra.mrb[198].mxu1 %vm309_vm2, %v24260_v49  ;;  %v15974_v63 = vpop.permute.xlu0 %15973 }
0x2d25   :  { %20459 = vmatpush3.xpose.msk.msra.mxu1 %vm309_vm2, %v15974_v63  ;;  %20460 = vmatprep.mubr.msk.f32.mxu1 %vm21435_vm1, %v21431_v0 }
0x2d26   :  { %20468 = vmatprep.subr.mxu1 %v21431_v0 }
0x2d28   :  { %20461 = vmatmul.mubr.msk.f32.vlgmr.msra.gmra.mrb[200].mxu1 %vm309_vm2, %v24267_v59  ;;  %v24386_v5 = vpop.permute.xlu0 %16843 }
0x2d29   :  { %20470 = vmatprep.mubr.msk.f32.mxu1 %vm21435_vm1, %v21431_v0 }
0x2d5b   :  { %v15285_v62 = vpop.xlane.xlu1 %15284 }
0x2d5c   :  { %v15287_v9 = vmul.f32 0.015873017, %v15285_v62 }
0x2d5e   :  { %21346 = vrsqrt.f32 %v15287_v9 }
0x2d5f   :  { %v15746_v25 = vpop.permute.xlu1 %15745 }
0x2d68   :  { %v21347_v16 = vpop.eup %21346 }
0x2d69   :  { %v15291_v44 = vmul.f32 %v21347_v16, %v15277_v11 }
0x2d6b   :  { %v24324_v12 = vadd.f32 %v15291_v44, %v23789_v37  ;;  %v15898_v37 = vpop.permute.xlu1 %15897 }
0x2d6d   :  { %20426 = vmatmul.mubr.msk.f32.vlgmr.msra.gmra.mrb[172].mxu0 %vm186_vm0, %v24324_v12 }
0x2d6e   :  { %20434 = vmatpush3.xpose.msk.msra.mxu0 %vm309_vm2, %v15594_v56  ;;  %20435 = vmatprep.mubr.msk.f32.mxu0 %vm21435_vm1, %v21431_v0 }
0x2d6f   :  { %20443 = vmatprep.subr.mxu0 %v21431_v0  ;;  %v16050_v4 = vpop.permute.xlu1 %16049 }
0x2d71   :  { %20436 = vmatmul.mubr.msk.f32.vlgmr.msra.gmra.mrb[174].mxu0 %vm309_vm2, %v24256_v1 }
0x2d72   :  { %20444 = vmatpush3.xpose.msk.msra.mxu0 %vm309_vm2, %v15746_v25  ;;  %20445 = vmatprep.mubr.msk.f32.mxu0 %vm21435_vm1, %v21431_v0 }
0x2d73   :  { %20453 = vmatprep.subr.mxu0 %v21431_v0  ;;  %v24405_v30 = vpop.permute.xlu1 %16841 }
0x2d75   :  { %20446 = vmatmul.mubr.msk.f32.vlgmr.msra.gmra.mrb[176].mxu0 %vm309_vm2, %v24276_v31 }
0x2d76   :  { %20454 = vmatpush3.xpose.msk.msra.mxu0 %vm309_vm2, %v15898_v37  ;;  %20455 = vmatprep.mubr.msk.f32.mxu0 %vm21435_vm1, %v21431_v0 }
0x2d77   :  { %20463 = vmatprep.subr.mxu0 %v21431_v0  ;;  %v24409_v56 = vpop.permute.xlu1 %16845 }
0x2d79   :  { %20456 = vmatmul.mubr.msk.f32.vlgmr.msra.gmra.mrb[178].mxu0 %vm309_vm2, %v24280_v3  ;;  %v24394_v3 = vpop.permute.xlu0 %16849 }
0x2d7a   :  { %20464 = vmatpush3.xpose.msk.msra.mxu0 %vm309_vm2, %v16050_v4  ;;  %20465 = vmatprep.mubr.msk.f32.mxu0 %vm21435_vm1, %v21431_v0 }
0x2d7b   :  { %20473 = vmatprep.subr.mxu0 %v21431_v0  ;;  %v24413_v62 = vpop.permute.xlu1 %16847 }
0x2d7d   :  { %20466 = vmatmul.mubr.msk.f32.vlgmr.msra.gmra.mrb[180].mxu0 %vm309_vm2, %v15494_v45 }
0x2d7e   :  { %20475 = vmatprep.mubr.msk.f32.mxu0 %vm21435_vm1, %v21431_v0 }
0x2d7f   :  { %v24419_v9 = vpop.permute.xlu1 %16851 }
0x2dc3   :  { %v15589_v28 = vpop.f32.mrb[194].mxu1 }
0x2dc4   :  { %v16125_v39 = vsel %vm7136_vm10, 0.0, %v15589_v28  ;;  %v20432_v20 = vpop.f32.mrb[195].mxu1 }
0x2dc5   :  { %v16133_v17 = vsel %vm309_vm2, %v16125_v39, -inf }
0x2dc6   :  { %16134 = vmax.xlane.f32.xlu0 %v16133_v17 }
0x2dc7   :  { %v15741_v41 = vpop.f32.mrb[196].mxu1 }
0x2dc8   :  { %v16127_v57 = vsel %vm7136_vm10, 0.0, %v15741_v41  ;;  %v20442_v38 = vpop.f32.mrb[197].mxu1 }
0x2dc9   :  { %v16139_v10 = vsel %vm309_vm2, %v16127_v57, -inf }
0x2dca   :  { %16140 = vmax.xlane.f32.xlu0 %v16139_v10 }
0x2df7   :  { %v15893_v21 = vpop.f32.mrb[198].mxu1 }
0x2df8   :  { %v24361_v34 = vsel %vm7136_vm10, 0.0, %v15893_v21  ;;  %v20452_v46 = vpop.f32.mrb[199].mxu1 }
0x2df9   :  { %v16145_v43 = vsel %vm309_vm2, %v24361_v34, -inf }
0x2dfa   :  { %16146 = vmax.xlane.f32.xlu1 %v16145_v43 }
0x2dfb   :  { %v16045_v47 = vpop.f32.mrb[200].mxu1 }
0x2dfc   :  { %v24367_v15 = vsel %vm7136_vm10, 0.0, %v16045_v47  ;;  %v20462_v32 = vpop.f32.mrb[201].mxu1 }
0x2dfd   :  { %v16151_v33 = vsel %vm309_vm2, %v24367_v15, -inf }
0x2dfe   :  { %16152 = vmax.xlane.f32.xlu1 %v16151_v33 }
0x2e40   :  { %v20427_v1 = vpop.f32.mrb[172].mxu0 }
0x2e41   :  { %v24374_v49 = vadd.f32 %v20427_v1, %v18909_v35  ;;  %v15471_v59 = vpop.f32.mrb[173].mxu0 }
0x2e42   :  { %v24376_v50 = vadd.f32 %v18909_v35, %v15471_v59 }
0x2e44   :  { %v15665_v53 = vpop.f32.mrb[174].mxu0  ;;  %20469 = vmatpush3.msra.mxu1 %v24376_v50 }
0x2e45   :  { %v24381_v19 = vsel %vm7136_vm10, 0.0, %v15665_v53  ;;  %v20437_v55 = vpop.f32.mrb[175].mxu0  ;;  %20478 = vmatprep.subr.mxu1 %v21431_v0 }
0x2e46   :  { %v16136_v8 = vsel %vm309_vm2, %v24381_v19, -inf }
0x2e47   :  { %16137 = vmax.xlane.f32.xlu1 %v16136_v8 }
0x2e48   :  { %v15817_v22 = vpop.f32.mrb[176].mxu0 }
0x2e49   :  { %v16128_v11 = vsel %vm7136_vm10, 0.0, %v15817_v22  ;;  %v20447_v24 = vpop.f32.mrb[177].mxu0 }
0x2e4a   :  { %v16142_v6 = vsel %vm309_vm2, %v16128_v11, -inf }
0x2e4b   :  { %16143 = vmax.xlane.f32.xlu0 %v16142_v6 }
0x2e4c   :  { %v15969_v31 = vpop.f32.mrb[178].mxu0 }
0x2e4d   :  { %v16130_v36 = vsel %vm7136_vm10, 0.0, %v15969_v31  ;;  %v20457_v7 = vpop.f32.mrb[179].mxu0 }
0x2e4e   :  { %v16148_v60 = vsel %vm309_vm2, %v16130_v36, -inf }
0x2e4f   :  { %16149 = vmax.xlane.f32.xlu0 %v16148_v60 }
0x2e50   :  { %v16121_v58 = vpop.f32.mrb[180].mxu0 }
0x2e51   :  { %v24398_v14 = vsel %vm7136_vm10, 0.0, %v16121_v58  ;;  %v20467_v2 = vpop.f32.mrb[181].mxu0 }
0x2e52   :  { %v16154_v45 = vsel %vm309_vm2, %v24398_v14, -inf }
0x2e53   :  { %16155 = vmax.xlane.f32.xlu0 %v16154_v45  ;;  %v16135_v54 = vpop.xlane.xlu0 %16134 }
0x2e54   :  { %v16157_v13 = vsub.f32 %v16125_v39, %v16135_v54 }
0x2e56   :  { %v16165_v40 = vmul.f32 1.442695, %v16157_v13 }
0x2e57   :  { %v16141_v51 = vpop.xlane.xlu0 %16140 }
0x2e58   :  { %21348 = vpow2.f32 %v16165_v40  ;;  %v16159_v48 = vsub.f32 %v16127_v57, %v16141_v51 }
0x2e5a   :  { %v16169_v63 = vmul.f32 1.442695, %v16159_v48 }
0x2e5c   :  { %21350 = vpow2.f32 %v16169_v63 }
0x2e62   :  { %v21349_v42 = vpop.eup %21348 }
0x2e63   :  { %v16181_v23 = vsel %vm309_vm2, %v21349_v42, 0.0 }
0x2e64   :  { %16182 = vadd.xlane.f32.xlu1 %v16181_v23 }
0x2e66   :  { %v24421_v16 = vpop.eup %21350 }
0x2e67   :  { %v16187_v25 = vsel %vm309_vm2, %v24421_v16, 0.0 }
0x2e69   :  { %16853 = vrot.lane.b32.xlu0 %v24213_v26, %s21441_s21 }
0x2e75   :  { %15499 = vrot.lane.b32.xlu1 %v24376_v50, %s21437_s17 }
0x2e79   :  { %15502 = vrot.lane.b32.xlu1 %v24376_v50, %s21433_s14 }
0x2e7d   :  { %15508 = vrot.lane.b32.xlu1 %v24376_v50, %s21439_s19 }
0x2e81   :  { %15514 = vrot.lane.b32.xlu1 %v24376_v50, %s21441_s21 }
0x2e85   :  { %16953 = vrot.lane.b32.xlu1 %v24405_v30, %s21440_s20 }
0x2e87   :  { %v16147_v44 = vpop.xlane.xlu1 %16146 }
0x2e88   :  { %v16161_v37 = vsub.f32 %v24361_v34, %v16147_v44  ;;  %16188 = vadd.xlane.f32.xlu0 %v16187_v25 }
0x2e8a   :  { %v16173_v4 = vmul.f32 1.442695, %v16161_v37 }
0x2e8b   :  { %v16153_v28 = vpop.xlane.xlu1 %16152 }
0x2e8c   :  { %21352 = vpow2.f32 %v16173_v4  ;;  %v16163_v39 = vsub.f32 %v24367_v15, %v16153_v28 }
0x2e8e   :  { %v16177_v20 = vmul.f32 1.442695, %v16163_v39 }
0x2e90   :  { %21354 = vpow2.f32 %v16177_v20 }
0x2e96   :  { %v24429_v17 = vpop.eup %21352 }
0x2e97   :  { %v16193_v41 = vsel %vm309_vm2, %v24429_v17, 0.0 }
0x2e98   :  { %16194 = vadd.xlane.f32.xlu0 %v16193_v41 }
0x2e9a   :  { %v24433_v57 = vpop.eup %21354 }
0x2e9b   :  { %v16199_v38 = vsel %vm309_vm2, %v24433_v57, 0.0 }
0x2e9c   :  { %16200 = vadd.xlane.f32.xlu0 %v16199_v38 }
0x2eb2   :  { %15496 = vrot.lane.b32.xlu0 %v24376_v50, %s21434_s15 }
0x2ed4   :  { %v16138_v10 = vpop.xlane.xlu1 %16137 }
0x2ed5   :  { %v16158_v21 = vsub.f32 %v24381_v19, %v16138_v10 }
0x2ed7   :  { %v16167_v34 = vmul.f32 1.442695, %v16158_v21 }
0x2ed8   :  { %v16144_v46 = vpop.xlane.xlu0 %16143 }
0x2ed9   :  { %21356 = vpow2.f32 %v16167_v34  ;;  %v16160_v43 = vsub.f32 %v16128_v11, %v16144_v46 }
0x2edb   :  { %v16171_v47 = vmul.f32 1.442695, %v16160_v43 }
0x2edc   :  { %v16150_v15 = vpop.xlane.xlu0 %16149 }
0x2edd   :  { %21358 = vpow2.f32 %v16171_v47  ;;  %v16162_v32 = vsub.f32 %v16130_v36, %v16150_v15 }
0x2edf   :  { %v16175_v33 = vmul.f32 1.442695, %v16162_v32 }
0x2ee0   :  { %v16156_v6 = vpop.xlane.xlu0 %16155 }
0x2ee1   :  { %21360 = vpow2.f32 %v16175_v33  ;;  %v16164_v31 = vsub.f32 %v24398_v14, %v16156_v6 }
0x2ee3   :  { %v24440_v35 = vpop.eup %21356 }
0x2ee4   :  { %v16184_v1 = vsel %vm309_vm2, %v24440_v35, 0.0  ;;  %v24471_v36 = vpop.permute.xlu0 %16853 }
0x2ee5   :  { %16185 = vadd.xlane.f32.xlu0 %v16184_v1 }
0x2ee7   :  { %v24444_v59 = vpop.eup %21358 }
0x2ee8   :  { %v16190_v53 = vsel %vm309_vm2, %v24444_v59, 0.0 }
0x2ee9   :  { %16191 = vadd.xlane.f32.xlu1 %v16190_v53 }
0x2eeb   :  { %v24448_v19 = vpop.eup %21360 }
0x2eec   :  { %v16196_v55 = vsel %vm309_vm2, %v24448_v19, 0.0 }
0x2eed   :  { %16197 = vadd.xlane.f32.xlu1 %v16196_v55 }
0x2ef1   :  { %v16183_v8 = vpop.xlane.xlu1 %16182 }
0x2ef2   :  { %21362 = vrcp.f32 %v16183_v8 }
0x2ef5   :  { %v15500_v24 = vpop.permute.xlu1 %15499 }
0x2ef9   :  { %v15503_v40 = vpop.permute.xlu1 %15502 }
0x2efb   :  { %15505 = vrot.lane.b32.xlu0 %v24376_v50, %s21436_s16 }
0x2efc   :  { %v21363_v22 = vpop.eup %21362 }
0x2efd   :  { %v16213_v11 = vmul.f32 %v21363_v22, %v21349_v42  ;;  %v15509_v42 = vpop.permute.xlu1 %15508 }
0x2efe   :  { %17105 = vrot.lane.b32.xlu1 %v24409_v56, %s21440_s20 }
0x2eff   :  { %20471 = vmatmul.mubr.msk.f32.vlgmr.msra.gmra.mrb[202].mxu1 %vm309_vm2, %v16213_v11  ;;  %15511 = vrot.lane.b32.xlu0 %v24376_v50, %s21438_s18  ;;  %v16179_v50 = vmul.f32 1.442695, %v16164_v31 }
0x2f00   :  { %20479 = vmatpush3.msra.mxu1 %v15500_v24  ;;  %20480 = vmatprep.mubr.msk.f32.mxu1 %vm21435_vm1, %v21431_v0 }
0x2f01   :  { %20488 = vmatprep.subr.mxu1 %v21431_v0  ;;  %21364 = vpow2.f32 %v16179_v50  ;;  %v15515_v23 = vpop.permute.xlu1 %15514 }
0x2f03   :  { %16877 = vrot.lane.b32.xlu0 %v24213_v26, %s21440_s20 }
0x2f05   :  { %v24486_v51 = vpop.permute.xlu1 %16953 }
0x2f07   :  { %17029 = vrot.lane.b32.xlu0 %v24386_v5, %s21440_s20 }
0x2f0b   :  { %17181 = vrot.lane.b32.xlu0 %v24413_v62, %s21440_s20  ;;  %v24473_v60 = vpop.eup %21364 }
0x2f0c   :  { %v16202_v45 = vsel %vm309_vm2, %v24473_v60, 0.0 }
0x2f0f   :  { %17333 = vrot.lane.b32.xlu0 %v24419_v9, %s21440_s20 }
0x2f15   :  { %v16189_v7 = vpop.xlane.xlu0 %16188 }
0x2f16   :  { %21366 = vrcp.f32 %v16189_v7 }
0x2f20   :  { %v21367_v58 = vpop.eup %21366 }
0x2f21   :  { %v16215_v2 = vmul.f32 %v21367_v58, %v24421_v16 }
0x2f22   :  { %16203 = vadd.xlane.f32.xlu1 %v16202_v45 }
0x2f23   :  { %20481 = vmatmul.mubr.msk.f32.vlgmr.msra.gmra.mrb[204].mxu1 %vm309_vm2, %v16215_v2 }
0x2f24   :  { %20490 = vmatprep.mubr.msk.f32.mxu1 %vm21435_vm1, %v21431_v0 }
0x2f25   :  { %v16195_v14 = vpop.xlane.xlu0 %16194 }
0x2f26   :  { %21368 = vrcp.f32 %v16195_v14 }
0x2f29   :  { %v16201_v54 = vpop.xlane.xlu0 %16200 }
0x2f2a   :  { %21370 = vrcp.f32 %v16201_v54 }
0x2f2d   :  { %v15497_v13 = vpop.permute.xlu0 %15496 }
0x2f2e   :  { %20474 = vmatpush3.msra.mxu0 %v15497_v13 }
0x2f2f   :  { %20483 = vmatprep.subr.mxu0 %v21431_v0 }
0x2f30   :  { %v21369_v63 = vpop.eup %21368 }
0x2f31   :  { %v16217_v16 = vmul.f32 %v21369_v63, %v24429_v17 }
0x2f33   :  { %17257 = vrot.lane.b32.xlu1 %v24394_v3, %s21440_s20 }
0x2f34   :  { %v21371_v37 = vpop.eup %21370 }
0x2f35   :  { %v16219_v4 = vmul.f32 %v21371_v37, %v24433_v57 }
0x2f37   :  { %17409 = vrot.lane.b32.xlu1 %v24471_v36, %s21440_s20 }
0x2f72   :  { %v16186_v48 = vpop.xlane.xlu0 %16185 }
0x2f73   :  { %21372 = vrcp.f32 %v16186_v48 }
0x2f76   :  { %v16192_v44 = vpop.xlane.xlu1 %16191  ;;  %v15506_v25 = vpop.permute.xlu0 %15505 }
0x2f77   :  { %21374 = vrcp.f32 %v16192_v44  ;;  %20489 = vmatpush3.msra.mxu1 %v15506_v25 }
0x2f78   :  { %20491 = vmatmul.mubr.msk.f32.vlgmr.msra.gmra.mrb[206].mxu1 %vm309_vm2, %v16217_v16  ;;  %20498 = vmatprep.subr.mxu1 %v21431_v0 }
0x2f79   :  { %20500 = vmatprep.mubr.msk.f32.mxu1 %vm21435_vm1, %v21431_v0 }
0x2f7a   :  { %v16198_v28 = vpop.xlane.xlu1 %16197  ;;  %v15512_v39 = vpop.permute.xlu0 %15511 }
0x2f7b   :  { %21376 = vrcp.f32 %v16198_v28  ;;  %20499 = vmatpush3.msra.mxu1 %v15512_v39 }
0x2f7c   :  { %20501 = vmatmul.mubr.msk.f32.vlgmr.msra.gmra.mrb[208].mxu1 %vm309_vm2, %v16219_v4  ;;  %20508 = vmatprep.subr.mxu1 %v21431_v0 }
0x2f7d   :  { %v21373_v20 = vpop.eup %21372  ;;  %20510 = vmatprep.mubr.msk.f32.mxu1 %vm21435_vm1, %v21431_v0 }
0x2f7e   :  { %v16214_v17 = vmul.f32 %v21373_v20, %v24440_v35  ;;  %v16878_v41 = vpop.permute.xlu0 %16877 }
0x2f80   :  { %20476 = vmatmul.mubr.msk.f32.vlgmr.msra.gmra.mrb[182].mxu0 %vm309_vm2, %v16214_v17 }
0x2f81   :  { %v21375_v38 = vpop.eup %21374  ;;  %20484 = vmatpush3.msra.mxu0 %v15503_v40  ;;  %20485 = vmatprep.mubr.msk.f32.mxu0 %vm21435_vm1, %v21431_v0 }
0x2f82   :  { %v16216_v57 = vmul.f32 %v21375_v38, %v24444_v59  ;;  %20509 = vmatpush3.xpose.msk.msra.mxu1 %vm309_vm2, %v16878_v41  ;;  %v17030_v10 = vpop.permute.xlu0 %17029  ;;  %20493 = vmatprep.subr.mxu0 %v21431_v0 }
0x2f83   :  { %20518 = vmatprep.subr.mxu1 %v21431_v0 }
0x2f84   :  { %20486 = vmatmul.mubr.msk.f32.vlgmr.msra.gmra.mrb[184].mxu0 %vm309_vm2, %v16216_v57 }
0x2f85   :  { %v21377_v21 = vpop.eup %21376  ;;  %20494 = vmatpush3.msra.mxu0 %v15509_v42  ;;  %20511 = vmatmul.mubr.msk.f32.vlgmr.msra.gmra.mrb[210].mxu1 %vm309_vm2, %v24213_v26 }
0x2f86   :  { %v16218_v34 = vmul.f32 %v21377_v21, %v24448_v19  ;;  %20519 = vmatpush3.xpose.msk.msra.mxu1 %vm309_vm2, %v17030_v10  ;;  %20495 = vmatprep.mubr.msk.f32.mxu0 %vm21435_vm1, %v21431_v0  ;;  %v17182_v46 = vpop.permute.xlu0 %17181 }
0x2f87   :  { %20503 = vmatprep.subr.mxu0 %v21431_v0  ;;  %20520 = vmatprep.mubr.msk.f32.mxu1 %vm21435_vm1, %v21431_v0 }
0x2f88   :  { %20496 = vmatmul.mubr.msk.f32.vlgmr.msra.gmra.mrb[186].mxu0 %vm309_vm2, %v16218_v34  ;;  %20528 = vmatprep.subr.mxu1 %v21431_v0 }
0x2f89   :  { %20504 = vmatpush3.msra.mxu0 %v15515_v23  ;;  %20521 = vmatmul.mubr.msk.f32.vlgmr.msra.gmra.mrb[212].mxu1 %vm309_vm2, %v24386_v5  ;;  %v17106_v5 = vpop.permute.xlu1 %17105 }
0x2f8a   :  { %20529 = vmatpush3.xpose.msk.msra.mxu1 %vm309_vm2, %v17182_v46  ;;  %20530 = vmatprep.mubr.msk.f32.mxu1 %vm21435_vm1, %v21431_v0  ;;  %v17334_v26 = vpop.permute.xlu0 %17333 }
0x2f8b   :  { %20538 = vmatprep.subr.mxu1 %v21431_v0  ;;  %20505 = vmatprep.mubr.msk.f32.mxu0 %vm21435_vm1, %v21431_v0 }
0x2f8c   :  { %20513 = vmatprep.subr.mxu0 %v21431_v0 }
0x2f8d   :  { %20531 = vmatmul.mubr.msk.f32.vlgmr.msra.gmra.mrb[214].mxu1 %vm309_vm2, %v24413_v62 }
0x2f8e   :  { %20539 = vmatpush3.xpose.msk.msra.mxu1 %vm309_vm2, %v17334_v26  ;;  %20540 = vmatprep.mubr.msk.f32.mxu1 %vm21435_vm1, %v21431_v0 }
0x2f8f   :  { %20548 = vmatprep.subr.mxu1 %v21431_v0 }
0x2f91   :  { %20541 = vmatmul.mubr.msk.f32.vlgmr.msra.gmra.mrb[216].mxu1 %vm309_vm2, %v24419_v9 }
0x2f92   :  { %20549 = vmatpush3.msra.mxu1 %v24374_v49  ;;  %20550 = vmatprep.mubr.msk.f32.mxu1 %vm21435_vm1, %v21431_v0 }
0x2f93   :  { %20558 = vmatprep.subr.mxu1 %v21431_v0 }
0x2faf   :  { %v16204_v43 = vpop.xlane.xlu1 %16203 }
0x2fb0   :  { %21378 = vrcp.f32 %v16204_v43 }
0x2fb3   :  { %v17258_v9 = vpop.permute.xlu1 %17257 }
0x2fb7   :  { %v17410_v15 = vpop.permute.xlu1 %17409 }
0x2fba   :  { %v21379_v62 = vpop.eup %21378 }
0x2fbb   :  { %v16220_v47 = vmul.f32 %v21379_v62, %v24473_v60 }
0x2fbd   :  { %20506 = vmatmul.mubr.msk.f32.vlgmr.msra.gmra.mrb[188].mxu0 %vm309_vm2, %v16220_v47 }
0x2fbe   :  { %20514 = vmatpush3.xpose.msk.msra.mxu0 %vm309_vm2, %v24486_v51  ;;  %20515 = vmatprep.mubr.msk.f32.mxu0 %vm21435_vm1, %v21431_v0 }
0x2fbf   :  { %20523 = vmatprep.subr.mxu0 %v21431_v0 }
0x2fc1   :  { %20516 = vmatmul.mubr.msk.f32.vlgmr.msra.gmra.mrb[190].mxu0 %vm309_vm2, %v24405_v30 }
0x2fc2   :  { %20524 = vmatpush3.xpose.msk.msra.mxu0 %vm309_vm2, %v17106_v5  ;;  %20525 = vmatprep.mubr.msk.f32.mxu0 %vm21435_vm1, %v21431_v0 }
0x2fc3   :  { %20533 = vmatprep.subr.mxu0 %v21431_v0 }
0x2fc5   :  { %20526 = vmatmul.mubr.msk.f32.vlgmr.msra.gmra.mrb[192].mxu0 %vm309_vm2, %v24409_v56 }
0x2fc6   :  { %20534 = vmatpush3.xpose.msk.msra.mxu0 %vm309_vm2, %v17258_v9  ;;  %20535 = vmatprep.mubr.msk.f32.mxu0 %vm21435_vm1, %v21431_v0 }
0x2fc7   :  { %20543 = vmatprep.subr.mxu0 %v21431_v0 }
0x2fc9   :  { %20536 = vmatmul.mubr.msk.f32.vlgmr.msra.gmra.mrb[194].mxu0 %vm309_vm2, %v24394_v3 }
0x2fca   :  { %20544 = vmatpush3.xpose.msk.msra.mxu0 %vm309_vm2, %v17410_v15  ;;  %20545 = vmatprep.mubr.msk.f32.mxu0 %vm21435_vm1, %v21431_v0 }
0x2fcb   :  { %20553 = vmatprep.subr.mxu0 %v21431_v0 }
0x2fcd   :  { %20546 = vmatmul.mubr.msk.f32.vlgmr.msra.gmra.mrb[196].mxu0 %vm309_vm2, %v24471_v36 }
0x2fce   :  { %20555 = vmatprep.mubr.msk.f32.mxu0 %vm21435_vm1, %v21431_v0 }
0x2fd2   :  { %v24568_v30 = vpop.f32.mrb[202].mxu1 }
0x2fd3   :  { %v20472_v56 = vpop.f32.mrb[203].mxu1 }
0x2ff6   :  { %v24570_v32 = vpop.f32.mrb[204].mxu1 }
0x2ff7   :  { %v20482_v33 = vpop.f32.mrb[205].mxu1 }
0x304b   :  { %v24572_v3 = vpop.f32.mrb[206].mxu1 }
0x304c   :  { %v20492_v35 = vpop.f32.mrb[207].mxu1 }
0x304f   :  { %v24574_v1 = vpop.f32.mrb[208].mxu1 }
0x3050   :  { %v20502_v59 = vpop.f32.mrb[209].mxu1 }
0x3053   :  { %v24576_v53 = vpop.f32.mrb[182].mxu0 }
0x3054   :  { %v20477_v19 = vpop.f32.mrb[183].mxu0 }
0x3057   :  { %v24578_v55 = vpop.f32.mrb[184].mxu0 }
0x3058   :  { %v20487_v8 = vpop.f32.mrb[185].mxu0  ;;  %v16949_v22 = vpop.f32.mrb[210].mxu1 }
0x3059   :  { %v17485_v11 = vsel %vm8502_vm12, 0.0, %v16949_v22  ;;  %v20512_v24 = vpop.f32.mrb[211].mxu1 }
0x305a   :  { %v17493_v6 = vsel %vm309_vm2, %v17485_v11, -inf }
0x305b   :  { %v24583_v31 = vpop.f32.mrb[186].mxu0  ;;  %17494 = vmax.xlane.f32.xlu0 %v17493_v6 }
0x305c   :  { %v20497_v50 = vpop.f32.mrb[187].mxu0  ;;  %v17101_v36 = vpop.f32.mrb[212].mxu1 }
0x305d   :  { %v17487_v7 = vsel %vm8502_vm12, 0.0, %v17101_v36  ;;  %v20522_v60 = vpop.f32.mrb[213].mxu1 }
0x305e   :  { %v17499_v58 = vsel %vm309_vm2, %v17487_v7, -inf }
0x305f   :  { %17500 = vmax.xlane.f32.xlu0 %v17499_v58 }
0x3060   :  { %v17253_v2 = vpop.f32.mrb[214].mxu1 }
0x3061   :  { %v20532_v45 = vpop.f32.mrb[215].mxu1  ;;  %v17489_v63 = vsel %vm8502_vm12, 0.0, %v17253_v2 }
0x3062   :  { %v17505_v37 = vsel %vm309_vm2, %v17489_v63, -inf }
0x3064   :  { %v17405_v14 = vpop.f32.mrb[216].mxu1 }
0x3065   :  { %v20542_v54 = vpop.f32.mrb[217].mxu1  ;;  %v17491_v28 = vsel %vm8502_vm12, 0.0, %v17405_v14 }
0x3066   :  { %v17511_v41 = vsel %vm309_vm2, %v17491_v28, -inf }
0x3090   :  { %v24588_v13 = vpop.f32.mrb[188].mxu0 }
0x3091   :  { %v20507_v40 = vpop.f32.mrb[189].mxu0 }
0x3094   :  { %v17025_v42 = vpop.f32.mrb[190].mxu0 }
0x3095   :  { %v17486_v23 = vsel %vm8502_vm12, 0.0, %v17025_v42  ;;  %v20517_v51 = vpop.f32.mrb[191].mxu0 }
0x3096   :  { %v17496_v48 = vsel %vm309_vm2, %v17486_v23, -inf }
0x3097   :  { %17497 = vmax.xlane.f32.xlu1 %v17496_v48 }
0x3098   :  { %v17177_v16 = vpop.f32.mrb[192].mxu0 }
0x3099   :  { %v17488_v44 = vsel %vm8502_vm12, 0.0, %v17177_v16  ;;  %v20527_v25 = vpop.f32.mrb[193].mxu0 }
0x309a   :  { %v17502_v4 = vsel %vm309_vm2, %v17488_v44, -inf }
0x309b   :  { %17503 = vmax.xlane.f32.xlu0 %v17502_v4  ;;  %17506 = vmax.xlane.f32.xlu1 %v17505_v37 }
0x309c   :  { %v17329_v39 = vpop.f32.mrb[194].mxu0 }
0x309d   :  { %v17490_v20 = vsel %vm8502_vm12, 0.0, %v17329_v39  ;;  %v20537_v17 = vpop.f32.mrb[195].mxu0 }
0x309e   :  { %v17508_v38 = vsel %vm309_vm2, %v17490_v20, -inf }
0x309f   :  { %17509 = vmax.xlane.f32.xlu0 %v17508_v38  ;;  %17512 = vmax.xlane.f32.xlu1 %v17511_v41 }
0x30a0   :  { %v17481_v57 = vpop.f32.mrb[196].mxu0 }
0x30a1   :  { %v17492_v10 = vsel %vm8502_vm12, 0.0, %v17481_v57  ;;  %v20547_v21 = vpop.f32.mrb[197].mxu0 }
0x30a2   :  { %v17514_v34 = vsel %vm309_vm2, %v17492_v10, -inf }
0x30a3   :  { %17515 = vmax.xlane.f32.xlu0 %v17514_v34 }
0x30b9   :  { %16859 = vrot.lane.b32.xlu0 %v24374_v49, %s21437_s17 }
0x30bd   :  { %16868 = vrot.lane.b32.xlu0 %v24374_v49, %s21439_s19 }
0x30e8   :  { %v17495_v46 = vpop.xlane.xlu0 %17494 }
0x30e9   :  { %v17517_v26 = vsub.f32 %v17485_v11, %v17495_v46 }
0x30eb   :  { %v17525_v5 = vmul.f32 1.442695, %v17517_v26 }
0x30ec   :  { %v17501_v43 = vpop.xlane.xlu0 %17500 }
0x30ed   :  { %21380 = vpow2.f32 %v17525_v5  ;;  %v17519_v62 = vsub.f32 %v17487_v7, %v17501_v43 }
0x30ef   :  { %v17529_v47 = vmul.f32 1.442695, %v17519_v62 }
0x30f1   :  { %21382 = vpow2.f32 %v17529_v47 }
0x30f7   :  { %v24612_v61 = vpop.eup %21380 }
0x30f8   :  { %v17541_v9 = vsel %vm309_vm2, %v24612_v61, 0.0 }
0x30f9   :  { %17542 = vadd.xlane.f32.xlu1 %v17541_v9 }
0x30fb   :  { %v24616_v15 = vpop.eup %21382 }
0x30fc   :  { %v17547_v56 = vsel %vm309_vm2, %v24616_v15, 0.0 }
0x30fd   :  { %17548 = vadd.xlane.f32.xlu1 %v17547_v56 }
0x3124   :  { %v17498_v33 = vpop.xlane.xlu1 %17497 }
0x3125   :  { %v17518_v35 = vsub.f32 %v17486_v23, %v17498_v33 }
0x3127   :  { %v17527_v59 = vmul.f32 1.442695, %v17518_v35 }
0x3128   :  { %v17507_v19 = vpop.xlane.xlu1 %17506  ;;  %v17504_v8 = vpop.xlane.xlu0 %17503 }
0x3129   :  { %21384 = vpow2.f32 %v17527_v59  ;;  %v17521_v22 = vsub.f32 %v17489_v63, %v17507_v19  ;;  %v17520_v11 = vsub.f32 %v17488_v44, %v17504_v8 }
0x312b   :  { %v17533_v24 = vmul.f32 1.442695, %v17521_v22  ;;  %v17531_v6 = vmul.f32 1.442695, %v17520_v11 }
0x312c   :  { %v17513_v50 = vpop.xlane.xlu1 %17512  ;;  %v17510_v36 = vpop.xlane.xlu0 %17509 }
0x312d   :  { %21386 = vpow2.f32 %v17533_v24  ;;  %v17523_v7 = vsub.f32 %v17491_v28, %v17513_v50  ;;  %v17522_v60 = vsub.f32 %v17490_v20, %v17510_v36 }
0x312e   :  { %21388 = vpow2.f32 %v17531_v6 }
0x312f   :  { %v17537_v58 = vmul.f32 1.442695, %v17523_v7  ;;  %v17535_v2 = vmul.f32 1.442695, %v17522_v60 }
0x3130   :  { %v17516_v45 = vpop.xlane.xlu0 %17515 }
0x3131   :  { %21390 = vpow2.f32 %v17537_v58  ;;  %v17524_v14 = vsub.f32 %v17492_v10, %v17516_v45 }
0x3132   :  { %21392 = vpow2.f32 %v17535_v2 }
0x3133   :  { %v21385_v54 = vpop.eup %21384  ;;  %v17539_v40 = vmul.f32 1.442695, %v17524_v14 }
0x3134   :  { %v17544_v42 = vsel %vm309_vm2, %v21385_v54, 0.0 }
0x3135   :  { %21394 = vpow2.f32 %v17539_v40  ;;  %17545 = vadd.xlane.f32.xlu0 %v17544_v42 }
0x3137   :  { %v24621_v23 = vpop.eup %21386 }
0x3138   :  { %v24623_v51 = vpop.eup %21388  ;;  %v17553_v48 = vsel %vm309_vm2, %v24621_v23, 0.0 }
0x3139   :  { %17554 = vadd.xlane.f32.xlu1 %v17553_v48  ;;  %v17550_v63 = vsel %vm309_vm2, %v24623_v51, 0.0 }
0x313a   :  { %17551 = vadd.xlane.f32.xlu0 %v17550_v63 }
0x313b   :  { %v24629_v16 = vpop.eup %21390 }
0x313c   :  { %v24631_v44 = vpop.eup %21392  ;;  %v17559_v25 = vsel %vm309_vm2, %v24629_v16, 0.0 }
0x313d   :  { %17560 = vadd.xlane.f32.xlu1 %v17559_v25  ;;  %v17556_v37 = vsel %vm309_vm2, %v24631_v44, 0.0 }
0x313e   :  { %17557 = vadd.xlane.f32.xlu0 %v17556_v37 }
0x313f   :  { %v24637_v4 = vpop.eup %21394 }
0x3140   :  { %v17562_v28 = vsel %vm309_vm2, %v24637_v4, 0.0 }
0x3142   :  { %17563 = vadd.xlane.f32.xlu0 %v17562_v28 }
0x314e   :  { %16856 = vrot.lane.b32.xlu1 %v24374_v49, %s21434_s15 }
0x3152   :  { %16862 = vrot.lane.b32.xlu1 %v24374_v49, %s21433_s14  ;;  %s21475_s14 = smov 31  }
0x3153   :  { %s18636_s17 = sld [smem:[%s24812_s0 + %s21475_s14]]  }
0x3156   :  { %16865 = vrot.lane.b32.xlu1 %v24374_v49, %s21436_s16 }
0x3158   :  { %16874 = vrot.lane.b32.xlu0 %v24374_v49, %s21441_s21 }
0x315a   :  { %16871 = vrot.lane.b32.xlu1 %v24374_v49, %s21438_s18  ;;  %s21476_s18 = smov 33  }
0x315b   :  { %s24738_s21 = sld [smem:[%s24812_s0 + %s21476_s18]]  }
0x315c   :  { %16810 = vrot.lane.b32.xlu0 %v24570_v32, %s21442_s22 }
0x315e   :  { %16806 = vrot.lane.b32.xlu1 %v24576_v53, %s21445_s25 }
0x3160   :  { %16818 = vrot.lane.b32.xlu0 %v24572_v3, %s21447_s27  ;;  %v16860_v3 = vpop.permute.xlu0 %16859 }
0x3162   :  { %16814 = vrot.lane.b32.xlu1 %v24578_v55, %s21443_s23 }
0x3166   :  { %16822 = vrot.lane.b32.xlu1 %v24583_v31, %s21444_s24  ;;  %v16869_v31 = vpop.permute.xlu0 %16868 }
0x316a   :  { %16826 = vrot.lane.b32.xlu1 %v24574_v1, %s21448_s28 }
0x316e   :  { %16830 = vrot.lane.b32.xlu1 %v24588_v13, %s21446_s26 }
0x3186   :  { %v17543_v49 = vpop.xlane.xlu1 %17542 }
0x3187   :  { %21396 = vrcp.f32 %v17543_v49 }
0x318a   :  { %v17549_v32 = vpop.xlane.xlu1 %17548 }
0x318b   :  { %21398 = vrcp.f32 %v17549_v32 }
0x3191   :  { %v21397_v53 = vpop.eup %21396 }
0x3192   :  { %v17573_v39 = vmul.f32 %v21397_v53, %v24612_v61 }
0x3194   :  { %20551 = vmatmul.mubr.msk.f32.vlgmr.msra.gmra.mrb[218].mxu1 %vm309_vm2, %v17573_v39 }
0x3195   :  { %v21399_v55 = vpop.eup %21398  ;;  %20559 = vmatpush3.msra.mxu1 %v16860_v3  ;;  %20560 = vmatprep.mubr.msk.f32.mxu1 %vm21435_vm1, %v21431_v0 }
0x3196   :  { %v17575_v1 = vmul.f32 %v21399_v55, %v24616_v15  ;;  %20568 = vmatprep.subr.mxu1 %v21431_v0 }
0x3198   :  { %20561 = vmatmul.mubr.msk.f32.vlgmr.msra.gmra.mrb[220].mxu1 %vm309_vm2, %v17575_v1 }
0x3199   :  { %20570 = vmatprep.mubr.msk.f32.mxu1 %vm21435_vm1, %v21431_v0 }
0x31c2   :  { %v17546_v13 = vpop.xlane.xlu0 %17545 }
0x31c3   :  { %21400 = vrcp.f32 %v17546_v13 }
0x31c6   :  { %v17555_v20 = vpop.xlane.xlu1 %17554 }
0x31c7   :  { %v17552_v17 = vpop.xlane.xlu0 %17551 }
0x31c8   :  { %21402 = vrcp.f32 %v17552_v17 }
0x31c9   :  { %21404 = vrcp.f32 %v17555_v20 }
0x31ca   :  { %v17561_v41 = vpop.xlane.xlu1 %17560 }
0x31cb   :  { %v17558_v38 = vpop.xlane.xlu0 %17557 }
0x31cc   :  { %21406 = vrcp.f32 %v17558_v38 }
0x31cd   :  { %v21401_v57 = vpop.eup %21400  ;;  %21408 = vrcp.f32 %v17561_v41 }
0x31ce   :  { %v17574_v10 = vmul.f32 %v21401_v57, %v21385_v54  ;;  %v16857_v21 = vpop.permute.xlu1 %16856 }
0x31cf   :  { %v17564_v34 = vpop.xlane.xlu0 %17563  ;;  %20554 = vmatpush3.msra.mxu0 %v16857_v21 }
0x31d0   :  { %21410 = vrcp.f32 %v17564_v34  ;;  %20556 = vmatmul.mubr.msk.f32.vlgmr.msra.gmra.mrb[198].mxu0 %vm309_vm2, %v17574_v10  ;;  %20563 = vmatprep.subr.mxu0 %v21431_v0 }
0x31d1   :  { %20565 = vmatprep.mubr.msk.f32.mxu0 %vm21435_vm1, %v21431_v0 }
0x31d2   :  { %v21403_v46 = vpop.eup %21402  ;;  %v16863_v26 = vpop.permute.xlu1 %16862 }
0x31d3   :  { %v21405_v5 = vpop.eup %21404  ;;  %v17576_v43 = vmul.f32 %v21403_v46, %v24623_v51  ;;  %20564 = vmatpush3.msra.mxu0 %v16863_v26  ;;  %v16875_v56 = vpop.permute.xlu0 %16874 }
0x31d4   :  { %20573 = vmatprep.subr.mxu0 %v21431_v0  ;;  %v17577_v47 = vmul.f32 %v21405_v5, %v24621_v23 }
0x31d5   :  { %20566 = vmatmul.mubr.msk.f32.vlgmr.msra.gmra.mrb[200].mxu0 %vm309_vm2, %v17576_v43 }
0x31d6   :  { %v21407_v62 = vpop.eup %21406  ;;  %20574 = vmatpush3.msra.mxu0 %v16869_v31  ;;  %v16866_v61 = vpop.permute.xlu1 %16865  ;;  %20575 = vmatprep.mubr.msk.f32.mxu0 %vm21435_vm1, %v21431_v0 }
0x31d7   :  { %v21409_v9 = vpop.eup %21408  ;;  %v17578_v15 = vmul.f32 %v21407_v62, %v24631_v44  ;;  %20569 = vmatpush3.msra.mxu1 %v16866_v61  ;;  %20583 = vmatprep.subr.mxu0 %v21431_v0  ;;  %v16811_v63 = vpop.permute.xlu0 %16810 }
0x31d8   :  { %20571 = vmatmul.mubr.msk.f32.vlgmr.msra.gmra.mrb[222].mxu1 %vm309_vm2, %v17577_v47  ;;  %20578 = vmatprep.subr.mxu1 %v21431_v0  ;;  %v17579_v35 = vmul.f32 %v21409_v9, %v24629_v16  ;;  %v18227_v9 = vld [vmem:[%s18636_s17 + $0x8] sm:$0xff] }
0x31d9   :  { %20576 = vmatmul.mubr.msk.f32.vlgmr.msra.gmra.mrb[202].mxu0 %vm309_vm2, %v17578_v15  ;;  %20580 = vmatprep.mubr.msk.f32.mxu1 %vm21435_vm1, %v21431_v0  ;;  %v18229_v15 = vld [vmem:[%s18636_s17 + $0x18] sm:$0xff] }
0x31da   :  { %v21411_v33 = vpop.eup %21410  ;;  %20584 = vmatpush3.msra.mxu0 %v16875_v56  ;;  %v16872_v59 = vpop.permute.xlu1 %16871  ;;  %20585 = vmatprep.mubr.msk.f32.mxu0 %vm21435_vm1, %v21431_v0  ;;  %v20879_v56 = vpack.c.bf16 %v18229_v15, %v18227_v9  ;;  %v18350_v9 = vld [vmem:[%s24738_s21 + $0x48] sm:$0xff]  ;;  %v18367_v15 = vld [vmem:[%s24738_s21 + $0xd0] sm:$0xff] }
0x31db   :  { %v17580_v19 = vmul.f32 %v21411_v33, %v24637_v4  ;;  %20579 = vmatpush3.msra.mxu1 %v16872_v59  ;;  %v16819_v4 = vpop.permute.xlu0 %16818  ;;  %v18226_v33 = vld [vmem:[%s18636_s17] sm:$0xff] }
0x31dc   :  { %20581 = vmatmul.mubr.msk.f32.vlgmr.msra.gmra.mrb[224].mxu1 %vm309_vm2, %v17579_v35  ;;  %v18228_v35 = vld [vmem:[%s18636_s17 + $0x10] sm:$0xff]  ;;  %20880 = vmatprep.subr.bf16.mxu1 %v20879_v56  ;;  %v18368_v56 = vld [vmem:[%s24738_s21 + $0xd8] sm:$0xff] }
0x31dd   :  { %20586 = vmatmul.mubr.msk.f32.vlgmr.msra.gmra.mrb[204].mxu0 %vm309_vm2, %v17580_v19  ;;  %18324 = vmatprep.mubr.f32.mxu1 %v21431_v0  ;;  %v20881_v59 = vpack.c.bf16 %v18228_v35, %v18226_v33  ;;  %v18231_v19 = vld [vmem:[%s18636_s17 + $0x28] sm:$0xff]  ;;  %v20915_v35 = vpack.c.bf16 %v18368_v56, %v18367_v15 }
0x31de   :  { %v16807_v23 = vpop.permute.xlu1 %16806 }
0x31df   :  { %v16833_v16 = vsel %vm309_vm2, %v24568_v30, %v16807_v23  ;;  %20882 = vmatpush1.bf16.msra.mxu1 %v20881_v59  ;;  %v18351_v59 = vld [vmem:[%s24738_s21 + $0x50] sm:$0xff] }
0x31e0   :  { %v16834_v25 = vsel %vm1617_vm3, %v16833_v16, %v16811_v63 }
0x31e2   :  { %v16815_v51 = vpop.permute.xlu1 %16814 }
0x31e3   :  { %v16835_v37 = vsel %vm1619_vm4, %v16834_v25, %v16815_v51  ;;  %v18357_v25 = vld [vmem:[%s24738_s21 + $0x80] sm:$0xff] }
0x31e4   :  { %v16836_v28 = vsel %vm1621_vm5, %v16835_v37, %v16819_v4  ;;  %v18358_v37 = vld [vmem:[%s24738_s21 + $0x88] sm:$0xff]  ;;  %v18341_v4 = vld [vmem:[%s24738_s21] sm:$0xff] }
0x31e6   :  { %v16823_v48 = vpop.permute.xlu1 %16822 }
0x31e7   :  { %v16837_v32 = vsel %vm1623_vm6, %v16836_v28, %v16823_v48  ;;  %v20895_v28 = vpack.c.bf16 %v18358_v37, %v18357_v25 }
0x31e9   :  { %20896 = vmatprep.subr.bf16.mxu0 %v20895_v28 }
0x31ea   :  { %v16827_v44 = vpop.permute.xlu1 %16826 }
0x31eb   :  { %v16838_v53 = vsel %vm1625_vm7, %v16837_v32, %v16827_v44  ;;  %v18359_v32 = vld [vmem:[%s24738_s21 + $0x90] sm:$0xff] }
0x31ee   :  { %v16831_v49 = vpop.permute.xlu1 %16830 }
0x31ef   :  { %v16839_v39 = vsel %vm1627_vm8, %v16838_v53, %v16831_v49  ;;  %v18342_v49 = vld [vmem:[%s24738_s21 + $0x8] sm:$0xff]  ;;  %v18360_v53 = vld [vmem:[%s24738_s21 + $0x98] sm:$0xff] }
0x31f0   :  { %v18200_v3 = vsel %vm186_vm0, %v16839_v39, 0.0 }
0x3267   :  { %v17650_v8 = vpop.f32.mrb[218].mxu1 }
0x3268   :  { %v20552_v22 = vpop.f32.mrb[219].mxu1 }
0x326b   :  { %v17796_v11 = vpop.f32.mrb[220].mxu1 }
0x326c   :  { %18170 = vrot.lane.b32.xlu0 %v17796_v11, %s21442_s22  ;;  %v20562_v24 = vpop.f32.mrb[221].mxu1  ;;  %v18230_v11 = vld [vmem:[%s18636_s17 + $0x20] sm:$0xff] }
0x326d   :  { %v18232_v24 = vld [vmem:[%s18636_s17 + $0x30] sm:$0xff] }
0x32a3   :  { %v17723_v6 = vpop.f32.mrb[198].mxu0 }
0x32a4   :  { %18166 = vrot.lane.b32.xlu0 %v17723_v6, %s21445_s25  ;;  %v20557_v50 = vpop.f32.mrb[199].mxu0  ;;  %v20885_v6 = vpack.c.bf16 %v18232_v24, %v18230_v11  ;;  %s21477_s25 = smov 34  }
0x32a5   :  { %v18235_v50 = vld [vmem:[%s18636_s17 + $0x48] sm:$0xff] }
0x32a8   :  { %v17869_v36 = vpop.f32.mrb[200].mxu0 }
0x32a9   :  { %18174 = vrot.lane.b32.xlu0 %v17869_v36, %s21443_s23  ;;  %v20567_v7 = vpop.f32.mrb[201].mxu0  ;;  %v18237_v36 = vld [vmem:[%s18636_s17 + $0x58] sm:$0xff] }
0x32aa   :  { %v20887_v7 = vpack.c.bf16 %v18237_v36, %v18235_v50 }
0x32ab   :  { %v17942_v60 = vpop.f32.mrb[222].mxu1 }
0x32ac   :  { %v18015_v58 = vpop.f32.mrb[202].mxu0  ;;  %18178 = vrot.lane.b32.xlu1 %v17942_v60, %s21447_s27  ;;  %v20572_v2 = vpop.f32.mrb[223].mxu1  ;;  %v18234_v60 = vld [vmem:[%s18636_s17 + $0x40] sm:$0xff] }
0x32ad   :  { %18182 = vrot.lane.b32.xlu0 %v18015_v58, %s21444_s24  ;;  %v20577_v45 = vpop.f32.mrb[203].mxu0  ;;  %v18236_v58 = vld [vmem:[%s18636_s17 + $0x50] sm:$0xff]  ;;  %s18637_s24 = sld [smem:[%s24812_s0 + %s21447_s27]]  }
0x32ae   :  { %v20889_v2 = vpack.c.bf16 %v18236_v58, %v18234_v60  ;;  %v18239_v45 = vld [vmem:[%s18636_s17 + $0x68] sm:$0xff] }
0x32af   :  { %v18088_v14 = vpop.f32.mrb[224].mxu1 }
0x32b0   :  { %v18161_v54 = vpop.f32.mrb[204].mxu0  ;;  %18186 = vrot.lane.b32.xlu1 %v18088_v14, %s21448_s28  ;;  %v20582_v40 = vpop.f32.mrb[225].mxu1  ;;  %v18241_v14 = vld [vmem:[%s18636_s17 + $0x78] sm:$0xff]  ;;  %s18639_s28 = sld [smem:[%s24812_s0 + %s21477_s25]]  }
0x32b1   :  { %18190 = vrot.lane.b32.xlu0 %v18161_v54, %s21446_s26  ;;  %v20587_v42 = vpop.f32.mrb[205].mxu0  ;;  %v20891_v54 = vpack.c.bf16 %v18241_v14, %v18239_v45  ;;  %v18238_v40 = vld [vmem:[%s18636_s17 + $0x60] sm:$0xff] }
0x32b2   :  { %v18240_v42 = vld [vmem:[%s18636_s17 + $0x70] sm:$0xff] }
0x32b3   :  { %v20893_v23 = vpack.c.bf16 %v18240_v42, %v18238_v40  ;;  %v18371_v42 = vld [vmem:[%s24738_s21 + $0xf0] sm:$0xff] }
0x32d4   :  { %18201 = vadd.xlane.f32.xlu1 %v18200_v3  ;;  %v20899_v3 = vpack.c.bf16 %v18360_v53, %v18359_v32 }
0x32de   :  { %v18171_v55 = vpop.permute.xlu0 %18170 }
0x3316   :  { %v18167_v30 = vpop.permute.xlu0 %18166 }
0x3317   :  { %v18193_v1 = vsel %vm309_vm2, %v17650_v8, %v18167_v30  ;;  %v18233_v8 = vld [vmem:[%s18636_s17 + $0x38] sm:$0xff] }
0x3318   :  { %v18194_v13 = vsel %vm1617_vm3, %v18193_v1, %v18171_v55  ;;  %v20883_v22 = vpack.c.bf16 %v18233_v8, %v18231_v19  ;;  %v18343_v55 = vld [vmem:[%s24738_s21 + $0x10] sm:$0xff]  ;;  %v18344_v30 = vld [vmem:[%s24738_s21 + $0x18] sm:$0xff]  ;;  %v18361_v1 = vld [vmem:[%s24738_s21 + $0xa0] sm:$0xff] }
0x3319   :  { %v18352_v19 = vld [vmem:[%s24738_s21 + $0x58] sm:$0xff]  ;;  %v18369_v8 = vld [vmem:[%s24738_s21 + $0xe0] sm:$0xff] }
0x331a   :  { %20884 = vmatprep.subr.bf16.mxu1 %v20883_v22  ;;  %v18370_v22 = vld [vmem:[%s24738_s21 + $0xe8] sm:$0xff]  ;;  %v20917_v11 = vpack.c.bf16 %v18352_v19, %v18351_v59  ;;  %v18483_v19 = vld [vmem:[%s18640_s6 + $0x10] sm:$0xff] }
0x331b   :  { %v18175_v31 = vpop.permute.xlu0 %18174  ;;  %20886 = vmatpush1.bf16.msra.mxu1 %v20885_v6  ;;  %v20919_v6 = vpack.c.bf16 %v18370_v22, %v18369_v8  ;;  %v18484_v8 = vld [vmem:[%s18640_s6 + $0x18] sm:$0xff] }
0x331c   :  { %v18195_v20 = vsel %vm1619_vm4, %v18194_v13, %v18175_v31  ;;  %20888 = vmatprep.subr.bf16.mxu1 %v20887_v7  ;;  %v18362_v31 = vld [vmem:[%s24738_s21 + $0xa8] sm:$0xff]  ;;  %v20901_v13 = vpack.c.bf16 %v18344_v30, %v18343_v55  ;;  %v20931_v22 = vpack.c.bf16 %v18484_v8, %v18483_v19 }
0x331e   :  { %v18179_v17 = vpop.permute.xlu1 %18178 }
0x331f   :  { %v18196_v41 = vsel %vm1621_vm5, %v18195_v20, %v18179_v17  ;;  %v18183_v38 = vpop.permute.xlu0 %18182  ;;  %20890 = vmatpush1.bf16.msra.mxu1 %v20889_v2  ;;  %v20903_v20 = vpack.c.bf16 %v18362_v31, %v18361_v1  ;;  %v18345_v17 = vld [vmem:[%s24738_s21 + $0x20] sm:$0xff] }
0x3320   :  { %v18197_v57 = vsel %vm1623_vm6, %v18196_v41, %v18183_v38  ;;  %20892 = vmatprep.subr.bf16.mxu1 %v20891_v54  ;;  %v18346_v41 = vld [vmem:[%s24738_s21 + $0x28] sm:$0xff]  ;;  %v18363_v38 = vld [vmem:[%s24738_s21 + $0xb0] sm:$0xff] }
0x3322   :  { %v18187_v10 = vpop.permute.xlu1 %18186 }
0x3323   :  { %v18198_v21 = vsel %vm1625_vm7, %v18197_v57, %v18187_v10  ;;  %v18191_v34 = vpop.permute.xlu0 %18190  ;;  %20894 = vmatpush1.bf16.msra.mxu1 %v20893_v23  ;;  %v18364_v57 = vld [vmem:[%s24738_s21 + $0xb8] sm:$0xff]  ;;  %v20905_v10 = vpack.c.bf16 %v18346_v41, %v18345_v17 }
0x3324   :  { %v18199_v46 = vsel %vm1627_vm8, %v18198_v21, %v18191_v34  ;;  %v20907_v21 = vpack.c.bf16 %v18364_v57, %v18363_v38  ;;  %v18347_v34 = vld [vmem:[%s24738_s21 + $0x30] sm:$0xff]  ;;  %v18372_v23 = vld [vmem:[%s24738_s21 + $0xf8] sm:$0xff] }
0x3325   :  { %v18203_v26 = vsel %vm186_vm0, %v18199_v46, 0.0 }
0x3326   :  { %18204 = vadd.xlane.f32.xlu0 %v18203_v26  ;;  %v18365_v26 = vld [vmem:[%s24738_s21 + $0xc0] sm:$0xff] }
0x3361   :  { %v18202_v5 = vpop.xlane.xlu1 %18201 }
0x3362   :  { %v18206_v43 = vmul.f32 0.015625, %v18202_v5  ;;  %v18366_v5 = vld [vmem:[%s24738_s21 + $0xc8] sm:$0xff] }
0x3364   :  { %v24722_v62 = vsub.f32 %v16839_v39, %v18206_v43  ;;  %v20897_v39 = vpack.c.bf16 %v18342_v49, %v18341_v4 }
0x3366   :  { %v18210_v47 = vmul.f32 %v24722_v62, %v24722_v62  ;;  %20898 = vmatpush3.bf16.msra.mxu0 %v20897_v39 }
0x3367   :  { %20900 = vmatprep.subr.bf16.mxu0 %v20899_v3 }
0x3368   :  { %v18212_v61 = vsel %vm186_vm0, %v18210_v47, 0.0  ;;  %v20911_v47 = vpack.c.bf16 %v18366_v5, %v18365_v26 }
0x3369   :  { %18213 = vadd.xlane.f32.xlu0 %v18212_v61  ;;  %v18349_v61 = vld [vmem:[%s24738_s21 + $0x40] sm:$0xff] }
0x336a   :  { %20902 = vmatpush3.bf16.msra.mxu0 %v20901_v13  ;;  %v20913_v33 = vpack.c.bf16 %v18350_v9, %v18349_v61 }
0x336b   :  { %20904 = vmatprep.subr.bf16.mxu0 %v20903_v20 }
0x336e   :  { %20906 = vmatpush3.bf16.msra.mxu0 %v20905_v10 }
0x336f   :  { %20908 = vmatprep.subr.bf16.mxu0 %v20907_v21 }
0x33b3   :  { %v18205_v51 = vpop.xlane.xlu0 %18204 }
0x33b4   :  { %v18207_v48 = vmul.f32 0.015625, %v18205_v51  ;;  %v18355_v51 = vld [vmem:[%s24738_s21 + $0x70] sm:$0xff] }
0x33b6   :  { %v24730_v63 = vsub.f32 %v18199_v46, %v18207_v48  ;;  %v18348_v46 = vld [vmem:[%s24738_s21 + $0x38] sm:$0xff] }
0x33b7   :  { %v20909_v43 = vpack.c.bf16 %v18348_v46, %v18347_v34  ;;  %v18356_v48 = vld [vmem:[%s24738_s21 + $0x78] sm:$0xff] }
0x33b8   :  { %v18211_v16 = vmul.f32 %v24730_v63, %v24730_v63 }
0x33b9   :  { %20910 = vmatpush3.bf16.msra.mxu0 %v20909_v43 }
0x33ba   :  { %v18215_v44 = vsel %vm186_vm0, %v18211_v16, 0.0  ;;  %20912 = vmatprep.subr.bf16.mxu0 %v20911_v47  ;;  %v20925_v16 = vpack.c.bf16 %v18356_v48, %v18355_v51  ;;  %v18578_v51 = vand.u32 127, %v176_v27  ;;  %v18963_v48 = vld [vmem:[%s18641_s12] ss:$0 sm:$0xff] }
0x33bb   :  { %18216 = vadd.xlane.f32.xlu1 %v18215_v44 }
0x33bc   :  { %vm18579_vm13 = vcmp.lt.s32.totalorder %v18578_v51, 100 }
0x33bd   :  { %20914 = vmatpush3.bf16.msra.mxu0 %v20913_v33  ;;  %v18481_v33 = vld [vmem:[%s18640_s6] sm:$0xff] }
0x33be   :  { %20916 = vmatprep.subr.bf16.mxu0 %v20915_v35  ;;  %v18482_v35 = vld [vmem:[%s18640_s6 + $0x8] sm:$0xff] }
0x33bf   :  { %v20927_v59 = vpack.c.bf16 %v18482_v35, %v18481_v33 }
0x33c1   :  { %20918 = vmatpush3.bf16.msra.mxu0 %v20917_v11  ;;  %20928 = vmatprep.subr.bf16.mxu1 %v20927_v59  ;;  %v18485_v11 = vld [vmem:[%s18640_s6 + $0x20] sm:$0xff] }
0x33c2   :  { %20920 = vmatprep.subr.bf16.mxu0 %v20919_v6 }
0x33f6   :  { %v18214_v24 = vpop.xlane.xlu0 %18213 }
0x33f7   :  { %v18218_v50 = vmul.f32 0.015873017, %v18214_v24  ;;  %v18486_v24 = vld [vmem:[%s18640_s6 + $0x28] sm:$0xff] }
0x33f8   :  { %v20935_v6 = vpack.c.bf16 %v18486_v24, %v18485_v11 }
0x33f9   :  { %21412 = vrsqrt.f32 %v18218_v50  ;;  %v18487_v50 = vld [vmem:[%s18640_s6 + $0x30] sm:$0xff] }
0x3403   :  { %v21413_v36 = vpop.eup %21412 }
0x3404   :  { %v18222_v7 = vmul.f32 %v21413_v36, %v24722_v62  ;;  %v18354_v62 = vld [vmem:[%s24738_s21 + $0x68] sm:$0xff]  ;;  %v18488_v36 = vld [vmem:[%s18640_s6 + $0x38] sm:$0xff] }
0x3406   :  { %v24768_v60 = vadd.f32 %v18222_v7, %v24307_v18  ;;  %v18353_v18 = vld [vmem:[%s24738_s21 + $0x60] sm:$0xff]  ;;  %v20939_v7 = vpack.c.bf16 %v18488_v36, %v18487_v50 }
0x3407   :  { %v20921_v40 = vpack.c.bf16 %v18354_v62, %v18353_v18 }
0x3408   :  { %18960 = vmatmul.mubr.msk.f32.vlgmr.msra.gmra.mrb[226].mxu1 %vm186_vm0, %v24768_v60 }
0x3409   :  { %18330 = vmatprep.mubr.f32.mxu1 %v21431_v0  ;;  %20922 = vmatpush3.bf16.msra.mxu0 %v20921_v40  ;;  %v20923_v0 = vpack.c.bf16 %v18372_v23, %v18371_v42 }
0x340a   :  { %20930 = vmatpush3.bf16.msra.mxu1 %v20927_v59 }
0x340b   :  { %20924 = vmatprep.subr.bf16.mxu0 %v20923_v0  ;;  %20932 = vmatprep.subr.bf16.mxu1 %v20931_v22 }
0x340d   :  { %20926 = vmatpush3.bf16.msra.mxu0 %v20925_v16 }
0x340e   :  { %20934 = vmatpush3.bf16.msra.mxu1 %v20931_v22 }
0x340f   :  { %20936 = vmatprep.subr.bf16.mxu1 %v20935_v6 }
0x3412   :  { %20938 = vmatpush3.bf16.msra.mxu1 %v20935_v6 }
0x3413   :  { %20940 = vmatprep.subr.bf16.mxu1 %v20939_v7 }
0x3416   :  { %20942 = vmatpush3.bf16.msra.mxu1 %v20939_v7 }
0x3448   :  { %v18217_v58 = vpop.xlane.xlu1 %18216 }
0x3449   :  { %v18219_v2 = vmul.f32 0.015873017, %v18217_v58 }
0x344b   :  { %21414 = vrsqrt.f32 %v18219_v2 }
0x3455   :  { %v21415_v45 = vpop.eup %21414 }
0x3456   :  { %v18223_v14 = vmul.f32 %v21415_v45, %v24730_v63 }
0x3458   :  { %v24775_v54 = vadd.f32 %v18223_v14, %v24324_v12  ;;  %v18242_v12 = vld [vmem:[%s18637_s24] sm:$0x3] }
0x3459   :  { %v18247_v63 = vrot.slane %v18242_v12, %v21527_v29  ;;  %v18251_v44 = vrot.slane %v18242_v12, %v21588_v52  ;;  %v18962_v52 = vld [vmem:[%s18639_s28] ss:$0 sm:$0xff] }
0x345a   :  { %18961 = vmatmul.mubr.msk.f32.gmra.mrb[228].mxu1 %vm186_vm0, %v24775_v54 }
0x34db   :  { %v18326_v25 = vpop.f32.mrb[226].mxu1 }
0x34dc   :  { %v18327_v37 = vadd.f32 %v18326_v25, %v18247_v63  ;;  %v18328_v4 = vpop.f32.mrb[227].mxu1 }
0x34dd   :  { %v18329_v28 = vadd.f32 %v18328_v4, %v18251_v44 }
0x34de   :  { %v18337_v32 = vmax.f32 %v18327_v37, 0.0 }
0x34df   :  { %v18338_v49 = vmax.f32 %v18329_v28, 0.0 }
0x34e1   :  { %18444 = vmatprep.mubr.f32.mxu0 %v18338_v49 }
0x34e2   :  { %18445 = vmatmul.mubr.f32.vlgmr.msra.gmra.mrb[206].mxu0 %v18337_v32 }
0x352d   :  { %v18332_v53 = vpop.f32.mrb[228].mxu1 }
0x352e   :  { %v18333_v39 = vadd.f32 %v18332_v53, %v18247_v63  ;;  %v18334_v3 = vpop.f32.mrb[229].mxu1 }
0x352f   :  { %v18335_v55 = vadd.f32 %v18334_v3, %v18251_v44 }
0x3530   :  { %v18339_v1 = vmax.f32 %v18333_v39, 0.0 }
0x3531   :  { %v18340_v30 = vmax.f32 %v18335_v55, 0.0 }
0x3533   :  { %18449 = vmatprep.mubr.f32.mxu0 %v18340_v30 }
0x3534   :  { %18450 = vmatmul.mubr.f32.gmra.mrb[208].mxu0 %v18339_v1 }
0x35b5   :  { %v19536_v29 = vpop.f32.mrb[206].mxu0 }
0x35b6   :  { %v19537_v31 = vpop.f32.mrb[207].mxu0 }
0x35b7   :  { %v19538_v13 = vadd.f32 %v19537_v31, %v19536_v29 }
0x35b9   :  { %v18447_v20 = vadd.f32 %v19538_v13, %v18962_v52 }
0x35bb   :  { %v18455_v17 = vsel %vm186_vm0, %v18447_v20, 0.0 }
0x35bc   :  { %18456 = vadd.xlane.f32.xlu0 %v18455_v17 }
0x3607   :  { %v19539_v41 = vpop.f32.mrb[208].mxu0 }
0x3608   :  { %v19540_v38 = vpop.f32.mrb[209].mxu0 }
0x3609   :  { %v19541_v57 = vadd.f32 %v19540_v38, %v19539_v41 }
0x360b   :  { %v18452_v10 = vadd.f32 %v19541_v57, %v18962_v52 }
0x360d   :  { %v18458_v21 = vsel %vm186_vm0, %v18452_v10, 0.0 }
0x360e   :  { %18459 = vadd.xlane.f32.xlu1 %v18458_v21 }
0x3649   :  { %v18457_v34 = vpop.xlane.xlu0 %18456 }
0x364a   :  { %v18461_v46 = vmul.f32 0.015625, %v18457_v34 }
0x364c   :  { %v18463_v26 = vsub.f32 %v18447_v20, %v18461_v46 }
0x364e   :  { %v18465_v5 = vmul.f32 %v18463_v26, %v18463_v26 }
0x3650   :  { %v18467_v43 = vsel %vm186_vm0, %v18465_v5, 0.0 }
0x3651   :  { %18468 = vadd.xlane.f32.xlu0 %v18467_v43 }
0x369b   :  { %v18460_v47 = vpop.xlane.xlu1 %18459 }
0x369c   :  { %v18462_v61 = vmul.f32 0.015625, %v18460_v47 }
0x369e   :  { %v18464_v9 = vsub.f32 %v18452_v10, %v18462_v61 }
0x36a0   :  { %v18466_v15 = vmul.f32 %v18464_v9, %v18464_v9 }
0x36a2   :  { %v18470_v56 = vsel %vm186_vm0, %v18466_v15, 0.0 }
0x36a3   :  { %18471 = vadd.xlane.f32.xlu1 %v18470_v56 }
0x36de   :  { %v18469_v58 = vpop.xlane.xlu0 %18468 }
0x36df   :  { %v18473_v2 = vmul.f32 0.015873017, %v18469_v58 }
0x36e1   :  { %21416 = vrsqrt.f32 %v18473_v2 }
0x36eb   :  { %v21417_v45 = vpop.eup %21416 }
0x36ec   :  { %v18477_v14 = vmul.f32 %v21417_v45, %v18463_v26 }
0x36ee   :  { %v18479_v18 = vadd.f32 %v18477_v14, %v24768_v60 }
0x36f0   :  { %20604 = vmatprep.mubr.msk.f32.mxu1 %vm186_vm0, %v18479_v18 }
0x3730   :  { %v18472_v62 = vpop.xlane.xlu1 %18471 }
0x3731   :  { %v18474_v40 = vmul.f32 0.015873017, %v18472_v62 }
0x3733   :  { %21418 = vrsqrt.f32 %v18474_v40 }
0x373d   :  { %v21419_v42 = vpop.eup %21418 }
0x373e   :  { %v18478_v23 = vmul.f32 %v21419_v42, %v18464_v9 }
0x3740   :  { %v18480_v0 = vadd.f32 %v18478_v23, %v24775_v54 }
0x3742   :  { %20605 = vmatmul.mubr.msk.f32.vlgmr.msra.gmra.mrb[230].mxu1 %vm186_vm0, %v18480_v0 }
0x3815   :  { %v20606_v60 = vpop.f32.mrb[230].mxu1 }
0x3816   :  { %v18574_v16 = vadd.f32 %v20606_v60, %v18963_v48  ;;  %v18568_v12 = vpop.f32.mrb[231].mxu1 }
0x3817   :  { %v18569_v63 = vadd.f32 %v18963_v48, %v18568_v12 }
0x3818   :  { %v18581_v44 = vsel %vm18579_vm13, %v18574_v16, -inf }
0x3819   :  { %18584 = vmax.xlane.f32.xlu1 %v18581_v44  ;;  %v18580_v25 = vsel %vm18579_vm13, %v18569_v63, -inf }
0x381a   :  { %18582 = vmax.xlane.f32.xlu0 %v18580_v25 }
0x38a6   :  { %v18585_v54 = vpop.xlane.xlu1 %18584 }
0x38a7   :  { %v18587_v37 = vsub.f32 %v18581_v44, %v18585_v54  ;;  %v18583_v4 = vpop.xlane.xlu0 %18582 }
0x38a8   :  { %v18586_v28 = vsub.f32 %v18580_v25, %v18583_v4 }
0x38a9   :  { %v18590_v49 = vmul.f32 1.442695, %v18587_v37 }
0x38aa   :  { %v18588_v32 = vmul.f32 1.442695, %v18586_v28 }
0x38ab   :  { %21420 = vpow2.f32 %v18590_v49 }
0x38ac   :  { %21422 = vpow2.f32 %v18588_v32 }
0x38b5   :  { %v21421_v53 = vpop.eup %21420 }
0x38b6   :  { %v21423_v27 = vpop.eup %21422  ;;  %18594 = vadd.xlane.f32.xlu1 %v21421_v53 }
0x38b7   :  { %18592 = vadd.xlane.f32.xlu0 %v21423_v27 }
0x3943   :  { %v18595_v39 = vpop.xlane.xlu1 %18594 }
0x3944   :  { %21424 = vrcp.f32 %v18595_v39  ;;  %v18593_v3 = vpop.xlane.xlu0 %18592 }
0x3945   :  { %21426 = vrcp.f32 %v18593_v3 }
0x394e   :  { %v21425_v55 = vpop.eup %21424 }
0x394f   :  { %v21427_v30 = vpop.eup %21426  ;;  %v18599_v1 = vmul.f32 %v21425_v55, %v21421_v53 }
0x3950   :  { %v18597_v29 = vmul.f32 %v21427_v30, %v21423_v27 }
0x3951   :  { %18601 = vst [vmem:[%s18642_s1 + $0x8] sm:$0xff] %v18599_v1 }
0x3952   :  { %18600 = vst [vmem:[%s18642_s1] sm:$0xff] %v18597_v29 }

</bundles_post_ra>
